<compile_context>
chip_gen: v6e
topology: v6e:2x2x1
jax: 0.10.0
libtpu: 0.0.40
codegen_flags: <defaults>
</compile_context>

<pallas_src>
import functools

import jax
import jax.numpy as jnp
from jax.experimental import pallas as pl
from jax.experimental.pallas import tpu as pltpu


def _round_up(x, m):
    return ((x + m - 1) // m) * m


def _pick_tile(dim, preferred, align):
    """Largest multiple of `align` that divides `dim` and is <= preferred.
    `dim` is always pre-padded to a multiple of `align`, so this always succeeds."""
    if dim <= preferred:
        return dim
    t = (preferred // align) * align
    while t >= align:
        if dim % t == 0:
            return t
        t -= align
    return dim


# ---------------------------------------------------------------------------
# Generic tiled matmul + bias (hoisted input projection and vocab projection).
# grid = (M tiles, N tiles, K tiles); bf16 operands, f32 accumulator in VMEM.
# ---------------------------------------------------------------------------
def _matmul_bias_kernel(x_ref, w_ref, b_ref, o_ref, acc_ref):
    @pl.when(pl.program_id(2) == 0)
    def _():
        acc_ref[...] = jnp.zeros_like(acc_ref)

    acc_ref[...] += jnp.dot(x_ref[...], w_ref[...],
                            preferred_element_type=jnp.float32)

    @pl.when(pl.program_id(2) == pl.num_programs(2) - 1)
    def _():
        o_ref[...] = (acc_ref[...] + b_ref[...]).astype(o_ref.dtype)


def matmul_bias(x, w, b, *, tm_pref=256, tk_pref=512, tn_pref=512):
    """(M, K) @ (K, N) + (1, N) -> (M, N) f32.  Operands cast to bf16 for the MXU
    (f32 accumulation).  Dims zero-padded to TPU tile alignment so blocks are
    always (8,128)-aligned (no masked lane stores, no full-dim weight tiles)."""
    M, K = x.shape
    K2, N = w.shape
    assert K == K2 and b.shape == (1, N)

    Mp, Kp, Np = _round_up(M, 8), _round_up(K, 128), _round_up(N, 128)
    x = x.astype(jnp.bfloat16)
    w = w.astype(jnp.bfloat16)
    b = b.astype(jnp.float32)
    if (Mp, Kp) != (M, K):
        x = jnp.pad(x, ((0, Mp - M), (0, Kp - K)))
    if (Kp, Np) != (K, N):
        w = jnp.pad(w, ((0, Kp - K), (0, Np - N)))
    if Np != N:
        b = jnp.pad(b, ((0, 0), (0, Np - N)))

    tm = _pick_tile(Mp, tm_pref, 8)
    tk = _pick_tile(Kp, tk_pref, 128)
    tn = _pick_tile(Np, tn_pref, 128)

    # v7x megacore: make sure at least one *parallel* axis has >= 2 blocks so the
    # second TensorCore is not idle at small problem sizes.
    if (Mp // tm) == 1 and (Np // tn) == 1:
        if tn % 256 == 0:
            tn //= 2
        elif tm % 16 == 0:
            tm //= 2

    grid = (Mp // tm, Np // tn, Kp // tk)

    # Explicit scoped-VMEM limit derived from the chosen tiles (double-buffered
    # bf16 inputs, double-buffered f32 output, f32 accumulator) + headroom.
    vmem_bytes = (2 * (tm * tk * 2 + tk * tn * 2 + tn * 4)
                  + 2 * (tm * tn * 4) + tm * tn * 4)
    vmem_limit = max(32 << 20, int(vmem_bytes * 1.5) + (2 << 20))

    out = pl.pallas_call(
        _matmul_bias_kernel,
        out_shape=jax.ShapeDtypeStruct((Mp, Np), jnp.float32),
        grid_spec=pltpu.PrefetchScalarGridSpec(
            num_scalar_prefetch=0,
            grid=grid,
            in_specs=[
                pl.BlockSpec((tm, tk), lambda i, j, k: (i, k)),
                pl.BlockSpec((tk, tn), lambda i, j, k: (k, j)),
                pl.BlockSpec((1, tn), lambda i, j, k: (0, j)),
            ],
            out_specs=pl.BlockSpec((tm, tn), lambda i, j, k: (i, j)),
            scratch_shapes=[pltpu.VMEM((tm, tn), jnp.float32)],
        ),
        compiler_params=pltpu.CompilerParams(
            dimension_semantics=("parallel", "parallel", "arbitrary"),
            vmem_limit_bytes=vmem_limit),
    )(x, w, b)

    if (Mp, Np) != (M, N):
        out = out[:M, :N]
    return out


# ---------------------------------------------------------------------------
# Recurrence: time-chunked streaming kernel.  grid=(S//Tc,), each grid step
# processes Tc timesteps with a statically unrolled inner loop.  h/c persist in
# VMEM scratch; h_seq is emitted batch-major (B, Tc, H) per chunk; final h/c are
# written only on the last chunk.
# ---------------------------------------------------------------------------
def _lstm_recurrence_kernel(pg_ref, wh_ref, h0_ref, c0_ref,
                            hseq_ref, hfin_ref, cfin_ref,
                            h_sc, c_sc, *, chunk, hidden_size):
    t = pl.program_id(0)
    H = hidden_size

    @pl.when(t == 0)
    def _():
        h_sc[...] = h0_ref[...]
        c_sc[...] = c0_ref[...]

    h = h_sc[...]
    c = c_sc[...]
    wh = wh_ref[...]                       # bf16, grid-invariant (hoisted load)

    # Static Python loop over the chunk -> fully unrolled, all indices static,
    # so the LLO scheduler can overlap step s+1's matmul push / pregate load with
    # step s's EUP/VALU tail (the only true serial dependency is h/c).
    for s in range(chunk):
        gates = pg_ref[s] + jnp.dot(h.astype(jnp.bfloat16), wh,
                                    preferred_element_type=jnp.float32)
        i_g = jax.nn.sigmoid(gates[:, 0 * H:1 * H])
        f_g = jax.nn.sigmoid(gates[:, 1 * H:2 * H])
        o_g = jax.nn.sigmoid(gates[:, 2 * H:3 * H])
        c_n = jnp.tanh(gates[:, 3 * H:4 * H])
        c = f_g * c + i_g * c_n
        h = o_g * jnp.tanh(c)
        hseq_ref[:, s, :] = h              # batch-major output, static index

    h_sc[...] = h
    c_sc[...] = c

    @pl.when(t == pl.num_programs(0) - 1)
    def _():
        hfin_ref[...] = h
        cfin_ref[...] = c


def _pick_chunk(seq_len):
    """Timesteps per grid step: whole sequence if short, else a multiple of 8
    (sublane rule for the (B, Tc, H) output block) that divides S."""
    if seq_len <= 16:
        return seq_len
    for tc in (16, 8):
        if seq_len % tc == 0:
            return tc
    return seq_len        # fallback: single chunk (still correct)


def lstm_recurrence(pregates, wh, h0, c0):
    S, B, four_h = pregates.shape
    H = h0.shape[1]
    assert four_h == 4 * H
    tc = _pick_chunk(S)
    n_chunks = S // tc

    wh_bf16 = wh.astype(jnp.bfloat16)
    kernel = functools.partial(_lstm_recurrence_kernel, chunk=tc, hidden_size=H)

    # NOTE: on v7x with large H, Wh/h0/c0 could additionally be single-buffered
    # via pipeline_mode=pl.Buffered(1) (their block index is constant); at these
    # shapes the bf16 cast already keeps the resident weight small.
    vmem_bytes = (2 * (tc * B * 4 * H * 4)     # pregate chunk (f32, double-buffered)
                  + 2 * (H * 4 * H * 2)        # Wh bf16 (double-buffered)
                  + 2 * (B * tc * H * 4)       # h_seq chunk out
                  + 8 * (B * H * 4))           # h0/c0, final h/c, scratch h/c
    vmem_limit = max(32 << 20, int(vmem_bytes * 1.5) + (2 << 20))

    return pl.pallas_call(
        kernel,
        out_shape=(
            jax.ShapeDtypeStruct((B, S, H), jnp.float32),
            jax.ShapeDtypeStruct((B, H), jnp.float32),
            jax.ShapeDtypeStruct((B, H), jnp.float32),
        ),
        grid_spec=pltpu.PrefetchScalarGridSpec(
            num_scalar_prefetch=0,
            grid=(n_chunks,),
            in_specs=[
                pl.BlockSpec((tc, B, 4 * H), lambda t: (t, 0, 0)),   # pregate chunk
                pl.BlockSpec((H, 4 * H), lambda t: (0, 0)),          # Wh (resident)
                pl.BlockSpec((B, H), lambda t: (0, 0)),              # h0
                pl.BlockSpec((B, H), lambda t: (0, 0)),              # c0
            ],
            out_specs=(
                pl.BlockSpec((B, tc, H), lambda t: (0, t, 0)),       # h_seq (batch-major)
                pl.BlockSpec((B, H), lambda t: (0, 0)),              # final h
                pl.BlockSpec((B, H), lambda t: (0, 0)),              # final c
            ),
            scratch_shapes=[
                pltpu.VMEM((B, H), jnp.float32),                     # running h
                pltpu.VMEM((B, H), jnp.float32),                     # running c
            ],
        ),
        compiler_params=pltpu.CompilerParams(
            dimension_semantics=("arbitrary",),                      # time recurrence
            vmem_limit_bytes=vmem_limit),
    )(pregates, wh_bf16, h0, c0)


# ---------------------------------------------------------------------------
# Forward pass wrapper (matches LSTM.forward semantics).
# ---------------------------------------------------------------------------
def lstm_forward(token_ids, hidden_state, cell_state, params):
    """token_ids (B,S) int32; hidden/cell (B,H) f32.
    Returns (logits (B,S,V), h_new (B,H), c_new (B,H))."""
    emb_table = params["embedding"]          # (V, E)
    wx = params["wx"]                        # (E, 4H)
    wh = params["wh"]                        # (H, 4H)
    bx = params["bx"]                        # (1, 4H)
    why = params["why"]                      # (H, V)
    by = params["by"]                        # (1, V)

    B, S = token_ids.shape
    E = emb_table.shape[1]
    H = hidden_state.shape[1]
    V = why.shape[1]

    h0 = hidden_state.astype(jnp.float32)
    c0 = cell_state.astype(jnp.float32)

    # Embedding gather (plain-JAX glue), time-major so the recurrent kernel reads
    # contiguous (Tc, B, 4H) pregate slabs per chunk.
    # TODO(synk): fold this gather into the input-projection pass (scalar-prefetched
    # token ids + pl.Element row gather) to avoid the (S,B,E) HBM round trip.
    emb_tm = jnp.take(emb_table, token_ids.T, axis=0)            # (S, B, E)

    # 1) Hoisted input-path projection: one big bf16 MXU matmul over all S*B rows.
    pregates = matmul_bias(emb_tm.reshape(S * B, E), wx, bx)     # (S*B, 4H) f32
    pregates = pregates.reshape(S, B, 4 * H)

    # 2) Time-chunked recurrence; h_seq comes out batch-major (B, S, H).
    h_seq, h_fin, c_fin = lstm_recurrence(pregates, wh, h0, c0)

    # 3) Vocab projection straight off the batch-major hidden slab -> (B, S, V).
    logits = matmul_bias(h_seq.reshape(B * S, H), why, by).reshape(B, S, V)
    return logits, h_fin, c_fin


# ---------------------------------------------------------------------------
# Parameter init mirroring the PyTorch module (x-path Linears with bias,
# hidden-path Linears bias=False, Why with bias, N(0,1) embedding w/ zero pad row).
# ---------------------------------------------------------------------------
def init_params(key, *, vocab_size, embed_dim, hidden_size, pad_token_id):
    ks = jax.random.split(key, 12)

    def linear_w(k, fan_in, fan_out):
        bound = 1.0 / jnp.sqrt(fan_in)
        # stored as (in, out) == PyTorch weight (out, in) transposed
        return jax.random.uniform(k, (fan_in, fan_out), jnp.float32, -bound, bound)

    def linear_b(k, fan_in, fan_out):
        bound = 1.0 / jnp.sqrt(fan_in)
        return jax.random.uniform(k, (1, fan_out), jnp.float32, -bound, bound)

    H, E, V = hidden_size, embed_dim, vocab_size
    # Gate order: i, f, o, c  (matches the kernels' slicing)
    wxi, wxf, wxo, wxc = (linear_w(ks[i], E, H) for i in range(4))
    whi, whf, who, whc = (linear_w(ks[4 + i], H, H) for i in range(4))
    bxi = linear_b(ks[8], E, H)      # x-path biases (fan_in = input_size = E)
    bxf = linear_b(ks[9], E, H)
    bxo = linear_b(ks[10], E, H)
    bxc = linear_b(ks[11], E, H)
    # hidden-path Linears are bias=False in the PyTorch module -> no bh.

    k_why, k_by, k_emb = jax.random.split(jax.random.fold_in(key, 7), 3)
    why = linear_w(k_why, H, V)
    by = linear_b(k_by, H, V)

    emb = jax.random.normal(k_emb, (V, E), jnp.float32)
    emb = emb.at[pad_token_id].set(0.0)                          # padding_idx row

    return {
        "embedding": emb,
        "wx": jnp.concatenate([wxi, wxf, wxo, wxc], axis=1),     # (E, 4H)
        "wh": jnp.concatenate([whi, whf, who, whc], axis=1),     # (H, 4H)
        "bx": jnp.concatenate([bxi, bxf, bxo, bxc], axis=1),     # (1, 4H)
        "why": why,
        "by": by,
    }


def _reference_forward(token_ids, h, c, params):
    """Pure-JAX f32 reference matching the PyTorch forward semantics."""
    emb = jnp.take(params["embedding"], token_ids, axis=0)       # (B, S, E)
    H = h.shape[1]
    outs = []
    for t in range(token_ids.shape[1]):
        x_t = emb[:, t, :]
        gates = x_t @ params["wx"] + h @ params["wh"] + params["bx"]
        i_g = jax.nn.sigmoid(gates[:, 0 * H:1 * H])
        f_g = jax.nn.sigmoid(gates[:, 1 * H:2 * H])
        o_g = jax.nn.sigmoid(gates[:, 2 * H:3 * H])
        c_n = jnp.tanh(gates[:, 3 * H:4 * H])
        c = f_g * c + i_g * c_n
        h = o_g * jnp.tanh(c)
        outs.append(h @ params["why"] + params["by"])
    return jnp.stack(outs, axis=1), h, c


def _run_case(params, token_ids, h0, c0, atol, rtol):
    ref_logits, ref_h, ref_c = _reference_forward(token_ids, h0, c0, params)
    fwd = jax.jit(lstm_forward)
    logits, h_new, c_new = fwd(token_ids, h0, c0, params)
    jax.block_until_ready((logits, h_new, c_new))
    assert logits.shape == ref_logits.shape
    assert h_new.shape == ref_h.shape and c_new.shape == ref_c.shape
    # Tolerances loosened vs the pure-f32 version: matmul operands are bf16
    # (f32 accumulation), per the performance review.
    assert jnp.allclose(logits, ref_logits, atol=atol, rtol=rtol)
    assert jnp.allclose(h_new, ref_h, atol=atol, rtol=rtol)
    assert jnp.allclose(c_new, ref_c, atol=atol, rtol=2 * rtol)


if __name__ == "__main__":
    # Small, TPU-tile-friendly shapes consistent with the module's defaults
    # (embed=input=128, hidden=256); vocab scaled down from 10000 for the demo.
    BATCH = 8
    EMBED = 128
    HIDDEN = 256
    VOCAB = 512
    PAD = 3

    key = jax.random.PRNGKey(0)
    k_params, k_tok1, k_tok2 = jax.random.split(key, 3)

    params = init_params(k_params, vocab_size=VOCAB, embed_dim=EMBED,
                         hidden_size=HIDDEN, pad_token_id=PAD)

    h0 = jnp.zeros((BATCH, HIDDEN), jnp.float32)
    c0 = jnp.zeros((BATCH, HIDDEN), jnp.float32)

    # Case 1: short sequence (single chunk, grid=(1,)).
    tok1 = jax.random.randint(k_tok1, (BATCH, 8), 0, VOCAB, dtype=jnp.int32)
    _run_case(params, tok1, h0, c0, atol=4e-2, rtol=4e-2)

    # Case 2: longer sequence exercising multiple time chunks (S=24 -> Tc=8, grid=(3,))
    # and the cross-chunk h/c carry in VMEM scratch.
    tok2 = jax.random.randint(k_tok2, (BATCH, 24), 0, VOCAB, dtype=jnp.int32)
    _run_case(params, tok2, h0, c0, atol=5e-2, rtol=5e-2)

    # TODO(synk): predict_next_token / prompt (tokenizer + multinomial sampling)
    # are host-side autoregressive loops and are not implemented as kernels.
    print("KERNEL_OK")
</pallas_src>

<mosaic_0001>
module attributes {stable_mosaic.version = 11 : i64} {
  func.func @_matmul_bias_kernel(%arg0: i32, %arg1: i32, %arg2: i32, %arg3: memref<64x128xbf16, #tpu.memory_space<vmem>>, %arg4: memref<128x512xbf16, #tpu.memory_space<vmem>>, %arg5: memref<1x512xf32, #tpu.memory_space<vmem>>, %arg6: memref<64x512xf32, #tpu.memory_space<vmem>>, %arg7: memref<64x512xf32, #tpu.memory_space<vmem>>) attributes {dimension_semantics = [#tpu.dimension_semantics<parallel>, #tpu.dimension_semantics<parallel>, #tpu.dimension_semantics<arbitrary>], iteration_bounds = array<i64: 1, 2, 1>, scalar_prefetch = 0 : i64, scratch_operands = 1 : i64, tpu.core_type = #tpu.core_type<tc>, window_params = [{transform_indices = @transform_0, window_bounds = array<i64: 64, 128>}, {transform_indices = @transform_1, window_bounds = array<i64: 128, 512>}, {transform_indices = @transform_2, window_bounds = array<i64: 1, 512>}, {transform_indices = @transform_3, window_bounds = array<i64: 64, 512>}]} {
    %c0_i32 = arith.constant 0 : i32
    %0 = arith.cmpi eq, %arg2, %c0_i32 : i32
    %1 = arith.extui %0 : i1 to i32
    %c0_i32_0 = arith.constant 0 : i32
    %2 = arith.cmpi ne, %1, %c0_i32_0 : i32
    scf.if %2 {
      %cst_10 = arith.constant 0.000000e+00 : f32
      %12 = vector.broadcast %cst_10 : f32 to vector<64x512xf32>
      %c0_11 = arith.constant 0 : index
      %c0_12 = arith.constant 0 : index
      %13 = vector.load %arg7[%c0_11, %c0_12] : memref<64x512xf32, #tpu.memory_space<vmem>>, vector<64x512xf32>
      tpu.vector_store %arg7[%c0_11, %c0_12], %12 {strides = array<i32>} : memref<64x512xf32, #tpu.memory_space<vmem>>, vector<64x512xf32>,
    } else {
    }
    %c0 = arith.constant 0 : index
    %c0_1 = arith.constant 0 : index
    %3 = vector.load %arg7[%c0, %c0_1] : memref<64x512xf32, #tpu.memory_space<vmem>>, vector<64x512xf32>
    %c0_2 = arith.constant 0 : index
    %c0_3 = arith.constant 0 : index
    %4 = vector.load %arg3[%c0_2, %c0_3] : memref<64x128xbf16, #tpu.memory_space<vmem>>, vector<64x128xbf16>
    %c0_4 = arith.constant 0 : index
    %c0_5 = arith.constant 0 : index
    %5 = vector.load %arg4[%c0_4, %c0_5] : memref<128x512xbf16, #tpu.memory_space<vmem>>, vector<128x512xbf16>
    %cst = arith.constant dense<0.000000e+00> : vector<64x512xf32>
    %6 = tpu.matmul %4, %5, %cst {dimension_numbers = #tpu.dot_dimension_numbers<[1], [0], [0], [1], [0, 0, 1, 1], [], []>} : vector<64x128xbf16>, vector<128x512xbf16>, vector<64x512xf32> -> vector<64x512xf32>
    %7 = arith.addf %3, %6 : vector<64x512xf32>
    %c0_6 = arith.constant 0 : index
    %c0_7 = arith.constant 0 : index
    %8 = vector.load %arg7[%c0_6, %c0_7] : memref<64x512xf32, #tpu.memory_space<vmem>>, vector<64x512xf32>
    tpu.vector_store %arg7[%c0_6, %c0_7], %7 {strides = array<i32>} : memref<64x512xf32, #tpu.memory_space<vmem>>, vector<64x512xf32>,
    %c0_i32_8 = arith.constant 0 : i32
    %9 = arith.cmpi eq, %arg2, %c0_i32_8 : i32
    %10 = arith.extui %9 : i1 to i32
    %c0_i32_9 = arith.constant 0 : i32
    %11 = arith.cmpi ne, %10, %c0_i32_9 : i32
    scf.if %11 {
      %c0_10 = arith.constant 0 : index
      %c0_11 = arith.constant 0 : index
      %12 = vector.load %arg7[%c0_10, %c0_11] : memref<64x512xf32, #tpu.memory_space<vmem>>, vector<64x512xf32>
      %c0_12 = arith.constant 0 : index
      %c0_13 = arith.constant 0 : index
      %13 = vector.load %arg5[%c0_12, %c0_13] : memref<1x512xf32, #tpu.memory_space<vmem>>, vector<1x512xf32>
      %14 = vector.broadcast %13 : vector<1x512xf32> to vector<64x512xf32>
      %15 = arith.addf %12, %14 : vector<64x512xf32>
      %c0_14 = arith.constant 0 : index
      %c0_15 = arith.constant 0 : index
      %16 = vector.load %arg6[%c0_14, %c0_15] : memref<64x512xf32, #tpu.memory_space<vmem>>, vector<64x512xf32>
      tpu.vector_store %arg6[%c0_14, %c0_15], %15 {strides = array<i32>} : memref<64x512xf32, #tpu.memory_space<vmem>>, vector<64x512xf32>,
    } else {
    }
    return
  }
  func.func @transform_0(%arg0: i32, %arg1: i32, %arg2: i32) -> (i32, i32) {
    %c0_i32 = arith.constant 0 : i32
    return %arg0, %arg2 : i32, i32
  }
  func.func @transform_1(%arg0: i32, %arg1: i32, %arg2: i32) -> (i32, i32) {
    %c0_i32 = arith.constant 0 : i32
    return %arg2, %arg1 : i32, i32
  }
  func.func @transform_2(%arg0: i32, %arg1: i32, %arg2: i32) -> (i32, i32) {
    %c0_i32 = arith.constant 0 : i32
    %c0_i32_0 = arith.constant 0 : i32
    return %c0_i32, %arg1 : i32, i32
  }
  func.func @transform_3(%arg0: i32, %arg1: i32, %arg2: i32) -> (i32, i32) {
    %c0_i32 = arith.constant 0 : i32
    return %arg0, %arg1 : i32, i32
  }
}

module attributes {stable_mosaic.version = 11 : i64} {
  func.func @_lstm_recurrence_kernel(%arg0: i32, %arg1: memref<8x8x1024xf32, #tpu.memory_space<vmem>>, %arg2: memref<256x1024xbf16, #tpu.memory_space<vmem>>, %arg3: memref<8x256xf32, #tpu.memory_space<vmem>>, %arg4: memref<8x256xf32, #tpu.memory_space<vmem>>, %arg5: memref<8x8x256xf32, #tpu.memory_space<vmem>>, %arg6: memref<8x256xf32, #tpu.memory_space<vmem>>, %arg7: memref<8x256xf32, #tpu.memory_space<vmem>>, %arg8: memref<8x256xf32, #tpu.memory_space<vmem>>, %arg9: memref<8x256xf32, #tpu.memory_space<vmem>>) attributes {dimension_semantics = [#tpu.dimension_semantics<arbitrary>], iteration_bounds = array<i64: 1>, scalar_prefetch = 0 : i64, scratch_operands = 2 : i64, tpu.core_type = #tpu.core_type<tc>, window_params = [{transform_indices = @transform_0, window_bounds = array<i64: 8, 8, 1024>}, {pipeline_mode = #tpu.pipeline_mode<synchronous>, transform_indices = @transform_1, window_bounds = array<i64: 256, 1024>}, {pipeline_mode = #tpu.pipeline_mode<synchronous>, transform_indices = @transform_2, window_bounds = array<i64: 8, 256>}, {pipeline_mode = #tpu.pipeline_mode<synchronous>, transform_indices = @transform_3, window_bounds = array<i64: 8, 256>}, {transform_indices = @transform_4, window_bounds = array<i64: 8, 8, 256>}, {pipeline_mode = #tpu.pipeline_mode<synchronous>, transform_indices = @transform_5, window_bounds = array<i64: 8, 256>}, {pipeline_mode = #tpu.pipeline_mode<synchronous>, transform_indices = @transform_6, window_bounds = array<i64: 8, 256>}]} {
    %c0_i32 = arith.constant 0 : i32
    %0 = arith.cmpi eq, %arg0, %c0_i32 : i32
    %1 = arith.extui %0 : i1 to i32
    %c0_i32_0 = arith.constant 0 : i32
    %2 = arith.cmpi ne, %1, %c0_i32_0 : i32
    scf.if %2 {
      %c0_84 = arith.constant 0 : index
      %c0_85 = arith.constant 0 : index
      %275 = vector.load %arg3[%c0_84, %c0_85] : memref<8x256xf32, #tpu.memory_space<vmem>>, vector<8x256xf32>
      %c0_86 = arith.constant 0 : index
      %c0_87 = arith.constant 0 : index
      %276 = vector.load %arg8[%c0_86, %c0_87] : memref<8x256xf32, #tpu.memory_space<vmem>>, vector<8x256xf32>
      tpu.vector_store %arg8[%c0_86, %c0_87], %275 {strides = array<i32>} : memref<8x256xf32, #tpu.memory_space<vmem>>, vector<8x256xf32>,
      %c0_88 = arith.constant 0 : index
      %c0_89 = arith.constant 0 : index
      %277 = vector.load %arg4[%c0_88, %c0_89] : memref<8x256xf32, #tpu.memory_space<vmem>>, vector<8x256xf32>
      %c0_90 = arith.constant 0 : index
      %c0_91 = arith.constant 0 : index
      %278 = vector.load %arg9[%c0_90, %c0_91] : memref<8x256xf32, #tpu.memory_space<vmem>>, vector<8x256xf32>
      tpu.vector_store %arg9[%c0_90, %c0_91], %277 {strides = array<i32>} : memref<8x256xf32, #tpu.memory_space<vmem>>, vector<8x256xf32>,
    } else {
    }
    %c0 = arith.constant 0 : index
    %c0_1 = arith.constant 0 : index
    %3 = vector.load %arg8[%c0, %c0_1] : memref<8x256xf32, #tpu.memory_space<vmem>>, vector<8x256xf32>
    %c0_2 = arith.constant 0 : index
    %c0_3 = arith.constant 0 : index
    %4 = vector.load %arg9[%c0_2, %c0_3] : memref<8x256xf32, #tpu.memory_space<vmem>>, vector<8x256xf32>
    %c0_4 = arith.constant 0 : index
    %c0_5 = arith.constant 0 : index
    %5 = vector.load %arg2[%c0_4, %c0_5] : memref<256x1024xbf16, #tpu.memory_space<vmem>>, vector<256x1024xbf16>
    %c0_6 = arith.constant 0 : index
    %c0_7 = arith.constant 0 : index
    %c0_8 = arith.constant 0 : index
    %6 = vector.load %arg1[%c0_6, %c0_7, %c0_8] : memref<8x8x1024xf32, #tpu.memory_space<vmem>>, vector<1x8x1024xf32>
    %7 = vector.shape_cast %6 : vector<1x8x1024xf32> to vector<8x1024xf32>
    %8 = arith.truncf %3 : vector<8x256xf32> to vector<8x256xbf16>
    %cst = arith.constant dense<0.000000e+00> : vector<8x1024xf32>
    %9 = tpu.matmul %8, %5, %cst {dimension_numbers = #tpu.dot_dimension_numbers<[1], [0], [0], [1], [0, 0, 1, 1], [], []>} : vector<8x256xbf16>, vector<256x1024xbf16>, vector<8x1024xf32> -> vector<8x1024xf32>
    %10 = arith.addf %7, %9 : vector<8x1024xf32>
    %11 = vector.extract_strided_slice %10 {offsets = [0, 0], sizes = [8, 256], strides = [1, 1]} : vector<8x1024xf32> to vector<8x256xf32>
    %12 = arith.negf %11 : vector<8x256xf32>
    %13 = math.exp %12 : vector<8x256xf32>
    %cst_9 = arith.constant 1.000000e+00 : f32
    %14 = vector.broadcast %cst_9 : f32 to vector<8x256xf32>
    %15 = arith.addf %14, %13 : vector<8x256xf32>
    %16 = arith.divf %14, %15 : vector<8x256xf32>
    %17 = vector.extract_strided_slice %10 {offsets = [0, 256], sizes = [8, 256], strides = [1, 1]} : vector<8x1024xf32> to vector<8x256xf32>
    %18 = arith.negf %17 : vector<8x256xf32>
    %19 = math.exp %18 : vector<8x256xf32>
    %cst_10 = arith.constant 1.000000e+00 : f32
    %20 = vector.broadcast %cst_10 : f32 to vector<8x256xf32>
    %21 = arith.addf %20, %19 : vector<8x256xf32>
    %22 = arith.divf %20, %21 : vector<8x256xf32>
    %23 = vector.extract_strided_slice %10 {offsets = [0, 512], sizes = [8, 256], strides = [1, 1]} : vector<8x1024xf32> to vector<8x256xf32>
    %24 = arith.negf %23 : vector<8x256xf32>
    %25 = math.exp %24 : vector<8x256xf32>
    %cst_11 = arith.constant 1.000000e+00 : f32
    %26 = vector.broadcast %cst_11 : f32 to vector<8x256xf32>
    %27 = arith.addf %26, %25 : vector<8x256xf32>
    %28 = arith.divf %26, %27 : vector<8x256xf32>
    %29 = vector.extract_strided_slice %10 {offsets = [0, 768], sizes = [8, 256], strides = [1, 1]} : vector<8x1024xf32> to vector<8x256xf32>
    %30 = math.tanh %29 : vector<8x256xf32>
    %31 = arith.mulf %22, %4 : vector<8x256xf32>
    %32 = arith.mulf %16, %30 : vector<8x256xf32>
    %33 = arith.addf %31, %32 : vector<8x256xf32>
    %34 = math.tanh %33 : vector<8x256xf32>
    %35 = arith.mulf %28, %34 : vector<8x256xf32>
    %c0_12 = arith.constant 0 : index
    %c0_13 = arith.constant 0 : index
    %c0_14 = arith.constant 0 : index
    %36 = vector.load %arg5[%c0_12, %c0_13, %c0_14] : memref<8x8x256xf32, #tpu.memory_space<vmem>>, vector<8x1x256xf32>
    %37 = vector.shape_cast %36 : vector<8x1x256xf32> to vector<8x256xf32>
    %38 = vector.shape_cast %35 : vector<8x256xf32> to vector<8x1x256xf32>
    tpu.vector_store %arg5[%c0_12, %c0_13, %c0_14], %38 {strides = array<i32>} : memref<8x8x256xf32, #tpu.memory_space<vmem>>, vector<8x1x256xf32>,
    %c1 = arith.constant 1 : index
    %c0_15 = arith.constant 0 : index
    %c0_16 = arith.constant 0 : index
    %39 = vector.load %arg1[%c1, %c0_15, %c0_16] : memref<8x8x1024xf32, #tpu.memory_space<vmem>>, vector<1x8x1024xf32>
    %40 = vector.shape_cast %39 : vector<1x8x1024xf32> to vector<8x1024xf32>
    %41 = arith.truncf %35 : vector<8x256xf32> to vector<8x256xbf16>
    %cst_17 = arith.constant dense<0.000000e+00> : vector<8x1024xf32>
    %42 = tpu.matmul %41, %5, %cst_17 {dimension_numbers = #tpu.dot_dimension_numbers<[1], [0], [0], [1], [0, 0, 1, 1], [], []>} : vector<8x256xbf16>, vector<256x1024xbf16>, vector<8x1024xf32> -> vector<8x1024xf32>
    %43 = arith.addf %40, %42 : vector<8x1024xf32>
    %44 = vector.extract_strided_slice %43 {offsets = [0, 0], sizes = [8, 256], strides = [1, 1]} : vector<8x1024xf32> to vector<8x256xf32>
    %45 = arith.negf %44 : vector<8x256xf32>
    %46 = math.exp %45 : vector<8x256xf32>
    %cst_18 = arith.constant 1.000000e+00 : f32
    %47 = vector.broadcast %cst_18 : f32 to vector<8x256xf32>
    %48 = arith.addf %47, %46 : vector<8x256xf32>
    %49 = arith.divf %47, %48 : vector<8x256xf32>
    %50 = vector.extract_strided_slice %43 {offsets = [0, 256], sizes = [8, 256], strides = [1, 1]} : vector<8x1024xf32> to vector<8x256xf32>
    %51 = arith.negf %50 : vector<8x256xf32>
    %52 = math.exp %51 : vector<8x256xf32>
    %cst_19 = arith.constant 1.000000e+00 : f32
    %53 = vector.broadcast %cst_19 : f32 to vector<8x256xf32>
    %54 = arith.addf %53, %52 : vector<8x256xf32>
    %55 = arith.divf %53, %54 : vector<8x256xf32>
    %56 = vector.extract_strided_slice %43 {offsets = [0, 512], sizes = [8, 256], strides = [1, 1]} : vector<8x1024xf32> to vector<8x256xf32>
    %57 = arith.negf %56 : vector<8x256xf32>
    %58 = math.exp %57 : vector<8x256xf32>
    %cst_20 = arith.constant 1.000000e+00 : f32
    %59 = vector.broadcast %cst_20 : f32 to vector<8x256xf32>
    %60 = arith.addf %59, %58 : vector<8x256xf32>
    %61 = arith.divf %59, %60 : vector<8x256xf32>
    %62 = vector.extract_strided_slice %43 {offsets = [0, 768], sizes = [8, 256], strides = [1, 1]} : vector<8x1024xf32> to vector<8x256xf32>
    %63 = math.tanh %62 : vector<8x256xf32>
    %64 = arith.mulf %55, %33 : vector<8x256xf32>
    %65 = arith.mulf %49, %63 : vector<8x256xf32>
    %66 = arith.addf %64, %65 : vector<8x256xf32>
    %67 = math.tanh %66 : vector<8x256xf32>
    %68 = arith.mulf %61, %67 : vector<8x256xf32>
    %c0_21 = arith.constant 0 : index
    %c1_22 = arith.constant 1 : index
    %c0_23 = arith.constant 0 : index
    %69 = vector.load %arg5[%c0_21, %c1_22, %c0_23] : memref<8x8x256xf32, #tpu.memory_space<vmem>>, vector<8x1x256xf32>
    %70 = vector.shape_cast %69 : vector<8x1x256xf32> to vector<8x256xf32>
    %71 = vector.shape_cast %68 : vector<8x256xf32> to vector<8x1x256xf32>
    tpu.vector_store %arg5[%c0_21, %c1_22, %c0_23], %71 {strides = array<i32>} : memref<8x8x256xf32, #tpu.memory_space<vmem>>, vector<8x1x256xf32>,
    %c2 = arith.constant 2 : index
    %c0_24 = arith.constant 0 : index
    %c0_25 = arith.constant 0 : index
    %72 = vector.load %arg1[%c2, %c0_24, %c0_25] : memref<8x8x1024xf32, #tpu.memory_space<vmem>>, vector<1x8x1024xf32>
    %73 = vector.shape_cast %72 : vector<1x8x1024xf32> to vector<8x1024xf32>
    %74 = arith.truncf %68 : vector<8x256xf32> to vector<8x256xbf16>
    %cst_26 = arith.constant dense<0.000000e+00> : vector<8x1024xf32>
    %75 = tpu.matmul %74, %5, %cst_26 {dimension_numbers = #tpu.dot_dimension_numbers<[1], [0], [0], [1], [0, 0, 1, 1], [], []>} : vector<8x256xbf16>, vector<256x1024xbf16>, vector<8x1024xf32> -> vector<8x1024xf32>
    %76 = arith.addf %73, %75 : vector<8x1024xf32>
    %77 = vector.extract_strided_slice %76 {offsets = [0, 0], sizes = [8, 256], strides = [1, 1]} : vector<8x1024xf32> to vector<8x256xf32>
    %78 = arith.negf %77 : vector<8x256xf32>
    %79 = math.exp %78 : vector<8x256xf32>
    %cst_27 = arith.constant 1.000000e+00 : f32
    %80 = vector.broadcast %cst_27 : f32 to vector<8x256xf32>
    %81 = arith.addf %80, %79 : vector<8x256xf32>
    %82 = arith.divf %80, %81 : vector<8x256xf32>
    %83 = vector.extract_strided_slice %76 {offsets = [0, 256], sizes = [8, 256], strides = [1, 1]} : vector<8x1024xf32> to vector<8x256xf32>
    %84 = arith.negf %83 : vector<8x256xf32>
    %85 = math.exp %84 : vector<8x256xf32>
    %cst_28 = arith.constant 1.000000e+00 : f32
    %86 = vector.broadcast %cst_28 : f32 to vector<8x256xf32>
    %87 = arith.addf %86, %85 : vector<8x256xf32>
    %88 = arith.divf %86, %87 : vector<8x256xf32>
    %89 = vector.extract_strided_slice %76 {offsets = [0, 512], sizes = [8, 256], strides = [1, 1]} : vector<8x1024xf32> to vector<8x256xf32>
    %90 = arith.negf %89 : vector<8x256xf32>
    %91 = math.exp %90 : vector<8x256xf32>
    %cst_29 = arith.constant 1.000000e+00 : f32
    %92 = vector.broadcast %cst_29 : f32 to vector<8x256xf32>
    %93 = arith.addf %92, %91 : vector<8x256xf32>
    %94 = arith.divf %92, %93 : vector<8x256xf32>
    %95 = vector.extract_strided_slice %76 {offsets = [0, 768], sizes = [8, 256], strides = [1, 1]} : vector<8x1024xf32> to vector<8x256xf32>
    %96 = math.tanh %95 : vector<8x256xf32>
    %97 = arith.mulf %88, %66 : vector<8x256xf32>
    %98 = arith.mulf %82, %96 : vector<8x256xf32>
    %99 = arith.addf %97, %98 : vector<8x256xf32>
    %100 = math.tanh %99 : vector<8x256xf32>
    %101 = arith.mulf %94, %100 : vector<8x256xf32>
    %c0_30 = arith.constant 0 : index
    %c2_31 = arith.constant 2 : index
    %c0_32 = arith.constant 0 : index
    %102 = vector.load %arg5[%c0_30, %c2_31, %c0_32] : memref<8x8x256xf32, #tpu.memory_space<vmem>>, vector<8x1x256xf32>
    %103 = vector.shape_cast %102 : vector<8x1x256xf32> to vector<8x256xf32>
    %104 = vector.shape_cast %101 : vector<8x256xf32> to vector<8x1x256xf32>
    tpu.vector_store %arg5[%c0_30, %c2_31, %c0_32], %104 {strides = array<i32>} : memref<8x8x256xf32, #tpu.memory_space<vmem>>, vector<8x1x256xf32>,
    %c3 = arith.constant 3 : index
    %c0_33 = arith.constant 0 : index
    %c0_34 = arith.constant 0 : index
    %105 = vector.load %arg1[%c3, %c0_33, %c0_34] : memref<8x8x1024xf32, #tpu.memory_space<vmem>>, vector<1x8x1024xf32>
    %106 = vector.shape_cast %105 : vector<1x8x1024xf32> to vector<8x1024xf32>
    %107 = arith.truncf %101 : vector<8x256xf32> to vector<8x256xbf16>
    %cst_35 = arith.constant dense<0.000000e+00> : vector<8x1024xf32>
    %108 = tpu.matmul %107, %5, %cst_35 {dimension_numbers = #tpu.dot_dimension_numbers<[1], [0], [0], [1], [0, 0, 1, 1], [], []>} : vector<8x256xbf16>, vector<256x1024xbf16>, vector<8x1024xf32> -> vector<8x1024xf32>
    %109 = arith.addf %106, %108 : vector<8x1024xf32>
    %110 = vector.extract_strided_slice %109 {offsets = [0, 0], sizes = [8, 256], strides = [1, 1]} : vector<8x1024xf32> to vector<8x256xf32>
    %111 = arith.negf %110 : vector<8x256xf32>
    %112 = math.exp %111 : vector<8x256xf32>
    %cst_36 = arith.constant 1.000000e+00 : f32
    %113 = vector.broadcast %cst_36 : f32 to vector<8x256xf32>
    %114 = arith.addf %113, %112 : vector<8x256xf32>
    %115 = arith.divf %113, %114 : vector<8x256xf32>
    %116 = vector.extract_strided_slice %109 {offsets = [0, 256], sizes = [8, 256], strides = [1, 1]} : vector<8x1024xf32> to vector<8x256xf32>
    %117 = arith.negf %116 : vector<8x256xf32>
    %118 = math.exp %117 : vector<8x256xf32>
    %cst_37 = arith.constant 1.000000e+00 : f32
    %119 = vector.broadcast %cst_37 : f32 to vector<8x256xf32>
    %120 = arith.addf %119, %118 : vector<8x256xf32>
    %121 = arith.divf %119, %120 : vector<8x256xf32>
    %122 = vector.extract_strided_slice %109 {offsets = [0, 512], sizes = [8, 256], strides = [1, 1]} : vector<8x1024xf32> to vector<8x256xf32>
    %123 = arith.negf %122 : vector<8x256xf32>
    %124 = math.exp %123 : vector<8x256xf32>
    %cst_38 = arith.constant 1.000000e+00 : f32
    %125 = vector.broadcast %cst_38 : f32 to vector<8x256xf32>
    %126 = arith.addf %125, %124 : vector<8x256xf32>
    %127 = arith.divf %125, %126 : vector<8x256xf32>
    %128 = vector.extract_strided_slice %109 {offsets = [0, 768], sizes = [8, 256], strides = [1, 1]} : vector<8x1024xf32> to vector<8x256xf32>
    %129 = math.tanh %128 : vector<8x256xf32>
    %130 = arith.mulf %121, %99 : vector<8x256xf32>
    %131 = arith.mulf %115, %129 : vector<8x256xf32>
    %132 = arith.addf %130, %131 : vector<8x256xf32>
    %133 = math.tanh %132 : vector<8x256xf32>
    %134 = arith.mulf %127, %133 : vector<8x256xf32>
    %c0_39 = arith.constant 0 : index
    %c3_40 = arith.constant 3 : index
    %c0_41 = arith.constant 0 : index
    %135 = vector.load %arg5[%c0_39, %c3_40, %c0_41] : memref<8x8x256xf32, #tpu.memory_space<vmem>>, vector<8x1x256xf32>
    %136 = vector.shape_cast %135 : vector<8x1x256xf32> to vector<8x256xf32>
    %137 = vector.shape_cast %134 : vector<8x256xf32> to vector<8x1x256xf32>
    tpu.vector_store %arg5[%c0_39, %c3_40, %c0_41], %137 {strides = array<i32>} : memref<8x8x256xf32, #tpu.memory_space<vmem>>, vector<8x1x256xf32>,
    %c4 = arith.constant 4 : index
    %c0_42 = arith.constant 0 : index
    %c0_43 = arith.constant 0 : index
    %138 = vector.load %arg1[%c4, %c0_42, %c0_43] : memref<8x8x1024xf32, #tpu.memory_space<vmem>>, vector<1x8x1024xf32>
    %139 = vector.shape_cast %138 : vector<1x8x1024xf32> to vector<8x1024xf32>
    %140 = arith.truncf %134 : vector<8x256xf32> to vector<8x256xbf16>
    %cst_44 = arith.constant dense<0.000000e+00> : vector<8x1024xf32>
    %141 = tpu.matmul %140, %5, %cst_44 {dimension_numbers = #tpu.dot_dimension_numbers<[1], [0], [0], [1], [0, 0, 1, 1], [], []>} : vector<8x256xbf16>, vector<256x1024xbf16>, vector<8x1024xf32> -> vector<8x1024xf32>
    %142 = arith.addf %139, %141 : vector<8x1024xf32>
    %143 = vector.extract_strided_slice %142 {offsets = [0, 0], sizes = [8, 256], strides = [1, 1]} : vector<8x1024xf32> to vector<8x256xf32>
    %144 = arith.negf %143 : vector<8x256xf32>
    %145 = math.exp %144 : vector<8x256xf32>
    %cst_45 = arith.constant 1.000000e+00 : f32
    %146 = vector.broadcast %cst_45 : f32 to vector<8x256xf32>
    %147 = arith.addf %146, %145 : vector<8x256xf32>
    %148 = arith.divf %146, %147 : vector<8x256xf32>
    %149 = vector.extract_strided_slice %142 {offsets = [0, 256], sizes = [8, 256], strides = [1, 1]} : vector<8x1024xf32> to vector<8x256xf32>
    %150 = arith.negf %149 : vector<8x256xf32>
    %151 = math.exp %150 : vector<8x256xf32>
    %cst_46 = arith.constant 1.000000e+00 : f32
    %152 = vector.broadcast %cst_46 : f32 to vector<8x256xf32>
    %153 = arith.addf %152, %151 : vector<8x256xf32>
    %154 = arith.divf %152, %153 : vector<8x256xf32>
    %155 = vector.extract_strided_slice %142 {offsets = [0, 512], sizes = [8, 256], strides = [1, 1]} : vector<8x1024xf32> to vector<8x256xf32>
    %156 = arith.negf %155 : vector<8x256xf32>
    %157 = math.exp %156 : vector<8x256xf32>
    %cst_47 = arith.constant 1.000000e+00 : f32
    %158 = vector.broadcast %cst_47 : f32 to vector<8x256xf32>
    %159 = arith.addf %158, %157 : vector<8x256xf32>
    %160 = arith.divf %158, %159 : vector<8x256xf32>
    %161 = vector.extract_strided_slice %142 {offsets = [0, 768], sizes = [8, 256], strides = [1, 1]} : vector<8x1024xf32> to vector<8x256xf32>
    %162 = math.tanh %161 : vector<8x256xf32>
    %163 = arith.mulf %154, %132 : vector<8x256xf32>
    %164 = arith.mulf %148, %162 : vector<8x256xf32>
    %165 = arith.addf %163, %164 : vector<8x256xf32>
    %166 = math.tanh %165 : vector<8x256xf32>
    %167 = arith.mulf %160, %166 : vector<8x256xf32>
    %c0_48 = arith.constant 0 : index
    %c4_49 = arith.constant 4 : index
    %c0_50 = arith.constant 0 : index
    %168 = vector.load %arg5[%c0_48, %c4_49, %c0_50] : memref<8x8x256xf32, #tpu.memory_space<vmem>>, vector<8x1x256xf32>
    %169 = vector.shape_cast %168 : vector<8x1x256xf32> to vector<8x256xf32>
    %170 = vector.shape_cast %167 : vector<8x256xf32> to vector<8x1x256xf32>
    tpu.vector_store %arg5[%c0_48, %c4_49, %c0_50], %170 {strides = array<i32>} : memref<8x8x256xf32, #tpu.memory_space<vmem>>, vector<8x1x256xf32>,
    %c5 = arith.constant 5 : index
    %c0_51 = arith.constant 0 : index
    %c0_52 = arith.constant 0 : index
    %171 = vector.load %arg1[%c5, %c0_51, %c0_52] : memref<8x8x1024xf32, #tpu.memory_space<vmem>>, vector<1x8x1024xf32>
    %172 = vector.shape_cast %171 : vector<1x8x1024xf32> to vector<8x1024xf32>
    %173 = arith.truncf %167 : vector<8x256xf32> to vector<8x256xbf16>
    %cst_53 = arith.constant dense<0.000000e+00> : vector<8x1024xf32>
    %174 = tpu.matmul %173, %5, %cst_53 {dimension_numbers = #tpu.dot_dimension_numbers<[1], [0], [0], [1], [0, 0, 1, 1], [], []>} : vector<8x256xbf16>, vector<256x1024xbf16>, vector<8x1024xf32> -> vector<8x1024xf32>
    %175 = arith.addf %172, %174 : vector<8x1024xf32>
    %176 = vector.extract_strided_slice %175 {offsets = [0, 0], sizes = [8, 256], strides = [1, 1]} : vector<8x1024xf32> to vector<8x256xf32>
    %177 = arith.negf %176 : vector<8x256xf32>
    %178 = math.exp %177 : vector<8x256xf32>
    %cst_54 = arith.constant 1.000000e+00 : f32
    %179 = vector.broadcast %cst_54 : f32 to vector<8x256xf32>
    %180 = arith.addf %179, %178 : vector<8x256xf32>
    %181 = arith.divf %179, %180 : vector<8x256xf32>
    %182 = vector.extract_strided_slice %175 {offsets = [0, 256], sizes = [8, 256], strides = [1, 1]} : vector<8x1024xf32> to vector<8x256xf32>
    %183 = arith.negf %182 : vector<8x256xf32>
    %184 = math.exp %183 : vector<8x256xf32>
    %cst_55 = arith.constant 1.000000e+00 : f32
    %185 = vector.broadcast %cst_55 : f32 to vector<8x256xf32>
    %186 = arith.addf %185, %184 : vector<8x256xf32>
    %187 = arith.divf %185, %186 : vector<8x256xf32>
    %188 = vector.extract_strided_slice %175 {offsets = [0, 512], sizes = [8, 256], strides = [1, 1]} : vector<8x1024xf32> to vector<8x256xf32>
    %189 = arith.negf %188 : vector<8x256xf32>
    %190 = math.exp %189 : vector<8x256xf32>
    %cst_56 = arith.constant 1.000000e+00 : f32
    %191 = vector.broadcast %cst_56 : f32 to vector<8x256xf32>
    %192 = arith.addf %191, %190 : vector<8x256xf32>
    %193 = arith.divf %191, %192 : vector<8x256xf32>
    %194 = vector.extract_strided_slice %175 {offsets = [0, 768], sizes = [8, 256], strides = [1, 1]} : vector<8x1024xf32> to vector<8x256xf32>
    %195 = math.tanh %194 : vector<8x256xf32>
    %196 = arith.mulf %187, %165 : vector<8x256xf32>
    %197 = arith.mulf %181, %195 : vector<8x256xf32>
    %198 = arith.addf %196, %197 : vector<8x256xf32>
    %199 = math.tanh %198 : vector<8x256xf32>
    %200 = arith.mulf %193, %199 : vector<8x256xf32>
    %c0_57 = arith.constant 0 : index
    %c5_58 = arith.constant 5 : index
    %c0_59 = arith.constant 0 : index
    %201 = vector.load %arg5[%c0_57, %c5_58, %c0_59] : memref<8x8x256xf32, #tpu.memory_space<vmem>>, vector<8x1x256xf32>
    %202 = vector.shape_cast %201 : vector<8x1x256xf32> to vector<8x256xf32>
    %203 = vector.shape_cast %200 : vector<8x256xf32> to vector<8x1x256xf32>
    tpu.vector_store %arg5[%c0_57, %c5_58, %c0_59], %203 {strides = array<i32>} : memref<8x8x256xf32, #tpu.memory_space<vmem>>, vector<8x1x256xf32>,
    %c6 = arith.constant 6 : index
    %c0_60 = arith.constant 0 : index
    %c0_61 = arith.constant 0 : index
    %204 = vector.load %arg1[%c6, %c0_60, %c0_61] : memref<8x8x1024xf32, #tpu.memory_space<vmem>>, vector<1x8x1024xf32>
    %205 = vector.shape_cast %204 : vector<1x8x1024xf32> to vector<8x1024xf32>
    %206 = arith.truncf %200 : vector<8x256xf32> to vector<8x256xbf16>
    %cst_62 = arith.constant dense<0.000000e+00> : vector<8x1024xf32>
    %207 = tpu.matmul %206, %5, %cst_62 {dimension_numbers = #tpu.dot_dimension_numbers<[1], [0], [0], [1], [0, 0, 1, 1], [], []>} : vector<8x256xbf16>, vector<256x1024xbf16>, vector<8x1024xf32> -> vector<8x1024xf32>
    %208 = arith.addf %205, %207 : vector<8x1024xf32>
    %209 = vector.extract_strided_slice %208 {offsets = [0, 0], sizes = [8, 256], strides = [1, 1]} : vector<8x1024xf32> to vector<8x256xf32>
    %210 = arith.negf %209 : vector<8x256xf32>
    %211 = math.exp %210 : vector<8x256xf32>
    %cst_63 = arith.constant 1.000000e+00 : f32
    %212 = vector.broadcast %cst_63 : f32 to vector<8x256xf32>
    %213 = arith.addf %212, %211 : vector<8x256xf32>
    %214 = arith.divf %212, %213 : vector<8x256xf32>
    %215 = vector.extract_strided_slice %208 {offsets = [0, 256], sizes = [8, 256], strides = [1, 1]} : vector<8x1024xf32> to vector<8x256xf32>
    %216 = arith.negf %215 : vector<8x256xf32>
    %217 = math.exp %216 : vector<8x256xf32>
    %cst_64 = arith.constant 1.000000e+00 : f32
    %218 = vector.broadcast %cst_64 : f32 to vector<8x256xf32>
    %219 = arith.addf %218, %217 : vector<8x256xf32>
    %220 = arith.divf %218, %219 : vector<8x256xf32>
    %221 = vector.extract_strided_slice %208 {offsets = [0, 512], sizes = [8, 256], strides = [1, 1]} : vector<8x1024xf32> to vector<8x256xf32>
    %222 = arith.negf %221 : vector<8x256xf32>
    %223 = math.exp %222 : vector<8x256xf32>
    %cst_65 = arith.constant 1.000000e+00 : f32
    %224 = vector.broadcast %cst_65 : f32 to vector<8x256xf32>
    %225 = arith.addf %224, %223 : vector<8x256xf32>
    %226 = arith.divf %224, %225 : vector<8x256xf32>
    %227 = vector.extract_strided_slice %208 {offsets = [0, 768], sizes = [8, 256], strides = [1, 1]} : vector<8x1024xf32> to vector<8x256xf32>
    %228 = math.tanh %227 : vector<8x256xf32>
    %229 = arith.mulf %220, %198 : vector<8x256xf32>
    %230 = arith.mulf %214, %228 : vector<8x256xf32>
    %231 = arith.addf %229, %230 : vector<8x256xf32>
    %232 = math.tanh %231 : vector<8x256xf32>
    %233 = arith.mulf %226, %232 : vector<8x256xf32>
    %c0_66 = arith.constant 0 : index
    %c6_67 = arith.constant 6 : index
    %c0_68 = arith.constant 0 : index
    %234 = vector.load %arg5[%c0_66, %c6_67, %c0_68] : memref<8x8x256xf32, #tpu.memory_space<vmem>>, vector<8x1x256xf32>
    %235 = vector.shape_cast %234 : vector<8x1x256xf32> to vector<8x256xf32>
    %236 = vector.shape_cast %233 : vector<8x256xf32> to vector<8x1x256xf32>
    tpu.vector_store %arg5[%c0_66, %c6_67, %c0_68], %236 {strides = array<i32>} : memref<8x8x256xf32, #tpu.memory_space<vmem>>, vector<8x1x256xf32>,
    %c7 = arith.constant 7 : index
    %c0_69 = arith.constant 0 : index
    %c0_70 = arith.constant 0 : index
    %237 = vector.load %arg1[%c7, %c0_69, %c0_70] : memref<8x8x1024xf32, #tpu.memory_space<vmem>>, vector<1x8x1024xf32>
    %238 = vector.shape_cast %237 : vector<1x8x1024xf32> to vector<8x1024xf32>
    %239 = arith.truncf %233 : vector<8x256xf32> to vector<8x256xbf16>
    %cst_71 = arith.constant dense<0.000000e+00> : vector<8x1024xf32>
    %240 = tpu.matmul %239, %5, %cst_71 {dimension_numbers = #tpu.dot_dimension_numbers<[1], [0], [0], [1], [0, 0, 1, 1], [], []>} : vector<8x256xbf16>, vector<256x1024xbf16>, vector<8x1024xf32> -> vector<8x1024xf32>
    %241 = arith.addf %238, %240 : vector<8x1024xf32>
    %242 = vector.extract_strided_slice %241 {offsets = [0, 0], sizes = [8, 256], strides = [1, 1]} : vector<8x1024xf32> to vector<8x256xf32>
    %243 = arith.negf %242 : vector<8x256xf32>
    %244 = math.exp %243 : vector<8x256xf32>
    %cst_72 = arith.constant 1.000000e+00 : f32
    %245 = vector.broadcast %cst_72 : f32 to vector<8x256xf32>
    %246 = arith.addf %245, %244 : vector<8x256xf32>
    %247 = arith.divf %245, %246 : vector<8x256xf32>
    %248 = vector.extract_strided_slice %241 {offsets = [0, 256], sizes = [8, 256], strides = [1, 1]} : vector<8x1024xf32> to vector<8x256xf32>
    %249 = arith.negf %248 : vector<8x256xf32>
    %250 = math.exp %249 : vector<8x256xf32>
    %cst_73 = arith.constant 1.000000e+00 : f32
    %251 = vector.broadcast %cst_73 : f32 to vector<8x256xf32>
    %252 = arith.addf %251, %250 : vector<8x256xf32>
    %253 = arith.divf %251, %252 : vector<8x256xf32>
    %254 = vector.extract_strided_slice %241 {offsets = [0, 512], sizes = [8, 256], strides = [1, 1]} : vector<8x1024xf32> to vector<8x256xf32>
    %255 = arith.negf %254 : vector<8x256xf32>
    %256 = math.exp %255 : vector<8x256xf32>
    %cst_74 = arith.constant 1.000000e+00 : f32
    %257 = vector.broadcast %cst_74 : f32 to vector<8x256xf32>
    %258 = arith.addf %257, %256 : vector<8x256xf32>
    %259 = arith.divf %257, %258 : vector<8x256xf32>
    %260 = vector.extract_strided_slice %241 {offsets = [0, 768], sizes = [8, 256], strides = [1, 1]} : vector<8x1024xf32> to vector<8x256xf32>
    %261 = math.tanh %260 : vector<8x256xf32>
    %262 = arith.mulf %253, %231 : vector<8x256xf32>
    %263 = arith.mulf %247, %261 : vector<8x256xf32>
    %264 = arith.addf %262, %263 : vector<8x256xf32>
    %265 = math.tanh %264 : vector<8x256xf32>
    %266 = arith.mulf %259, %265 : vector<8x256xf32>
    %c0_75 = arith.constant 0 : index
    %c7_76 = arith.constant 7 : index
    %c0_77 = arith.constant 0 : index
    %267 = vector.load %arg5[%c0_75, %c7_76, %c0_77] : memref<8x8x256xf32, #tpu.memory_space<vmem>>, vector<8x1x256xf32>
    %268 = vector.shape_cast %267 : vector<8x1x256xf32> to vector<8x256xf32>
    %269 = vector.shape_cast %266 : vector<8x256xf32> to vector<8x1x256xf32>
    tpu.vector_store %arg5[%c0_75, %c7_76, %c0_77], %269 {strides = array<i32>} : memref<8x8x256xf32, #tpu.memory_space<vmem>>, vector<8x1x256xf32>,
    %c0_78 = arith.constant 0 : index
    %c0_79 = arith.constant 0 : index
    %270 = vector.load %arg8[%c0_78, %c0_79] : memref<8x256xf32, #tpu.memory_space<vmem>>, vector<8x256xf32>
    tpu.vector_store %arg8[%c0_78, %c0_79], %266 {strides = array<i32>} : memref<8x256xf32, #tpu.memory_space<vmem>>, vector<8x256xf32>,
    %c0_80 = arith.constant 0 : index
    %c0_81 = arith.constant 0 : index
    %271 = vector.load %arg9[%c0_80, %c0_81] : memref<8x256xf32, #tpu.memory_space<vmem>>, vector<8x256xf32>
    tpu.vector_store %arg9[%c0_80, %c0_81], %264 {strides = array<i32>} : memref<8x256xf32, #tpu.memory_space<vmem>>, vector<8x256xf32>,
    %c0_i32_82 = arith.constant 0 : i32
    %272 = arith.cmpi eq, %arg0, %c0_i32_82 : i32
    %273 = arith.extui %272 : i1 to i32
    %c0_i32_83 = arith.constant 0 : i32
    %274 = arith.cmpi ne, %273, %c0_i32_83 : i32
    scf.if %274 {
      %c0_84 = arith.constant 0 : index
      %c0_85 = arith.constant 0 : index
      %275 = vector.load %arg6[%c0_84, %c0_85] : memref<8x256xf32, #tpu.memory_space<vmem>>, vector<8x256xf32>
      tpu.vector_store %arg6[%c0_84, %c0_85], %266 {strides = array<i32>} : memref<8x256xf32, #tpu.memory_space<vmem>>, vector<8x256xf32>,
      %c0_86 = arith.constant 0 : index
      %c0_87 = arith.constant 0 : index
      %276 = vector.load %arg7[%c0_86, %c0_87] : memref<8x256xf32, #tpu.memory_space<vmem>>, vector<8x256xf32>
      tpu.vector_store %arg7[%c0_86, %c0_87], %264 {strides = array<i32>} : memref<8x256xf32, #tpu.memory_space<vmem>>, vector<8x256xf32>,
    } else {
    }
    return
  }
  func.func @transform_0(%arg0: i32) -> (i32, i32, i32) {
    %c0_i32 = arith.constant 0 : i32
    %c0_i32_0 = arith.constant 0 : i32
    %c0_i32_1 = arith.constant 0 : i32
    return %arg0, %c0_i32, %c0_i32_0 : i32, i32, i32
  }
  func.func @transform_1(%arg0: i32) -> (i32, i32) {
    %c0_i32 = arith.constant 0 : i32
    %c0_i32_0 = arith.constant 0 : i32
    %c0_i32_1 = arith.constant 0 : i32
    return %c0_i32, %c0_i32_0 : i32, i32
  }
  func.func @transform_2(%arg0: i32) -> (i32, i32) {
    %c0_i32 = arith.constant 0 : i32
    %c0_i32_0 = arith.constant 0 : i32
    %c0_i32_1 = arith.constant 0 : i32
    return %c0_i32, %c0_i32_0 : i32, i32
  }
  func.func @transform_3(%arg0: i32) -> (i32, i32) {
    %c0_i32 = arith.constant 0 : i32
    %c0_i32_0 = arith.constant 0 : i32
    %c0_i32_1 = arith.constant 0 : i32
    return %c0_i32, %c0_i32_0 : i32, i32
  }
  func.func @transform_4(%arg0: i32) -> (i32, i32, i32) {
    %c0_i32 = arith.constant 0 : i32
    %c0_i32_0 = arith.constant 0 : i32
    %c0_i32_1 = arith.constant 0 : i32
    return %c0_i32, %arg0, %c0_i32_0 : i32, i32, i32
  }
  func.func @transform_5(%arg0: i32) -> (i32, i32) {
    %c0_i32 = arith.constant 0 : i32
    %c0_i32_0 = arith.constant 0 : i32
    %c0_i32_1 = arith.constant 0 : i32
    return %c0_i32, %c0_i32_0 : i32, i32
  }
  func.func @transform_6(%arg0: i32) -> (i32, i32) {
    %c0_i32 = arith.constant 0 : i32
    %c0_i32_0 = arith.constant 0 : i32
    %c0_i32_1 = arith.constant 0 : i32
    return %c0_i32, %c0_i32_0 : i32, i32
  }
}

module attributes {stable_mosaic.version = 11 : i64} {
  func.func @_matmul_bias_kernel(%arg0: i32, %arg1: i32, %arg2: i32, %arg3: memref<64x256xbf16, #tpu.memory_space<vmem>>, %arg4: memref<256x256xbf16, #tpu.memory_space<vmem>>, %arg5: memref<1x256xf32, #tpu.memory_space<vmem>>, %arg6: memref<64x256xf32, #tpu.memory_space<vmem>>, %arg7: memref<64x256xf32, #tpu.memory_space<vmem>>) attributes {dimension_semantics = [#tpu.dimension_semantics<parallel>, #tpu.dimension_semantics<parallel>, #tpu.dimension_semantics<arbitrary>], iteration_bounds = array<i64: 1, 2, 1>, scalar_prefetch = 0 : i64, scratch_operands = 1 : i64, tpu.core_type = #tpu.core_type<tc>, window_params = [{transform_indices = @transform_0, window_bounds = array<i64: 64, 256>}, {transform_indices = @transform_1, window_bounds = array<i64: 256, 256>}, {transform_indices = @transform_2, window_bounds = array<i64: 1, 256>}, {transform_indices = @transform_3, window_bounds = array<i64: 64, 256>}]} {
    %c0_i32 = arith.constant 0 : i32
    %0 = arith.cmpi eq, %arg2, %c0_i32 : i32
    %1 = arith.extui %0 : i1 to i32
    %c0_i32_0 = arith.constant 0 : i32
    %2 = arith.cmpi ne, %1, %c0_i32_0 : i32
    scf.if %2 {
      %cst_10 = arith.constant 0.000000e+00 : f32
      %12 = vector.broadcast %cst_10 : f32 to vector<64x256xf32>
      %c0_11 = arith.constant 0 : index
      %c0_12 = arith.constant 0 : index
      %13 = vector.load %arg7[%c0_11, %c0_12] : memref<64x256xf32, #tpu.memory_space<vmem>>, vector<64x256xf32>
      tpu.vector_store %arg7[%c0_11, %c0_12], %12 {strides = array<i32>} : memref<64x256xf32, #tpu.memory_space<vmem>>, vector<64x256xf32>,
    } else {
    }
    %c0 = arith.constant 0 : index
    %c0_1 = arith.constant 0 : index
    %3 = vector.load %arg7[%c0, %c0_1] : memref<64x256xf32, #tpu.memory_space<vmem>>, vector<64x256xf32>
    %c0_2 = arith.constant 0 : index
    %c0_3 = arith.constant 0 : index
    %4 = vector.load %arg3[%c0_2, %c0_3] : memref<64x256xbf16, #tpu.memory_space<vmem>>, vector<64x256xbf16>
    %c0_4 = arith.constant 0 : index
    %c0_5 = arith.constant 0 : index
    %5 = vector.load %arg4[%c0_4, %c0_5] : memref<256x256xbf16, #tpu.memory_space<vmem>>, vector<256x256xbf16>
    %cst = arith.constant dense<0.000000e+00> : vector<64x256xf32>
    %6 = tpu.matmul %4, %5, %cst {dimension_numbers = #tpu.dot_dimension_numbers<[1], [0], [0], [1], [0, 0, 1, 1], [], []>} : vector<64x256xbf16>, vector<256x256xbf16>, vector<64x256xf32> -> vector<64x256xf32>
    %7 = arith.addf %3, %6 : vector<64x256xf32>
    %c0_6 = arith.constant 0 : index
    %c0_7 = arith.constant 0 : index
    %8 = vector.load %arg7[%c0_6, %c0_7] : memref<64x256xf32, #tpu.memory_space<vmem>>, vector<64x256xf32>
    tpu.vector_store %arg7[%c0_6, %c0_7], %7 {strides = array<i32>} : memref<64x256xf32, #tpu.memory_space<vmem>>, vector<64x256xf32>,
    %c0_i32_8 = arith.constant 0 : i32
    %9 = arith.cmpi eq, %arg2, %c0_i32_8 : i32
    %10 = arith.extui %9 : i1 to i32
    %c0_i32_9 = arith.constant 0 : i32
    %11 = arith.cmpi ne, %10, %c0_i32_9 : i32
    scf.if %11 {
      %c0_10 = arith.constant 0 : index
      %c0_11 = arith.constant 0 : index
      %12 = vector.load %arg7[%c0_10, %c0_11] : memref<64x256xf32, #tpu.memory_space<vmem>>, vector<64x256xf32>
      %c0_12 = arith.constant 0 : index
      %c0_13 = arith.constant 0 : index
      %13 = vector.load %arg5[%c0_12, %c0_13] : memref<1x256xf32, #tpu.memory_space<vmem>>, vector<1x256xf32>
      %14 = vector.broadcast %13 : vector<1x256xf32> to vector<64x256xf32>
      %15 = arith.addf %12, %14 : vector<64x256xf32>
      %c0_14 = arith.constant 0 : index
      %c0_15 = arith.constant 0 : index
      %16 = vector.load %arg6[%c0_14, %c0_15] : memref<64x256xf32, #tpu.memory_space<vmem>>, vector<64x256xf32>
      tpu.vector_store %arg6[%c0_14, %c0_15], %15 {strides = array<i32>} : memref<64x256xf32, #tpu.memory_space<vmem>>, vector<64x256xf32>,
    } else {
    }
    return
  }
  func.func @transform_0(%arg0: i32, %arg1: i32, %arg2: i32) -> (i32, i32) {
    %c0_i32 = arith.constant 0 : i32
    return %arg0, %arg2 : i32, i32
  }
  func.func @transform_1(%arg0: i32, %arg1: i32, %arg2: i32) -> (i32, i32) {
    %c0_i32 = arith.constant 0 : i32
    return %arg2, %arg1 : i32, i32
  }
  func.func @transform_2(%arg0: i32, %arg1: i32, %arg2: i32) -> (i32, i32) {
    %c0_i32 = arith.constant 0 : i32
    %c0_i32_0 = arith.constant 0 : i32
    return %c0_i32, %arg1 : i32, i32
  }
  func.func @transform_3(%arg0: i32, %arg1: i32, %arg2: i32) -> (i32, i32) {
    %c0_i32 = arith.constant 0 : i32
    return %arg0, %arg1 : i32, i32
  }
}

</mosaic_0001>

<bundles_post_ra>
// kernel: lstm_forward.5
= control target key start
LH: loop header
LB: loop body
LE: loop exit
PB: predicated region body
PF: predicated region fallthrough
CT: control target
= control target key end

     0   :  { %8 = vsyncpa [#allocation5], 0  ;;  %s1578_s0 = inlined_call_operand.vmem [shape: bf16[64,256], index: 0, kind: input, shape index: {}]   ;;  %s1579_s1 = inlined_call_operand.vmem [shape: bf16[256,512], index: 1, kind: input, shape index: {}]   ;;  %s1580_s2 = inlined_call_operand.vmem [shape: f32[1,512], index: 2, kind: input, shape index: {}]   ;;  %s1581_s3 = inlined_call_operand.hbm [shape: f32[64,512], index: 3, kind: output, shape index: {}]  }
   0x1   :  { %10 = vsyncpa [#allocation5 + $0x1], 0  ;;  %s1306_s12 = smov 0   ;;  %s1308_s13 = smov 0  }
   0x2   :  { %s1310_s14 = smov 0   ;;  %s1312_s15 = smov 0  }
   0x3   :  { %s1314_s16 = smov 0   ;;  %s1316_s17 = smov 0  }
   0x4 LB: > { %s995_s18 = sadd.s32 4294967295, %s1280_s17   ;;  %s996_s19 = sadd.s32 4294967294, %s1280_s17   ;;  %s1280_s17 = sphi %s1316_s17, %s16_s17   ;;  %s1276_s16 = sphi %s1314_s16, %s1588_s16   ;;  %s1272_s15 = sphi %s1312_s15, %s1587_s15   ;;  %s1268_s14 = sphi %s1310_s14, %s1586_s14   ;;  %s1264_s13 = sphi %s1308_s13, %s1585_s13   ;;  %s1260_s12 = sphi %s1306_s12, %s1584_s12  }
   0x5   : > { %s31_s20 = sadd.s32 1, %s1276_s16  ;;  %s72_s21 = sadd.s32 1, %s1268_s14 }
   0x6   : > { %p33_p0 = scmp.ge.s32.totalorder %s31_s20, 2  ;;  %p79_p1 = scmp.ne.s32.totalorder %s1268_s14, %s1264_s13 }
   0x7   : > { %p80_p2 = scmp.eq.s32.totalorder %s1280_s17, 0  ;;  %p137_p3 = scmp.eq.s32.totalorder %s995_s18, 1 }
   0x8   : > { %s1590_s20 = smov (%p33_p0, %s31_s20), 0  ;;  %p142_p6 = scmp.ne.s32.totalorder %s1264_s13, %s1260_s12 }
   0x9   : > { %p81_p4 = por %p80_p2, %p79_p1  ;;  %p1345_p5 = por %p137_p3, %p79_p1 }
   0xa   : > { %s68_s23 = ssub.s32 %s1276_s16, %s1590_s20  ;;  %p143_p8 = scmp.eq.s32.totalorder %s996_s19, 1 }
   0xb   : > { %p70_p7 = scmp.eq.s32.totalorder %s68_s23, 0  ;;  %p999_p10 = scmp.ge.s32.totalorder %s1280_s17, 2 }
   0xc   : > { %p1356_p9 = por %p143_p8, %p142_p6 }
   0xd   : > { %s1354_s24 = scalar_select %p70_p7, %s1268_s14, %s72_s21  }
   0xe   : > { %174 = sbr.rel (%p999_p10) target bundleno = 39 (0x27), region = 20 }
  0x13   : > { %177 = sbr.rel (!%p81_p4) target bundleno = 39 (0x27), region = 24  ;;  %s179_s26 = sand.u32 (%p81_p4), 1, %s1268_s14  }
  0x14   : > { %s1052_s27 = sshll.u32 (%p81_p4), %s1276_s16, 3  ;;  %s1000_s28 = sshll.u32 (%p81_p4), %s179_s26, 8 }
  0x15   : > { %s1368_s4 = scalar_lea.vmem (%p81_p4), %s1579_s1, %s1052_s27  ;;  %s1373_s5 = scalar_lea.vmem (%p81_p4), [#allocation3], %s1000_s28 }
  0x16   : > { %v278_v0 = vld [vmem:[%s1368_s4] sm:$0xff] (%p81_p4)  ;;  %v280_v1 = vld [vmem:[%s1368_s4 + $0x10] sm:$0xff] (%p81_p4) }
  0x17   : > { %v282_v2 = vld [vmem:[%s1368_s4 + $0x20] sm:$0xff] (%p81_p4)  ;;  %279 = vst [vmem:[%s1373_s5] sm:$0xff] (%p81_p4), %v278_v0  ;;  %281 = vst [vmem:[%s1373_s5 + $0x8] sm:$0xff] (%p81_p4), %v280_v1  ;;  %v284_v3 = vld [vmem:[%s1368_s4 + $0x30] sm:$0xff] (%p81_p4) }
  0x18   : > { %283 = vst [vmem:[%s1373_s5 + $0x10] sm:$0xff] %v282_v2  ;;  %v286_v4 = vld [vmem:[%s1368_s4 + $0x40] sm:$0xff]  ;;  %v288_v5 = vld [vmem:[%s1368_s4 + $0x50] sm:$0xff]  ;;  %285 = vst [vmem:[%s1373_s5 + $0x18] sm:$0xff] %v284_v3 }
  0x19   : > { %287 = vst [vmem:[%s1373_s5 + $0x20] sm:$0xff] %v286_v4  ;;  %289 = vst [vmem:[%s1373_s5 + $0x28] sm:$0xff] %v288_v5  ;;  %v290_v6 = vld [vmem:[%s1368_s4 + $0x60] sm:$0xff]  ;;  %v292_v7 = vld [vmem:[%s1368_s4 + $0x70] sm:$0xff] }
  0x1a   : > { %v294_v8 = vld [vmem:[%s1368_s4 + $0x80] sm:$0xff]  ;;  %291 = vst [vmem:[%s1373_s5 + $0x30] sm:$0xff] %v290_v6  ;;  %293 = vst [vmem:[%s1373_s5 + $0x38] sm:$0xff] %v292_v7  ;;  %v296_v9 = vld [vmem:[%s1368_s4 + $0x90] sm:$0xff] }
  0x1b   : > { %295 = vst [vmem:[%s1373_s5 + $0x40] sm:$0xff] %v294_v8  ;;  %v298_v10 = vld [vmem:[%s1368_s4 + $0xa0] sm:$0xff]  ;;  %v300_v11 = vld [vmem:[%s1368_s4 + $0xb0] sm:$0xff]  ;;  %297 = vst [vmem:[%s1373_s5 + $0x48] sm:$0xff] %v296_v9 }
  0x1c   : > { %299 = vst [vmem:[%s1373_s5 + $0x50] sm:$0xff] %v298_v10  ;;  %301 = vst [vmem:[%s1373_s5 + $0x58] sm:$0xff] %v300_v11  ;;  %v302_v12 = vld [vmem:[%s1368_s4 + $0xc0] sm:$0xff]  ;;  %v304_v13 = vld [vmem:[%s1368_s4 + $0xd0] sm:$0xff] }
  0x1d   : > { %v306_v14 = vld [vmem:[%s1368_s4 + $0xe0] sm:$0xff]  ;;  %303 = vst [vmem:[%s1373_s5 + $0x60] sm:$0xff] %v302_v12  ;;  %305 = vst [vmem:[%s1373_s5 + $0x68] sm:$0xff] %v304_v13  ;;  %v308_v15 = vld [vmem:[%s1368_s4 + $0xf0] sm:$0xff] }
  0x1e   : > { %307 = vst [vmem:[%s1373_s5 + $0x70] sm:$0xff] %v306_v14  ;;  %v310_v16 = vld [vmem:[%s1368_s4 + $0x100] sm:$0xff]  ;;  %v312_v17 = vld [vmem:[%s1368_s4 + $0x110] sm:$0xff]  ;;  %309 = vst [vmem:[%s1373_s5 + $0x78] sm:$0xff] %v308_v15 }
  0x1f   : > { %311 = vst [vmem:[%s1373_s5 + $0x80] sm:$0xff] %v310_v16  ;;  %313 = vst [vmem:[%s1373_s5 + $0x88] sm:$0xff] %v312_v17  ;;  %v314_v18 = vld [vmem:[%s1368_s4 + $0x120] sm:$0xff]  ;;  %v316_v19 = vld [vmem:[%s1368_s4 + $0x130] sm:$0xff] }
  0x20   : > { %v318_v20 = vld [vmem:[%s1368_s4 + $0x140] sm:$0xff]  ;;  %315 = vst [vmem:[%s1373_s5 + $0x90] sm:$0xff] %v314_v18  ;;  %317 = vst [vmem:[%s1373_s5 + $0x98] sm:$0xff] %v316_v19  ;;  %v320_v21 = vld [vmem:[%s1368_s4 + $0x150] sm:$0xff] }
  0x21   : > { %319 = vst [vmem:[%s1373_s5 + $0xa0] sm:$0xff] %v318_v20  ;;  %v322_v22 = vld [vmem:[%s1368_s4 + $0x160] sm:$0xff]  ;;  %v324_v23 = vld [vmem:[%s1368_s4 + $0x170] sm:$0xff]  ;;  %321 = vst [vmem:[%s1373_s5 + $0xa8] sm:$0xff] %v320_v21 }
  0x22   : > { %323 = vst [vmem:[%s1373_s5 + $0xb0] sm:$0xff] %v322_v22  ;;  %325 = vst [vmem:[%s1373_s5 + $0xb8] sm:$0xff] %v324_v23  ;;  %v326_v24 = vld [vmem:[%s1368_s4 + $0x180] sm:$0xff]  ;;  %v328_v25 = vld [vmem:[%s1368_s4 + $0x190] sm:$0xff] }
  0x23   : > { %v330_v26 = vld [vmem:[%s1368_s4 + $0x1a0] sm:$0xff]  ;;  %327 = vst [vmem:[%s1373_s5 + $0xc0] sm:$0xff] %v326_v24  ;;  %329 = vst [vmem:[%s1373_s5 + $0xc8] sm:$0xff] %v328_v25  ;;  %v332_v27 = vld [vmem:[%s1368_s4 + $0x1b0] sm:$0xff] }
  0x24   : > { %331 = vst [vmem:[%s1373_s5 + $0xd0] sm:$0xff] %v330_v26  ;;  %v334_v28 = vld [vmem:[%s1368_s4 + $0x1c0] sm:$0xff]  ;;  %v336_v29 = vld [vmem:[%s1368_s4 + $0x1d0] sm:$0xff]  ;;  %333 = vst [vmem:[%s1373_s5 + $0xd8] sm:$0xff] %v332_v27 }
  0x25   : > { %335 = vst [vmem:[%s1373_s5 + $0xe0] sm:$0xff] %v334_v28  ;;  %337 = vst [vmem:[%s1373_s5 + $0xe8] sm:$0xff] %v336_v29  ;;  %v338_v30 = vld [vmem:[%s1368_s4 + $0x1e0] sm:$0xff]  ;;  %v340_v31 = vld [vmem:[%s1368_s4 + $0x1f0] sm:$0xff] }
  0x26   : > { %339 = vst [vmem:[%s1373_s5 + $0xf0] sm:$0xff] %v338_v30  ;;  %341 = vst [vmem:[%s1373_s5 + $0xf8] sm:$0xff] %v340_v31 }
  0x27 PF: > { %p1003_p11 = scmp.ge.s32.totalorder %s1280_s17, 1  ;;  %p354_p12 = scmp.lt.s32.totalorder %s1280_s17, 3 }
  0x29   : > { %p355_p13 = pnand %p1003_p11, %p354_p12 }
  0x2a   : > { %s1439_s6 = sand.u32 (!%p355_p13), 1, %s1264_s13   ;;  %s1006_s9 = sshll.u32 (!%p355_p13), %s1272_s15, 1 }
  0x2b   : > { %358 = sbr.rel (%p355_p13) target bundleno = 338 (0x152), region = 66  ;;  %s1004_s7 = sshll.u32 (!%p355_p13), %s1439_s6, 8 }
  0x2c   : > { %s1448_s18 = scalar_lea.vmem (!%p355_p13), [#allocation3], %s1004_s7  ;;  %p413_p0 = scmp.lt.s32.totalorder (!%p355_p13), %s1006_s9, 3 }
  0x2d   : > { %s1005_s19 = sshll.u32 (!%p355_p13), %s1439_s6, 7  ;;  %s1053_s23 = sshll.u32 (!%p355_p13), %s1272_s15, 8 }
  0x2e   : > { %s1505_s21 = scalar_lea.vmem (!%p355_p13), [#allocation4], %s1005_s19  ;;  %s1524_s15 = scalar_lea.hbm (!%p355_p13), %s1581_s3, %s1053_s23 }
  0x2f   : > { %s880_s26 = sshll.u32 (!%p355_p13), %s1505_s21, 4  ;;  %s864_s29 = scalar_lea.sflag (!%p355_p13), [#allocation5], %s1439_s6  ;;  %s1526_s26 = int_to_ptr.vmem [resolvable:$true] %s880_s26 }
  0x30   : > { %v1194_v32 = vld [vmem:[%s1578_s0 + $0x4] ss:$8 sps:$4 sm:$0xff]   ;;  %v1144_v34 = vld [vmem:[%s1448_s18 + $0x74] ss:$8 sps:$4 sm:$0xff]   ;;  %v1146_v35 = vld [vmem:[%s1448_s18 + $0x70] ss:$8 sps:$4 sm:$0xff]   ;;  %v821_v8 = vlaneseq }
  0x31   : > { %v1197_v33 = vld [vmem:[%s1578_s0 + $0x24] ss:$8 sps:$4 sm:$0xff]   ;;  %727 = vmatprep.mubr.bf16.mxu0 %v1194_v32  ;;  %695 = vmatprep.subr.bf16.mxu0 %v1144_v34  ;;  %v1149_v37 = vld [vmem:[%s1448_s18 + $0x60] ss:$8 sps:$4 sm:$0xff]   ;;  %v1150_v38 = vld [vmem:[%s1448_s18 + $0x54] ss:$8 sps:$4 sm:$0xff]  }
  0x32   : > { %747 = vmatprep.mubr.bf16.mxu1 %v1197_v33  ;;  %1054 = vmatprep.subr.bf16.mxu1 %v1144_v34  ;;  %v1147_v36 = vld [vmem:[%s1448_s18 + $0x64] ss:$8 sps:$4 sm:$0xff]   ;;  %v1152_v39 = vld [vmem:[%s1448_s18 + $0x50] ss:$8 sps:$4 sm:$0xff]   ;;  %v1155_v41 = vld [vmem:[%s1448_s18 + $0x40] ss:$8 sps:$4 sm:$0xff]  }
  0x33   : > { %696 = vmatpush1.bf16.msra.mxu0 %v1146_v35  ;;  %1070 = vmatpush1.bf16.msra.mxu1 %v1146_v35  ;;  %v1153_v40 = vld [vmem:[%s1448_s18 + $0x44] ss:$8 sps:$4 sm:$0xff]   ;;  %v1156_v42 = vld [vmem:[%s1448_s18 + $0x34] ss:$8 sps:$4 sm:$0xff]   ;;  %v1158_v43 = vld [vmem:[%s1448_s18 + $0x30] ss:$8 sps:$4 sm:$0xff]  }
  0x34   : > { %697 = vmatprep.subr.bf16.mxu0 %v1147_v36  ;;  %1055 = vmatprep.subr.bf16.mxu1 %v1147_v36  ;;  %v1159_v44 = vld [vmem:[%s1448_s18 + $0x24] ss:$8 sps:$4 sm:$0xff]   ;;  %v1161_v45 = vld [vmem:[%s1448_s18 + $0x20] ss:$8 sps:$4 sm:$0xff]   ;;  %v1162_v46 = vld [vmem:[%s1448_s18 + $0x14] ss:$8 sps:$4 sm:$0xff]  }
  0x35   : > { %v1164_v47 = vld [vmem:[%s1448_s18 + $0x10] ss:$8 sps:$4 sm:$0xff]   ;;  %v1165_v48 = vld [vmem:[%s1448_s18 + $0x4] ss:$8 sps:$4 sm:$0xff]   ;;  %v1167_v49 = vld [vmem:[%s1448_s18] ss:$8 sps:$4 sm:$0xff]  }
  0x36   : > { %v1168_v50 = vld [vmem:[%s1448_s18 + $0xf4] ss:$8 sps:$4 sm:$0xff]   ;;  %v1170_v51 = vld [vmem:[%s1448_s18 + $0xf0] ss:$8 sps:$4 sm:$0xff]   ;;  %v1171_v52 = vld [vmem:[%s1448_s18 + $0xe4] ss:$8 sps:$4 sm:$0xff]  }
  0x37   : > { %698 = vmatpush1.bf16.msra.mxu0 %v1149_v37  ;;  %1071 = vmatpush1.bf16.msra.mxu1 %v1149_v37  ;;  %v1173_v53 = vld [vmem:[%s1448_s18 + $0xe0] ss:$8 sps:$4 sm:$0xff]   ;;  %v1174_v54 = vld [vmem:[%s1448_s18 + $0xd4] ss:$8 sps:$4 sm:$0xff]   ;;  %v1176_v55 = vld [vmem:[%s1448_s18 + $0xd0] ss:$8 sps:$4 sm:$0xff]  }
  0x38   : > { %699 = vmatprep.subr.bf16.mxu0 %v1150_v38  ;;  %1056 = vmatprep.subr.bf16.mxu1 %v1150_v38  ;;  %v1177_v56 = vld [vmem:[%s1448_s18 + $0xc4] ss:$8 sps:$4 sm:$0xff]   ;;  %v1179_v57 = vld [vmem:[%s1448_s18 + $0xc0] ss:$8 sps:$4 sm:$0xff]   ;;  %v1180_v58 = vld [vmem:[%s1448_s18 + $0xb4] ss:$8 sps:$4 sm:$0xff]  }
  0x39   : > { %v1182_v59 = vld [vmem:[%s1448_s18 + $0xb0] ss:$8 sps:$4 sm:$0xff]   ;;  %v1183_v60 = vld [vmem:[%s1448_s18 + $0xa4] ss:$8 sps:$4 sm:$0xff]   ;;  %v1185_v61 = vld [vmem:[%s1448_s18 + $0xa0] ss:$8 sps:$4 sm:$0xff]  }
  0x3a   : > { %v1186_v62 = vld [vmem:[%s1448_s18 + $0x94] ss:$8 sps:$4 sm:$0xff]   ;;  %v1188_v63 = vld [vmem:[%s1448_s18 + $0x90] ss:$8 sps:$4 sm:$0xff]   ;;  %v1189_v0 = vld [vmem:[%s1448_s18 + $0x84] ss:$8 sps:$4 sm:$0xff]  }
  0x3b   : > { %700 = vmatpush1.bf16.msra.mxu0 %v1152_v39  ;;  %1072 = vmatpush1.bf16.msra.mxu1 %v1152_v39  ;;  %v1191_v1 = vld [vmem:[%s1448_s18 + $0x80] ss:$8 sps:$4 sm:$0xff]   ;;  %v1198_v4 = vld [vmem:[%s1578_s0 + $0x14] ss:$8 sps:$4 sm:$0xff]   ;;  %v1202_v6 = vld [vmem:[%s1578_s0 + $0x10] ss:$8 sps:$4 sm:$0xff]  }
  0x3c   : > { %701 = vmatprep.subr.bf16.mxu0 %v1153_v40  ;;  %1057 = vmatprep.subr.bf16.mxu1 %v1153_v40  ;;  %v1192_v2 = vld [vmem:[%s1578_s0] ss:$8 sps:$4 sm:$0xff]   ;;  %v1200_v5 = vld [vmem:[%s1578_s0 + $0x34] ss:$8 sps:$4 sm:$0xff]   ;;  %v1203_v7 = vld [vmem:[%s1578_s0 + $0x30] ss:$8 sps:$4 sm:$0xff]  }
  0x3d   : > { %v1195_v3 = vld [vmem:[%s1578_s0 + $0x20] ss:$8 sps:$4 sm:$0xff]   ;;  %s1592_s9 = smov (!%p413_p0, %s1006_s9), 3  ;;  %v822_v9 = vshrl.u32 %v821_v8, 7  ;;  %s1204_s30 = scalar_lea.vmem %s1526_s26, 2048 }
  0x3e   : > { %s415_s18 = scalar_lea.vmem %s1580_s2, %s1592_s9  ;;  %p1205_p1 = scmp.ne.s32.totalorder %s1526_s26, %s1204_s30 }
  0x3f   : > { %702 = vmatpush1.bf16.msra.mxu0 %v1155_v41  ;;  %1073 = vmatpush1.bf16.msra.mxu1 %v1155_v41  ;;  %v823_v10 = vsub.s32 0, %v822_v9  ;;  %v819_v11 = vld [vmem:[%s415_s18] sm:$0x3]  ;;  %v827_v12 = vsub.s32 1, %v822_v9  ;;  %s1282_s4 = smov [#allocation4]  }
  0x40   : > { %703 = vmatprep.subr.bf16.mxu0 %v1156_v42  ;;  %1058 = vmatprep.subr.bf16.mxu1 %v1156_v42  ;;  %p1206_p2 = pnand %p1205_p1, %p1345_p5  ;;  %s1208_s5 = sshll.u32 %s1282_s4, 4  ;;  %s1209_s5 = int_to_ptr.vmem [resolvable:$false] %s1208_s5 }
  0x41   : > { %v824_v13 = vrot.slane %v819_v11, %v823_v10  ;;  %v828_v14 = vrot.slane %v819_v11, %v827_v12  ;;  %s1210_s7 = scalar_lea.vmem %s1209_s5, 4096  ;;  %p1211_p4 = scmp.lt.s32.totalorder %s1526_s26, %s1209_s5 }
  0x42   : > { %p1207_p3 = pneg %p1206_p2  ;;  %p1212_p6 = scmp.lt.s32.totalorder %s1210_s7, %s1204_s30 }
  0x43   : > { %704 = vmatpush1.bf16.msra.mxu0 %v1158_v43  ;;  %1074 = vmatpush1.bf16.msra.mxu1 %v1158_v43 }
  0x44   : > { %705 = vmatprep.subr.bf16.mxu0 %v1159_v44  ;;  %1059 = vmatprep.subr.bf16.mxu1 %v1159_v44  ;;  %p1213_p7 = por %p1212_p6, %p1211_p4 }
  0x46   : > { %p1214_p8 = pnand %p1213_p7, %p1207_p3 }
  0x47   : > { %706 = vmatpush1.bf16.msra.mxu0 %v1161_v45  ;;  %1075 = vmatpush1.bf16.msra.mxu1 %v1161_v45 }
  0x48   : > { %707 = vmatprep.subr.bf16.mxu0 %v1162_v46  ;;  %1060 = vmatprep.subr.bf16.mxu1 %v1162_v46 }
  0x4b   : > { %708 = vmatpush1.bf16.msra.mxu0 %v1164_v47  ;;  %1076 = vmatpush1.bf16.msra.mxu1 %v1164_v47 }
  0x4c   : > { %709 = vmatprep.subr.bf16.mxu0 %v1165_v48  ;;  %1061 = vmatprep.subr.bf16.mxu1 %v1165_v48 }
  0x4f   : > { %710 = vmatpush1.bf16.msra.mxu0 %v1167_v49  ;;  %1077 = vmatpush1.bf16.msra.mxu1 %v1167_v49 }
  0x50   : > { %711 = vmatprep.subr.bf16.mxu0 %v1168_v50  ;;  %1062 = vmatprep.subr.bf16.mxu1 %v1168_v50 }
  0x53   : > { %712 = vmatpush2.bf16.msra.mxu0 %v1170_v51  ;;  %1078 = vmatpush2.bf16.msra.mxu1 %v1170_v51 }
  0x54   : > { %713 = vmatprep.subr.bf16.mxu0 %v1171_v52  ;;  %1063 = vmatprep.subr.bf16.mxu1 %v1171_v52 }
  0x57   : > { %714 = vmatpush2.bf16.msra.mxu0 %v1173_v53  ;;  %1079 = vmatpush2.bf16.msra.mxu1 %v1173_v53 }
  0x58   : > { %715 = vmatprep.subr.bf16.mxu0 %v1174_v54  ;;  %1064 = vmatprep.subr.bf16.mxu1 %v1174_v54 }
  0x5b   : > { %716 = vmatpush2.bf16.msra.mxu0 %v1176_v55  ;;  %1080 = vmatpush2.bf16.msra.mxu1 %v1176_v55 }
  0x5c   : > { %717 = vmatprep.subr.bf16.mxu0 %v1177_v56  ;;  %1065 = vmatprep.subr.bf16.mxu1 %v1177_v56 }
  0x5f   : > { %718 = vmatpush2.bf16.msra.mxu0 %v1179_v57  ;;  %1081 = vmatpush2.bf16.msra.mxu1 %v1179_v57 }
  0x60   : > { %719 = vmatprep.subr.bf16.mxu0 %v1180_v58  ;;  %1066 = vmatprep.subr.bf16.mxu1 %v1180_v58 }
  0x63   : > { %720 = vmatpush2.bf16.msra.mxu0 %v1182_v59  ;;  %1082 = vmatpush2.bf16.msra.mxu1 %v1182_v59 }
  0x64   : > { %721 = vmatprep.subr.bf16.mxu0 %v1183_v60  ;;  %1067 = vmatprep.subr.bf16.mxu1 %v1183_v60 }
  0x67   : > { %722 = vmatpush2.bf16.msra.mxu0 %v1185_v61  ;;  %1083 = vmatpush2.bf16.msra.mxu1 %v1185_v61 }
  0x68   : > { %723 = vmatprep.subr.bf16.mxu0 %v1186_v62  ;;  %1068 = vmatprep.subr.bf16.mxu1 %v1186_v62 }
  0x6b   : > { %724 = vmatpush2.bf16.msra.mxu0 %v1188_v63  ;;  %1084 = vmatpush2.bf16.msra.mxu1 %v1188_v63 }
  0x6c   : > { %725 = vmatprep.subr.bf16.mxu0 %v1189_v0  ;;  %1069 = vmatprep.subr.bf16.mxu1 %v1189_v0 }
  0x6f   : > { %726 = vmatpush2.bf16.msra.mxu0 %v1191_v1  ;;  %1085 = vmatpush2.bf16.msra.mxu1 %v1191_v1 }
  0x72   : > { %728 = vmatmul.mubr.bf16.vlgmr.msra.gmra.mxu0 %v1192_v2  ;;  %748 = vmatmul.mubr.bf16.vlgmr.msra.gmra.mxu1 %v1195_v3 }
  0x73   : > { %737 = vmatprep.mubr.bf16.mxu0 %v1198_v4  ;;  %757 = vmatprep.mubr.bf16.mxu1 %v1200_v5 }
  0x7a   : > { %738 = vmatmul.mubr.bf16.gmra.mxu0 %v1202_v6  ;;  %758 = vmatmul.mubr.bf16.gmra.mxu1 %v1203_v7 }
 0x132   : > { %v729_v15 = vpop.f32.mrf.mxu0  ;;  %v749_v16 = vpop.f32.mrf.mxu1 }
 0x133   : > { %v831_v17 = vadd.f32 %v824_v13, %v729_v15  ;;  %v839_v18 = vadd.f32 %v824_v13, %v749_v16 }
 0x134   : > { %v731_v19 = vpop.f32.mrf.mxu0  ;;  %v751_v20 = vpop.f32.mrf.mxu1 }
 0x135   : > { %847 = vst [vmem:[%s1505_s21] sm:$0xff] %v831_v17  ;;  %855 = vst [vmem:[%s1505_s21 + $0x40] sm:$0xff] %v839_v18  ;;  %v832_v21 = vadd.f32 %v828_v14, %v731_v19  ;;  %v840_v22 = vadd.f32 %v828_v14, %v751_v20 }
 0x136   : > { %v733_v23 = vpop.f32.mrf.mxu0  ;;  %v753_v24 = vpop.f32.mrf.mxu1 }
 0x137   : > { %848 = vst [vmem:[%s1505_s21 + $0x8] sm:$0xff] %v832_v21  ;;  %856 = vst [vmem:[%s1505_s21 + $0x48] sm:$0xff] %v840_v22  ;;  %v833_v25 = vadd.f32 %v824_v13, %v733_v23  ;;  %v841_v26 = vadd.f32 %v824_v13, %v753_v24 }
 0x138   : > { %v735_v27 = vpop.f32.mrf.mxu0  ;;  %v755_v28 = vpop.f32.mrf.mxu1 }
 0x139   : > { %849 = vst [vmem:[%s1505_s21 + $0x10] sm:$0xff] %v833_v25  ;;  %857 = vst [vmem:[%s1505_s21 + $0x50] sm:$0xff] %v841_v26  ;;  %v834_v29 = vadd.f32 %v828_v14, %v735_v27  ;;  %v842_v30 = vadd.f32 %v828_v14, %v755_v28 }
 0x13a   : > { %v739_v31 = vpop.f32.mrf.mxu0  ;;  %v759_v32 = vpop.f32.mrf.mxu1 }
 0x13b   : > { %850 = vst [vmem:[%s1505_s21 + $0x18] sm:$0xff] %v834_v29  ;;  %858 = vst [vmem:[%s1505_s21 + $0x58] sm:$0xff] %v842_v30  ;;  %v835_v33 = vadd.f32 %v824_v13, %v739_v31  ;;  %v843_v34 = vadd.f32 %v824_v13, %v759_v32 }
 0x13c   : > { %v741_v35 = vpop.f32.mrf.mxu0  ;;  %v761_v36 = vpop.f32.mrf.mxu1 }
 0x13d   : > { %851 = vst [vmem:[%s1505_s21 + $0x20] sm:$0xff] %v835_v33  ;;  %859 = vst [vmem:[%s1505_s21 + $0x60] sm:$0xff] %v843_v34  ;;  %v836_v37 = vadd.f32 %v828_v14, %v741_v35  ;;  %v844_v38 = vadd.f32 %v828_v14, %v761_v36 }
 0x13e   : > { %v743_v39 = vpop.f32.mrf.mxu0  ;;  %v763_v40 = vpop.f32.mrf.mxu1 }
 0x13f   : > { %852 = vst [vmem:[%s1505_s21 + $0x28] sm:$0xff] %v836_v37  ;;  %860 = vst [vmem:[%s1505_s21 + $0x68] sm:$0xff] %v844_v38  ;;  %v837_v41 = vadd.f32 %v824_v13, %v743_v39  ;;  %v845_v42 = vadd.f32 %v824_v13, %v763_v40 }
 0x140   : > { %v745_v43 = vpop.f32.mrf.mxu0  ;;  %v765_v44 = vpop.f32.mrf.mxu1 }
 0x141   : > { %853 = vst [vmem:[%s1505_s21 + $0x30] sm:$0xff] %v837_v41  ;;  %861 = vst [vmem:[%s1505_s21 + $0x70] sm:$0xff] %v845_v42  ;;  %v838_v45 = vadd.f32 %v828_v14, %v745_v43  ;;  %v846_v46 = vadd.f32 %v828_v14, %v765_v44 }
 0x143   : > { %854 = vst [vmem:[%s1505_s21 + $0x38] sm:$0xff] %v838_v45  ;;  %862 = vst [vmem:[%s1505_s21 + $0x78] sm:$0xff] %v846_v46 }
 0x144   : > { %1217 = shalt.err (!%p1214_p8)
}
 0x145   : > { %s1218_s8 = scalar_lea.hbm %s1524_s15, 2048  ;;  %s1222_s11 = scalar_lea.hbm %s1581_s3, 4096 }
 0x146   : > { %p1219_p11 = scmp.ne.s32.totalorder %s1524_s15, %s1218_s8  ;;  %p1223_p0 = scmp.lt.s32.totalorder %s1524_s15, %s1581_s3 }
 0x147   : > { %p1224_p1 = scmp.lt.s32.totalorder %s1222_s11, %s1218_s8 }
 0x148   : > { %p1220_p12 = pnand %p1219_p11, %p1345_p5 }
 0x149   : > { %p1225_p2 = por %p1224_p1, %p1223_p0 }
 0x14a   : > { %p1221_p13 = pneg %p1220_p12 }
 0x14c   : > { %p1226_p3 = pnand %p1225_p2, %p1221_p13 }
 0x14e   : > { %1229 = shalt.err (!%p1226_p3)
}
 0x14f   : > { %s1283_s21 = smov 256   ;;  %s1284_s23 = smov 512  }
 0x150   : > { %s1285_s27 = smov 16  }
 0x151   : > { %1086 = dma.vmem_to_hbm [thread:$0]  (%p1345_p5), %s1526_s26, 2048, %s1524_s15, %s864_s29, %s1283_s21, %s1284_s23, %s1285_s27  }
 0x152 PF: > { %s895_s28 = sand.u32 1, %s1260_s12   ;;  %p1089_p4 = pnand %p999_p10, %p1356_p9 }
 0x153   : > { %s896_s30 = scalar_lea.sflag [#allocation5], %s895_s28 }
 0x154   : > { %p1090_p6 = pneg %p1089_p4 }
 0x156   : > { %1255 = dma.done.wait (%p1090_p6), %s896_s30, 2048  }
 0x157   : > { %1257 = vsyncadd (%p1090_p6), %s896_s30, 4294965248  ;;  %s16_s17 = sadd.s32 1, %s1280_s17   ;;  %s1584_s12 = smov %s1264_s13 }
 0x158   : > { %p13_p7 = scmp.ge.s32.totalorder %s16_s17, 4   ;;  %s1585_s13 = smov %s1268_s14 }
 0x159   : > { %s1586_s14 = smov %s1354_s24  ;;  %s1587_s15 = smov %s1276_s16 }
 0x15a   : > { %s1588_s16 = smov %s1590_s20  ;;  %15 = sbr.rel (!%p13_p7) target bundleno = 4 (0x4), region = 124 }
 0x15f   :  { %901 = vsyncpa [#allocation5], 1 }
 0x160   :  { %903 = vsyncpa [#allocation5 + $0x1], 1 }

// kernel: lstm_forward.3
= control target key start
LH: loop header
LB: loop body
LE: loop exit
PB: predicated region body
PF: predicated region fallthrough
CT: control target
= control target key end

     0   :  { %8 = vsyncpa [#allocation5], 0  ;;  %s1818_s0 = inlined_call_operand.vmem [shape: bf16[64,128], index: 0, kind: input, shape index: {}]   ;;  %s1819_s1 = inlined_call_operand.vmem [shape: bf16[128,1024], index: 1, kind: input, shape index: {}]   ;;  %s1820_s2 = inlined_call_operand.hbm [shape: f32[1,1024], index: 2, kind: input, shape index: {}]   ;;  %s1821_s3 = inlined_call_operand.vmem [shape: f32[64,1024], index: 3, kind: output, shape index: {}]  }
   0x1   :  { %10 = vsyncpa [#allocation5 + $0x1], 0  ;;  %s1442_s12 = smov 0   ;;  %s1444_s13 = smov 0  }
   0x2   :  { %s1446_s14 = smov 0   ;;  %s1448_s15 = smov 0  }
   0x3   :  { %s1450_s16 = smov 0   ;;  %s1452_s17 = smov 0  }
   0x4 LB: > { %s1180_s18 = sadd.s32 4294967295, %s1418_s17   ;;  %s31_s19 = sadd.s32 1, %s1414_s16  ;;  %s1418_s17 = sphi %s1452_s17, %s16_s17   ;;  %s1414_s16 = sphi %s1450_s16, %s1829_s16   ;;  %s1410_s15 = sphi %s1448_s15, %s1828_s15   ;;  %s1406_s14 = sphi %s1446_s14, %s1827_s14   ;;  %s1402_s13 = sphi %s1444_s13, %s1826_s13   ;;  %s1398_s12 = sphi %s1442_s12, %s1825_s12  }
   0x5   : > { %p33_p0 = scmp.ge.s32.totalorder %s31_s19, 2  ;;  %s72_s20 = sadd.s32 1, %s1406_s14 }
   0x6   : > { %p79_p1 = scmp.ne.s32.totalorder %s1406_s14, %s1402_s13  ;;  %p80_p2 = scmp.eq.s32.totalorder %s1418_s17, 0 }
   0x7   : > { %s1831_s19 = smov (%p33_p0, %s31_s19), 0  ;;  %p111_p4 = scmp.ne.s32.totalorder %s1402_s13, %s1398_s12 }
   0x8   : > { %p1478_p3 = por %p80_p2, %p79_p1  ;;  %s68_s22 = ssub.s32 %s1414_s16, %s1831_s19 }
   0x9   : > { %p112_p5 = scmp.eq.s32.totalorder %s1180_s18, 0  ;;  %p70_p6 = scmp.eq.s32.totalorder %s68_s22, 0 }
   0xa   : > { %p137_p7 = scmp.eq.s32.totalorder %s1180_s18, 1  ;;  %p1184_p10 = scmp.ge.s32.totalorder %s1418_s17, 2 }
   0xb   : > { %p1485_p8 = por %p112_p5, %p111_p4 }
   0xc   : > { %s1490_s24 = scalar_select %p70_p6, %s1406_s14, %s72_s20  }
   0xd   : > { %p1492_p9 = por %p137_p7, %p79_p1  ;;  %171 = sbr.rel (%p1184_p10) target bundleno = 53 (0x35), region = 20 }
  0x12   : > { %174 = sbr.rel (!%p1478_p3) target bundleno = 38 (0x26), region = 24  ;;  %s176_s26 = sand.u32 (%p1478_p3), 1, %s1406_s14  }
  0x13   : > { %s1236_s27 = sshll.u32 (%p1478_p3), %s1414_s16, 4  ;;  %s1185_s28 = sshll.u32 (%p1478_p3), %s176_s26, 8 }
  0x14   : > { %s1504_s4 = scalar_lea.vmem (%p1478_p3), %s1819_s1, %s1236_s27  ;;  %s1509_s5 = scalar_lea.vmem (%p1478_p3), [#allocation3], %s1185_s28 }
  0x15   : > { %v197_v0 = vld [vmem:[%s1504_s4] sm:$0xff] (%p1478_p3)  ;;  %v199_v1 = vld [vmem:[%s1504_s4 + $0x8] sm:$0xff] (%p1478_p3) }
  0x16   : > { %v201_v2 = vld [vmem:[%s1504_s4 + $0x20] sm:$0xff] (%p1478_p3)  ;;  %198 = vst [vmem:[%s1509_s5] sm:$0xff] (%p1478_p3), %v197_v0  ;;  %200 = vst [vmem:[%s1509_s5 + $0x8] sm:$0xff] (%p1478_p3), %v199_v1  ;;  %v203_v3 = vld [vmem:[%s1504_s4 + $0x28] sm:$0xff] (%p1478_p3) }
  0x17   : > { %202 = vst [vmem:[%s1509_s5 + $0x10] sm:$0xff] %v201_v2  ;;  %v205_v4 = vld [vmem:[%s1504_s4 + $0x40] sm:$0xff]  ;;  %v207_v5 = vld [vmem:[%s1504_s4 + $0x48] sm:$0xff]  ;;  %204 = vst [vmem:[%s1509_s5 + $0x18] sm:$0xff] %v203_v3 }
  0x18   : > { %206 = vst [vmem:[%s1509_s5 + $0x20] sm:$0xff] %v205_v4  ;;  %208 = vst [vmem:[%s1509_s5 + $0x28] sm:$0xff] %v207_v5  ;;  %v209_v6 = vld [vmem:[%s1504_s4 + $0x60] sm:$0xff]  ;;  %v211_v7 = vld [vmem:[%s1504_s4 + $0x68] sm:$0xff] }
  0x19   : > { %v213_v8 = vld [vmem:[%s1504_s4 + $0x80] sm:$0xff]  ;;  %210 = vst [vmem:[%s1509_s5 + $0x30] sm:$0xff] %v209_v6  ;;  %212 = vst [vmem:[%s1509_s5 + $0x38] sm:$0xff] %v211_v7  ;;  %v215_v9 = vld [vmem:[%s1504_s4 + $0x88] sm:$0xff] }
  0x1a   : > { %214 = vst [vmem:[%s1509_s5 + $0x40] sm:$0xff] %v213_v8  ;;  %v217_v10 = vld [vmem:[%s1504_s4 + $0xa0] sm:$0xff]  ;;  %v219_v11 = vld [vmem:[%s1504_s4 + $0xa8] sm:$0xff]  ;;  %216 = vst [vmem:[%s1509_s5 + $0x48] sm:$0xff] %v215_v9 }
  0x1b   : > { %218 = vst [vmem:[%s1509_s5 + $0x50] sm:$0xff] %v217_v10  ;;  %220 = vst [vmem:[%s1509_s5 + $0x58] sm:$0xff] %v219_v11  ;;  %v221_v12 = vld [vmem:[%s1504_s4 + $0xc0] sm:$0xff]  ;;  %v223_v13 = vld [vmem:[%s1504_s4 + $0xc8] sm:$0xff] }
  0x1c   : > { %v225_v14 = vld [vmem:[%s1504_s4 + $0xe0] sm:$0xff]  ;;  %222 = vst [vmem:[%s1509_s5 + $0x60] sm:$0xff] %v221_v12  ;;  %224 = vst [vmem:[%s1509_s5 + $0x68] sm:$0xff] %v223_v13  ;;  %v227_v15 = vld [vmem:[%s1504_s4 + $0xe8] sm:$0xff] }
  0x1d   : > { %226 = vst [vmem:[%s1509_s5 + $0x70] sm:$0xff] %v225_v14  ;;  %v229_v16 = vld [vmem:[%s1504_s4 + $0x100] sm:$0xff]  ;;  %v231_v17 = vld [vmem:[%s1504_s4 + $0x108] sm:$0xff]  ;;  %228 = vst [vmem:[%s1509_s5 + $0x78] sm:$0xff] %v227_v15 }
  0x1e   : > { %230 = vst [vmem:[%s1509_s5 + $0x80] sm:$0xff] %v229_v16  ;;  %232 = vst [vmem:[%s1509_s5 + $0x88] sm:$0xff] %v231_v17  ;;  %v233_v18 = vld [vmem:[%s1504_s4 + $0x120] sm:$0xff]  ;;  %v235_v19 = vld [vmem:[%s1504_s4 + $0x128] sm:$0xff] }
  0x1f   : > { %v237_v20 = vld [vmem:[%s1504_s4 + $0x140] sm:$0xff]  ;;  %234 = vst [vmem:[%s1509_s5 + $0x90] sm:$0xff] %v233_v18  ;;  %236 = vst [vmem:[%s1509_s5 + $0x98] sm:$0xff] %v235_v19  ;;  %v239_v21 = vld [vmem:[%s1504_s4 + $0x148] sm:$0xff] }
  0x20   : > { %238 = vst [vmem:[%s1509_s5 + $0xa0] sm:$0xff] %v237_v20  ;;  %v241_v22 = vld [vmem:[%s1504_s4 + $0x160] sm:$0xff]  ;;  %v243_v23 = vld [vmem:[%s1504_s4 + $0x168] sm:$0xff]  ;;  %240 = vst [vmem:[%s1509_s5 + $0xa8] sm:$0xff] %v239_v21 }
  0x21   : > { %242 = vst [vmem:[%s1509_s5 + $0xb0] sm:$0xff] %v241_v22  ;;  %244 = vst [vmem:[%s1509_s5 + $0xb8] sm:$0xff] %v243_v23  ;;  %v245_v24 = vld [vmem:[%s1504_s4 + $0x180] sm:$0xff]  ;;  %v247_v25 = vld [vmem:[%s1504_s4 + $0x188] sm:$0xff] }
  0x22   : > { %v249_v26 = vld [vmem:[%s1504_s4 + $0x1a0] sm:$0xff]  ;;  %246 = vst [vmem:[%s1509_s5 + $0xc0] sm:$0xff] %v245_v24  ;;  %248 = vst [vmem:[%s1509_s5 + $0xc8] sm:$0xff] %v247_v25  ;;  %v251_v27 = vld [vmem:[%s1504_s4 + $0x1a8] sm:$0xff] }
  0x23   : > { %250 = vst [vmem:[%s1509_s5 + $0xd0] sm:$0xff] %v249_v26  ;;  %v253_v28 = vld [vmem:[%s1504_s4 + $0x1c0] sm:$0xff]  ;;  %v255_v29 = vld [vmem:[%s1504_s4 + $0x1c8] sm:$0xff]  ;;  %252 = vst [vmem:[%s1509_s5 + $0xd8] sm:$0xff] %v251_v27 }
  0x24   : > { %254 = vst [vmem:[%s1509_s5 + $0xe0] sm:$0xff] %v253_v28  ;;  %256 = vst [vmem:[%s1509_s5 + $0xe8] sm:$0xff] %v255_v29  ;;  %v257_v30 = vld [vmem:[%s1504_s4 + $0x1e0] sm:$0xff]  ;;  %v259_v31 = vld [vmem:[%s1504_s4 + $0x1e8] sm:$0xff] }
  0x25   : > { %258 = vst [vmem:[%s1509_s5 + $0xf0] sm:$0xff] %v257_v30  ;;  %260 = vst [vmem:[%s1509_s5 + $0xf8] sm:$0xff] %v259_v31 }
  0x26 PF: > { %s267_s6 = sand.u32 1, %s1406_s14   ;;  %s1237_s7 = sshll.u32 %s1414_s16, 6 }
  0x27   : > { %s1188_s8 = sshll.u32 %s267_s6, 2  ;;  %s277_s11 = scalar_lea.hbm %s1820_s2, %s1237_s7 }
  0x28   : > { %s271_s12 = scalar_lea.vmem [#allocation4], %s1188_s8  ;;  %s268_s20 = scalar_lea.sflag [#allocation5], %s267_s6 }
  0x29   : > { %s279_s18 = sshll.u32 %s271_s12, 4  ;;  %s1420_s26 = smov [#allocation4]   ;;  %s280_s18 = int_to_ptr.vmem [resolvable:$true] %s279_s18 }
  0x2a   : > { %s1354_s22 = scalar_lea.vmem %s280_s18, 64  ;;  %s1358_s27 = sshll.u32 %s1420_s26, 4  ;;  %s1359_s27 = int_to_ptr.vmem [resolvable:$false] %s1358_s27 }
  0x2b   : > { %p1355_p11 = scmp.ne.s32.totalorder %s280_s18, %s1354_s22  ;;  %s1360_s28 = scalar_lea.vmem %s1359_s27, 128 }
  0x2c   : > { %p1361_p0 = scmp.lt.s32.totalorder %s280_s18, %s1359_s27  ;;  %p1362_p1 = scmp.lt.s32.totalorder %s1360_s28, %s1354_s22 }
  0x2d   : > { %p1356_p12 = pnand %p1355_p11, %p1478_p3 }
  0x2e   : > { %p1363_p2 = por %p1362_p1, %p1361_p0 }
  0x2f   : > { %p1357_p13 = pneg %p1356_p12 }
  0x31   : > { %p1364_p4 = pnand %p1363_p2, %p1357_p13 }
  0x33   : > { %1367 = shalt.err (!%p1364_p4)
}
  0x34   : > { %1239 = dma.hbm_to_vmem [thread:$0]  (%p1478_p3), %s277_s11, 64, %s280_s18, %s268_s20  }
  0x35 PF: > { %p1191_p5 = scmp.ge.s32.totalorder %s1418_s17, 1  ;;  %p284_p6 = scmp.lt.s32.totalorder %s1418_s17, 3 }
  0x37   : > { %p285_p7 = pnand %p1191_p5, %p284_p6 }
  0x38   : > { %s1584_s29 = sand.u32 (!%p285_p7), 1, %s1402_s13  }
  0x39   : > { %288 = sbr.rel (%p285_p7) target bundleno = 331 (0x14b), region = 51  ;;  %s1192_s30 = sshll.u32 (!%p285_p7), %s1584_s29, 8 }
  0x3a   : > { %s1193_s4 = sshll.u32 (!%p285_p7), %s1584_s29, 2  ;;  %s1590_s21 = scalar_lea.vmem (!%p285_p7), [#allocation3], %s1192_s30 }
  0x3b   : > { %s298_s5 = scalar_lea.sflag (!%p285_p7), [#allocation5], %s1584_s29  ;;  %s1593_s6 = scalar_lea.vmem (!%p285_p7), [#allocation4], %s1193_s4 }
  0x3e   : > { %1393 = dma.done.wait (%p1485_p8), %s298_s5, 64  }
  0x3f   : > { %1395 = vsyncadd (%p1485_p8), %s298_s5, 4294967232  ;;  %v1421_v32 = vmov 0   ;;  %v1290_v33 = vld [vmem:[%s1590_s21 + $0xe4] ss:$16 sps:$4 sm:$0xff]   ;;  %v1292_v34 = vld [vmem:[%s1590_s21 + $0xec] ss:$16 sps:$4 sm:$0xff]   ;;  %v889_v5 = vlaneseq }
  0x40   : > { %674 = vmatprep.mubr.bf16.mxu0 %v1421_v32  ;;  %747 = vmatprep.mubr.bf16.mxu1 %v1421_v32  ;;  %v1294_v35 = vld [vmem:[%s1590_s21 + $0xe0] ss:$16 sps:$4 sm:$0xff]   ;;  %v1295_v36 = vld [vmem:[%s1590_s21 + $0xe8] ss:$16 sps:$4 sm:$0xff]   ;;  %v1296_v37 = vld [vmem:[%s1590_s21 + $0xc4] ss:$16 sps:$4 sm:$0xff]  }
  0x41   : > { %642 = vmatprep.subr.bf16.mxu0 %v1290_v33  ;;  %715 = vmatprep.subr.bf16.mxu1 %v1292_v34  ;;  %v1298_v38 = vld [vmem:[%s1590_s21 + $0xcc] ss:$16 sps:$4 sm:$0xff]   ;;  %v1300_v39 = vld [vmem:[%s1590_s21 + $0xc0] ss:$16 sps:$4 sm:$0xff]   ;;  %v1301_v40 = vld [vmem:[%s1590_s21 + $0xc8] ss:$16 sps:$4 sm:$0xff]  }
  0x42   : > { %643 = vmatpush1.bf16.msra.mxu0 %v1294_v35  ;;  %716 = vmatpush1.bf16.msra.mxu1 %v1295_v36  ;;  %v1302_v41 = vld [vmem:[%s1590_s21 + $0xa4] ss:$16 sps:$4 sm:$0xff]   ;;  %v1304_v42 = vld [vmem:[%s1590_s21 + $0xac] ss:$16 sps:$4 sm:$0xff]   ;;  %v1306_v43 = vld [vmem:[%s1590_s21 + $0xa0] ss:$16 sps:$4 sm:$0xff]  }
  0x43   : > { %644 = vmatprep.subr.bf16.mxu0 %v1296_v37  ;;  %717 = vmatprep.subr.bf16.mxu1 %v1298_v38  ;;  %v1307_v44 = vld [vmem:[%s1590_s21 + $0xa8] ss:$16 sps:$4 sm:$0xff]   ;;  %v1308_v45 = vld [vmem:[%s1590_s21 + $0x84] ss:$16 sps:$4 sm:$0xff]   ;;  %v1310_v46 = vld [vmem:[%s1590_s21 + $0x8c] ss:$16 sps:$4 sm:$0xff]  }
  0x44   : > { %v1312_v47 = vld [vmem:[%s1590_s21 + $0x80] ss:$16 sps:$4 sm:$0xff]   ;;  %v1313_v48 = vld [vmem:[%s1590_s21 + $0x88] ss:$16 sps:$4 sm:$0xff]   ;;  %v1314_v49 = vld [vmem:[%s1590_s21 + $0x64] ss:$16 sps:$4 sm:$0xff]  }
  0x45   : > { %v1316_v50 = vld [vmem:[%s1590_s21 + $0x6c] ss:$16 sps:$4 sm:$0xff]   ;;  %v1318_v51 = vld [vmem:[%s1590_s21 + $0x60] ss:$16 sps:$4 sm:$0xff]   ;;  %v1319_v52 = vld [vmem:[%s1590_s21 + $0x68] ss:$16 sps:$4 sm:$0xff]  }
  0x46   : > { %645 = vmatpush1.bf16.msra.mxu0 %v1300_v39  ;;  %718 = vmatpush1.bf16.msra.mxu1 %v1301_v40  ;;  %v1320_v53 = vld [vmem:[%s1590_s21 + $0x44] ss:$16 sps:$4 sm:$0xff]   ;;  %v1322_v54 = vld [vmem:[%s1590_s21 + $0x4c] ss:$16 sps:$4 sm:$0xff]   ;;  %v1324_v55 = vld [vmem:[%s1590_s21 + $0x40] ss:$16 sps:$4 sm:$0xff]  }
  0x47   : > { %646 = vmatprep.subr.bf16.mxu0 %v1302_v41  ;;  %719 = vmatprep.subr.bf16.mxu1 %v1304_v42  ;;  %v1325_v56 = vld [vmem:[%s1590_s21 + $0x48] ss:$16 sps:$4 sm:$0xff]   ;;  %v1326_v57 = vld [vmem:[%s1590_s21 + $0x24] ss:$16 sps:$4 sm:$0xff]   ;;  %v1328_v58 = vld [vmem:[%s1590_s21 + $0x2c] ss:$16 sps:$4 sm:$0xff]  }
  0x48   : > { %v1330_v59 = vld [vmem:[%s1590_s21 + $0x20] ss:$16 sps:$4 sm:$0xff]   ;;  %v1331_v60 = vld [vmem:[%s1590_s21 + $0x28] ss:$16 sps:$4 sm:$0xff]   ;;  %v1332_v61 = vld [vmem:[%s1590_s21 + $0x4] ss:$16 sps:$4 sm:$0xff]  }
  0x49   : > { %v1334_v62 = vld [vmem:[%s1590_s21 + $0xc] ss:$16 sps:$4 sm:$0xff]   ;;  %v1336_v63 = vld [vmem:[%s1590_s21] ss:$16 sps:$4 sm:$0xff]   ;;  %v1337_v0 = vld [vmem:[%s1590_s21 + $0x8] ss:$16 sps:$4 sm:$0xff]  }
  0x4a   : > { %647 = vmatpush1.bf16.msra.mxu0 %v1306_v43  ;;  %720 = vmatpush1.bf16.msra.mxu1 %v1307_v44  ;;  %v1338_v1 = vld [vmem:[%s1818_s0] sm:$0xff]   ;;  %v1339_v2 = vld [vmem:[%s1818_s0 + $0x8] sm:$0xff]   ;;  %v1340_v3 = vld [vmem:[%s1818_s0 + $0x10] sm:$0xff]   ;;  %v890_v6 = vshrl.u32 %v889_v5, 7  ;;  %s1664_s20 = scalar_lea.vmem [#allocation6], %s1192_s30  ;;  %s1238_s22 = sshll.u32 (%p1492_p9), %s1410_s15, 5 }
  0x4b   : > { %648 = vmatprep.subr.bf16.mxu0 %v1308_v45  ;;  %721 = vmatprep.subr.bf16.mxu1 %v1310_v46  ;;  %v1341_v4 = vld [vmem:[%s1818_s0 + $0x18] sm:$0xff]   ;;  %v887_v9 = vld [vmem:[%s1593_s6] sm:$0xf]  ;;  %s1737_s28 = scalar_lea.vmem (%p1492_p9), %s1821_s3, %s1238_s22 }
  0x4c   : > { %v891_v7 = vsub.s32 0, %v890_v6  ;;  %v899_v8 = vsub.s32 2, %v890_v6  ;;  %v895_v10 = vsub.s32 1, %v890_v6  ;;  %v903_v11 = vsub.s32 3, %v890_v6 }
  0x4e   : > { %649 = vmatpush1.bf16.msra.mxu0 %v1312_v47  ;;  %722 = vmatpush1.bf16.msra.mxu1 %v1313_v48  ;;  %v1652_v12 = vrot.slane %v887_v9, %v891_v7  ;;  %v1654_v13 = vrot.slane %v887_v9, %v899_v8  ;;  %v1656_v14 = vrot.slane %v887_v9, %v895_v10 }
  0x4f   : > { %650 = vmatprep.subr.bf16.mxu0 %v1314_v49  ;;  %723 = vmatprep.subr.bf16.mxu1 %v1316_v50  ;;  %v1658_v15 = vrot.slane %v887_v9, %v903_v11 }
  0x52   : > { %651 = vmatpush1.bf16.msra.mxu0 %v1318_v51  ;;  %724 = vmatpush1.bf16.msra.mxu1 %v1319_v52 }
  0x53   : > { %652 = vmatprep.subr.bf16.mxu0 %v1320_v53  ;;  %725 = vmatprep.subr.bf16.mxu1 %v1322_v54 }
  0x56   : > { %653 = vmatpush1.bf16.msra.mxu0 %v1324_v55  ;;  %726 = vmatpush1.bf16.msra.mxu1 %v1325_v56 }
  0x57   : > { %654 = vmatprep.subr.bf16.mxu0 %v1326_v57  ;;  %727 = vmatprep.subr.bf16.mxu1 %v1328_v58 }
  0x5a   : > { %655 = vmatpush1.bf16.msra.mxu0 %v1330_v59  ;;  %728 = vmatpush1.bf16.msra.mxu1 %v1331_v60 }
  0x5b   : > { %656 = vmatprep.subr.bf16.mxu0 %v1332_v61  ;;  %729 = vmatprep.subr.bf16.mxu1 %v1334_v62 }
  0x5e   : > { %657 = vmatpush1.bf16.msra.mxu0 %v1336_v63  ;;  %730 = vmatpush1.bf16.msra.mxu1 %v1337_v0 }
  0x61   : > { %675 = vmatmul.mubr.bf16.vlgmr.msra.gmra.mxu0 %v1338_v1  ;;  %748 = vmatmul.mubr.bf16.vlgmr.msra.gmra.mxu1 %v1338_v1 }
  0x62   : > { %684 = vmatprep.mubr.bf16.mxu0 %v1421_v32  ;;  %757 = vmatprep.mubr.bf16.mxu1 %v1421_v32 }
  0x69   : > { %685 = vmatmul.mubr.bf16.gmra.mxu0 %v1339_v2  ;;  %758 = vmatmul.mubr.bf16.gmra.mxu1 %v1339_v2 }
  0x6a   : > { %694 = vmatprep.mubr.bf16.mxu0 %v1421_v32  ;;  %767 = vmatprep.mubr.bf16.mxu1 %v1421_v32 }
  0x71   : > { %695 = vmatmul.mubr.bf16.gmra.mxu0 %v1340_v3  ;;  %768 = vmatmul.mubr.bf16.gmra.mxu1 %v1340_v3 }
  0x72   : > { %704 = vmatprep.mubr.bf16.mxu0 %v1421_v32  ;;  %777 = vmatprep.mubr.bf16.mxu1 %v1421_v32 }
  0x79   : > { %705 = vmatmul.mubr.bf16.gmra.mxu0 %v1341_v4  ;;  %778 = vmatmul.mubr.bf16.gmra.mxu1 %v1341_v4 }
 0x121   : > { %v676_v16 = vpop.f32.mrf.mxu0  ;;  %v749_v17 = vpop.f32.mrf.mxu1 }
 0x122   : > { %v909_v18 = vadd.f32 %v1652_v12, %v676_v16  ;;  %v911_v19 = vadd.f32 %v1654_v13, %v749_v17 }
 0x123   : > { %v678_v20 = vpop.f32.mrf.mxu0  ;;  %v751_v21 = vpop.f32.mrf.mxu1 }
 0x124   : > { %941 = vst [vmem:[%s1664_s20] sm:$0xff] %v909_v18  ;;  %943 = vst [vmem:[%s1664_s20 + $0x10] sm:$0xff] %v911_v19  ;;  %v910_v22 = vadd.f32 %v1656_v14, %v678_v20  ;;  %v912_v23 = vadd.f32 %v1658_v15, %v751_v21 }
 0x125   : > { %v680_v24 = vpop.f32.mrf.mxu0  ;;  %v753_v25 = vpop.f32.mrf.mxu1 }
 0x126   : > { %942 = vst [vmem:[%s1664_s20 + $0x8] sm:$0xff] %v910_v22  ;;  %944 = vst [vmem:[%s1664_s20 + $0x18] sm:$0xff] %v912_v23  ;;  %v913_v26 = vadd.f32 %v1652_v12, %v680_v24  ;;  %v915_v27 = vadd.f32 %v1654_v13, %v753_v25 }
 0x127   : > { %v682_v28 = vpop.f32.mrf.mxu0  ;;  %v755_v29 = vpop.f32.mrf.mxu1 }
 0x128   : > { %945 = vst [vmem:[%s1664_s20 + $0x20] sm:$0xff] %v913_v26  ;;  %947 = vst [vmem:[%s1664_s20 + $0x30] sm:$0xff] %v915_v27  ;;  %v914_v30 = vadd.f32 %v1656_v14, %v682_v28  ;;  %v916_v31 = vadd.f32 %v1658_v15, %v755_v29 }
 0x129   : > { %v686_v32 = vpop.f32.mrf.mxu0  ;;  %v759_v33 = vpop.f32.mrf.mxu1 }
 0x12a   : > { %946 = vst [vmem:[%s1664_s20 + $0x28] sm:$0xff] %v914_v30  ;;  %948 = vst [vmem:[%s1664_s20 + $0x38] sm:$0xff] %v916_v31  ;;  %v917_v34 = vadd.f32 %v1652_v12, %v686_v32  ;;  %v919_v35 = vadd.f32 %v1654_v13, %v759_v33 }
 0x12b   : > { %v688_v36 = vpop.f32.mrf.mxu0  ;;  %v761_v37 = vpop.f32.mrf.mxu1 }
 0x12c   : > { %949 = vst [vmem:[%s1664_s20 + $0x40] sm:$0xff] %v917_v34  ;;  %951 = vst [vmem:[%s1664_s20 + $0x50] sm:$0xff] %v919_v35  ;;  %v918_v38 = vadd.f32 %v1656_v14, %v688_v36  ;;  %v920_v39 = vadd.f32 %v1658_v15, %v761_v37 }
 0x12d   : > { %v690_v40 = vpop.f32.mrf.mxu0  ;;  %v763_v41 = vpop.f32.mrf.mxu1 }
 0x12e   : > { %950 = vst [vmem:[%s1664_s20 + $0x48] sm:$0xff] %v918_v38  ;;  %952 = vst [vmem:[%s1664_s20 + $0x58] sm:$0xff] %v920_v39  ;;  %v921_v42 = vadd.f32 %v1652_v12, %v690_v40  ;;  %v923_v43 = vadd.f32 %v1654_v13, %v763_v41 }
 0x12f   : > { %v692_v44 = vpop.f32.mrf.mxu0  ;;  %v765_v45 = vpop.f32.mrf.mxu1  ;;  %v1006_v20 = vld [vmem:[%s1664_s20 + $0x20] sm:$0xff] (%p1492_p9)  ;;  %v1010_v22 = vld [vmem:[%s1664_s20 + $0x30] sm:$0xff] (%p1492_p9) }
 0x130   : > { %953 = vst [vmem:[%s1664_s20 + $0x60] sm:$0xff] %v921_v42  ;;  %955 = vst [vmem:[%s1664_s20 + $0x70] sm:$0xff] %v923_v43  ;;  %v922_v46 = vadd.f32 %v1656_v14, %v692_v44  ;;  %v924_v47 = vadd.f32 %v1658_v15, %v765_v45 }
 0x131   : > { %v696_v48 = vpop.f32.mrf.mxu0  ;;  %v769_v49 = vpop.f32.mrf.mxu1  ;;  %v1008_v21 = vld [vmem:[%s1664_s20 + $0x28] sm:$0xff] (%p1492_p9)  ;;  %1007 = vst [vmem:[%s1737_s28 + $0x40] sm:$0xff] (%p1492_p9), %v1006_v20  ;;  %v1012_v23 = vld [vmem:[%s1664_s20 + $0x38] sm:$0xff] (%p1492_p9)  ;;  %1011 = vst [vmem:[%s1737_s28 + $0x50] sm:$0xff] (%p1492_p9), %v1010_v22 }
 0x132   : > { %954 = vst [vmem:[%s1664_s20 + $0x68] sm:$0xff] %v922_v46  ;;  %956 = vst [vmem:[%s1664_s20 + $0x78] sm:$0xff] %v924_v47  ;;  %v925_v50 = vadd.f32 %v1652_v12, %v696_v48  ;;  %v927_v51 = vadd.f32 %v1654_v13, %v769_v49 }
 0x133   : > { %v698_v52 = vpop.f32.mrf.mxu0  ;;  %v771_v53 = vpop.f32.mrf.mxu1  ;;  %1009 = vst [vmem:[%s1737_s28 + $0x48] sm:$0xff] (%p1492_p9), %v1008_v21  ;;  %v1014_v24 = vld [vmem:[%s1664_s20 + $0x40] sm:$0xff] (%p1492_p9)  ;;  %1013 = vst [vmem:[%s1737_s28 + $0x58] sm:$0xff] (%p1492_p9), %v1012_v23  ;;  %v1018_v26 = vld [vmem:[%s1664_s20 + $0x50] sm:$0xff] (%p1492_p9) }
 0x134   : > { %957 = vst [vmem:[%s1664_s20 + $0x80] sm:$0xff] %v925_v50  ;;  %959 = vst [vmem:[%s1664_s20 + $0x90] sm:$0xff] %v927_v51  ;;  %v926_v54 = vadd.f32 %v1656_v14, %v698_v52  ;;  %v928_v55 = vadd.f32 %v1658_v15, %v771_v53 }
 0x135   : > { %v700_v56 = vpop.f32.mrf.mxu0  ;;  %v773_v57 = vpop.f32.mrf.mxu1  ;;  %1015 = vst [vmem:[%s1737_s28 + $0x80] sm:$0xff] (%p1492_p9), %v1014_v24  ;;  %v1016_v25 = vld [vmem:[%s1664_s20 + $0x48] sm:$0xff] (%p1492_p9)  ;;  %v1020_v27 = vld [vmem:[%s1664_s20 + $0x58] sm:$0xff] (%p1492_p9)  ;;  %1019 = vst [vmem:[%s1737_s28 + $0x90] sm:$0xff] (%p1492_p9), %v1018_v26 }
 0x136   : > { %958 = vst [vmem:[%s1664_s20 + $0x88] sm:$0xff] %v926_v54  ;;  %960 = vst [vmem:[%s1664_s20 + $0x98] sm:$0xff] %v928_v55  ;;  %v929_v58 = vadd.f32 %v1652_v12, %v700_v56  ;;  %v931_v59 = vadd.f32 %v1654_v13, %v773_v57 }
 0x137   : > { %v702_v60 = vpop.f32.mrf.mxu0  ;;  %v775_v61 = vpop.f32.mrf.mxu1  ;;  %1017 = vst [vmem:[%s1737_s28 + $0x88] sm:$0xff] (%p1492_p9), %v1016_v25  ;;  %1021 = vst [vmem:[%s1737_s28 + $0x98] sm:$0xff] (%p1492_p9), %v1020_v27  ;;  %v1022_v28 = vld [vmem:[%s1664_s20 + $0x60] sm:$0xff] (%p1492_p9)  ;;  %v1026_v30 = vld [vmem:[%s1664_s20 + $0x70] sm:$0xff] (%p1492_p9) }
 0x138   : > { %961 = vst [vmem:[%s1664_s20 + $0xa0] sm:$0xff] %v929_v58  ;;  %963 = vst [vmem:[%s1664_s20 + $0xb0] sm:$0xff] %v931_v59  ;;  %v930_v62 = vadd.f32 %v1656_v14, %v702_v60  ;;  %v932_v63 = vadd.f32 %v1658_v15, %v775_v61 }
 0x139   : > { %v706_v0 = vpop.f32.mrf.mxu0  ;;  %v779_v1 = vpop.f32.mrf.mxu1  ;;  %v1024_v29 = vld [vmem:[%s1664_s20 + $0x68] sm:$0xff] (%p1492_p9)  ;;  %1023 = vst [vmem:[%s1737_s28 + $0xc0] sm:$0xff] (%p1492_p9), %v1022_v28  ;;  %1027 = vst [vmem:[%s1737_s28 + $0xd0] sm:$0xff] (%p1492_p9), %v1026_v30  ;;  %v1028_v31 = vld [vmem:[%s1664_s20 + $0x78] sm:$0xff] (%p1492_p9) }
 0x13a   : > { %962 = vst [vmem:[%s1664_s20 + $0xa8] sm:$0xff] %v930_v62  ;;  %964 = vst [vmem:[%s1664_s20 + $0xb8] sm:$0xff] %v932_v63  ;;  %v933_v2 = vadd.f32 %v1652_v12, %v706_v0  ;;  %v935_v3 = vadd.f32 %v1654_v13, %v779_v1 }
 0x13b   : > { %v708_v4 = vpop.f32.mrf.mxu0  ;;  %v781_v5 = vpop.f32.mrf.mxu1  ;;  %1025 = vst [vmem:[%s1737_s28 + $0xc8] sm:$0xff] (%p1492_p9), %v1024_v29  ;;  %v1030_v32 = vld [vmem:[%s1664_s20 + $0x80] sm:$0xff] (%p1492_p9)  ;;  %1029 = vst [vmem:[%s1737_s28 + $0xd8] sm:$0xff] (%p1492_p9), %v1028_v31  ;;  %v1034_v34 = vld [vmem:[%s1664_s20 + $0x90] sm:$0xff] (%p1492_p9) }
 0x13c   : > { %965 = vst [vmem:[%s1664_s20 + $0xc0] sm:$0xff] %v933_v2  ;;  %967 = vst [vmem:[%s1664_s20 + $0xd0] sm:$0xff] %v935_v3  ;;  %v934_v6 = vadd.f32 %v1656_v14, %v708_v4  ;;  %v936_v7 = vadd.f32 %v1658_v15, %v781_v5 }
 0x13d   : > { %v710_v8 = vpop.f32.mrf.mxu0  ;;  %v783_v9 = vpop.f32.mrf.mxu1  ;;  %v1032_v33 = vld [vmem:[%s1664_s20 + $0x88] sm:$0xff] (%p1492_p9)  ;;  %1031 = vst [vmem:[%s1737_s28 + $0x100] sm:$0xff] (%p1492_p9), %v1030_v32  ;;  %v1036_v35 = vld [vmem:[%s1664_s20 + $0x98] sm:$0xff] (%p1492_p9)  ;;  %1035 = vst [vmem:[%s1737_s28 + $0x110] sm:$0xff] (%p1492_p9), %v1034_v34 }
 0x13e   : > { %966 = vst [vmem:[%s1664_s20 + $0xc8] sm:$0xff] %v934_v6  ;;  %968 = vst [vmem:[%s1664_s20 + $0xd8] sm:$0xff] %v936_v7  ;;  %v937_v10 = vadd.f32 %v1652_v12, %v710_v8  ;;  %v939_v11 = vadd.f32 %v1654_v13, %v783_v9  ;;  %979 = sbr.rel (!%p1492_p9) target bundleno = 331 (0x14b), region = 71  ;;  %v998_v12 = vld [vmem:[%s1664_s20] sm:$0xff] (%p1492_p9)  ;;  %v1000_v13 = vld [vmem:[%s1664_s20 + $0x8] sm:$0xff] (%p1492_p9) }
 0x13f   : > { %v712_v16 = vpop.f32.mrf.mxu0  ;;  %v785_v17 = vpop.f32.mrf.mxu1  ;;  %999 = vst [vmem:[%s1737_s28] sm:$0xff] (%p1492_p9), %v998_v12  ;;  %1001 = vst [vmem:[%s1737_s28 + $0x8] sm:$0xff] (%p1492_p9), %v1000_v13  ;;  %v1038_v36 = vld [vmem:[%s1664_s20 + $0xa0] sm:$0xff] (%p1492_p9)  ;;  %v1042_v38 = vld [vmem:[%s1664_s20 + $0xb0] sm:$0xff] (%p1492_p9) }
 0x140   : > { %969 = vst [vmem:[%s1664_s20 + $0xe0] sm:$0xff] %v937_v10  ;;  %971 = vst [vmem:[%s1664_s20 + $0xf0] sm:$0xff] %v939_v11  ;;  %v938_v18 = vadd.f32 %v1656_v14, %v712_v16  ;;  %v940_v19 = vadd.f32 %v1658_v15, %v785_v17  ;;  %v1002_v14 = vld [vmem:[%s1664_s20 + $0x10] sm:$0xff] (%p1492_p9)  ;;  %v1004_v15 = vld [vmem:[%s1664_s20 + $0x18] sm:$0xff] (%p1492_p9) }
 0x141   : > { %1003 = vst [vmem:[%s1737_s28 + $0x10] sm:$0xff] (%p1492_p9), %v1002_v14  ;;  %1005 = vst [vmem:[%s1737_s28 + $0x18] sm:$0xff] (%p1492_p9), %v1004_v15  ;;  %v1040_v37 = vld [vmem:[%s1664_s20 + $0xa8] sm:$0xff] (%p1492_p9)  ;;  %v1044_v39 = vld [vmem:[%s1664_s20 + $0xb8] sm:$0xff] (%p1492_p9) }
 0x142   : > { %970 = vst [vmem:[%s1664_s20 + $0xe8] sm:$0xff] %v938_v18  ;;  %972 = vst [vmem:[%s1664_s20 + $0xf8] sm:$0xff] %v940_v19 }
 0x143   : > { %1033 = vst [vmem:[%s1737_s28 + $0x108] sm:$0xff] %v1032_v33  ;;  %1037 = vst [vmem:[%s1737_s28 + $0x118] sm:$0xff] %v1036_v35  ;;  %v1046_v40 = vld [vmem:[%s1664_s20 + $0xc0] sm:$0xff]  ;;  %v1050_v42 = vld [vmem:[%s1664_s20 + $0xd0] sm:$0xff] }
 0x144   : > { %1039 = vst [vmem:[%s1737_s28 + $0x140] sm:$0xff] %v1038_v36  ;;  %1041 = vst [vmem:[%s1737_s28 + $0x148] sm:$0xff] %v1040_v37 }
 0x145   : > { %1043 = vst [vmem:[%s1737_s28 + $0x150] sm:$0xff] %v1042_v38  ;;  %1045 = vst [vmem:[%s1737_s28 + $0x158] sm:$0xff] %v1044_v39  ;;  %v1048_v41 = vld [vmem:[%s1664_s20 + $0xc8] sm:$0xff]  ;;  %v1052_v43 = vld [vmem:[%s1664_s20 + $0xd8] sm:$0xff] }
 0x146   : > { %1047 = vst [vmem:[%s1737_s28 + $0x180] sm:$0xff] %v1046_v40  ;;  %1049 = vst [vmem:[%s1737_s28 + $0x188] sm:$0xff] %v1048_v41 }
 0x147   : > { %1051 = vst [vmem:[%s1737_s28 + $0x190] sm:$0xff] %v1050_v42  ;;  %v1054_v44 = vld [vmem:[%s1664_s20 + $0xe0] sm:$0xff]  ;;  %1053 = vst [vmem:[%s1737_s28 + $0x198] sm:$0xff] %v1052_v43  ;;  %v1058_v46 = vld [vmem:[%s1664_s20 + $0xf0] sm:$0xff] }
 0x148   : > { %1055 = vst [vmem:[%s1737_s28 + $0x1c0] sm:$0xff] %v1054_v44  ;;  %1059 = vst [vmem:[%s1737_s28 + $0x1d0] sm:$0xff] %v1058_v46 }
 0x149   : > { %v1056_v45 = vld [vmem:[%s1664_s20 + $0xe8] sm:$0xff]  ;;  %v1060_v47 = vld [vmem:[%s1664_s20 + $0xf8] sm:$0xff] }
 0x14a   : > { %1057 = vst [vmem:[%s1737_s28 + $0x1c8] sm:$0xff] %v1056_v45  ;;  %1061 = vst [vmem:[%s1737_s28 + $0x1d8] sm:$0xff] %v1060_v47 }
 0x14b PF: > { %s16_s17 = sadd.s32 1, %s1418_s17   ;;  %s1825_s12 = smov %s1402_s13 }
 0x14c   : > { %p13_p3 = scmp.ge.s32.totalorder %s16_s17, 4   ;;  %s1826_s13 = smov %s1406_s14 }
 0x14d   : > { %s1827_s14 = smov %s1490_s24  ;;  %s1828_s15 = smov %s1414_s16 }
 0x14e   : > { %s1829_s16 = smov %s1831_s19  ;;  %15 = sbr.rel (!%p13_p3) target bundleno = 4 (0x4), region = 137 }
 0x153   :  { %1077 = vsyncpa [#allocation5], 1 }
 0x154   :  { %1079 = vsyncpa [#allocation5 + $0x1], 1 }

// kernel: lstm_forward.4
= control target key start
LH: loop header
LB: loop body
LE: loop exit
PB: predicated region body
PF: predicated region fallthrough
CT: control target
= control target key end

     0   :  { %12 = vsyncpa [#allocation5], 0  ;;  %s6365_s0 = inlined_call_operand.vmem [shape: f32[8,8,1024], index: 0, kind: input, shape index: {}]   ;;  %s6366_s1 = inlined_call_operand.vmem [shape: bf16[256,1024], index: 1, kind: input, shape index: {}]   ;;  %s6367_s2 = inlined_call_operand.vmem [shape: f32[8,256], index: 2, kind: input, shape index: {}]   ;;  %s6368_s3 = inlined_call_operand.vmem [shape: f32[8,256], index: 3, kind: input, shape index: {}]   ;;  %s6369_s4 = inlined_call_operand.vmem [shape: f32[8,8,256], index: 4, kind: output, shape index: {0}]   ;;  %s6370_s5 = inlined_call_operand.hbm [shape: f32[8,256], index: 5, kind: output, shape index: {1}]   ;;  %s6371_s6 = inlined_call_operand.hbm [shape: f32[8,256], index: 6, kind: output, shape index: {2}]  }
   0x1   :  { %v94_v0 = vld [vmem:[%s6366_s1 + $0x1c0] sm:$0xff]  ;;  %v95_v2 = vld [vmem:[%s6366_s1 + $0x1c8] sm:$0xff] }
   0x2   :  { %v98_v1 = vld [vmem:[%s6366_s1 + $0x1e0] sm:$0xff]  ;;  %v99_v4 = vld [vmem:[%s6366_s1 + $0x1e8] sm:$0xff] }
   0x3   :  { %v4016_v3 = vcombine.high %v94_v0, %v98_v1  ;;  %v4021_v5 = vcombine.low %v94_v0, %v98_v1  ;;  %v86_v6 = vld [vmem:[%s6366_s1 + $0x180] sm:$0xff]  ;;  %v4029_v8 = vcombine.high %v95_v2, %v99_v4  ;;  %v4031_v9 = vcombine.low %v95_v2, %v99_v4  ;;  %v87_v11 = vld [vmem:[%s6366_s1 + $0x188] sm:$0xff] }
   0x4   :  { %v90_v7 = vld [vmem:[%s6366_s1 + $0x1a0] sm:$0xff]  ;;  %v91_v12 = vld [vmem:[%s6366_s1 + $0x1a8] sm:$0xff] }
   0x5   :  { %6639 = vst [vmem:[#allocation10_spill] sm:$0xff] %v4016_v3  ;;  %6640 = vst [vmem:[#allocation11_spill] sm:$0xff] %v4021_v5  ;;  %v4033_v10 = vcombine.high %v86_v6, %v90_v7  ;;  %v78_v13 = vld [vmem:[%s6366_s1 + $0x140] sm:$0xff]  ;;  %816 = vmatprep.subr.bf16.mxu0 %v4016_v3  ;;  %v4045_v14 = vcombine.high %v87_v11, %v91_v12  ;;  %v79_v16 = vld [vmem:[%s6366_s1 + $0x148] sm:$0xff]  ;;  %857 = vmatprep.subr.bf16.mxu1 %v4029_v8 }
   0x6   :  { %6641 = vst [vmem:[#allocation12_spill] sm:$0xff] %v4029_v8  ;;  %6642 = vst [vmem:[#allocation13_spill] sm:$0xff] %v4031_v9  ;;  %v82_v15 = vld [vmem:[%s6366_s1 + $0x160] sm:$0xff]  ;;  %v83_v17 = vld [vmem:[%s6366_s1 + $0x168] sm:$0xff]  ;;  %817 = vmatpush1.bf16.msra.mxu0 %v4021_v5  ;;  %v4058_v18 = vcombine.low %v86_v6, %v90_v7  ;;  %858 = vmatpush1.bf16.msra.mxu1 %v4031_v9  ;;  %v4062_v19 = vcombine.low %v87_v11, %v91_v12 }
   0x7   :  { %6643 = vst [vmem:[#allocation14_spill] sm:$0xff] %v4033_v10  ;;  %6644 = vst [vmem:[#allocation15_spill] sm:$0xff] %v4045_v14  ;;  %818 = vmatprep.subr.bf16.mxu0 %v4033_v10  ;;  %v4064_v20 = vcombine.high %v78_v13, %v82_v15  ;;  %859 = vmatprep.subr.bf16.mxu1 %v4045_v14  ;;  %v4067_v21 = vcombine.high %v79_v16, %v83_v17  ;;  %v70_v22 = vld [vmem:[%s6366_s1 + $0x100] sm:$0xff]  ;;  %v71_v24 = vld [vmem:[%s6366_s1 + $0x108] sm:$0xff] }
   0x8   :  { %6645 = vst [vmem:[#allocation16_spill] sm:$0xff] %v4058_v18  ;;  %6646 = vst [vmem:[#allocation17_spill] sm:$0xff] %v4062_v19  ;;  %v74_v23 = vld [vmem:[%s6366_s1 + $0x120] sm:$0xff]  ;;  %v75_v25 = vld [vmem:[%s6366_s1 + $0x128] sm:$0xff]  ;;  %v4082_v26 = vcombine.low %v78_v13, %v82_v15  ;;  %v4086_v27 = vcombine.low %v79_v16, %v83_v17 }
   0x9   :  { %6647 = vst [vmem:[#allocation18_spill] sm:$0xff] %v4064_v20  ;;  %6648 = vst [vmem:[#allocation19_spill] sm:$0xff] %v4067_v21  ;;  %v4088_v28 = vcombine.high %v70_v22, %v74_v23  ;;  %v4091_v29 = vcombine.high %v71_v24, %v75_v25  ;;  %v62_v30 = vld [vmem:[%s6366_s1 + $0xc0] sm:$0xff]  ;;  %v63_v32 = vld [vmem:[%s6366_s1 + $0xc8] sm:$0xff]  ;;  %v4106_v34 = vcombine.low %v70_v22, %v74_v23 }
   0xa   :  { %819 = vmatpush1.bf16.msra.mxu0 %v4058_v18  ;;  %6649 = vst [vmem:[#allocation20_spill] sm:$0xff] %v4082_v26  ;;  %860 = vmatpush1.bf16.msra.mxu1 %v4062_v19  ;;  %6650 = vst [vmem:[#allocation21_spill] sm:$0xff] %v4086_v27  ;;  %v66_v31 = vld [vmem:[%s6366_s1 + $0xe0] sm:$0xff]  ;;  %v67_v33 = vld [vmem:[%s6366_s1 + $0xe8] sm:$0xff]  ;;  %v4110_v35 = vcombine.low %v71_v24, %v75_v25 }
   0xb   :  { %820 = vmatprep.subr.bf16.mxu0 %v4064_v20  ;;  %6651 = vst [vmem:[#allocation22_spill] sm:$0xff] %v4088_v28  ;;  %861 = vmatprep.subr.bf16.mxu1 %v4067_v21  ;;  %6652 = vst [vmem:[#allocation23_spill] sm:$0xff] %v4091_v29  ;;  %v4112_v36 = vcombine.high %v62_v30, %v66_v31  ;;  %v4115_v37 = vcombine.high %v63_v32, %v67_v33  ;;  %v54_v38 = vld [vmem:[%s6366_s1 + $0x80] sm:$0xff]  ;;  %v55_v40 = vld [vmem:[%s6366_s1 + $0x88] sm:$0xff] }
   0xc   :  { %6653 = vst [vmem:[#allocation24_spill] sm:$0xff] %v4106_v34  ;;  %6654 = vst [vmem:[#allocation25_spill] sm:$0xff] %v4110_v35  ;;  %v58_v39 = vld [vmem:[%s6366_s1 + $0xa0] sm:$0xff]  ;;  %v59_v41 = vld [vmem:[%s6366_s1 + $0xa8] sm:$0xff]  ;;  %v4130_v42 = vcombine.low %v62_v30, %v66_v31  ;;  %v4134_v43 = vcombine.low %v63_v32, %v67_v33 }
   0xd   :  { %6655 = vst [vmem:[#allocation26_spill] sm:$0xff] %v4112_v36  ;;  %6656 = vst [vmem:[#allocation27_spill] sm:$0xff] %v4115_v37  ;;  %v4136_v44 = vcombine.high %v54_v38, %v58_v39  ;;  %v4139_v45 = vcombine.high %v55_v40, %v59_v41  ;;  %v46_v46 = vld [vmem:[%s6366_s1 + $0x40] sm:$0xff]  ;;  %v47_v48 = vld [vmem:[%s6366_s1 + $0x48] sm:$0xff]  ;;  %v4154_v50 = vcombine.low %v54_v38, %v58_v39 }
   0xe   :  { %821 = vmatpush1.bf16.msra.mxu0 %v4082_v26  ;;  %862 = vmatpush1.bf16.msra.mxu1 %v4086_v27  ;;  %6657 = vst [vmem:[#allocation28_spill] sm:$0xff] %v4130_v42  ;;  %6658 = vst [vmem:[#allocation29_spill] sm:$0xff] %v4134_v43  ;;  %v50_v47 = vld [vmem:[%s6366_s1 + $0x60] sm:$0xff]  ;;  %v51_v49 = vld [vmem:[%s6366_s1 + $0x68] sm:$0xff]  ;;  %v4158_v51 = vcombine.low %v55_v40, %v59_v41 }
   0xf   :  { %822 = vmatprep.subr.bf16.mxu0 %v4088_v28  ;;  %863 = vmatprep.subr.bf16.mxu1 %v4091_v29  ;;  %6659 = vst [vmem:[#allocation30_spill] sm:$0xff] %v4136_v44  ;;  %6660 = vst [vmem:[#allocation31_spill] sm:$0xff] %v4139_v45  ;;  %v4160_v52 = vcombine.high %v46_v46, %v50_v47  ;;  %v27_v53 = vld [vmem:[%s6367_s2 + $0x8] sm:$0xff]  ;;  %v4166_v54 = vcombine.high %v47_v48, %v51_v49  ;;  %v38_v55 = vld [vmem:[%s6366_s1] sm:$0xff] }
  0x10   :  { %6661 = vst [vmem:[#allocation32_spill] sm:$0xff] %v4154_v50  ;;  %6662 = vst [vmem:[#allocation33_spill] sm:$0xff] %v4158_v51  ;;  %v42_v56 = vld [vmem:[%s6366_s1 + $0x20] sm:$0xff]  ;;  %v4174_v57 = vpack.c.bf16 %v27_v53, %v27_v53  ;;  %v39_v58 = vld [vmem:[%s6366_s1 + $0x8] sm:$0xff]  ;;  %v4183_v60 = vcombine.low %v46_v46, %v50_v47  ;;  %v4188_v61 = vcombine.low %v47_v48, %v51_v49 }
  0x11   :  { %6663 = vst [vmem:[#allocation34_spill] sm:$0xff] %v4160_v52  ;;  %6664 = vst [vmem:[#allocation35_spill] sm:$0xff] %v4166_v54  ;;  %v43_v59 = vld [vmem:[%s6366_s1 + $0x28] sm:$0xff]  ;;  %v4190_v62 = vcombine.high %v38_v55, %v42_v56  ;;  %v158_v0 = vld [vmem:[%s6366_s1 + $0x3c0] sm:$0xff]  ;;  %v4209_v6 = vcombine.low %v38_v55, %v42_v56 }
  0x12   :  { %823 = vmatpush1.bf16.msra.mxu0 %v4106_v34  ;;  %864 = vmatpush1.bf16.msra.mxu1 %v4110_v35  ;;  %6665 = vst [vmem:[#allocation36_spill] sm:$0xff] %v4183_v60  ;;  %6666 = vst [vmem:[#allocation37_spill] sm:$0xff] %v4188_v61  ;;  %v4193_v63 = vcombine.high %v39_v58, %v43_v59  ;;  %v162_v1 = vld [vmem:[%s6366_s1 + $0x3e0] sm:$0xff]  ;;  %v159_v2 = vld [vmem:[%s6366_s1 + $0x3c8] sm:$0xff]  ;;  %v4213_v7 = vcombine.low %v39_v58, %v43_v59 }
  0x13   :  { %824 = vmatprep.subr.bf16.mxu0 %v4112_v36  ;;  %865 = vmatprep.subr.bf16.mxu1 %v4115_v37  ;;  %6667 = vst [vmem:[#allocation38_spill] sm:$0xff] %v4190_v62  ;;  %v163_v4 = vld [vmem:[%s6366_s1 + $0x3e8] sm:$0xff]  ;;  %6669 = vst [vmem:[#allocation40_spill] sm:$0xff] %v4209_v6  ;;  %v4215_v11 = vcombine.high %v158_v0, %v162_v1  ;;  %v150_v13 = vld [vmem:[%s6366_s1 + $0x380] sm:$0xff]  ;;  %v4233_v22 = vcombine.low %v158_v0, %v162_v1 }
  0x14   :  { %848 = vmatprep.mubr.bf16.mxu0 %v4174_v57  ;;  %6668 = vst [vmem:[#allocation39_spill] sm:$0xff] %v4193_v63  ;;  %889 = vmatprep.mubr.bf16.mxu1 %v4174_v57  ;;  %6670 = vst [vmem:[#allocation41_spill] sm:$0xff] %v4213_v7  ;;  %v4218_v12 = vcombine.high %v159_v2, %v163_v4  ;;  %v154_v15 = vld [vmem:[%s6366_s1 + $0x3a0] sm:$0xff]  ;;  %v151_v16 = vld [vmem:[%s6366_s1 + $0x388] sm:$0xff]  ;;  %v4237_v23 = vcombine.low %v159_v2, %v163_v4 }
  0x15   :  { %6671 = vst [vmem:[#allocation42_spill] sm:$0xff] %v4215_v11  ;;  %v155_v17 = vld [vmem:[%s6366_s1 + $0x3a8] sm:$0xff]  ;;  %6673 = vst [vmem:[#allocation44_spill] sm:$0xff] %v4233_v22  ;;  %v4239_v24 = vcombine.high %v150_v13, %v154_v15  ;;  %v142_v30 = vld [vmem:[%s6366_s1 + $0x340] sm:$0xff]  ;;  %v4257_v38 = vcombine.low %v150_v13, %v154_v15 }
  0x16   :  { %825 = vmatpush1.bf16.msra.mxu0 %v4130_v42  ;;  %866 = vmatpush1.bf16.msra.mxu1 %v4134_v43  ;;  %6672 = vst [vmem:[#allocation43_spill] sm:$0xff] %v4218_v12  ;;  %6674 = vst [vmem:[#allocation45_spill] sm:$0xff] %v4237_v23  ;;  %v4242_v25 = vcombine.high %v151_v16, %v155_v17  ;;  %v146_v31 = vld [vmem:[%s6366_s1 + $0x360] sm:$0xff]  ;;  %v143_v32 = vld [vmem:[%s6366_s1 + $0x348] sm:$0xff]  ;;  %v4261_v39 = vcombine.low %v151_v16, %v155_v17 }
  0x17   :  { %826 = vmatprep.subr.bf16.mxu0 %v4136_v44  ;;  %867 = vmatprep.subr.bf16.mxu1 %v4139_v45  ;;  %6675 = vst [vmem:[#allocation46_spill] sm:$0xff] %v4239_v24  ;;  %v147_v33 = vld [vmem:[%s6366_s1 + $0x368] sm:$0xff]  ;;  %6677 = vst [vmem:[#allocation48_spill] sm:$0xff] %v4257_v38  ;;  %v4263_v40 = vcombine.high %v142_v30, %v146_v31  ;;  %v134_v46 = vld [vmem:[%s6366_s1 + $0x300] sm:$0xff]  ;;  %v4281_v53 = vcombine.low %v142_v30, %v146_v31 }
  0x18   :  { %6676 = vst [vmem:[#allocation47_spill] sm:$0xff] %v4242_v25  ;;  %6678 = vst [vmem:[#allocation49_spill] sm:$0xff] %v4261_v39  ;;  %v4266_v41 = vcombine.high %v143_v32, %v147_v33  ;;  %v138_v47 = vld [vmem:[%s6366_s1 + $0x320] sm:$0xff]  ;;  %v135_v48 = vld [vmem:[%s6366_s1 + $0x308] sm:$0xff]  ;;  %v4285_v55 = vcombine.low %v143_v32, %v147_v33 }
  0x19   :  { %6679 = vst [vmem:[#allocation50_spill] sm:$0xff] %v4263_v40  ;;  %v139_v49 = vld [vmem:[%s6366_s1 + $0x328] sm:$0xff]  ;;  %6681 = vst [vmem:[#allocation52_spill] sm:$0xff] %v4281_v53  ;;  %v4287_v56 = vcombine.high %v134_v46, %v138_v47  ;;  %v126_v59 = vld [vmem:[%s6366_s1 + $0x2c0] sm:$0xff] }
  0x1a   :  { %827 = vmatpush1.bf16.msra.mxu0 %v4154_v50  ;;  %868 = vmatpush1.bf16.msra.mxu1 %v4158_v51  ;;  %6680 = vst [vmem:[#allocation51_spill] sm:$0xff] %v4266_v41  ;;  %6682 = vst [vmem:[#allocation53_spill] sm:$0xff] %v4285_v55  ;;  %v4290_v58 = vcombine.high %v135_v48, %v139_v49  ;;  %v130_v0 = vld [vmem:[%s6366_s1 + $0x2e0] sm:$0xff]  ;;  %v127_v1 = vld [vmem:[%s6366_s1 + $0x2c8] sm:$0xff] }
  0x1b   :  { %828 = vmatprep.subr.bf16.mxu0 %v4160_v52  ;;  %869 = vmatprep.subr.bf16.mxu1 %v4166_v54  ;;  %6683 = vst [vmem:[#allocation54_spill] sm:$0xff] %v4287_v56  ;;  %v131_v2 = vld [vmem:[%s6366_s1 + $0x2e8] sm:$0xff] }
  0x1c   :  { %6684 = vst [vmem:[#allocation55_spill] sm:$0xff] %v4290_v58 }
  0x1e   :  { %829 = vmatpush1.bf16.msra.mxu0 %v4183_v60  ;;  %870 = vmatpush1.bf16.msra.mxu1 %v4188_v61 }
  0x1f   :  { %830 = vmatprep.subr.bf16.mxu0 %v4190_v62  ;;  %871 = vmatprep.subr.bf16.mxu1 %v4193_v63 }
  0x22   :  { %831 = vmatpush1.bf16.msra.mxu0 %v4209_v6  ;;  %872 = vmatpush1.bf16.msra.mxu1 %v4213_v7 }
  0x23   :  { %832 = vmatprep.subr.bf16.mxu0 %v4215_v11  ;;  %873 = vmatprep.subr.bf16.mxu1 %v4218_v12 }
  0x26   :  { %833 = vmatpush2.bf16.msra.mxu0 %v4233_v22  ;;  %874 = vmatpush2.bf16.msra.mxu1 %v4237_v23 }
  0x27   :  { %834 = vmatprep.subr.bf16.mxu0 %v4239_v24  ;;  %875 = vmatprep.subr.bf16.mxu1 %v4242_v25 }
  0x2a   :  { %835 = vmatpush2.bf16.msra.mxu0 %v4257_v38  ;;  %876 = vmatpush2.bf16.msra.mxu1 %v4261_v39 }
  0x2b   :  { %836 = vmatprep.subr.bf16.mxu0 %v4263_v40  ;;  %877 = vmatprep.subr.bf16.mxu1 %v4266_v41 }
  0x2c   :  { %13 = vsyncpa [#allocation7], 0  ;;  %v4305_v4 = vcombine.low %v134_v46, %v138_v47  ;;  %v4309_v13 = vcombine.low %v135_v48, %v139_v49  ;;  %v4311_v15 = vcombine.high %v126_v59, %v130_v0  ;;  %v4314_v16 = vcombine.high %v127_v1, %v131_v2  ;;  %v118_v17 = vld [vmem:[%s6366_s1 + $0x280] sm:$0xff]  ;;  %v119_v31 = vld [vmem:[%s6366_s1 + $0x288] sm:$0xff] }
  0x2d   :  { %v122_v30 = vld [vmem:[%s6366_s1 + $0x2a0] sm:$0xff]  ;;  %v123_v32 = vld [vmem:[%s6366_s1 + $0x2a8] sm:$0xff]  ;;  %v4329_v33 = vcombine.low %v126_v59, %v130_v0  ;;  %v4333_v46 = vcombine.low %v127_v1, %v131_v2 }
  0x2e   :  { %837 = vmatpush2.bf16.msra.mxu0 %v4281_v53  ;;  %6685 = vst [vmem:[#allocation56_spill] sm:$0xff] %v4305_v4  ;;  %878 = vmatpush2.bf16.msra.mxu1 %v4285_v55  ;;  %6686 = vst [vmem:[#allocation57_spill] sm:$0xff] %v4309_v13  ;;  %v4335_v47 = vcombine.high %v118_v17, %v122_v30  ;;  %v4338_v48 = vcombine.high %v119_v31, %v123_v32  ;;  %v110_v49 = vld [vmem:[%s6366_s1 + $0x240] sm:$0xff]  ;;  %v111_v0 = vld [vmem:[%s6366_s1 + $0x248] sm:$0xff] }
  0x2f   :  { %838 = vmatprep.subr.bf16.mxu0 %v4287_v56  ;;  %6687 = vst [vmem:[#allocation58_spill] sm:$0xff] %v4311_v15  ;;  %879 = vmatprep.subr.bf16.mxu1 %v4290_v58  ;;  %6688 = vst [vmem:[#allocation59_spill] sm:$0xff] %v4314_v16  ;;  %v114_v59 = vld [vmem:[%s6366_s1 + $0x260] sm:$0xff]  ;;  %v115_v1 = vld [vmem:[%s6366_s1 + $0x268] sm:$0xff]  ;;  %v4353_v2 = vcombine.low %v118_v17, %v122_v30 }
  0x30   :  { %6689 = vst [vmem:[#allocation60_spill] sm:$0xff] %v4329_v33  ;;  %6690 = vst [vmem:[#allocation61_spill] sm:$0xff] %v4333_v46  ;;  %v106_v17 = vld [vmem:[%s6366_s1 + $0x220] sm:$0xff]  ;;  %v103_v30 = vld [vmem:[%s6366_s1 + $0x208] sm:$0xff] }
  0x31   :  { %6691 = vst [vmem:[#allocation62_spill] sm:$0xff] %v4335_v47  ;;  %6692 = vst [vmem:[#allocation63_spill] sm:$0xff] %v4338_v48  ;;  %v80_v58 = vld [vmem:[%s6366_s1 + $0x150] sm:$0xff] }
  0x32   :  { %839 = vmatpush2.bf16.msra.mxu0 %v4305_v4  ;;  %880 = vmatpush2.bf16.msra.mxu1 %v4309_v13  ;;  %6693 = vst [vmem:[#allocation64_spill] sm:$0xff] %v4353_v2  ;;  %v4362_v13 = vcombine.high %v111_v0, %v115_v1  ;;  %v102_v4 = vld [vmem:[%s6366_s1 + $0x200] sm:$0xff] }
  0x33   :  { %840 = vmatprep.subr.bf16.mxu0 %v4311_v15  ;;  %881 = vmatprep.subr.bf16.mxu1 %v4314_v16  ;;  %v4357_v16 = vcombine.low %v119_v31, %v123_v32  ;;  %v4359_v15 = vcombine.high %v110_v49, %v114_v59  ;;  %v107_v31 = vld [vmem:[%s6366_s1 + $0x228] sm:$0xff]  ;;  %v4377_v32 = vcombine.low %v110_v49, %v114_v59  ;;  %v100_v49 = vld [vmem:[%s6366_s1 + $0x1f0] sm:$0xff]  ;;  %v97_v59 = vld [vmem:[%s6366_s1 + $0x1d8] sm:$0xff] }
  0x34   :  { %6696 = vst [vmem:[#allocation67_spill] sm:$0xff] %v4362_v13 }
  0x35   :  { %6694 = vst [vmem:[#allocation65_spill] sm:$0xff] %v4357_v16  ;;  %6695 = vst [vmem:[#allocation66_spill] sm:$0xff] %v4359_v15 }
  0x36   :  { %841 = vmatpush2.bf16.msra.mxu0 %v4329_v33  ;;  %882 = vmatpush2.bf16.msra.mxu1 %v4333_v46  ;;  %6697 = vst [vmem:[#allocation68_spill] sm:$0xff] %v4377_v32  ;;  %v4386_v46 = vcombine.high %v103_v30, %v107_v31  ;;  %v96_v33 = vld [vmem:[%s6366_s1 + $0x1d0] sm:$0xff] }
  0x37   :  { %842 = vmatprep.subr.bf16.mxu0 %v4335_v47  ;;  %883 = vmatprep.subr.bf16.mxu1 %v4338_v48  ;;  %v4381_v48 = vcombine.low %v111_v0, %v115_v1  ;;  %v4383_v47 = vcombine.high %v102_v4, %v106_v17  ;;  %v101_v0 = vld [vmem:[%s6366_s1 + $0x1f8] sm:$0xff]  ;;  %v4401_v1 = vcombine.low %v102_v4, %v106_v17  ;;  %v88_v4 = vld [vmem:[%s6366_s1 + $0x190] sm:$0xff] }
  0x38   :  { %6700 = vst [vmem:[#allocation71_spill] sm:$0xff] %v4386_v46  ;;  %v92_v17 = vld [vmem:[%s6366_s1 + $0x1b0] sm:$0xff] }
  0x39   :  { %6698 = vst [vmem:[#allocation69_spill] sm:$0xff] %v4381_v48  ;;  %6699 = vst [vmem:[#allocation70_spill] sm:$0xff] %v4383_v47 }
  0x3a   :  { %843 = vmatpush2.bf16.msra.mxu0 %v4353_v2  ;;  %884 = vmatpush2.bf16.msra.mxu1 %v4357_v16  ;;  %6701 = vst [vmem:[#allocation72_spill] sm:$0xff] %v4401_v1  ;;  %v4410_v16 = vcombine.high %v96_v33, %v100_v49  ;;  %v4413_v2 = vcombine.high %v97_v59, %v101_v0 }
  0x3b   :  { %844 = vmatprep.subr.bf16.mxu0 %v4359_v15  ;;  %885 = vmatprep.subr.bf16.mxu1 %v4362_v13  ;;  %v26_v13 = vld [vmem:[%s6367_s2] sm:$0xff]  ;;  %v4408_v15 = vcombine.low %v103_v30, %v107_v31  ;;  %v89_v30 = vld [vmem:[%s6366_s1 + $0x198] sm:$0xff] }
  0x3c   :  { %6703 = vst [vmem:[#allocation74_spill] sm:$0xff] %v4410_v16  ;;  %6704 = vst [vmem:[#allocation75_spill] sm:$0xff] %v4413_v2  ;;  %v93_v31 = vld [vmem:[%s6366_s1 + $0x1b8] sm:$0xff] }
  0x3d   :  { %6702 = vst [vmem:[#allocation73_spill] sm:$0xff] %v4408_v15 }
  0x3e   :  { %845 = vmatpush2.bf16.msra.mxu0 %v4377_v32  ;;  %886 = vmatpush2.bf16.msra.mxu1 %v4381_v48  ;;  %v4421_v32 = vpack.c.bf16 %v26_v13, %v26_v13  ;;  %v4436_v13 = vcombine.high %v88_v4, %v92_v17  ;;  %v4439_v48 = vcombine.high %v89_v30, %v93_v31 }
  0x3f   :  { %846 = vmatprep.subr.bf16.mxu0 %v4383_v47  ;;  %887 = vmatprep.subr.bf16.mxu1 %v4386_v46  ;;  %v4430_v46 = vcombine.low %v96_v33, %v100_v49  ;;  %v4434_v47 = vcombine.low %v97_v59, %v101_v0  ;;  %v84_v33 = vld [vmem:[%s6366_s1 + $0x170] sm:$0xff]  ;;  %v81_v49 = vld [vmem:[%s6366_s1 + $0x158] sm:$0xff]  ;;  %v4456_v0 = vcombine.low %v88_v4, %v92_v17 }
  0x40   :  { %6706 = vst [vmem:[#allocation77_spill] sm:$0xff] %v4436_v13  ;;  %6707 = vst [vmem:[#allocation78_spill] sm:$0xff] %v4439_v48  ;;  %v85_v59 = vld [vmem:[%s6366_s1 + $0x178] sm:$0xff]  ;;  %v76_v4 = vld [vmem:[%s6366_s1 + $0x130] sm:$0xff] }
  0x41   :  { %6705 = vst [vmem:[#allocation76_spill] sm:$0xff] %v4434_v47  ;;  %6708 = vst [vmem:[#allocation79_spill] sm:$0xff] %v4456_v0  ;;  %v73_v17 = vld [vmem:[%s6366_s1 + $0x118] sm:$0xff] }
  0x42   :  { %847 = vmatpush2.bf16.msra.mxu0 %v4401_v1  ;;  %888 = vmatpush2.bf16.msra.mxu1 %v4408_v15  ;;  %v4465_v15 = vcombine.high %v81_v49, %v85_v59  ;;  %v72_v1 = vld [vmem:[%s6366_s1 + $0x110] sm:$0xff] }
  0x43   :  { %898 = vmatprep.subr.bf16.mxu0 %v4410_v16  ;;  %939 = vmatprep.subr.bf16.mxu1 %v4413_v2  ;;  %v4460_v2 = vcombine.low %v89_v30, %v93_v31  ;;  %v4462_v16 = vcombine.high %v80_v58, %v84_v33  ;;  %v77_v30 = vld [vmem:[%s6366_s1 + $0x138] sm:$0xff]  ;;  %v4482_v31 = vcombine.low %v80_v58, %v84_v33  ;;  %v68_v58 = vld [vmem:[%s6366_s1 + $0xf0] sm:$0xff] }
  0x44   :  { %6711 = vst [vmem:[#allocation82_spill] sm:$0xff] %v4465_v15  ;;  %v65_v33 = vld [vmem:[%s6366_s1 + $0xd8] sm:$0xff] }
  0x45   :  { %849 = vmatmul.mubr.bf16.vlgmr.msra.gmra.mxu0 %v4421_v32  ;;  %890 = vmatmul.mubr.bf16.vlgmr.msra.gmra.mxu1 %v4421_v32  ;;  %6709 = vst [vmem:[#allocation80_spill] sm:$0xff] %v4460_v2  ;;  %6710 = vst [vmem:[#allocation81_spill] sm:$0xff] %v4462_v16 }
  0x46   :  { %899 = vmatpush1.bf16.msra.mxu0 %v4430_v46  ;;  %940 = vmatpush1.bf16.msra.mxu1 %v4434_v47  ;;  %6712 = vst [vmem:[#allocation83_spill] sm:$0xff] %v4482_v31  ;;  %v4491_v47 = vcombine.high %v73_v17, %v77_v30 }
  0x47   :  { %900 = vmatprep.subr.bf16.mxu0 %v4436_v13  ;;  %941 = vmatprep.subr.bf16.mxu1 %v4439_v48  ;;  %v4486_v48 = vcombine.low %v81_v49, %v85_v59  ;;  %v4488_v13 = vcombine.high %v72_v1, %v76_v4  ;;  %v69_v49 = vld [vmem:[%s6366_s1 + $0xf8] sm:$0xff]  ;;  %v4506_v59 = vcombine.low %v72_v1, %v76_v4  ;;  %v60_v1 = vld [vmem:[%s6366_s1 + $0xb0] sm:$0xff] }
  0x48   :  { %930 = vmatprep.mubr.bf16.mxu0 %v4174_v57  ;;  %971 = vmatprep.mubr.bf16.mxu1 %v4174_v57  ;;  %6715 = vst [vmem:[#allocation86_spill] sm:$0xff] %v4491_v47  ;;  %v64_v57 = vld [vmem:[%s6366_s1 + $0xd0] sm:$0xff]  ;;  %v57_v4 = vld [vmem:[%s6366_s1 + $0x98] sm:$0xff] }
  0x49   :  { %6713 = vst [vmem:[#allocation84_spill] sm:$0xff] %v4486_v48  ;;  %6714 = vst [vmem:[#allocation85_spill] sm:$0xff] %v4488_v13 }
  0x4a   :  { %901 = vmatpush1.bf16.msra.mxu0 %v4456_v0  ;;  %942 = vmatpush1.bf16.msra.mxu1 %v4460_v2  ;;  %6716 = vst [vmem:[#allocation87_spill] sm:$0xff] %v4506_v59  ;;  %v4515_v2 = vcombine.high %v65_v33, %v69_v49  ;;  %v56_v0 = vld [vmem:[%s6366_s1 + $0x90] sm:$0xff] }
  0x4b   :  { %902 = vmatprep.subr.bf16.mxu0 %v4462_v16  ;;  %943 = vmatprep.subr.bf16.mxu1 %v4465_v15  ;;  %v4510_v15 = vcombine.low %v73_v17, %v77_v30  ;;  %v4512_v16 = vcombine.high %v64_v57, %v68_v58  ;;  %v61_v17 = vld [vmem:[%s6366_s1 + $0xb8] sm:$0xff]  ;;  %v4530_v30 = vcombine.low %v64_v57, %v68_v58  ;;  %v52_v57 = vld [vmem:[%s6366_s1 + $0x70] sm:$0xff] }
  0x4c   :  { %6719 = vst [vmem:[#allocation90_spill] sm:$0xff] %v4515_v2  ;;  %v49_v58 = vld [vmem:[%s6366_s1 + $0x58] sm:$0xff] }
  0x4d   :  { %6717 = vst [vmem:[#allocation88_spill] sm:$0xff] %v4510_v15  ;;  %6718 = vst [vmem:[#allocation89_spill] sm:$0xff] %v4512_v16 }
  0x4e   :  { %903 = vmatpush1.bf16.msra.mxu0 %v4482_v31  ;;  %944 = vmatpush1.bf16.msra.mxu1 %v4486_v48  ;;  %6720 = vst [vmem:[#allocation91_spill] sm:$0xff] %v4530_v30  ;;  %v4539_v48 = vcombine.high %v57_v4, %v61_v17  ;;  %v48_v31 = vld [vmem:[%s6366_s1 + $0x50] sm:$0xff] }
  0x4f   :  { %904 = vmatprep.subr.bf16.mxu0 %v4488_v13  ;;  %945 = vmatprep.subr.bf16.mxu1 %v4491_v47  ;;  %v4534_v47 = vcombine.low %v65_v33, %v69_v49  ;;  %v4536_v13 = vcombine.high %v56_v0, %v60_v1  ;;  %v53_v33 = vld [vmem:[%s6366_s1 + $0x78] sm:$0xff]  ;;  %v4554_v49 = vcombine.low %v56_v0, %v60_v1  ;;  %v44_v0 = vld [vmem:[%s6366_s1 + $0x30] sm:$0xff] }
  0x50   :  { %6723 = vst [vmem:[#allocation94_spill] sm:$0xff] %v4539_v48  ;;  %v41_v1 = vld [vmem:[%s6366_s1 + $0x18] sm:$0xff] }
  0x51   :  { %6721 = vst [vmem:[#allocation92_spill] sm:$0xff] %v4534_v47  ;;  %6722 = vst [vmem:[#allocation93_spill] sm:$0xff] %v4536_v13 }
  0x52   :  { %905 = vmatpush1.bf16.msra.mxu0 %v4506_v59  ;;  %946 = vmatpush1.bf16.msra.mxu1 %v4510_v15  ;;  %6724 = vst [vmem:[#allocation95_spill] sm:$0xff] %v4554_v49  ;;  %v4563_v15 = vcombine.high %v49_v58, %v53_v33  ;;  %v40_v59 = vld [vmem:[%s6366_s1 + $0x10] sm:$0xff] }
  0x53   :  { %906 = vmatprep.subr.bf16.mxu0 %v4512_v16  ;;  %947 = vmatprep.subr.bf16.mxu1 %v4515_v2  ;;  %v4558_v2 = vcombine.low %v57_v4, %v61_v17  ;;  %v4560_v16 = vcombine.high %v48_v31, %v52_v57  ;;  %v45_v4 = vld [vmem:[%s6366_s1 + $0x38] sm:$0xff]  ;;  %v4578_v17 = vcombine.low %v48_v31, %v52_v57  ;;  %v164_v31 = vld [vmem:[%s6366_s1 + $0x3f0] sm:$0xff] }
  0x54   :  { %6727 = vst [vmem:[#allocation98_spill] sm:$0xff] %v4563_v15  ;;  %v161_v57 = vld [vmem:[%s6366_s1 + $0x3d8] sm:$0xff] }
  0x55   :  { %6725 = vst [vmem:[#allocation96_spill] sm:$0xff] %v4558_v2  ;;  %6726 = vst [vmem:[#allocation97_spill] sm:$0xff] %v4560_v16 }
  0x56   :  { %907 = vmatpush1.bf16.msra.mxu0 %v4530_v30  ;;  %948 = vmatpush1.bf16.msra.mxu1 %v4534_v47  ;;  %6728 = vst [vmem:[#allocation99_spill] sm:$0xff] %v4578_v17  ;;  %v4587_v47 = vcombine.high %v41_v1, %v45_v4  ;;  %v160_v30 = vld [vmem:[%s6366_s1 + $0x3d0] sm:$0xff] }
  0x57   :  { %908 = vmatprep.subr.bf16.mxu0 %v4536_v13  ;;  %949 = vmatprep.subr.bf16.mxu1 %v4539_v48  ;;  %v4582_v48 = vcombine.low %v49_v58, %v53_v33  ;;  %v4584_v13 = vcombine.high %v40_v59, %v44_v0  ;;  %v165_v58 = vld [vmem:[%s6366_s1 + $0x3f8] sm:$0xff]  ;;  %v4602_v33 = vcombine.low %v40_v59, %v44_v0  ;;  %v156_v59 = vld [vmem:[%s6366_s1 + $0x3b0] sm:$0xff] }
  0x58   :  { %6731 = vst [vmem:[#allocation102_spill] sm:$0xff] %v4587_v47  ;;  %v153_v0 = vld [vmem:[%s6366_s1 + $0x398] sm:$0xff] }
  0x59   :  { %6729 = vst [vmem:[#allocation100_spill] sm:$0xff] %v4582_v48  ;;  %6730 = vst [vmem:[#allocation101_spill] sm:$0xff] %v4584_v13 }
  0x5a   :  { %909 = vmatpush1.bf16.msra.mxu0 %v4554_v49  ;;  %950 = vmatpush1.bf16.msra.mxu1 %v4558_v2  ;;  %6732 = vst [vmem:[#allocation103_spill] sm:$0xff] %v4602_v33  ;;  %v4611_v2 = vcombine.high %v161_v57, %v165_v58  ;;  %v152_v49 = vld [vmem:[%s6366_s1 + $0x390] sm:$0xff] }
  0x5b   :  { %910 = vmatprep.subr.bf16.mxu0 %v4560_v16  ;;  %951 = vmatprep.subr.bf16.mxu1 %v4563_v15  ;;  %v4606_v15 = vcombine.low %v41_v1, %v45_v4  ;;  %v4608_v16 = vcombine.high %v160_v30, %v164_v31  ;;  %v157_v1 = vld [vmem:[%s6366_s1 + $0x3b8] sm:$0xff]  ;;  %v4626_v4 = vcombine.low %v160_v30, %v164_v31  ;;  %v148_v30 = vld [vmem:[%s6366_s1 + $0x370] sm:$0xff] }
  0x5c   :  { %6735 = vst [vmem:[#allocation106_spill] sm:$0xff] %v4611_v2  ;;  %v145_v31 = vld [vmem:[%s6366_s1 + $0x358] sm:$0xff] }
  0x5d   :  { %6733 = vst [vmem:[#allocation104_spill] sm:$0xff] %v4606_v15  ;;  %6734 = vst [vmem:[#allocation105_spill] sm:$0xff] %v4608_v16 }
  0x5e   :  { %911 = vmatpush1.bf16.msra.mxu0 %v4578_v17  ;;  %952 = vmatpush1.bf16.msra.mxu1 %v4582_v48  ;;  %6736 = vst [vmem:[#allocation107_spill] sm:$0xff] %v4626_v4  ;;  %v4635_v48 = vcombine.high %v153_v0, %v157_v1  ;;  %v144_v17 = vld [vmem:[%s6366_s1 + $0x350] sm:$0xff] }
  0x5f   :  { %912 = vmatprep.subr.bf16.mxu0 %v4584_v13  ;;  %953 = vmatprep.subr.bf16.mxu1 %v4587_v47  ;;  %v4630_v47 = vcombine.low %v161_v57, %v165_v58  ;;  %v4632_v13 = vcombine.high %v152_v49, %v156_v59  ;;  %v149_v57 = vld [vmem:[%s6366_s1 + $0x378] sm:$0xff]  ;;  %v4650_v58 = vcombine.low %v152_v49, %v156_v59  ;;  %v140_v49 = vld [vmem:[%s6366_s1 + $0x330] sm:$0xff] }
  0x60   :  { %6739 = vst [vmem:[#allocation110_spill] sm:$0xff] %v4635_v48  ;;  %v137_v59 = vld [vmem:[%s6366_s1 + $0x318] sm:$0xff] }
  0x61   :  { %6737 = vst [vmem:[#allocation108_spill] sm:$0xff] %v4630_v47  ;;  %6738 = vst [vmem:[#allocation109_spill] sm:$0xff] %v4632_v13 }
  0x62   :  { %913 = vmatpush1.bf16.msra.mxu0 %v4602_v33  ;;  %954 = vmatpush1.bf16.msra.mxu1 %v4606_v15  ;;  %6740 = vst [vmem:[#allocation111_spill] sm:$0xff] %v4650_v58  ;;  %v4659_v15 = vcombine.high %v145_v31, %v149_v57  ;;  %v136_v33 = vld [vmem:[%s6366_s1 + $0x310] sm:$0xff] }
  0x63   :  { %914 = vmatprep.subr.bf16.mxu0 %v4608_v16  ;;  %955 = vmatprep.subr.bf16.mxu1 %v4611_v2  ;;  %v4654_v2 = vcombine.low %v153_v0, %v157_v1  ;;  %v4656_v16 = vcombine.high %v144_v17, %v148_v30  ;;  %v141_v0 = vld [vmem:[%s6366_s1 + $0x338] sm:$0xff]  ;;  %v4674_v1 = vcombine.low %v144_v17, %v148_v30  ;;  %v132_v17 = vld [vmem:[%s6366_s1 + $0x2f0] sm:$0xff] }
  0x64   :  { %6743 = vst [vmem:[#allocation114_spill] sm:$0xff] %v4659_v15  ;;  %v129_v30 = vld [vmem:[%s6366_s1 + $0x2d8] sm:$0xff] }
  0x65   :  { %6741 = vst [vmem:[#allocation112_spill] sm:$0xff] %v4654_v2  ;;  %6742 = vst [vmem:[#allocation113_spill] sm:$0xff] %v4656_v16 }
  0x66   :  { %915 = vmatpush2.bf16.msra.mxu0 %v4626_v4  ;;  %956 = vmatpush2.bf16.msra.mxu1 %v4630_v47  ;;  %6744 = vst [vmem:[#allocation115_spill] sm:$0xff] %v4674_v1  ;;  %v4683_v47 = vcombine.high %v137_v59, %v141_v0  ;;  %v128_v4 = vld [vmem:[%s6366_s1 + $0x2d0] sm:$0xff] }
  0x67   :  { %916 = vmatprep.subr.bf16.mxu0 %v4632_v13  ;;  %957 = vmatprep.subr.bf16.mxu1 %v4635_v48  ;;  %v4678_v48 = vcombine.low %v145_v31, %v149_v57  ;;  %v4680_v13 = vcombine.high %v136_v33, %v140_v49  ;;  %v133_v31 = vld [vmem:[%s6366_s1 + $0x2f8] sm:$0xff]  ;;  %v4698_v57 = vcombine.low %v136_v33, %v140_v49  ;;  %v124_v33 = vld [vmem:[%s6366_s1 + $0x2b0] sm:$0xff] }
  0x68   :  { %6747 = vst [vmem:[#allocation118_spill] sm:$0xff] %v4683_v47  ;;  %v121_v49 = vld [vmem:[%s6366_s1 + $0x298] sm:$0xff] }
  0x69   :  { %6745 = vst [vmem:[#allocation116_spill] sm:$0xff] %v4678_v48  ;;  %6746 = vst [vmem:[#allocation117_spill] sm:$0xff] %v4680_v13 }
  0x6a   :  { %917 = vmatpush2.bf16.msra.mxu0 %v4650_v58  ;;  %958 = vmatpush2.bf16.msra.mxu1 %v4654_v2  ;;  %6748 = vst [vmem:[#allocation119_spill] sm:$0xff] %v4698_v57  ;;  %v4707_v2 = vcombine.high %v129_v30, %v133_v31  ;;  %v120_v58 = vld [vmem:[%s6366_s1 + $0x290] sm:$0xff] }
  0x6b   :  { %918 = vmatprep.subr.bf16.mxu0 %v4656_v16  ;;  %959 = vmatprep.subr.bf16.mxu1 %v4659_v15  ;;  %v4702_v15 = vcombine.low %v137_v59, %v141_v0  ;;  %v4704_v16 = vcombine.high %v128_v4, %v132_v17  ;;  %v125_v59 = vld [vmem:[%s6366_s1 + $0x2b8] sm:$0xff]  ;;  %v4722_v0 = vcombine.low %v128_v4, %v132_v17  ;;  %v116_v4 = vld [vmem:[%s6366_s1 + $0x270] sm:$0xff] }
  0x6c   :  { %6751 = vst [vmem:[#allocation122_spill] sm:$0xff] %v4707_v2  ;;  %v113_v17 = vld [vmem:[%s6366_s1 + $0x258] sm:$0xff] }
  0x6d   :  { %6749 = vst [vmem:[#allocation120_spill] sm:$0xff] %v4702_v15  ;;  %6750 = vst [vmem:[#allocation121_spill] sm:$0xff] %v4704_v16 }
  0x6e   :  { %919 = vmatpush2.bf16.msra.mxu0 %v4674_v1  ;;  %960 = vmatpush2.bf16.msra.mxu1 %v4678_v48  ;;  %6752 = vst [vmem:[#allocation123_spill] sm:$0xff] %v4722_v0  ;;  %v4731_v48 = vcombine.high %v121_v49, %v125_v59  ;;  %v112_v1 = vld [vmem:[%s6366_s1 + $0x250] sm:$0xff] }
  0x6f   :  { %920 = vmatprep.subr.bf16.mxu0 %v4680_v13  ;;  %961 = vmatprep.subr.bf16.mxu1 %v4683_v47  ;;  %v4726_v47 = vcombine.low %v129_v30, %v133_v31  ;;  %v4728_v13 = vcombine.high %v120_v58, %v124_v33  ;;  %v117_v30 = vld [vmem:[%s6366_s1 + $0x278] sm:$0xff]  ;;  %v4746_v31 = vcombine.low %v120_v58, %v124_v33  ;;  %v108_v58 = vld [vmem:[%s6366_s1 + $0x230] sm:$0xff] }
  0x70   :  { %6755 = vst [vmem:[#allocation126_spill] sm:$0xff] %v4731_v48  ;;  %v105_v33 = vld [vmem:[%s6366_s1 + $0x218] sm:$0xff] }
  0x71   :  { %6753 = vst [vmem:[#allocation124_spill] sm:$0xff] %v4726_v47  ;;  %6754 = vst [vmem:[#allocation125_spill] sm:$0xff] %v4728_v13 }
  0x72   :  { %921 = vmatpush2.bf16.msra.mxu0 %v4698_v57  ;;  %962 = vmatpush2.bf16.msra.mxu1 %v4702_v15  ;;  %6756 = vst [vmem:[#allocation127_spill] sm:$0xff] %v4746_v31  ;;  %v4755_v15 = vcombine.high %v113_v17, %v117_v30  ;;  %v104_v57 = vld [vmem:[%s6366_s1 + $0x210] sm:$0xff] }
  0x73   :  { %922 = vmatprep.subr.bf16.mxu0 %v4704_v16  ;;  %963 = vmatprep.subr.bf16.mxu1 %v4707_v2  ;;  %v4750_v2 = vcombine.low %v121_v49, %v125_v59  ;;  %v4752_v16 = vcombine.high %v112_v1, %v116_v4  ;;  %v109_v49 = vld [vmem:[%s6366_s1 + $0x238] sm:$0xff]  ;;  %v4770_v59 = vcombine.low %v112_v1, %v116_v4 }
  0x74   :  { %6759 = vst [vmem:[#allocation130_spill] sm:$0xff] %v4755_v15  ;;  %v4786_v1 = vcombine.low %v105_v33, %v109_v49  ;;  %v6768_v4 = vld [vmem:[#allocation57_spill] sm:$0xff] }
  0x75   :  { %6757 = vst [vmem:[#allocation128_spill] sm:$0xff] %v4750_v2  ;;  %6758 = vst [vmem:[#allocation129_spill] sm:$0xff] %v4752_v16 }
  0x76   :  { %923 = vmatpush2.bf16.msra.mxu0 %v4722_v0  ;;  %964 = vmatpush2.bf16.msra.mxu1 %v4726_v47  ;;  %6760 = vst [vmem:[#allocation131_spill] sm:$0xff] %v4770_v59  ;;  %v4779_v47 = vcombine.high %v105_v33, %v109_v49  ;;  %v4782_v0 = vcombine.low %v104_v57, %v108_v58  ;;  %6765 = vst [vmem:[#allocation136_spill] sm:$0xff] %v4786_v1  ;;  %v6772_v33 = vld [vmem:[#allocation61_spill] sm:$0xff]  ;;  %v6773_v49 = vld [vmem:[#allocation62_spill] sm:$0xff] }
  0x77   :  { %924 = vmatprep.subr.bf16.mxu0 %v4728_v13  ;;  %965 = vmatprep.subr.bf16.mxu1 %v4731_v48  ;;  %v4774_v48 = vcombine.low %v113_v17, %v117_v30  ;;  %v4776_v13 = vcombine.high %v104_v57, %v108_v58  ;;  %v6767_v57 = vld [vmem:[#allocation56_spill] sm:$0xff]  ;;  %v6769_v17 = vld [vmem:[#allocation58_spill] sm:$0xff]  ;;  %v6770_v30 = vld [vmem:[#allocation59_spill] sm:$0xff] }
  0x78   :  { %6763 = vst [vmem:[#allocation134_spill] sm:$0xff] %v4779_v47  ;;  %6764 = vst [vmem:[#allocation135_spill] sm:$0xff] %v4782_v0  ;;  %v6771_v58 = vld [vmem:[#allocation60_spill] sm:$0xff] }
  0x79   :  { %6761 = vst [vmem:[#allocation132_spill] sm:$0xff] %v4774_v48  ;;  %6762 = vst [vmem:[#allocation133_spill] sm:$0xff] %v4776_v13 }
  0x7a   :  { %925 = vmatpush2.bf16.msra.mxu0 %v4746_v31  ;;  %966 = vmatpush2.bf16.msra.mxu1 %v4750_v2 }
  0x7b   :  { %926 = vmatprep.subr.bf16.mxu0 %v4752_v16  ;;  %967 = vmatprep.subr.bf16.mxu1 %v4755_v15 }
  0x7e   :  { %927 = vmatpush2.bf16.msra.mxu0 %v4770_v59  ;;  %968 = vmatpush2.bf16.msra.mxu1 %v4774_v48 }
  0x7f   :  { %928 = vmatprep.subr.bf16.mxu0 %v4776_v13  ;;  %969 = vmatprep.subr.bf16.mxu1 %v4779_v47 }
  0x82   :  { %929 = vmatpush2.bf16.msra.mxu0 %v4782_v0  ;;  %970 = vmatpush2.bf16.msra.mxu1 %v4786_v1 }
  0x83   :  { %1134 = vmatprep.subr.bf16.mxu0 %v4016_v3  ;;  %1175 = vmatprep.subr.bf16.mxu1 %v4029_v8 }
  0x85   :  { %931 = vmatmul.mubr.bf16.vlgmr.msra.gmra.mxu0 %v4421_v32  ;;  %972 = vmatmul.mubr.bf16.vlgmr.msra.gmra.mxu1 %v4421_v32  ;;  %v6766_v32 = vld [vmem:[#allocation55_spill] sm:$0xff] }
  0x86   :  { %1135 = vmatpush1.bf16.msra.mxu0 %v4021_v5  ;;  %1176 = vmatpush1.bf16.msra.mxu1 %v4031_v9 }
  0x87   :  { %1136 = vmatprep.subr.bf16.mxu0 %v4033_v10  ;;  %1177 = vmatprep.subr.bf16.mxu1 %v4045_v14 }
  0x8a   :  { %1137 = vmatpush1.bf16.msra.mxu0 %v4058_v18  ;;  %1178 = vmatpush1.bf16.msra.mxu1 %v4062_v19 }
  0x8b   :  { %1138 = vmatprep.subr.bf16.mxu0 %v4064_v20  ;;  %1179 = vmatprep.subr.bf16.mxu1 %v4067_v21 }
  0x8e   :  { %1139 = vmatpush1.bf16.msra.mxu0 %v4082_v26  ;;  %1180 = vmatpush1.bf16.msra.mxu1 %v4086_v27 }
  0x8f   :  { %1140 = vmatprep.subr.bf16.mxu0 %v4088_v28  ;;  %1181 = vmatprep.subr.bf16.mxu1 %v4091_v29 }
  0x92   :  { %1141 = vmatpush1.bf16.msra.mxu0 %v4106_v34  ;;  %1182 = vmatpush1.bf16.msra.mxu1 %v4110_v35 }
  0x93   :  { %1142 = vmatprep.subr.bf16.mxu0 %v4112_v36  ;;  %1183 = vmatprep.subr.bf16.mxu1 %v4115_v37 }
  0x96   :  { %1143 = vmatpush1.bf16.msra.mxu0 %v4130_v42  ;;  %1184 = vmatpush1.bf16.msra.mxu1 %v4134_v43 }
  0x97   :  { %1144 = vmatprep.subr.bf16.mxu0 %v4136_v44  ;;  %1185 = vmatprep.subr.bf16.mxu1 %v4139_v45 }
  0x9a   :  { %1145 = vmatpush1.bf16.msra.mxu0 %v4154_v50  ;;  %1186 = vmatpush1.bf16.msra.mxu1 %v4158_v51 }
  0x9b   :  { %1146 = vmatprep.subr.bf16.mxu0 %v4160_v52  ;;  %1187 = vmatprep.subr.bf16.mxu1 %v4166_v54 }
  0x9e   :  { %1147 = vmatpush1.bf16.msra.mxu0 %v4183_v60  ;;  %1188 = vmatpush1.bf16.msra.mxu1 %v4188_v61 }
  0x9f   :  { %1148 = vmatprep.subr.bf16.mxu0 %v4190_v62  ;;  %1189 = vmatprep.subr.bf16.mxu1 %v4193_v63 }
  0xa2   :  { %1149 = vmatpush1.bf16.msra.mxu0 %v4209_v6  ;;  %1190 = vmatpush1.bf16.msra.mxu1 %v4213_v7 }
  0xa3   :  { %1150 = vmatprep.subr.bf16.mxu0 %v4215_v11  ;;  %1191 = vmatprep.subr.bf16.mxu1 %v4218_v12 }
  0xa6   :  { %1151 = vmatpush2.bf16.msra.mxu0 %v4233_v22  ;;  %1192 = vmatpush2.bf16.msra.mxu1 %v4237_v23 }
  0xa7   :  { %1152 = vmatprep.subr.bf16.mxu0 %v4239_v24  ;;  %1193 = vmatprep.subr.bf16.mxu1 %v4242_v25 }
  0xaa   :  { %1153 = vmatpush2.bf16.msra.mxu0 %v4257_v38  ;;  %1194 = vmatpush2.bf16.msra.mxu1 %v4261_v39 }
  0xab   :  { %1154 = vmatprep.subr.bf16.mxu0 %v4263_v40  ;;  %1195 = vmatprep.subr.bf16.mxu1 %v4266_v41 }
  0xae   :  { %1155 = vmatpush2.bf16.msra.mxu0 %v4281_v53  ;;  %1196 = vmatpush2.bf16.msra.mxu1 %v4285_v55  ;;  %v6774_v53 = vld [vmem:[#allocation63_spill] sm:$0xff]  ;;  %v6775_v55 = vld [vmem:[#allocation64_spill] sm:$0xff] }
  0xaf   :  { %1156 = vmatprep.subr.bf16.mxu0 %v4287_v56  ;;  %1197 = vmatprep.subr.bf16.mxu1 %v6766_v32  ;;  %v6776_v56 = vld [vmem:[#allocation65_spill] sm:$0xff]  ;;  %v6777_v32 = vld [vmem:[#allocation66_spill] sm:$0xff] }
  0xb2   :  { %1157 = vmatpush2.bf16.msra.mxu0 %v6767_v57  ;;  %1198 = vmatpush2.bf16.msra.mxu1 %v6768_v4  ;;  %v6778_v57 = vld [vmem:[#allocation67_spill] sm:$0xff]  ;;  %v6779_v4 = vld [vmem:[#allocation68_spill] sm:$0xff] }
  0xb3   :  { %1158 = vmatprep.subr.bf16.mxu0 %v6769_v17  ;;  %1199 = vmatprep.subr.bf16.mxu1 %v6770_v30  ;;  %v6780_v17 = vld [vmem:[#allocation69_spill] sm:$0xff]  ;;  %v6781_v30 = vld [vmem:[#allocation70_spill] sm:$0xff] }
  0xb6   :  { %1159 = vmatpush2.bf16.msra.mxu0 %v6771_v58  ;;  %1200 = vmatpush2.bf16.msra.mxu1 %v6772_v33  ;;  %v6782_v58 = vld [vmem:[#allocation71_spill] sm:$0xff]  ;;  %v6783_v33 = vld [vmem:[#allocation72_spill] sm:$0xff] }
  0xb7   :  { %1160 = vmatprep.subr.bf16.mxu0 %v6773_v49  ;;  %1201 = vmatprep.subr.bf16.mxu1 %v6774_v53  ;;  %v6784_v49 = vld [vmem:[#allocation73_spill] sm:$0xff]  ;;  %v6785_v53 = vld [vmem:[#allocation74_spill] sm:$0xff] }
  0xba   :  { %1161 = vmatpush2.bf16.msra.mxu0 %v6775_v55  ;;  %1202 = vmatpush2.bf16.msra.mxu1 %v6776_v56  ;;  %v6786_v55 = vld [vmem:[#allocation75_spill] sm:$0xff] }
  0xbb   :  { %1162 = vmatprep.subr.bf16.mxu0 %v6777_v32  ;;  %1203 = vmatprep.subr.bf16.mxu1 %v6778_v57 }
  0xbe   :  { %1163 = vmatpush2.bf16.msra.mxu0 %v6779_v4  ;;  %1204 = vmatpush2.bf16.msra.mxu1 %v6780_v17 }
  0xbf   :  { %1164 = vmatprep.subr.bf16.mxu0 %v6781_v30  ;;  %1205 = vmatprep.subr.bf16.mxu1 %v6782_v58  ;;  %v166_v58 = vld [vmem:[%s6365_s0] sm:$0xff] }
  0xc2   :  { %1165 = vmatpush2.bf16.msra.mxu0 %v6783_v33  ;;  %1206 = vmatpush2.bf16.msra.mxu1 %v6784_v49  ;;  %v168_v49 = vld [vmem:[%s6365_s0 + $0x10] sm:$0xff] }
  0xc3   :  { %1216 = vmatprep.subr.bf16.mxu0 %v6785_v53  ;;  %1257 = vmatprep.subr.bf16.mxu1 %v6786_v55  ;;  %v167_v55 = vld [vmem:[%s6365_s0 + $0x8] sm:$0xff] }
 0x105   :  { %v850_v56 = vpop.f32.mrf.mxu0  ;;  %v891_v32 = vpop.f32.mrf.mxu1 }
 0x106   :  { %v980_v53 = vadd.f32 %v850_v56, %v166_v58 }
 0x107   :  { %v852_v41 = vpop.f32.mrf.mxu0  ;;  %v893_v57 = vpop.f32.mrf.mxu1 }
 0x108   :  { %v3499_v33 = vmul.f32 -1.442695, %v980_v53  ;;  %v172_v53 = vld [vmem:[%s6365_s0 + $0x30] sm:$0xff] }
 0x109   :  { %v854_v40 = vpop.f32.mrf.mxu0  ;;  %v895_v4 = vpop.f32.mrf.mxu1 }
 0x10a   :  { %v169_v40 = vld [vmem:[%s6365_s0 + $0x18] sm:$0xff]  ;;  %v982_v4 = vadd.f32 %v891_v32, %v168_v49  ;;  %3669 = vpow2.f32 %v3499_v33 }
 0x10b   :  { %v855_v39 = vpop.f32.mrf.mxu0  ;;  %v896_v17 = vpop.f32.mrf.mxu1 }
 0x10c   :  { %v981_v39 = vadd.f32 %v852_v41, %v167_v55  ;;  %v983_v17 = vadd.f32 %v893_v57, %v169_v40  ;;  %v3501_v30 = vmul.f32 -1.442695, %v982_v4  ;;  %v170_v41 = vld [vmem:[%s6365_s0 + $0x20] sm:$0xff] }
 0x10e   :  { %v3500_v38 = vmul.f32 -1.442695, %v981_v39  ;;  %v3502_v25 = vmul.f32 -1.442695, %v983_v17  ;;  %3671 = vpow2.f32 %v3501_v30 }
 0x110   :  { %3673 = vpow2.f32 %v3500_v38 }
 0x111   :  { %3675 = vpow2.f32 %v3502_v25  ;;  %v171_v25 = vld [vmem:[%s6365_s0 + $0x28] sm:$0xff] }
 0x117   :  { %v3670_v24 = vpop.eup %3669 }
 0x118   :  { %v994_v56 = vadd.f32 1.0, %v3670_v24 }
 0x11a   :  { %3677 = vrcp.f32 %v994_v56 }
 0x11b   :  { %v3672_v23 = vpop.eup %3671 }
 0x11c   :  { %v1006_v58 = vadd.f32 1.0, %v3672_v23 }
 0x11d   :  { %v3674_v22 = vpop.eup %3673 }
 0x11e   :  { %v3676_v12 = vpop.eup %3675  ;;  %v995_v11 = vadd.f32 1.0, %v3674_v22  ;;  %3679 = vrcp.f32 %v1006_v58  ;;  %v173_v22 = vld [vmem:[%s6365_s0 + $0x38] sm:$0xff] }
 0x11f   :  { %v1007_v55 = vadd.f32 1.0, %v3676_v12 }
 0x120   :  { %3681 = vrcp.f32 %v995_v11  ;;  %v30_v11 = vld [vmem:[%s6368_s3] sm:$0xff] }
 0x121   :  { %3683 = vrcp.f32 %v1007_v55 }
 0x127   :  { %v3678_v58 = vpop.eup %3677 }
 0x145   :  { %v932_v32 = vpop.f32.mrf.mxu0  ;;  %v973_v24 = vpop.f32.mrf.mxu1 }
 0x146   :  { %v984_v38 = vadd.f32 %v932_v32, %v170_v41  ;;  %v986_v23 = vadd.f32 %v973_v24, %v172_v53  ;;  %v3680_v41 = vpop.eup %3679 }
 0x147   :  { %v934_v12 = vpop.f32.mrf.mxu0  ;;  %v975_v33 = vpop.f32.mrf.mxu1  ;;  %v1026_v24 = vmul.f32 %v3680_v41, %v30_v11 }
 0x148   :  { %v3503_v57 = vmul.f32 -1.442695, %v984_v38  ;;  %v985_v30 = vadd.f32 %v934_v12, %v171_v25  ;;  %3685 = vtanh.f32 %v986_v23  ;;  %v987_v49 = vadd.f32 %v975_v33, %v173_v22  ;;  %v3682_v32 = vpop.eup %3681  ;;  %v31_v25 = vld [vmem:[%s6368_s3 + $0x8] sm:$0xff] }
 0x149   :  { %v936_v40 = vpop.f32.mrf.mxu0  ;;  %v977_v39 = vpop.f32.mrf.mxu1 }
 0x14a   :  { %3687 = vpow2.f32 %v3503_v57  ;;  %v3504_v4 = vmul.f32 -1.442695, %v985_v30  ;;  %v3684_v55 = vpop.eup %3683  ;;  %v3969_v39 = vmov 1966171168  }
 0x14b   :  { %3689 = vtanh.f32 %v987_v49  ;;  %v937_v17 = vpop.f32.mrf.mxu0  ;;  %v978_v56 = vpop.f32.mrf.mxu1  ;;  %v1027_v33 = vmul.f32 %v3684_v55, %v31_v25 }
 0x14c   :  { %3691 = vpow2.f32 %v3504_v4  ;;  %v1041_v17 = vunpack.c.l.s4 %v3969_v39  ;;  %v1043_v56 = vlaneseq }
 0x14e   :  { %v1042_v41 = vunpack.c.0.s8 %v1041_v17  ;;  %v1044_v11 = vshrl.u32 %v1043_v56, 7  ;;  %vm4901_vm0 = vcmp.lt.s32.totalorder %v1043_v56, 256 }
 0x150   :  { %v4895_v25 = vsub.s32 %v1042_v41, %v1044_v11  ;;  %v6789_v11 = vld [vmem:[#allocation76_spill] sm:$0xff] }
 0x155   :  { %v3686_v53 = vpop.eup %3685 }
 0x156   :  { %v1028_v22 = vmul.f32 %v3686_v53, %v3678_v58 }
 0x157   :  { %v3688_v38 = vpop.eup %3687 }
 0x158   :  { %v3690_v23 = vpop.eup %3689  ;;  %v1018_v12 = vadd.f32 1.0, %v3688_v38  ;;  %v4889_v30 = vadd.f32 %v1028_v22, %v1026_v24 }
 0x159   :  { %v3692_v57 = vpop.eup %3691  ;;  %v1029_v49 = vmul.f32 %v3690_v23, %v3682_v32 }
 0x15a   :  { %3693 = vrcp.f32 %v1018_v12  ;;  %v1019_v40 = vadd.f32 1.0, %v3692_v57 }
 0x15b   :  { %3695 = vtanh.f32 %v4889_v30  ;;  %v4892_v4 = vadd.f32 %v1029_v49, %v1027_v33 }
 0x15c   :  { %3697 = vrcp.f32 %v1019_v40 }
 0x15d   :  { %3699 = vtanh.f32 %v4892_v4 }
 0x167   :  { %v3694_v58 = vpop.eup %3693 }
 0x168   :  { %v3696_v53 = vpop.eup %3695 }
 0x169   :  { %v3698_v38 = vpop.eup %3697  ;;  %v1034_v55 = vmul.f32 %v3696_v53, %v3694_v58 }
 0x16a   :  { %v3700_v24 = vpop.eup %3699 }
 0x16b   :  { %v1035_v32 = vmul.f32 %v3700_v24, %v3698_v38  ;;  %v4897_v57 = vpack.c.bf16 %v1034_v55, %v1034_v55 }
 0x16d   :  { %v1133_v22 = vpack.c.bf16 %v1035_v32, %v1035_v32  ;;  %v1038_v23 = vcombine.low %v1034_v55, %v1035_v32  ;;  %v1039_v12 = vcombine.high %v1034_v55, %v1035_v32  ;;  %v6790_v55 = vld [vmem:[#allocation77_spill] sm:$0xff]  ;;  %v6791_v32 = vld [vmem:[#allocation78_spill] sm:$0xff] }
 0x16f   :  { %1166 = vmatprep.mubr.bf16.mxu0 %v1133_v22  ;;  %1207 = vmatprep.mubr.bf16.mxu1 %v1133_v22  ;;  %v1046_v33 = vrot.slane %v1038_v23, %v4895_v25  ;;  %v1053_v49 = vrot.slane %v1039_v12, %v4895_v25 }
 0x170   :  { %1167 = vmatmul.mubr.bf16.vlgmr.msra.gmra.mxu0 %v4897_v57  ;;  %1208 = vmatmul.mubr.bf16.vlgmr.msra.gmra.mxu1 %v4897_v57 }
 0x171   :  { %v1054_v39 = vcombine.high %v1046_v33, %v1046_v33  ;;  %v1055_v17 = vcombine.high %v1053_v49, %v1053_v49  ;;  %v1062_v58 = vrot.slane %v1046_v33, %v4895_v25  ;;  %v1069_v41 = vrot.slane %v1053_v49, %v4895_v25  ;;  %1217 = vmatpush1.bf16.msra.mxu0 %v4430_v46  ;;  %v6793_v33 = vld [vmem:[#allocation80_spill] sm:$0xff]  ;;  %v6794_v49 = vld [vmem:[#allocation81_spill] sm:$0xff] }
 0x172   :  { %1258 = vmatpush1.bf16.msra.mxu1 %v6789_v11  ;;  %1248 = vmatprep.mubr.bf16.mxu0 %v1133_v22 }
 0x173   :  { %v1076_v56 = vrot.slane %v1054_v39, %v4895_v25  ;;  %v1083_v53 = vrot.slane %v1055_v17, %v4895_v25  ;;  %v1084_v38 = vcombine.high %v1062_v58, %v1062_v58  ;;  %v1085_v24 = vcombine.high %v1069_v41, %v1069_v41  ;;  %1100 = vst.msk [vmem:[%s6369_s4] ss:$8 sm:$0x3] %vm4901_vm0, %v1062_v58  ;;  %v6795_v39 = vld [vmem:[#allocation82_spill] sm:$0xff]  ;;  %v6796_v17 = vld [vmem:[#allocation83_spill] sm:$0xff]  ;;  %v6797_v58 = vld [vmem:[#allocation84_spill] sm:$0xff] }
 0x174   :  { %3508 = vst.msk [vmem:[%s6369_s4 + $0x40] ss:$8 sm:$0x3] %vm4901_vm0, %v1069_v41  ;;  %1289 = vmatprep.mubr.bf16.mxu1 %v1133_v22  ;;  %1218 = vmatprep.subr.bf16.mxu0 %v6790_v55  ;;  %v6792_v22 = vld [vmem:[#allocation79_spill] sm:$0xff]  ;;  %v6798_v41 = vld [vmem:[#allocation85_spill] sm:$0xff] }
 0x175   :  { %1259 = vmatprep.subr.bf16.mxu1 %v6791_v32  ;;  %v1086_v23 = vcombine.high %v1076_v56, %v1076_v56  ;;  %v1087_v12 = vcombine.high %v1083_v53, %v1083_v53  ;;  %3505 = vst.msk [vmem:[%s6369_s4 + $0x10] ss:$8 sm:$0x3] %vm4901_vm0, %v1076_v56  ;;  %3506 = vst.msk [vmem:[%s6369_s4 + $0x20] ss:$8 sm:$0x3] %vm4901_vm0, %v1084_v38  ;;  %1219 = vmatpush1.bf16.msra.mxu0 %v6792_v22 }
 0x176   :  { %3509 = vst.msk [vmem:[%s6369_s4 + $0x50] ss:$8 sm:$0x3] %vm4901_vm0, %v1083_v53  ;;  %3510 = vst.msk [vmem:[%s6369_s4 + $0x60] ss:$8 sm:$0x3] %vm4901_vm0, %v1085_v24  ;;  %1260 = vmatpush1.bf16.msra.mxu1 %v6793_v33  ;;  %1220 = vmatprep.subr.bf16.mxu0 %v6794_v49 }
 0x177   :  { %3507 = vst.msk [vmem:[%s6369_s4 + $0x30] ss:$8 sm:$0x3] %vm4901_vm0, %v1086_v23  ;;  %3511 = vst.msk [vmem:[%s6369_s4 + $0x70] ss:$8 sm:$0x3] %vm4901_vm0, %v1087_v12  ;;  %1261 = vmatprep.subr.bf16.mxu1 %v6795_v39 }
 0x178   :  { %v6799_v56 = vld [vmem:[#allocation86_spill] sm:$0xff]  ;;  %v6800_v53 = vld [vmem:[#allocation87_spill] sm:$0xff]  ;;  %v6801_v38 = vld [vmem:[#allocation88_spill] sm:$0xff] }
 0x179   :  { %1221 = vmatpush1.bf16.msra.mxu0 %v6796_v17  ;;  %v6802_v24 = vld [vmem:[#allocation89_spill] sm:$0xff]  ;;  %v6803_v23 = vld [vmem:[#allocation90_spill] sm:$0xff]  ;;  %v6804_v49 = vld [vmem:[#allocation91_spill] sm:$0xff] }
 0x17a   :  { %1262 = vmatpush1.bf16.msra.mxu1 %v6797_v58  ;;  %1222 = vmatprep.subr.bf16.mxu0 %v6798_v41  ;;  %v6805_v12 = vld [vmem:[#allocation92_spill] sm:$0xff]  ;;  %v6806_v39 = vld [vmem:[#allocation93_spill] sm:$0xff]  ;;  %v6807_v17 = vld [vmem:[#allocation94_spill] sm:$0xff] }
 0x17b   :  { %1263 = vmatprep.subr.bf16.mxu1 %v6799_v56  ;;  %v6808_v58 = vld [vmem:[#allocation95_spill] sm:$0xff]  ;;  %v6809_v41 = vld [vmem:[#allocation96_spill] sm:$0xff]  ;;  %v6810_v56 = vld [vmem:[#allocation97_spill] sm:$0xff] }
 0x17d   :  { %1223 = vmatpush1.bf16.msra.mxu0 %v6800_v53  ;;  %v6811_v53 = vld [vmem:[#allocation98_spill] sm:$0xff] }
 0x17e   :  { %1264 = vmatpush1.bf16.msra.mxu1 %v6801_v38  ;;  %1224 = vmatprep.subr.bf16.mxu0 %v6802_v24  ;;  %v6812_v38 = vld [vmem:[#allocation99_spill] sm:$0xff]  ;;  %v6813_v24 = vld [vmem:[#allocation100_spill] sm:$0xff] }
 0x17f   :  { %1265 = vmatprep.subr.bf16.mxu1 %v6803_v23  ;;  %v6814_v23 = vld [vmem:[#allocation101_spill] sm:$0xff] }
 0x181   :  { %1225 = vmatpush1.bf16.msra.mxu0 %v6804_v49  ;;  %v6815_v49 = vld [vmem:[#allocation102_spill] sm:$0xff] }
 0x182   :  { %1266 = vmatpush1.bf16.msra.mxu1 %v6805_v12  ;;  %1226 = vmatprep.subr.bf16.mxu0 %v6806_v39  ;;  %v6816_v12 = vld [vmem:[#allocation103_spill] sm:$0xff]  ;;  %v6817_v39 = vld [vmem:[#allocation104_spill] sm:$0xff] }
 0x183   :  { %1267 = vmatprep.subr.bf16.mxu1 %v6807_v17  ;;  %v6818_v17 = vld [vmem:[#allocation105_spill] sm:$0xff] }
 0x185   :  { %1227 = vmatpush1.bf16.msra.mxu0 %v6808_v58  ;;  %v6819_v58 = vld [vmem:[#allocation106_spill] sm:$0xff] }
 0x186   :  { %1268 = vmatpush1.bf16.msra.mxu1 %v6809_v41  ;;  %1228 = vmatprep.subr.bf16.mxu0 %v6810_v56  ;;  %v6820_v41 = vld [vmem:[#allocation107_spill] sm:$0xff]  ;;  %v6821_v56 = vld [vmem:[#allocation108_spill] sm:$0xff] }
 0x187   :  { %1269 = vmatprep.subr.bf16.mxu1 %v6811_v53  ;;  %v6822_v53 = vld [vmem:[#allocation109_spill] sm:$0xff] }
 0x189   :  { %1229 = vmatpush1.bf16.msra.mxu0 %v6812_v38  ;;  %v6823_v38 = vld [vmem:[#allocation110_spill] sm:$0xff] }
 0x18a   :  { %1270 = vmatpush1.bf16.msra.mxu1 %v6813_v24  ;;  %1230 = vmatprep.subr.bf16.mxu0 %v6814_v23  ;;  %v6824_v24 = vld [vmem:[#allocation111_spill] sm:$0xff]  ;;  %v6825_v23 = vld [vmem:[#allocation112_spill] sm:$0xff] }
 0x18b   :  { %1271 = vmatprep.subr.bf16.mxu1 %v6815_v49  ;;  %v6826_v49 = vld [vmem:[#allocation113_spill] sm:$0xff] }
 0x18d   :  { %1231 = vmatpush1.bf16.msra.mxu0 %v6816_v12  ;;  %v6827_v12 = vld [vmem:[#allocation114_spill] sm:$0xff] }
 0x18e   :  { %1272 = vmatpush1.bf16.msra.mxu1 %v6817_v39  ;;  %1232 = vmatprep.subr.bf16.mxu0 %v6818_v17  ;;  %v6828_v39 = vld [vmem:[#allocation115_spill] sm:$0xff]  ;;  %v6829_v17 = vld [vmem:[#allocation116_spill] sm:$0xff] }
 0x18f   :  { %1273 = vmatprep.subr.bf16.mxu1 %v6819_v58  ;;  %v6830_v58 = vld [vmem:[#allocation117_spill] sm:$0xff] }
 0x191   :  { %1233 = vmatpush2.bf16.msra.mxu0 %v6820_v41  ;;  %v6831_v41 = vld [vmem:[#allocation118_spill] sm:$0xff] }
 0x192   :  { %1274 = vmatpush2.bf16.msra.mxu1 %v6821_v56  ;;  %1234 = vmatprep.subr.bf16.mxu0 %v6822_v53  ;;  %v6832_v56 = vld [vmem:[#allocation119_spill] sm:$0xff]  ;;  %v6833_v53 = vld [vmem:[#allocation120_spill] sm:$0xff] }
 0x193   :  { %1275 = vmatprep.subr.bf16.mxu1 %v6823_v38  ;;  %v6834_v38 = vld [vmem:[#allocation121_spill] sm:$0xff] }
 0x195   :  { %1235 = vmatpush2.bf16.msra.mxu0 %v6824_v24  ;;  %v6835_v24 = vld [vmem:[#allocation122_spill] sm:$0xff] }
 0x196   :  { %1276 = vmatpush2.bf16.msra.mxu1 %v6825_v23  ;;  %1236 = vmatprep.subr.bf16.mxu0 %v6826_v49  ;;  %v6836_v23 = vld [vmem:[#allocation123_spill] sm:$0xff]  ;;  %v6837_v49 = vld [vmem:[#allocation124_spill] sm:$0xff] }
 0x197   :  { %1277 = vmatprep.subr.bf16.mxu1 %v6827_v12  ;;  %v6838_v12 = vld [vmem:[#allocation125_spill] sm:$0xff] }
 0x199   :  { %1237 = vmatpush2.bf16.msra.mxu0 %v6828_v39  ;;  %v6839_v39 = vld [vmem:[#allocation126_spill] sm:$0xff] }
 0x19a   :  { %1278 = vmatpush2.bf16.msra.mxu1 %v6829_v17  ;;  %1238 = vmatprep.subr.bf16.mxu0 %v6830_v58 }
 0x19b   :  { %1279 = vmatprep.subr.bf16.mxu1 %v6831_v41 }
 0x19d   :  { %1239 = vmatpush2.bf16.msra.mxu0 %v6832_v56 }
 0x19e   :  { %1280 = vmatpush2.bf16.msra.mxu1 %v6833_v53  ;;  %1240 = vmatprep.subr.bf16.mxu0 %v6834_v38 }
 0x19f   :  { %1281 = vmatprep.subr.bf16.mxu1 %v6835_v24 }
 0x1a1   :  { %1241 = vmatpush2.bf16.msra.mxu0 %v6836_v23 }
 0x1a2   :  { %1282 = vmatpush2.bf16.msra.mxu1 %v6837_v49  ;;  %1242 = vmatprep.subr.bf16.mxu0 %v6838_v12 }
 0x1a3   :  { %1283 = vmatprep.subr.bf16.mxu1 %v6839_v39 }
 0x1a5   :  { %1243 = vmatpush2.bf16.msra.mxu0 %v4746_v31 }
 0x1a6   :  { %1284 = vmatpush2.bf16.msra.mxu1 %v4750_v2  ;;  %1244 = vmatprep.subr.bf16.mxu0 %v4752_v16 }
 0x1a7   :  { %1285 = vmatprep.subr.bf16.mxu1 %v4755_v15 }
 0x1a9   :  { %1245 = vmatpush2.bf16.msra.mxu0 %v4770_v59 }
 0x1aa   :  { %1286 = vmatpush2.bf16.msra.mxu1 %v4774_v48  ;;  %1246 = vmatprep.subr.bf16.mxu0 %v4776_v13 }
 0x1ab   :  { %1287 = vmatprep.subr.bf16.mxu1 %v4779_v47 }
 0x1ad   :  { %1247 = vmatpush2.bf16.msra.mxu0 %v4782_v0 }
 0x1ae   :  { %1288 = vmatpush2.bf16.msra.mxu1 %v4786_v1  ;;  %1449 = vmatprep.subr.bf16.mxu0 %v4016_v3 }
 0x1af   :  { %1490 = vmatprep.subr.bf16.mxu1 %v4029_v8 }
 0x1b0   :  { %1249 = vmatmul.mubr.bf16.vlgmr.msra.gmra.mxu0 %v4897_v57 }
 0x1b1   :  { %1290 = vmatmul.mubr.bf16.vlgmr.msra.gmra.mxu1 %v4897_v57  ;;  %1450 = vmatpush1.bf16.msra.mxu0 %v4021_v5  ;;  %v6840_v57 = vld [vmem:[#allocation42_spill] sm:$0xff] }
 0x1b2   :  { %1491 = vmatpush1.bf16.msra.mxu1 %v4031_v9  ;;  %1451 = vmatprep.subr.bf16.mxu0 %v4033_v10 }
 0x1b3   :  { %1492 = vmatprep.subr.bf16.mxu1 %v4045_v14 }
 0x1b5   :  { %1452 = vmatpush1.bf16.msra.mxu0 %v4058_v18 }
 0x1b6   :  { %1493 = vmatpush1.bf16.msra.mxu1 %v4062_v19  ;;  %1453 = vmatprep.subr.bf16.mxu0 %v4064_v20 }
 0x1b7   :  { %1494 = vmatprep.subr.bf16.mxu1 %v4067_v21 }
 0x1b9   :  { %1454 = vmatpush1.bf16.msra.mxu0 %v4082_v26 }
 0x1ba   :  { %1495 = vmatpush1.bf16.msra.mxu1 %v4086_v27  ;;  %1455 = vmatprep.subr.bf16.mxu0 %v4088_v28 }
 0x1bb   :  { %1496 = vmatprep.subr.bf16.mxu1 %v4091_v29 }
 0x1bd   :  { %1456 = vmatpush1.bf16.msra.mxu0 %v4106_v34 }
 0x1be   :  { %1497 = vmatpush1.bf16.msra.mxu1 %v4110_v35  ;;  %1457 = vmatprep.subr.bf16.mxu0 %v4112_v36 }
 0x1bf   :  { %1498 = vmatprep.subr.bf16.mxu1 %v4115_v37 }
 0x1c1   :  { %1458 = vmatpush1.bf16.msra.mxu0 %v4130_v42 }
 0x1c2   :  { %1499 = vmatpush1.bf16.msra.mxu1 %v4134_v43  ;;  %1459 = vmatprep.subr.bf16.mxu0 %v4136_v44 }
 0x1c3   :  { %1500 = vmatprep.subr.bf16.mxu1 %v4139_v45 }
 0x1c5   :  { %1460 = vmatpush1.bf16.msra.mxu0 %v4154_v50  ;;  %v6841_v50 = vld [vmem:[#allocation43_spill] sm:$0xff] }
 0x1c6   :  { %1501 = vmatpush1.bf16.msra.mxu1 %v4158_v51  ;;  %1461 = vmatprep.subr.bf16.mxu0 %v4160_v52  ;;  %v6842_v51 = vld [vmem:[#allocation44_spill] sm:$0xff]  ;;  %v6843_v52 = vld [vmem:[#allocation45_spill] sm:$0xff] }
 0x1c7   :  { %1502 = vmatprep.subr.bf16.mxu1 %v4166_v54  ;;  %v6844_v54 = vld [vmem:[#allocation46_spill] sm:$0xff] }
 0x1c9   :  { %1462 = vmatpush1.bf16.msra.mxu0 %v4183_v60  ;;  %v6845_v60 = vld [vmem:[#allocation47_spill] sm:$0xff] }
 0x1ca   :  { %1503 = vmatpush1.bf16.msra.mxu1 %v4188_v61  ;;  %1463 = vmatprep.subr.bf16.mxu0 %v4190_v62  ;;  %v6846_v61 = vld [vmem:[#allocation48_spill] sm:$0xff]  ;;  %v6847_v62 = vld [vmem:[#allocation49_spill] sm:$0xff] }
 0x1cb   :  { %1504 = vmatprep.subr.bf16.mxu1 %v4193_v63  ;;  %v6848_v63 = vld [vmem:[#allocation50_spill] sm:$0xff] }
 0x1cd   :  { %1464 = vmatpush1.bf16.msra.mxu0 %v4209_v6  ;;  %v6849_v6 = vld [vmem:[#allocation51_spill] sm:$0xff] }
 0x1ce   :  { %1505 = vmatpush1.bf16.msra.mxu1 %v4213_v7  ;;  %1465 = vmatprep.subr.bf16.mxu0 %v6840_v57  ;;  %v6850_v7 = vld [vmem:[#allocation52_spill] sm:$0xff]  ;;  %v6851_v57 = vld [vmem:[#allocation53_spill] sm:$0xff] }
 0x1cf   :  { %1506 = vmatprep.subr.bf16.mxu1 %v6841_v50  ;;  %v6852_v50 = vld [vmem:[#allocation54_spill] sm:$0xff] }
 0x1d1   :  { %1466 = vmatpush2.bf16.msra.mxu0 %v6842_v51  ;;  %v6853_v51 = vld [vmem:[#allocation55_spill] sm:$0xff] }
 0x1d2   :  { %1507 = vmatpush2.bf16.msra.mxu1 %v6843_v52  ;;  %1467 = vmatprep.subr.bf16.mxu0 %v6844_v54  ;;  %v6854_v52 = vld [vmem:[#allocation56_spill] sm:$0xff]  ;;  %v6855_v54 = vld [vmem:[#allocation57_spill] sm:$0xff] }
 0x1d3   :  { %1508 = vmatprep.subr.bf16.mxu1 %v6845_v60  ;;  %v6856_v60 = vld [vmem:[#allocation58_spill] sm:$0xff] }
 0x1d5   :  { %1468 = vmatpush2.bf16.msra.mxu0 %v6846_v61  ;;  %v6857_v61 = vld [vmem:[#allocation59_spill] sm:$0xff] }
 0x1d6   :  { %1509 = vmatpush2.bf16.msra.mxu1 %v6847_v62  ;;  %1469 = vmatprep.subr.bf16.mxu0 %v6848_v63  ;;  %v6858_v62 = vld [vmem:[#allocation60_spill] sm:$0xff]  ;;  %v6859_v63 = vld [vmem:[#allocation61_spill] sm:$0xff] }
 0x1d7   :  { %1510 = vmatprep.subr.bf16.mxu1 %v6849_v6  ;;  %v6860_v6 = vld [vmem:[#allocation62_spill] sm:$0xff] }
 0x1d9   :  { %1470 = vmatpush2.bf16.msra.mxu0 %v6850_v7  ;;  %v6861_v7 = vld [vmem:[#allocation63_spill] sm:$0xff] }
 0x1da   :  { %1511 = vmatpush2.bf16.msra.mxu1 %v6851_v57  ;;  %1471 = vmatprep.subr.bf16.mxu0 %v6852_v50  ;;  %v6862_v57 = vld [vmem:[#allocation64_spill] sm:$0xff]  ;;  %v6863_v50 = vld [vmem:[#allocation65_spill] sm:$0xff] }
 0x1db   :  { %1512 = vmatprep.subr.bf16.mxu1 %v6853_v51  ;;  %v6864_v51 = vld [vmem:[#allocation66_spill] sm:$0xff] }
 0x1dd   :  { %1472 = vmatpush2.bf16.msra.mxu0 %v6854_v52  ;;  %v6865_v52 = vld [vmem:[#allocation67_spill] sm:$0xff] }
 0x1de   :  { %1513 = vmatpush2.bf16.msra.mxu1 %v6855_v54  ;;  %1473 = vmatprep.subr.bf16.mxu0 %v6856_v60  ;;  %v6866_v54 = vld [vmem:[#allocation68_spill] sm:$0xff]  ;;  %v6867_v60 = vld [vmem:[#allocation69_spill] sm:$0xff] }
 0x1df   :  { %1514 = vmatprep.subr.bf16.mxu1 %v6857_v61  ;;  %v6868_v61 = vld [vmem:[#allocation70_spill] sm:$0xff] }
 0x1e1   :  { %1474 = vmatpush2.bf16.msra.mxu0 %v6858_v62  ;;  %v6869_v62 = vld [vmem:[#allocation71_spill] sm:$0xff] }
 0x1e2   :  { %1515 = vmatpush2.bf16.msra.mxu1 %v6859_v63  ;;  %1475 = vmatprep.subr.bf16.mxu0 %v6860_v6  ;;  %v6870_v63 = vld [vmem:[#allocation72_spill] sm:$0xff]  ;;  %v6871_v6 = vld [vmem:[#allocation73_spill] sm:$0xff] }
 0x1e3   :  { %1516 = vmatprep.subr.bf16.mxu1 %v6861_v7  ;;  %v6872_v7 = vld [vmem:[#allocation74_spill] sm:$0xff] }
 0x1e5   :  { %1476 = vmatpush2.bf16.msra.mxu0 %v6862_v57  ;;  %v6873_v57 = vld [vmem:[#allocation75_spill] sm:$0xff] }
 0x1e6   :  { %1517 = vmatpush2.bf16.msra.mxu1 %v6863_v50  ;;  %1477 = vmatprep.subr.bf16.mxu0 %v6864_v51 }
 0x1e7   :  { %1518 = vmatprep.subr.bf16.mxu1 %v6865_v52 }
 0x1e9   :  { %1478 = vmatpush2.bf16.msra.mxu0 %v6866_v54 }
 0x1ea   :  { %1519 = vmatpush2.bf16.msra.mxu1 %v6867_v60  ;;  %1479 = vmatprep.subr.bf16.mxu0 %v6868_v61 }
 0x1eb   :  { %1520 = vmatprep.subr.bf16.mxu1 %v6869_v62  ;;  %v3512_v62 = vld [vmem:[%s6365_s0 + $0x40] sm:$0xff] }
 0x1ed   :  { %1480 = vmatpush2.bf16.msra.mxu0 %v6870_v63 }
 0x1ee   :  { %1521 = vmatpush2.bf16.msra.mxu1 %v6871_v6  ;;  %1531 = vmatprep.subr.bf16.mxu0 %v6872_v7  ;;  %v3514_v6 = vld [vmem:[%s6365_s0 + $0x50] sm:$0xff] }
 0x1ef   :  { %1572 = vmatprep.subr.bf16.mxu1 %v6873_v57  ;;  %v3513_v57 = vld [vmem:[%s6365_s0 + $0x48] sm:$0xff] }
 0x230   :  { %v1168_v50 = vpop.f32.mrf.mxu0  ;;  %v1209_v51 = vpop.f32.mrf.mxu1 }
 0x231   :  { %v1298_v7 = vadd.f32 %v3512_v62, %v1168_v50 }
 0x232   :  { %v1170_v45 = vpop.f32.mrf.mxu0  ;;  %v1211_v52 = vpop.f32.mrf.mxu1 }
 0x233   :  { %v3520_v63 = vmul.f32 -1.442695, %v1298_v7 }
 0x234   :  { %v1172_v44 = vpop.f32.mrf.mxu0  ;;  %v1213_v54 = vpop.f32.mrf.mxu1 }
 0x235   :  { %v3515_v44 = vld [vmem:[%s6365_s0 + $0x58] sm:$0xff]  ;;  %v1300_v54 = vadd.f32 %v3514_v6, %v1209_v51  ;;  %3701 = vpow2.f32 %v3520_v63 }
 0x236   :  { %v1173_v43 = vpop.f32.mrf.mxu0  ;;  %v1214_v60 = vpop.f32.mrf.mxu1 }
 0x237   :  { %v1299_v43 = vadd.f32 %v3513_v57, %v1170_v45  ;;  %v1301_v60 = vadd.f32 %v3515_v44, %v1211_v52  ;;  %v3522_v61 = vmul.f32 -1.442695, %v1300_v54  ;;  %v3516_v45 = vld [vmem:[%s6365_s0 + $0x60] sm:$0xff]  ;;  %v3518_v52 = vld [vmem:[%s6365_s0 + $0x70] sm:$0xff] }
 0x239   :  { %v3521_v42 = vmul.f32 -1.442695, %v1299_v43  ;;  %v3523_v37 = vmul.f32 -1.442695, %v1301_v60  ;;  %3703 = vpow2.f32 %v3522_v61 }
 0x23b   :  { %3705 = vpow2.f32 %v3521_v42 }
 0x23c   :  { %3707 = vpow2.f32 %v3523_v37  ;;  %v3517_v37 = vld [vmem:[%s6365_s0 + $0x68] sm:$0xff] }
 0x242   :  { %v3702_v36 = vpop.eup %3701 }
 0x243   :  { %v1312_v50 = vadd.f32 1.0, %v3702_v36 }
 0x245   :  { %3709 = vrcp.f32 %v1312_v50 }
 0x246   :  { %v3704_v35 = vpop.eup %3703 }
 0x247   :  { %v1324_v62 = vadd.f32 1.0, %v3704_v35 }
 0x248   :  { %v3706_v34 = vpop.eup %3705 }
 0x249   :  { %v3708_v29 = vpop.eup %3707  ;;  %v1313_v28 = vadd.f32 1.0, %v3706_v34  ;;  %3711 = vrcp.f32 %v1324_v62  ;;  %v3519_v34 = vld [vmem:[%s6365_s0 + $0x78] sm:$0xff] }
 0x24a   :  { %v1325_v51 = vadd.f32 1.0, %v3708_v29 }
 0x24b   :  { %3713 = vrcp.f32 %v1313_v28 }
 0x24c   :  { %3715 = vrcp.f32 %v1325_v51 }
 0x252   :  { %v3710_v62 = vpop.eup %3709 }
 0x270   :  { %v1250_v61 = vpop.f32.mrf.mxu0 }
 0x271   :  { %v1302_v42 = vadd.f32 %v3516_v45, %v1250_v61  ;;  %v1291_v36 = vpop.f32.mrf.mxu1  ;;  %v3712_v45 = vpop.eup %3711 }
 0x272   :  { %v1304_v35 = vadd.f32 %v3518_v52, %v1291_v36  ;;  %v1252_v29 = vpop.f32.mrf.mxu0  ;;  %v3714_v61 = vpop.eup %3713  ;;  %v1344_v51 = vmul.f32 %v3712_v45, %v4889_v30 }
 0x273   :  { %v3524_v63 = vmul.f32 -1.442695, %v1302_v42  ;;  %v1303_v6 = vadd.f32 %v3517_v37, %v1252_v29  ;;  %v1293_v7 = vpop.f32.mrf.mxu1  ;;  %v3716_v28 = vpop.eup %3715 }
 0x274   :  { %3717 = vtanh.f32 %v1304_v35  ;;  %v1305_v57 = vadd.f32 %v3519_v34, %v1293_v7  ;;  %v1254_v44 = vpop.f32.mrf.mxu0 }
 0x275   :  { %3719 = vpow2.f32 %v3524_v63  ;;  %v3525_v54 = vmul.f32 -1.442695, %v1303_v6  ;;  %v1295_v43 = vpop.f32.mrf.mxu1  ;;  %v1345_v63 = vmul.f32 %v3716_v28, %v4892_v4 }
 0x276   :  { %3721 = vtanh.f32 %v1305_v57  ;;  %v1255_v60 = vpop.f32.mrf.mxu0 }
 0x277   :  { %3723 = vpow2.f32 %v3525_v54  ;;  %v1296_v50 = vpop.f32.mrf.mxu1 }
 0x281   :  { %v3718_v52 = vpop.eup %3717 }
 0x282   :  { %v3720_v36 = vpop.eup %3719  ;;  %v1346_v37 = vmul.f32 %v3718_v52, %v3710_v62 }
 0x283   :  { %v3722_v42 = vpop.eup %3721  ;;  %v1336_v35 = vadd.f32 1.0, %v3720_v36 }
 0x284   :  { %v3724_v34 = vpop.eup %3723  ;;  %v5106_v29 = vadd.f32 %v1346_v37, %v1344_v51  ;;  %v1347_v6 = vmul.f32 %v3722_v42, %v3714_v61 }
 0x285   :  { %3725 = vrcp.f32 %v1336_v35  ;;  %v1337_v7 = vadd.f32 1.0, %v3724_v34 }
 0x286   :  { %3727 = vtanh.f32 %v5106_v29  ;;  %v5110_v57 = vadd.f32 %v1347_v6, %v1345_v63 }
 0x287   :  { %3729 = vrcp.f32 %v1337_v7 }
 0x288   :  { %3731 = vtanh.f32 %v5110_v57 }
 0x292   :  { %v3726_v44 = vpop.eup %3725 }
 0x293   :  { %v3728_v30 = vpop.eup %3727 }
 0x294   :  { %v3730_v54 = vpop.eup %3729  ;;  %v1352_v60 = vmul.f32 %v3728_v30, %v3726_v44  ;;  %v6874_v30 = vld [vmem:[#allocation81_spill] sm:$0xff] }
 0x295   :  { %v3732_v43 = vpop.eup %3731 }
 0x296   :  { %v1353_v50 = vmul.f32 %v3732_v43, %v3730_v54  ;;  %v5113_v4 = vpack.c.bf16 %v1352_v60, %v1352_v60  ;;  %v6875_v54 = vld [vmem:[#allocation82_spill] sm:$0xff]  ;;  %v6876_v43 = vld [vmem:[#allocation83_spill] sm:$0xff] }
 0x298   :  { %v1448_v62 = vpack.c.bf16 %v1353_v50, %v1353_v50  ;;  %v1356_v45 = vcombine.low %v1352_v60, %v1353_v50  ;;  %v1357_v52 = vcombine.high %v1352_v60, %v1353_v50  ;;  %v6877_v60 = vld [vmem:[#allocation84_spill] sm:$0xff]  ;;  %v6878_v50 = vld [vmem:[#allocation85_spill] sm:$0xff] }
 0x29a   :  { %1481 = vmatprep.mubr.bf16.mxu0 %v1448_v62  ;;  %1522 = vmatprep.mubr.bf16.mxu1 %v1448_v62  ;;  %v1364_v61 = vrot.slane %v1356_v45, %v4895_v25  ;;  %v1371_v28 = vrot.slane %v1357_v52, %v4895_v25  ;;  %v6880_v45 = vld [vmem:[#allocation87_spill] sm:$0xff]  ;;  %v6881_v52 = vld [vmem:[#allocation88_spill] sm:$0xff] }
 0x29b   :  { %1482 = vmatmul.mubr.bf16.vlgmr.msra.gmra.mxu0 %v5113_v4  ;;  %1523 = vmatmul.mubr.bf16.vlgmr.msra.gmra.mxu1 %v5113_v4 }
 0x29c   :  { %v1372_v36 = vcombine.high %v1364_v61, %v1364_v61  ;;  %v1373_v51 = vcombine.high %v1371_v28, %v1371_v28  ;;  %v1380_v37 = vrot.slane %v1364_v61, %v4895_v25  ;;  %v1387_v42 = vrot.slane %v1371_v28, %v4895_v25  ;;  %1532 = vmatpush1.bf16.msra.mxu0 %v4430_v46  ;;  %v6882_v61 = vld [vmem:[#allocation89_spill] sm:$0xff]  ;;  %v6883_v28 = vld [vmem:[#allocation90_spill] sm:$0xff] }
 0x29d   :  { %1573 = vmatpush1.bf16.msra.mxu1 %v6789_v11  ;;  %1563 = vmatprep.mubr.bf16.mxu0 %v1448_v62 }
 0x29e   :  { %v1394_v35 = vrot.slane %v1372_v36, %v4895_v25  ;;  %v1401_v34 = vrot.slane %v1373_v51, %v4895_v25  ;;  %v1402_v63 = vcombine.high %v1380_v37, %v1380_v37  ;;  %v1403_v6 = vcombine.high %v1387_v42, %v1387_v42  ;;  %3526 = vst.msk [vmem:[%s6369_s4 + $0x1] ss:$8 sm:$0x3] %vm4901_vm0, %v1380_v37  ;;  %v6884_v36 = vld [vmem:[#allocation91_spill] sm:$0xff]  ;;  %v6885_v51 = vld [vmem:[#allocation92_spill] sm:$0xff]  ;;  %v6886_v37 = vld [vmem:[#allocation93_spill] sm:$0xff] }
 0x29f   :  { %3530 = vst.msk [vmem:[%s6369_s4 + $0x41] ss:$8 sm:$0x3] %vm4901_vm0, %v1387_v42  ;;  %1604 = vmatprep.mubr.bf16.mxu1 %v1448_v62  ;;  %1533 = vmatprep.subr.bf16.mxu0 %v6790_v55  ;;  %v6879_v62 = vld [vmem:[#allocation86_spill] sm:$0xff] }
 0x2a0   :  { %1574 = vmatprep.subr.bf16.mxu1 %v6791_v32  ;;  %v1404_v7 = vcombine.high %v1394_v35, %v1394_v35  ;;  %v1405_v44 = vcombine.high %v1401_v34, %v1401_v34  ;;  %3527 = vst.msk [vmem:[%s6369_s4 + $0x11] ss:$8 sm:$0x3] %vm4901_vm0, %v1394_v35  ;;  %3528 = vst.msk [vmem:[%s6369_s4 + $0x21] ss:$8 sm:$0x3] %vm4901_vm0, %v1402_v63  ;;  %1534 = vmatpush1.bf16.msra.mxu0 %v6792_v22 }
 0x2a1   :  { %3531 = vst.msk [vmem:[%s6369_s4 + $0x51] ss:$8 sm:$0x3] %vm4901_vm0, %v1401_v34  ;;  %3532 = vst.msk [vmem:[%s6369_s4 + $0x61] ss:$8 sm:$0x3] %vm4901_vm0, %v1403_v6  ;;  %1575 = vmatpush1.bf16.msra.mxu1 %v6793_v33  ;;  %1535 = vmatprep.subr.bf16.mxu0 %v6874_v30 }
 0x2a2   :  { %3529 = vst.msk [vmem:[%s6369_s4 + $0x31] ss:$8 sm:$0x3] %vm4901_vm0, %v1404_v7  ;;  %3533 = vst.msk [vmem:[%s6369_s4 + $0x71] ss:$8 sm:$0x3] %vm4901_vm0, %v1405_v44  ;;  %1576 = vmatprep.subr.bf16.mxu1 %v6875_v54 }
 0x2a3   :  { %v6887_v42 = vld [vmem:[#allocation94_spill] sm:$0xff]  ;;  %v6888_v35 = vld [vmem:[#allocation95_spill] sm:$0xff]  ;;  %v6889_v34 = vld [vmem:[#allocation96_spill] sm:$0xff] }
 0x2a4   :  { %1536 = vmatpush1.bf16.msra.mxu0 %v6876_v43  ;;  %v6890_v63 = vld [vmem:[#allocation97_spill] sm:$0xff]  ;;  %v6891_v6 = vld [vmem:[#allocation98_spill] sm:$0xff]  ;;  %v6892_v7 = vld [vmem:[#allocation99_spill] sm:$0xff] }
 0x2a5   :  { %1577 = vmatpush1.bf16.msra.mxu1 %v6877_v60  ;;  %1537 = vmatprep.subr.bf16.mxu0 %v6878_v50  ;;  %v6893_v44 = vld [vmem:[#allocation100_spill] sm:$0xff] }
 0x2a6   :  { %1578 = vmatprep.subr.bf16.mxu1 %v6879_v62 }
 0x2a8   :  { %1538 = vmatpush1.bf16.msra.mxu0 %v6880_v45 }
 0x2a9   :  { %1579 = vmatpush1.bf16.msra.mxu1 %v6881_v52  ;;  %1539 = vmatprep.subr.bf16.mxu0 %v6882_v61 }
 0x2aa   :  { %1580 = vmatprep.subr.bf16.mxu1 %v6883_v28  ;;  %v6894_v28 = vld [vmem:[#allocation101_spill] sm:$0xff] }
 0x2ac   :  { %1540 = vmatpush1.bf16.msra.mxu0 %v6884_v36  ;;  %v6895_v36 = vld [vmem:[#allocation102_spill] sm:$0xff] }
 0x2ad   :  { %1581 = vmatpush1.bf16.msra.mxu1 %v6885_v51  ;;  %1541 = vmatprep.subr.bf16.mxu0 %v6886_v37  ;;  %v6896_v51 = vld [vmem:[#allocation103_spill] sm:$0xff]  ;;  %v6897_v37 = vld [vmem:[#allocation104_spill] sm:$0xff] }
 0x2ae   :  { %1582 = vmatprep.subr.bf16.mxu1 %v6887_v42  ;;  %v6898_v42 = vld [vmem:[#allocation105_spill] sm:$0xff] }
 0x2b0   :  { %1542 = vmatpush1.bf16.msra.mxu0 %v6888_v35  ;;  %v6899_v35 = vld [vmem:[#allocation106_spill] sm:$0xff] }
 0x2b1   :  { %1583 = vmatpush1.bf16.msra.mxu1 %v6889_v34  ;;  %1543 = vmatprep.subr.bf16.mxu0 %v6890_v63  ;;  %v6900_v34 = vld [vmem:[#allocation107_spill] sm:$0xff]  ;;  %v6901_v63 = vld [vmem:[#allocation108_spill] sm:$0xff] }
 0x2b2   :  { %1584 = vmatprep.subr.bf16.mxu1 %v6891_v6  ;;  %v6902_v6 = vld [vmem:[#allocation109_spill] sm:$0xff] }
 0x2b4   :  { %1544 = vmatpush1.bf16.msra.mxu0 %v6892_v7  ;;  %v6903_v7 = vld [vmem:[#allocation110_spill] sm:$0xff] }
 0x2b5   :  { %1585 = vmatpush1.bf16.msra.mxu1 %v6893_v44  ;;  %1545 = vmatprep.subr.bf16.mxu0 %v6894_v28  ;;  %v6904_v44 = vld [vmem:[#allocation111_spill] sm:$0xff]  ;;  %v6905_v28 = vld [vmem:[#allocation112_spill] sm:$0xff] }
 0x2b6   :  { %1586 = vmatprep.subr.bf16.mxu1 %v6895_v36  ;;  %v6906_v36 = vld [vmem:[#allocation113_spill] sm:$0xff] }
 0x2b8   :  { %1546 = vmatpush1.bf16.msra.mxu0 %v6896_v51  ;;  %v6907_v51 = vld [vmem:[#allocation114_spill] sm:$0xff] }
 0x2b9   :  { %1587 = vmatpush1.bf16.msra.mxu1 %v6897_v37  ;;  %1547 = vmatprep.subr.bf16.mxu0 %v6898_v42  ;;  %v6908_v37 = vld [vmem:[#allocation115_spill] sm:$0xff] }
 0x2ba   :  { %1588 = vmatprep.subr.bf16.mxu1 %v6899_v35 }
 0x2bc   :  { %1548 = vmatpush2.bf16.msra.mxu0 %v6900_v34 }
 0x2bd   :  { %1589 = vmatpush2.bf16.msra.mxu1 %v6901_v63  ;;  %1549 = vmatprep.subr.bf16.mxu0 %v6902_v6 }
 0x2be   :  { %1590 = vmatprep.subr.bf16.mxu1 %v6903_v7 }
 0x2c0   :  { %1550 = vmatpush2.bf16.msra.mxu0 %v6904_v44 }
 0x2c1   :  { %1591 = vmatpush2.bf16.msra.mxu1 %v6905_v28  ;;  %1551 = vmatprep.subr.bf16.mxu0 %v6906_v36 }
 0x2c2   :  { %1592 = vmatprep.subr.bf16.mxu1 %v6907_v51 }
 0x2c4   :  { %1552 = vmatpush2.bf16.msra.mxu0 %v6908_v37 }
 0x2c5   :  { %1593 = vmatpush2.bf16.msra.mxu1 %v6829_v17  ;;  %1553 = vmatprep.subr.bf16.mxu0 %v6830_v58 }
 0x2c6   :  { %1594 = vmatprep.subr.bf16.mxu1 %v6831_v41 }
 0x2c8   :  { %1554 = vmatpush2.bf16.msra.mxu0 %v6832_v56 }
 0x2c9   :  { %1595 = vmatpush2.bf16.msra.mxu1 %v6833_v53  ;;  %1555 = vmatprep.subr.bf16.mxu0 %v6834_v38 }
 0x2ca   :  { %1596 = vmatprep.subr.bf16.mxu1 %v6835_v24 }
 0x2cc   :  { %1556 = vmatpush2.bf16.msra.mxu0 %v6836_v23 }
 0x2cd   :  { %1597 = vmatpush2.bf16.msra.mxu1 %v6837_v49  ;;  %1557 = vmatprep.subr.bf16.mxu0 %v6838_v12 }
 0x2ce   :  { %1598 = vmatprep.subr.bf16.mxu1 %v6839_v39 }
 0x2d0   :  { %1558 = vmatpush2.bf16.msra.mxu0 %v4746_v31 }
 0x2d1   :  { %1599 = vmatpush2.bf16.msra.mxu1 %v4750_v2  ;;  %1559 = vmatprep.subr.bf16.mxu0 %v4752_v16 }
 0x2d2   :  { %1600 = vmatprep.subr.bf16.mxu1 %v4755_v15 }
 0x2d4   :  { %1560 = vmatpush2.bf16.msra.mxu0 %v4770_v59 }
 0x2d5   :  { %1601 = vmatpush2.bf16.msra.mxu1 %v4774_v48  ;;  %1561 = vmatprep.subr.bf16.mxu0 %v4776_v13 }
 0x2d6   :  { %1602 = vmatprep.subr.bf16.mxu1 %v4779_v47 }
 0x2d8   :  { %1562 = vmatpush2.bf16.msra.mxu0 %v4782_v0 }
 0x2d9   :  { %1603 = vmatpush2.bf16.msra.mxu1 %v4786_v1  ;;  %1764 = vmatprep.subr.bf16.mxu0 %v4016_v3 }
 0x2da   :  { %1805 = vmatprep.subr.bf16.mxu1 %v4029_v8 }
 0x2db   :  { %1564 = vmatmul.mubr.bf16.vlgmr.msra.gmra.mxu0 %v5113_v4 }
 0x2dc   :  { %1605 = vmatmul.mubr.bf16.vlgmr.msra.gmra.mxu1 %v5113_v4  ;;  %1765 = vmatpush1.bf16.msra.mxu0 %v4021_v5  ;;  %v6909_v4 = vld [vmem:[#allocation22_spill] sm:$0xff]  ;;  %v6910_v5 = vld [vmem:[#allocation23_spill] sm:$0xff] }
 0x2dd   :  { %1806 = vmatpush1.bf16.msra.mxu1 %v4031_v9  ;;  %1766 = vmatprep.subr.bf16.mxu0 %v4033_v10  ;;  %v6911_v9 = vld [vmem:[#allocation24_spill] sm:$0xff]  ;;  %v6912_v10 = vld [vmem:[#allocation25_spill] sm:$0xff] }
 0x2de   :  { %1807 = vmatprep.subr.bf16.mxu1 %v4045_v14  ;;  %v6913_v14 = vld [vmem:[#allocation26_spill] sm:$0xff] }
 0x2e0   :  { %1767 = vmatpush1.bf16.msra.mxu0 %v4058_v18  ;;  %v6914_v18 = vld [vmem:[#allocation27_spill] sm:$0xff] }
 0x2e1   :  { %1808 = vmatpush1.bf16.msra.mxu1 %v4062_v19  ;;  %1768 = vmatprep.subr.bf16.mxu0 %v4064_v20  ;;  %v6915_v19 = vld [vmem:[#allocation28_spill] sm:$0xff]  ;;  %v6916_v20 = vld [vmem:[#allocation29_spill] sm:$0xff] }
 0x2e2   :  { %1809 = vmatprep.subr.bf16.mxu1 %v4067_v21  ;;  %v6917_v21 = vld [vmem:[#allocation30_spill] sm:$0xff] }
 0x2e4   :  { %1769 = vmatpush1.bf16.msra.mxu0 %v4082_v26  ;;  %v6918_v26 = vld [vmem:[#allocation31_spill] sm:$0xff] }
 0x2e5   :  { %1810 = vmatpush1.bf16.msra.mxu1 %v4086_v27  ;;  %1770 = vmatprep.subr.bf16.mxu0 %v6909_v4  ;;  %v6919_v27 = vld [vmem:[#allocation32_spill] sm:$0xff]  ;;  %v6920_v4 = vld [vmem:[#allocation33_spill] sm:$0xff] }
 0x2e6   :  { %1811 = vmatprep.subr.bf16.mxu1 %v6910_v5  ;;  %v6921_v5 = vld [vmem:[#allocation34_spill] sm:$0xff] }
 0x2e8   :  { %1771 = vmatpush1.bf16.msra.mxu0 %v6911_v9  ;;  %v6922_v9 = vld [vmem:[#allocation35_spill] sm:$0xff] }
 0x2e9   :  { %1812 = vmatpush1.bf16.msra.mxu1 %v6912_v10  ;;  %1772 = vmatprep.subr.bf16.mxu0 %v6913_v14  ;;  %v6923_v10 = vld [vmem:[#allocation36_spill] sm:$0xff]  ;;  %v6924_v14 = vld [vmem:[#allocation37_spill] sm:$0xff] }
 0x2ea   :  { %1813 = vmatprep.subr.bf16.mxu1 %v6914_v18  ;;  %v6925_v18 = vld [vmem:[#allocation38_spill] sm:$0xff] }
 0x2ec   :  { %1773 = vmatpush1.bf16.msra.mxu0 %v6915_v19  ;;  %v6926_v19 = vld [vmem:[#allocation39_spill] sm:$0xff] }
 0x2ed   :  { %1814 = vmatpush1.bf16.msra.mxu1 %v6916_v20  ;;  %1774 = vmatprep.subr.bf16.mxu0 %v6917_v21  ;;  %v6927_v20 = vld [vmem:[#allocation40_spill] sm:$0xff]  ;;  %v6928_v21 = vld [vmem:[#allocation41_spill] sm:$0xff] }
 0x2ee   :  { %1815 = vmatprep.subr.bf16.mxu1 %v6918_v26  ;;  %v6929_v26 = vld [vmem:[#allocation42_spill] sm:$0xff] }
 0x2f0   :  { %1775 = vmatpush1.bf16.msra.mxu0 %v6919_v27  ;;  %v6930_v27 = vld [vmem:[#allocation43_spill] sm:$0xff] }
 0x2f1   :  { %1816 = vmatpush1.bf16.msra.mxu1 %v6920_v4  ;;  %1776 = vmatprep.subr.bf16.mxu0 %v6921_v5  ;;  %v6931_v4 = vld [vmem:[#allocation44_spill] sm:$0xff]  ;;  %v6932_v5 = vld [vmem:[#allocation45_spill] sm:$0xff] }
 0x2f2   :  { %1817 = vmatprep.subr.bf16.mxu1 %v6922_v9  ;;  %v6933_v9 = vld [vmem:[#allocation46_spill] sm:$0xff] }
 0x2f4   :  { %1777 = vmatpush1.bf16.msra.mxu0 %v6923_v10  ;;  %v6934_v10 = vld [vmem:[#allocation47_spill] sm:$0xff] }
 0x2f5   :  { %1818 = vmatpush1.bf16.msra.mxu1 %v6924_v14  ;;  %1778 = vmatprep.subr.bf16.mxu0 %v6925_v18  ;;  %v6935_v14 = vld [vmem:[#allocation48_spill] sm:$0xff]  ;;  %v6936_v18 = vld [vmem:[#allocation49_spill] sm:$0xff] }
 0x2f6   :  { %1819 = vmatprep.subr.bf16.mxu1 %v6926_v19  ;;  %v6937_v19 = vld [vmem:[#allocation50_spill] sm:$0xff] }
 0x2f8   :  { %1779 = vmatpush1.bf16.msra.mxu0 %v6927_v20  ;;  %v6938_v20 = vld [vmem:[#allocation51_spill] sm:$0xff] }
 0x2f9   :  { %1820 = vmatpush1.bf16.msra.mxu1 %v6928_v21  ;;  %1780 = vmatprep.subr.bf16.mxu0 %v6929_v26  ;;  %v6939_v21 = vld [vmem:[#allocation52_spill] sm:$0xff]  ;;  %v6940_v26 = vld [vmem:[#allocation53_spill] sm:$0xff] }
 0x2fa   :  { %1821 = vmatprep.subr.bf16.mxu1 %v6930_v27  ;;  %v6941_v27 = vld [vmem:[#allocation54_spill] sm:$0xff] }
 0x2fc   :  { %1781 = vmatpush2.bf16.msra.mxu0 %v6931_v4  ;;  %v6942_v4 = vld [vmem:[#allocation55_spill] sm:$0xff] }
 0x2fd   :  { %1822 = vmatpush2.bf16.msra.mxu1 %v6932_v5  ;;  %1782 = vmatprep.subr.bf16.mxu0 %v6933_v9  ;;  %v6943_v5 = vld [vmem:[#allocation56_spill] sm:$0xff]  ;;  %v6944_v9 = vld [vmem:[#allocation57_spill] sm:$0xff] }
 0x2fe   :  { %1823 = vmatprep.subr.bf16.mxu1 %v6934_v10  ;;  %v6945_v10 = vld [vmem:[#allocation58_spill] sm:$0xff] }
 0x300   :  { %1783 = vmatpush2.bf16.msra.mxu0 %v6935_v14  ;;  %v6946_v14 = vld [vmem:[#allocation59_spill] sm:$0xff] }
 0x301   :  { %1824 = vmatpush2.bf16.msra.mxu1 %v6936_v18  ;;  %1784 = vmatprep.subr.bf16.mxu0 %v6937_v19  ;;  %v6947_v18 = vld [vmem:[#allocation60_spill] sm:$0xff]  ;;  %v6948_v19 = vld [vmem:[#allocation61_spill] sm:$0xff] }
 0x302   :  { %1825 = vmatprep.subr.bf16.mxu1 %v6938_v20  ;;  %v6949_v20 = vld [vmem:[#allocation62_spill] sm:$0xff] }
 0x304   :  { %1785 = vmatpush2.bf16.msra.mxu0 %v6939_v21  ;;  %v6950_v21 = vld [vmem:[#allocation63_spill] sm:$0xff] }
 0x305   :  { %1826 = vmatpush2.bf16.msra.mxu1 %v6940_v26  ;;  %1786 = vmatprep.subr.bf16.mxu0 %v6941_v27  ;;  %v6951_v26 = vld [vmem:[#allocation64_spill] sm:$0xff]  ;;  %v6952_v27 = vld [vmem:[#allocation65_spill] sm:$0xff] }
 0x306   :  { %1827 = vmatprep.subr.bf16.mxu1 %v6942_v4  ;;  %v6953_v4 = vld [vmem:[#allocation66_spill] sm:$0xff] }
 0x308   :  { %1787 = vmatpush2.bf16.msra.mxu0 %v6943_v5  ;;  %v6954_v5 = vld [vmem:[#allocation67_spill] sm:$0xff] }
 0x309   :  { %1828 = vmatpush2.bf16.msra.mxu1 %v6944_v9  ;;  %1788 = vmatprep.subr.bf16.mxu0 %v6945_v10  ;;  %v6955_v9 = vld [vmem:[#allocation68_spill] sm:$0xff]  ;;  %v6956_v10 = vld [vmem:[#allocation69_spill] sm:$0xff] }
 0x30a   :  { %1829 = vmatprep.subr.bf16.mxu1 %v6946_v14  ;;  %v6957_v14 = vld [vmem:[#allocation70_spill] sm:$0xff] }
 0x30c   :  { %1789 = vmatpush2.bf16.msra.mxu0 %v6947_v18  ;;  %v6958_v18 = vld [vmem:[#allocation71_spill] sm:$0xff] }
 0x30d   :  { %1830 = vmatpush2.bf16.msra.mxu1 %v6948_v19  ;;  %1790 = vmatprep.subr.bf16.mxu0 %v6949_v20  ;;  %v6959_v19 = vld [vmem:[#allocation72_spill] sm:$0xff]  ;;  %v6960_v20 = vld [vmem:[#allocation73_spill] sm:$0xff] }
 0x30e   :  { %1831 = vmatprep.subr.bf16.mxu1 %v6950_v21  ;;  %v6961_v21 = vld [vmem:[#allocation74_spill] sm:$0xff] }
 0x310   :  { %1791 = vmatpush2.bf16.msra.mxu0 %v6951_v26  ;;  %v6962_v26 = vld [vmem:[#allocation75_spill] sm:$0xff] }
 0x311   :  { %1832 = vmatpush2.bf16.msra.mxu1 %v6952_v27  ;;  %1792 = vmatprep.subr.bf16.mxu0 %v6953_v4 }
 0x312   :  { %1833 = vmatprep.subr.bf16.mxu1 %v6954_v5 }
 0x314   :  { %1793 = vmatpush2.bf16.msra.mxu0 %v6955_v9 }
 0x315   :  { %1834 = vmatpush2.bf16.msra.mxu1 %v6956_v10  ;;  %1794 = vmatprep.subr.bf16.mxu0 %v6957_v14 }
 0x316   :  { %1835 = vmatprep.subr.bf16.mxu1 %v6958_v18  ;;  %v3534_v18 = vld [vmem:[%s6365_s0 + $0x80] sm:$0xff] }
 0x318   :  { %1795 = vmatpush2.bf16.msra.mxu0 %v6959_v19 }
 0x319   :  { %1836 = vmatpush2.bf16.msra.mxu1 %v6960_v20  ;;  %1846 = vmatprep.subr.bf16.mxu0 %v6961_v21  ;;  %v3536_v20 = vld [vmem:[%s6365_s0 + $0x90] sm:$0xff] }
 0x31a   :  { %1887 = vmatprep.subr.bf16.mxu1 %v6962_v26  ;;  %v3535_v26 = vld [vmem:[%s6365_s0 + $0x88] sm:$0xff] }
 0x35b   :  { %v1483_v27 = vpop.f32.mrf.mxu0  ;;  %v1524_v4 = vpop.f32.mrf.mxu1 }
 0x35c   :  { %v1613_v21 = vadd.f32 %v3534_v18, %v1483_v27 }
 0x35d   :  { %v1485_v8 = vpop.f32.mrf.mxu0  ;;  %v1526_v5 = vpop.f32.mrf.mxu1 }
 0x35e   :  { %v3542_v19 = vmul.f32 -1.442695, %v1613_v21 }
 0x35f   :  { %v1487_v3 = vpop.f32.mrf.mxu0  ;;  %v1528_v9 = vpop.f32.mrf.mxu1 }
 0x360   :  { %v3537_v3 = vld [vmem:[%s6365_s0 + $0x98] sm:$0xff]  ;;  %v1615_v9 = vadd.f32 %v3536_v20, %v1524_v4  ;;  %3733 = vpow2.f32 %v3542_v19  ;;  %v3540_v20 = vld [vmem:[%s6365_s0 + $0xb0] sm:$0xff]  ;;  %v3539_v19 = vld [vmem:[%s6365_s0 + $0xa8] sm:$0xff] }
 0x361   :  { %v1488_v1 = vpop.f32.mrf.mxu0  ;;  %v1529_v10 = vpop.f32.mrf.mxu1 }
 0x362   :  { %v1614_v1 = vadd.f32 %v3535_v26, %v1485_v8  ;;  %v1616_v10 = vadd.f32 %v3537_v3, %v1526_v5  ;;  %v3544_v14 = vmul.f32 -1.442695, %v1615_v9  ;;  %v3538_v8 = vld [vmem:[%s6365_s0 + $0xa0] sm:$0xff] }
 0x364   :  { %v3543_v0 = vmul.f32 -1.442695, %v1614_v1  ;;  %v3545_v47 = vmul.f32 -1.442695, %v1616_v10  ;;  %3735 = vpow2.f32 %v3544_v14 }
 0x366   :  { %3737 = vpow2.f32 %v3543_v0 }
 0x367   :  { %3739 = vpow2.f32 %v3545_v47  ;;  %v3541_v47 = vld [vmem:[%s6365_s0 + $0xb8] sm:$0xff] }
 0x36d   :  { %v3734_v13 = vpop.eup %3733 }
 0x36e   :  { %v1627_v18 = vadd.f32 1.0, %v3734_v13 }
 0x370   :  { %3741 = vrcp.f32 %v1627_v18 }
 0x371   :  { %v3736_v48 = vpop.eup %3735 }
 0x372   :  { %v1639_v27 = vadd.f32 1.0, %v3736_v48 }
 0x373   :  { %v3738_v59 = vpop.eup %3737 }
 0x374   :  { %v3740_v15 = vpop.eup %3739  ;;  %v1628_v16 = vadd.f32 1.0, %v3738_v59  ;;  %3743 = vrcp.f32 %v1639_v27 }
 0x375   :  { %v1640_v5 = vadd.f32 1.0, %v3740_v15 }
 0x376   :  { %3745 = vrcp.f32 %v1628_v16 }
 0x377   :  { %3747 = vrcp.f32 %v1640_v5 }
 0x37d   :  { %v3742_v27 = vpop.eup %3741 }
 0x39b   :  { %v1565_v14 = vpop.f32.mrf.mxu0 }
 0x39c   :  { %v1617_v21 = vadd.f32 %v3538_v8, %v1565_v14  ;;  %v1606_v26 = vpop.f32.mrf.mxu1  ;;  %v3744_v8 = vpop.eup %3743 }
 0x39d   :  { %v1619_v48 = vadd.f32 %v3540_v20, %v1606_v26  ;;  %v1567_v15 = vpop.f32.mrf.mxu0  ;;  %v3746_v14 = vpop.eup %3745  ;;  %v1659_v5 = vmul.f32 %v3744_v8, %v5106_v29 }
 0x39e   :  { %v3546_v13 = vmul.f32 -1.442695, %v1617_v21  ;;  %v1618_v0 = vadd.f32 %v3539_v19, %v1567_v15  ;;  %v1608_v59 = vpop.f32.mrf.mxu1  ;;  %v3748_v16 = vpop.eup %3747 }
 0x39f   :  { %3749 = vtanh.f32 %v1619_v48  ;;  %v1620_v4 = vadd.f32 %v3541_v47, %v1608_v59  ;;  %v1569_v3 = vpop.f32.mrf.mxu0 }
 0x3a0   :  { %3751 = vpow2.f32 %v3546_v13  ;;  %v3547_v9 = vmul.f32 -1.442695, %v1618_v0  ;;  %v1610_v1 = vpop.f32.mrf.mxu1  ;;  %v1660_v13 = vmul.f32 %v3748_v16, %v5110_v57 }
 0x3a1   :  { %3753 = vtanh.f32 %v1620_v4  ;;  %v1570_v10 = vpop.f32.mrf.mxu0 }
 0x3a2   :  { %3755 = vpow2.f32 %v3547_v9  ;;  %v1611_v18 = vpop.f32.mrf.mxu1 }
 0x3ac   :  { %v3750_v20 = vpop.eup %3749 }
 0x3ad   :  { %v3752_v26 = vpop.eup %3751  ;;  %v1661_v19 = vmul.f32 %v3750_v20, %v3742_v27 }
 0x3ae   :  { %v3754_v21 = vpop.eup %3753  ;;  %v1651_v48 = vadd.f32 1.0, %v3752_v26 }
 0x3af   :  { %v3756_v47 = vpop.eup %3755  ;;  %v5318_v15 = vadd.f32 %v1661_v19, %v1659_v5  ;;  %v1662_v0 = vmul.f32 %v3754_v21, %v3746_v14 }
 0x3b0   :  { %3757 = vrcp.f32 %v1651_v48  ;;  %v1652_v59 = vadd.f32 1.0, %v3756_v47 }
 0x3b1   :  { %3759 = vtanh.f32 %v5318_v15  ;;  %v5322_v4 = vadd.f32 %v1662_v0, %v1660_v13 }
 0x3b2   :  { %3761 = vrcp.f32 %v1652_v59 }
 0x3b3   :  { %3763 = vtanh.f32 %v5322_v4 }
 0x3bd   :  { %v3758_v3 = vpop.eup %3757 }
 0x3be   :  { %v3760_v29 = vpop.eup %3759 }
 0x3bf   :  { %v3762_v9 = vpop.eup %3761  ;;  %v1667_v10 = vmul.f32 %v3760_v29, %v3758_v3  ;;  %v6963_v29 = vld [vmem:[#allocation90_spill] sm:$0xff] }
 0x3c0   :  { %v3764_v1 = vpop.eup %3763 }
 0x3c1   :  { %v1668_v18 = vmul.f32 %v3764_v1, %v3762_v9  ;;  %v5325_v57 = vpack.c.bf16 %v1667_v10, %v1667_v10  ;;  %v6964_v9 = vld [vmem:[#allocation91_spill] sm:$0xff]  ;;  %v6965_v1 = vld [vmem:[#allocation92_spill] sm:$0xff] }
 0x3c3   :  { %v1763_v27 = vpack.c.bf16 %v1668_v18, %v1668_v18  ;;  %v1671_v8 = vcombine.low %v1667_v10, %v1668_v18  ;;  %v1672_v20 = vcombine.high %v1667_v10, %v1668_v18  ;;  %v6966_v10 = vld [vmem:[#allocation93_spill] sm:$0xff]  ;;  %v6967_v18 = vld [vmem:[#allocation94_spill] sm:$0xff] }
 0x3c5   :  { %1796 = vmatprep.mubr.bf16.mxu0 %v1763_v27  ;;  %1837 = vmatprep.mubr.bf16.mxu1 %v1763_v27  ;;  %v1679_v14 = vrot.slane %v1671_v8, %v4895_v25  ;;  %v1686_v16 = vrot.slane %v1672_v20, %v4895_v25  ;;  %v6969_v8 = vld [vmem:[#allocation96_spill] sm:$0xff]  ;;  %v6970_v20 = vld [vmem:[#allocation97_spill] sm:$0xff] }
 0x3c6   :  { %1797 = vmatmul.mubr.bf16.vlgmr.msra.gmra.mxu0 %v5325_v57  ;;  %1838 = vmatmul.mubr.bf16.vlgmr.msra.gmra.mxu1 %v5325_v57 }
 0x3c7   :  { %v1687_v26 = vcombine.high %v1679_v14, %v1679_v14  ;;  %v1688_v5 = vcombine.high %v1686_v16, %v1686_v16  ;;  %v1695_v19 = vrot.slane %v1679_v14, %v4895_v25  ;;  %v1702_v21 = vrot.slane %v1686_v16, %v4895_v25  ;;  %1847 = vmatpush1.bf16.msra.mxu0 %v4430_v46  ;;  %v6971_v14 = vld [vmem:[#allocation98_spill] sm:$0xff]  ;;  %v6972_v16 = vld [vmem:[#allocation99_spill] sm:$0xff] }
 0x3c8   :  { %1888 = vmatpush1.bf16.msra.mxu1 %v6789_v11  ;;  %1878 = vmatprep.mubr.bf16.mxu0 %v1763_v27 }
 0x3c9   :  { %v1709_v48 = vrot.slane %v1687_v26, %v4895_v25  ;;  %v1716_v47 = vrot.slane %v1688_v5, %v4895_v25  ;;  %v1717_v13 = vcombine.high %v1695_v19, %v1695_v19  ;;  %v1718_v0 = vcombine.high %v1702_v21, %v1702_v21  ;;  %3548 = vst.msk [vmem:[%s6369_s4 + $0x2] ss:$8 sm:$0x3] %vm4901_vm0, %v1695_v19  ;;  %v6973_v26 = vld [vmem:[#allocation100_spill] sm:$0xff]  ;;  %v6974_v5 = vld [vmem:[#allocation101_spill] sm:$0xff]  ;;  %v6975_v19 = vld [vmem:[#allocation102_spill] sm:$0xff] }
 0x3ca   :  { %3552 = vst.msk [vmem:[%s6369_s4 + $0x42] ss:$8 sm:$0x3] %vm4901_vm0, %v1702_v21  ;;  %1919 = vmatprep.mubr.bf16.mxu1 %v1763_v27  ;;  %1848 = vmatprep.subr.bf16.mxu0 %v6790_v55  ;;  %v6968_v27 = vld [vmem:[#allocation95_spill] sm:$0xff] }
 0x3cb   :  { %1889 = vmatprep.subr.bf16.mxu1 %v6791_v32  ;;  %v1719_v59 = vcombine.high %v1709_v48, %v1709_v48  ;;  %v1720_v3 = vcombine.high %v1716_v47, %v1716_v47  ;;  %3549 = vst.msk [vmem:[%s6369_s4 + $0x12] ss:$8 sm:$0x3] %vm4901_vm0, %v1709_v48  ;;  %3550 = vst.msk [vmem:[%s6369_s4 + $0x22] ss:$8 sm:$0x3] %vm4901_vm0, %v1717_v13  ;;  %1849 = vmatpush1.bf16.msra.mxu0 %v6792_v22 }
 0x3cc   :  { %3553 = vst.msk [vmem:[%s6369_s4 + $0x52] ss:$8 sm:$0x3] %vm4901_vm0, %v1716_v47  ;;  %3554 = vst.msk [vmem:[%s6369_s4 + $0x62] ss:$8 sm:$0x3] %vm4901_vm0, %v1718_v0  ;;  %1890 = vmatpush1.bf16.msra.mxu1 %v6793_v33  ;;  %1850 = vmatprep.subr.bf16.mxu0 %v6874_v30 }
 0x3cd   :  { %3551 = vst.msk [vmem:[%s6369_s4 + $0x32] ss:$8 sm:$0x3] %vm4901_vm0, %v1719_v59  ;;  %3555 = vst.msk [vmem:[%s6369_s4 + $0x72] ss:$8 sm:$0x3] %vm4901_vm0, %v1720_v3  ;;  %1891 = vmatprep.subr.bf16.mxu1 %v6875_v54 }
 0x3ce   :  { %v6976_v21 = vld [vmem:[#allocation103_spill] sm:$0xff]  ;;  %v6977_v48 = vld [vmem:[#allocation104_spill] sm:$0xff]  ;;  %v6978_v47 = vld [vmem:[#allocation129_spill] sm:$0xff] }
 0x3cf   :  { %1851 = vmatpush1.bf16.msra.mxu0 %v6876_v43  ;;  %v6979_v13 = vld [vmem:[#allocation130_spill] sm:$0xff]  ;;  %v6980_v0 = vld [vmem:[#allocation131_spill] sm:$0xff]  ;;  %v6981_v59 = vld [vmem:[#allocation132_spill] sm:$0xff] }
 0x3d0   :  { %1892 = vmatpush1.bf16.msra.mxu1 %v6877_v60  ;;  %1852 = vmatprep.subr.bf16.mxu0 %v6878_v50  ;;  %v6982_v3 = vld [vmem:[#allocation133_spill] sm:$0xff] }
 0x3d1   :  { %1893 = vmatprep.subr.bf16.mxu1 %v6879_v62 }
 0x3d3   :  { %1853 = vmatpush1.bf16.msra.mxu0 %v6880_v45 }
 0x3d4   :  { %1894 = vmatpush1.bf16.msra.mxu1 %v6881_v52  ;;  %1854 = vmatprep.subr.bf16.mxu0 %v6882_v61 }
 0x3d5   :  { %1895 = vmatprep.subr.bf16.mxu1 %v6963_v29 }
 0x3d7   :  { %1855 = vmatpush1.bf16.msra.mxu0 %v6964_v9 }
 0x3d8   :  { %1896 = vmatpush1.bf16.msra.mxu1 %v6965_v1  ;;  %1856 = vmatprep.subr.bf16.mxu0 %v6966_v10 }
 0x3d9   :  { %1897 = vmatprep.subr.bf16.mxu1 %v6967_v18 }
 0x3db   :  { %1857 = vmatpush1.bf16.msra.mxu0 %v6968_v27 }
 0x3dc   :  { %1898 = vmatpush1.bf16.msra.mxu1 %v6969_v8  ;;  %1858 = vmatprep.subr.bf16.mxu0 %v6970_v20 }
 0x3dd   :  { %1899 = vmatprep.subr.bf16.mxu1 %v6971_v14 }
 0x3df   :  { %1859 = vmatpush1.bf16.msra.mxu0 %v6972_v16 }
 0x3e0   :  { %1900 = vmatpush1.bf16.msra.mxu1 %v6973_v26  ;;  %1860 = vmatprep.subr.bf16.mxu0 %v6974_v5 }
 0x3e1   :  { %1901 = vmatprep.subr.bf16.mxu1 %v6975_v19 }
 0x3e3   :  { %1861 = vmatpush1.bf16.msra.mxu0 %v6976_v21 }
 0x3e4   :  { %1902 = vmatpush1.bf16.msra.mxu1 %v6977_v48  ;;  %1862 = vmatprep.subr.bf16.mxu0 %v6898_v42 }
 0x3e5   :  { %1903 = vmatprep.subr.bf16.mxu1 %v6899_v35 }
 0x3e7   :  { %1863 = vmatpush2.bf16.msra.mxu0 %v6900_v34 }
 0x3e8   :  { %1904 = vmatpush2.bf16.msra.mxu1 %v6901_v63  ;;  %1864 = vmatprep.subr.bf16.mxu0 %v6902_v6 }
 0x3e9   :  { %1905 = vmatprep.subr.bf16.mxu1 %v6903_v7 }
 0x3eb   :  { %1865 = vmatpush2.bf16.msra.mxu0 %v6904_v44 }
 0x3ec   :  { %1906 = vmatpush2.bf16.msra.mxu1 %v6905_v28  ;;  %1866 = vmatprep.subr.bf16.mxu0 %v6906_v36 }
 0x3ed   :  { %1907 = vmatprep.subr.bf16.mxu1 %v6907_v51 }
 0x3ef   :  { %1867 = vmatpush2.bf16.msra.mxu0 %v6908_v37 }
 0x3f0   :  { %1908 = vmatpush2.bf16.msra.mxu1 %v6829_v17  ;;  %1868 = vmatprep.subr.bf16.mxu0 %v6830_v58 }
 0x3f1   :  { %1909 = vmatprep.subr.bf16.mxu1 %v6831_v41 }
 0x3f3   :  { %1869 = vmatpush2.bf16.msra.mxu0 %v6832_v56 }
 0x3f4   :  { %1910 = vmatpush2.bf16.msra.mxu1 %v6833_v53  ;;  %1870 = vmatprep.subr.bf16.mxu0 %v6834_v38 }
 0x3f5   :  { %1911 = vmatprep.subr.bf16.mxu1 %v6835_v24 }
 0x3f7   :  { %1871 = vmatpush2.bf16.msra.mxu0 %v6836_v23  ;;  %v6983_v23 = vld [vmem:[#allocation134_spill] sm:$0xff] }
 0x3f8   :  { %1912 = vmatpush2.bf16.msra.mxu1 %v6837_v49  ;;  %1872 = vmatprep.subr.bf16.mxu0 %v6838_v12  ;;  %v6984_v49 = vld [vmem:[#allocation135_spill] sm:$0xff]  ;;  %v6985_v12 = vld [vmem:[#allocation136_spill] sm:$0xff] }
 0x3f9   :  { %1913 = vmatprep.subr.bf16.mxu1 %v6839_v39  ;;  %v6986_v39 = vld [vmem:[#allocation10_spill] sm:$0xff] }
 0x3fb   :  { %1873 = vmatpush2.bf16.msra.mxu0 %v4746_v31  ;;  %v6987_v31 = vld [vmem:[#allocation12_spill] sm:$0xff] }
 0x3fc   :  { %1914 = vmatpush2.bf16.msra.mxu1 %v4750_v2  ;;  %1874 = vmatprep.subr.bf16.mxu0 %v6978_v47  ;;  %v6997_v47 = vld [vmem:[#allocation21_spill] sm:$0xff] }
 0x3fd   :  { %1915 = vmatprep.subr.bf16.mxu1 %v6979_v13  ;;  %v6988_v13 = vld [vmem:[#allocation11_spill] sm:$0xff] }
 0x3ff   :  { %1875 = vmatpush2.bf16.msra.mxu0 %v6980_v0  ;;  %v6989_v0 = vld [vmem:[#allocation13_spill] sm:$0xff] }
 0x400   :  { %1916 = vmatpush2.bf16.msra.mxu1 %v6981_v59  ;;  %1876 = vmatprep.subr.bf16.mxu0 %v6982_v3  ;;  %v6990_v59 = vld [vmem:[#allocation14_spill] sm:$0xff]  ;;  %v6991_v3 = vld [vmem:[#allocation15_spill] sm:$0xff] }
 0x401   :  { %1917 = vmatprep.subr.bf16.mxu1 %v6983_v23  ;;  %v6992_v23 = vld [vmem:[#allocation16_spill] sm:$0xff] }
 0x403   :  { %1877 = vmatpush2.bf16.msra.mxu0 %v6984_v49  ;;  %v6993_v49 = vld [vmem:[#allocation17_spill] sm:$0xff] }
 0x404   :  { %1918 = vmatpush2.bf16.msra.mxu1 %v6985_v12  ;;  %2079 = vmatprep.subr.bf16.mxu0 %v6986_v39  ;;  %v6994_v12 = vld [vmem:[#allocation18_spill] sm:$0xff]  ;;  %v6995_v39 = vld [vmem:[#allocation19_spill] sm:$0xff] }
 0x405   :  { %2120 = vmatprep.subr.bf16.mxu1 %v6987_v31  ;;  %v6996_v31 = vld [vmem:[#allocation20_spill] sm:$0xff] }
 0x406   :  { %1879 = vmatmul.mubr.bf16.vlgmr.msra.gmra.mxu0 %v5325_v57 }
 0x407   :  { %1920 = vmatmul.mubr.bf16.vlgmr.msra.gmra.mxu1 %v5325_v57  ;;  %2080 = vmatpush1.bf16.msra.mxu0 %v6988_v13  ;;  %v6998_v57 = vld [vmem:[#allocation22_spill] sm:$0xff]  ;;  %v6999_v13 = vld [vmem:[#allocation23_spill] sm:$0xff] }
 0x408   :  { %2121 = vmatpush1.bf16.msra.mxu1 %v6989_v0  ;;  %2081 = vmatprep.subr.bf16.mxu0 %v6990_v59  ;;  %v7000_v0 = vld [vmem:[#allocation24_spill] sm:$0xff]  ;;  %v7001_v59 = vld [vmem:[#allocation25_spill] sm:$0xff] }
 0x409   :  { %2122 = vmatprep.subr.bf16.mxu1 %v6991_v3  ;;  %v7002_v3 = vld [vmem:[#allocation26_spill] sm:$0xff] }
 0x40b   :  { %2082 = vmatpush1.bf16.msra.mxu0 %v6992_v23  ;;  %v7003_v23 = vld [vmem:[#allocation27_spill] sm:$0xff] }
 0x40c   :  { %2123 = vmatpush1.bf16.msra.mxu1 %v6993_v49  ;;  %2083 = vmatprep.subr.bf16.mxu0 %v6994_v12  ;;  %v7004_v49 = vld [vmem:[#allocation28_spill] sm:$0xff]  ;;  %v7005_v12 = vld [vmem:[#allocation29_spill] sm:$0xff] }
 0x40d   :  { %2124 = vmatprep.subr.bf16.mxu1 %v6995_v39  ;;  %v7006_v39 = vld [vmem:[#allocation30_spill] sm:$0xff] }
 0x40f   :  { %2084 = vmatpush1.bf16.msra.mxu0 %v6996_v31  ;;  %v7007_v31 = vld [vmem:[#allocation31_spill] sm:$0xff] }
 0x410   :  { %2125 = vmatpush1.bf16.msra.mxu1 %v6997_v47  ;;  %2085 = vmatprep.subr.bf16.mxu0 %v6998_v57  ;;  %v7008_v47 = vld [vmem:[#allocation32_spill] sm:$0xff]  ;;  %v7009_v57 = vld [vmem:[#allocation33_spill] sm:$0xff] }
 0x411   :  { %2126 = vmatprep.subr.bf16.mxu1 %v6999_v13  ;;  %v7010_v13 = vld [vmem:[#allocation34_spill] sm:$0xff] }
 0x413   :  { %2086 = vmatpush1.bf16.msra.mxu0 %v7000_v0  ;;  %v7011_v0 = vld [vmem:[#allocation35_spill] sm:$0xff] }
 0x414   :  { %2127 = vmatpush1.bf16.msra.mxu1 %v7001_v59  ;;  %2087 = vmatprep.subr.bf16.mxu0 %v7002_v3  ;;  %v7012_v59 = vld [vmem:[#allocation36_spill] sm:$0xff]  ;;  %v7013_v3 = vld [vmem:[#allocation37_spill] sm:$0xff] }
 0x415   :  { %2128 = vmatprep.subr.bf16.mxu1 %v7003_v23  ;;  %v7014_v23 = vld [vmem:[#allocation38_spill] sm:$0xff] }
 0x417   :  { %2088 = vmatpush1.bf16.msra.mxu0 %v7004_v49  ;;  %v7015_v49 = vld [vmem:[#allocation39_spill] sm:$0xff] }
 0x418   :  { %2129 = vmatpush1.bf16.msra.mxu1 %v7005_v12  ;;  %2089 = vmatprep.subr.bf16.mxu0 %v7006_v39  ;;  %v7016_v12 = vld [vmem:[#allocation40_spill] sm:$0xff]  ;;  %v7017_v39 = vld [vmem:[#allocation41_spill] sm:$0xff] }
 0x419   :  { %2130 = vmatprep.subr.bf16.mxu1 %v7007_v31  ;;  %v7018_v31 = vld [vmem:[#allocation42_spill] sm:$0xff] }
 0x41b   :  { %2090 = vmatpush1.bf16.msra.mxu0 %v7008_v47  ;;  %v7019_v47 = vld [vmem:[#allocation43_spill] sm:$0xff] }
 0x41c   :  { %2131 = vmatpush1.bf16.msra.mxu1 %v7009_v57  ;;  %2091 = vmatprep.subr.bf16.mxu0 %v7010_v13  ;;  %v7020_v57 = vld [vmem:[#allocation44_spill] sm:$0xff]  ;;  %v7021_v13 = vld [vmem:[#allocation45_spill] sm:$0xff] }
 0x41d   :  { %2132 = vmatprep.subr.bf16.mxu1 %v7011_v0  ;;  %v7022_v0 = vld [vmem:[#allocation46_spill] sm:$0xff] }
 0x41f   :  { %2092 = vmatpush1.bf16.msra.mxu0 %v7012_v59  ;;  %v7023_v59 = vld [vmem:[#allocation47_spill] sm:$0xff] }
 0x420   :  { %2133 = vmatpush1.bf16.msra.mxu1 %v7013_v3  ;;  %2093 = vmatprep.subr.bf16.mxu0 %v7014_v23  ;;  %v7024_v3 = vld [vmem:[#allocation48_spill] sm:$0xff]  ;;  %v7025_v23 = vld [vmem:[#allocation49_spill] sm:$0xff] }
 0x421   :  { %2134 = vmatprep.subr.bf16.mxu1 %v7015_v49  ;;  %v7026_v49 = vld [vmem:[#allocation50_spill] sm:$0xff] }
 0x423   :  { %2094 = vmatpush1.bf16.msra.mxu0 %v7016_v12  ;;  %v7027_v12 = vld [vmem:[#allocation51_spill] sm:$0xff] }
 0x424   :  { %2135 = vmatpush1.bf16.msra.mxu1 %v7017_v39  ;;  %2095 = vmatprep.subr.bf16.mxu0 %v7018_v31  ;;  %v7028_v39 = vld [vmem:[#allocation52_spill] sm:$0xff]  ;;  %v7029_v31 = vld [vmem:[#allocation53_spill] sm:$0xff] }
 0x425   :  { %2136 = vmatprep.subr.bf16.mxu1 %v7019_v47  ;;  %v7030_v47 = vld [vmem:[#allocation54_spill] sm:$0xff] }
 0x427   :  { %2096 = vmatpush2.bf16.msra.mxu0 %v7020_v57  ;;  %v7031_v57 = vld [vmem:[#allocation55_spill] sm:$0xff] }
 0x428   :  { %2137 = vmatpush2.bf16.msra.mxu1 %v7021_v13  ;;  %2097 = vmatprep.subr.bf16.mxu0 %v7022_v0  ;;  %v7032_v13 = vld [vmem:[#allocation56_spill] sm:$0xff]  ;;  %v7033_v0 = vld [vmem:[#allocation57_spill] sm:$0xff] }
 0x429   :  { %2138 = vmatprep.subr.bf16.mxu1 %v7023_v59  ;;  %v7034_v59 = vld [vmem:[#allocation58_spill] sm:$0xff] }
 0x42b   :  { %2098 = vmatpush2.bf16.msra.mxu0 %v7024_v3  ;;  %v7035_v3 = vld [vmem:[#allocation59_spill] sm:$0xff] }
 0x42c   :  { %2139 = vmatpush2.bf16.msra.mxu1 %v7025_v23  ;;  %2099 = vmatprep.subr.bf16.mxu0 %v7026_v49  ;;  %v7036_v23 = vld [vmem:[#allocation60_spill] sm:$0xff]  ;;  %v7037_v49 = vld [vmem:[#allocation61_spill] sm:$0xff] }
 0x42d   :  { %2140 = vmatprep.subr.bf16.mxu1 %v7027_v12  ;;  %v7038_v12 = vld [vmem:[#allocation62_spill] sm:$0xff] }
 0x42f   :  { %2100 = vmatpush2.bf16.msra.mxu0 %v7028_v39  ;;  %v7039_v39 = vld [vmem:[#allocation63_spill] sm:$0xff] }
 0x430   :  { %2141 = vmatpush2.bf16.msra.mxu1 %v7029_v31  ;;  %2101 = vmatprep.subr.bf16.mxu0 %v7030_v47  ;;  %v7040_v31 = vld [vmem:[#allocation64_spill] sm:$0xff]  ;;  %v7041_v47 = vld [vmem:[#allocation65_spill] sm:$0xff] }
 0x431   :  { %2142 = vmatprep.subr.bf16.mxu1 %v7031_v57  ;;  %v7042_v57 = vld [vmem:[#allocation66_spill] sm:$0xff] }
 0x433   :  { %2102 = vmatpush2.bf16.msra.mxu0 %v7032_v13  ;;  %v7043_v13 = vld [vmem:[#allocation67_spill] sm:$0xff] }
 0x434   :  { %2143 = vmatpush2.bf16.msra.mxu1 %v7033_v0  ;;  %2103 = vmatprep.subr.bf16.mxu0 %v7034_v59  ;;  %v7044_v0 = vld [vmem:[#allocation68_spill] sm:$0xff]  ;;  %v7045_v59 = vld [vmem:[#allocation69_spill] sm:$0xff] }
 0x435   :  { %2144 = vmatprep.subr.bf16.mxu1 %v7035_v3  ;;  %v7046_v3 = vld [vmem:[#allocation70_spill] sm:$0xff] }
 0x437   :  { %2104 = vmatpush2.bf16.msra.mxu0 %v7036_v23  ;;  %v7047_v23 = vld [vmem:[#allocation71_spill] sm:$0xff] }
 0x438   :  { %2145 = vmatpush2.bf16.msra.mxu1 %v7037_v49  ;;  %2105 = vmatprep.subr.bf16.mxu0 %v7038_v12  ;;  %v7048_v49 = vld [vmem:[#allocation72_spill] sm:$0xff]  ;;  %v7049_v12 = vld [vmem:[#allocation73_spill] sm:$0xff] }
 0x439   :  { %2146 = vmatprep.subr.bf16.mxu1 %v7039_v39  ;;  %v7050_v39 = vld [vmem:[#allocation74_spill] sm:$0xff] }
 0x43b   :  { %2106 = vmatpush2.bf16.msra.mxu0 %v7040_v31  ;;  %v7051_v31 = vld [vmem:[#allocation75_spill] sm:$0xff] }
 0x43c   :  { %2147 = vmatpush2.bf16.msra.mxu1 %v7041_v47  ;;  %2107 = vmatprep.subr.bf16.mxu0 %v7042_v57 }
 0x43d   :  { %2148 = vmatprep.subr.bf16.mxu1 %v7043_v13 }
 0x43f   :  { %2108 = vmatpush2.bf16.msra.mxu0 %v7044_v0 }
 0x440   :  { %2149 = vmatpush2.bf16.msra.mxu1 %v7045_v59  ;;  %2109 = vmatprep.subr.bf16.mxu0 %v7046_v3 }
 0x441   :  { %2150 = vmatprep.subr.bf16.mxu1 %v7047_v23  ;;  %v3556_v23 = vld [vmem:[%s6365_s0 + $0xc0] sm:$0xff] }
 0x443   :  { %2110 = vmatpush2.bf16.msra.mxu0 %v7048_v49 }
 0x444   :  { %2151 = vmatpush2.bf16.msra.mxu1 %v7049_v12  ;;  %2161 = vmatprep.subr.bf16.mxu0 %v7050_v39  ;;  %v3558_v12 = vld [vmem:[%s6365_s0 + $0xd0] sm:$0xff] }
 0x445   :  { %2202 = vmatprep.subr.bf16.mxu1 %v7051_v31  ;;  %v3557_v31 = vld [vmem:[%s6365_s0 + $0xc8] sm:$0xff] }
 0x486   :  { %v1798_v47 = vpop.f32.mrf.mxu0  ;;  %v1839_v57 = vpop.f32.mrf.mxu1 }
 0x487   :  { %v1928_v39 = vadd.f32 %v3556_v23, %v1798_v47 }
 0x488   :  { %v1800_v2 = vpop.f32.mrf.mxu0  ;;  %v1841_v13 = vpop.f32.mrf.mxu1 }
 0x489   :  { %v3564_v49 = vmul.f32 -1.442695, %v1928_v39  ;;  %v3562_v39 = vld [vmem:[%s6365_s0 + $0xf0] sm:$0xff] }
 0x48a   :  { %v1802_v24 = vpop.f32.mrf.mxu0  ;;  %v1843_v0 = vpop.f32.mrf.mxu1 }
 0x48b   :  { %v3559_v24 = vld [vmem:[%s6365_s0 + $0xd8] sm:$0xff]  ;;  %v1930_v0 = vadd.f32 %v3558_v12, %v1839_v57  ;;  %3765 = vpow2.f32 %v3564_v49 }
 0x48c   :  { %v1803_v38 = vpop.f32.mrf.mxu0  ;;  %v1844_v59 = vpop.f32.mrf.mxu1 }
 0x48d   :  { %v1929_v38 = vadd.f32 %v3557_v31, %v1800_v2  ;;  %v1931_v59 = vadd.f32 %v3559_v24, %v1841_v13  ;;  %v3566_v3 = vmul.f32 -1.442695, %v1930_v0  ;;  %v3560_v2 = vld [vmem:[%s6365_s0 + $0xe0] sm:$0xff] }
 0x48f   :  { %v3565_v53 = vmul.f32 -1.442695, %v1929_v38  ;;  %v3567_v56 = vmul.f32 -1.442695, %v1931_v59  ;;  %3767 = vpow2.f32 %v3566_v3 }
 0x491   :  { %3769 = vpow2.f32 %v3565_v53 }
 0x492   :  { %3771 = vpow2.f32 %v3567_v56  ;;  %v3561_v56 = vld [vmem:[%s6365_s0 + $0xe8] sm:$0xff] }
 0x498   :  { %v3766_v41 = vpop.eup %3765 }
 0x499   :  { %v1942_v23 = vadd.f32 1.0, %v3766_v41 }
 0x49b   :  { %3773 = vrcp.f32 %v1942_v23 }
 0x49c   :  { %v3768_v58 = vpop.eup %3767 }
 0x49d   :  { %v1954_v47 = vadd.f32 1.0, %v3768_v58 }
 0x49e   :  { %v3770_v17 = vpop.eup %3769 }
 0x49f   :  { %v3772_v37 = vpop.eup %3771  ;;  %v1943_v51 = vadd.f32 1.0, %v3770_v17  ;;  %3775 = vrcp.f32 %v1954_v47  ;;  %v3563_v17 = vld [vmem:[%s6365_s0 + $0xf8] sm:$0xff] }
 0x4a0   :  { %v1955_v31 = vadd.f32 1.0, %v3772_v37 }
 0x4a1   :  { %3777 = vrcp.f32 %v1943_v51 }
 0x4a2   :  { %3779 = vrcp.f32 %v1955_v31 }
 0x4a8   :  { %v3774_v47 = vpop.eup %3773 }
 0x4c6   :  { %v1880_v49 = vpop.f32.mrf.mxu0 }
 0x4c7   :  { %v1932_v53 = vadd.f32 %v3560_v2, %v1880_v49  ;;  %v1921_v41 = vpop.f32.mrf.mxu1  ;;  %v3776_v2 = vpop.eup %3775 }
 0x4c8   :  { %v1934_v58 = vadd.f32 %v3562_v39, %v1921_v41  ;;  %v1882_v12 = vpop.f32.mrf.mxu0  ;;  %v3778_v49 = vpop.eup %3777  ;;  %v1974_v31 = vmul.f32 %v3776_v2, %v5318_v15 }
 0x4c9   :  { %v3568_v37 = vmul.f32 -1.442695, %v1932_v53  ;;  %v1933_v13 = vadd.f32 %v3561_v56, %v1882_v12  ;;  %v1923_v3 = vpop.f32.mrf.mxu1  ;;  %v3780_v51 = vpop.eup %3779 }
 0x4ca   :  { %3781 = vtanh.f32 %v1934_v58  ;;  %v1935_v57 = vadd.f32 %v3563_v17, %v1923_v3  ;;  %v1884_v24 = vpop.f32.mrf.mxu0 }
 0x4cb   :  { %3783 = vpow2.f32 %v3568_v37  ;;  %v3569_v0 = vmul.f32 -1.442695, %v1933_v13  ;;  %v1925_v38 = vpop.f32.mrf.mxu1  ;;  %v1975_v37 = vmul.f32 %v3780_v51, %v5322_v4 }
 0x4cc   :  { %3785 = vtanh.f32 %v1935_v57  ;;  %v1885_v59 = vpop.f32.mrf.mxu0 }
 0x4cd   :  { %3787 = vpow2.f32 %v3569_v0  ;;  %v1926_v23 = vpop.f32.mrf.mxu1 }
 0x4d7   :  { %v3782_v39 = vpop.eup %3781 }
 0x4d8   :  { %v3784_v41 = vpop.eup %3783  ;;  %v1976_v56 = vmul.f32 %v3782_v39, %v3774_v47 }
 0x4d9   :  { %v3786_v53 = vpop.eup %3785  ;;  %v1966_v58 = vadd.f32 1.0, %v3784_v41 }
 0x4da   :  { %v3788_v17 = vpop.eup %3787  ;;  %v5530_v12 = vadd.f32 %v1976_v56, %v1974_v31  ;;  %v1977_v13 = vmul.f32 %v3786_v53, %v3778_v49 }
 0x4db   :  { %3789 = vrcp.f32 %v1966_v58  ;;  %v1967_v3 = vadd.f32 1.0, %v3788_v17 }
 0x4dc   :  { %3791 = vtanh.f32 %v5530_v12  ;;  %v5534_v57 = vadd.f32 %v1977_v13, %v1975_v37 }
 0x4dd   :  { %3793 = vrcp.f32 %v1967_v3 }
 0x4de   :  { %3795 = vtanh.f32 %v5534_v57 }
 0x4e8   :  { %v3790_v24 = vpop.eup %3789 }
 0x4e9   :  { %v3792_v15 = vpop.eup %3791 }
 0x4ea   :  { %v3794_v0 = vpop.eup %3793  ;;  %v1982_v59 = vmul.f32 %v3792_v15, %v3790_v24  ;;  %v7052_v15 = vld [vmem:[#allocation114_spill] sm:$0xff] }
 0x4eb   :  { %v3796_v38 = vpop.eup %3795 }
 0x4ec   :  { %v1983_v23 = vmul.f32 %v3796_v38, %v3794_v0  ;;  %v5537_v4 = vpack.c.bf16 %v1982_v59, %v1982_v59  ;;  %v7053_v0 = vld [vmem:[#allocation115_spill] sm:$0xff]  ;;  %v7054_v38 = vld [vmem:[#allocation116_spill] sm:$0xff] }
 0x4ee   :  { %v2078_v47 = vpack.c.bf16 %v1983_v23, %v1983_v23  ;;  %v1986_v2 = vcombine.low %v1982_v59, %v1983_v23  ;;  %v1987_v39 = vcombine.high %v1982_v59, %v1983_v23  ;;  %v7055_v59 = vld [vmem:[#allocation117_spill] sm:$0xff]  ;;  %v7056_v23 = vld [vmem:[#allocation118_spill] sm:$0xff] }
 0x4f0   :  { %2111 = vmatprep.mubr.bf16.mxu0 %v2078_v47  ;;  %2152 = vmatprep.mubr.bf16.mxu1 %v2078_v47  ;;  %v1994_v49 = vrot.slane %v1986_v2, %v4895_v25  ;;  %v2001_v51 = vrot.slane %v1987_v39, %v4895_v25  ;;  %v7058_v2 = vld [vmem:[#allocation120_spill] sm:$0xff]  ;;  %v7059_v39 = vld [vmem:[#allocation121_spill] sm:$0xff] }
 0x4f1   :  { %2112 = vmatmul.mubr.bf16.vlgmr.msra.gmra.mxu0 %v5537_v4  ;;  %2153 = vmatmul.mubr.bf16.vlgmr.msra.gmra.mxu1 %v5537_v4 }
 0x4f2   :  { %v2002_v41 = vcombine.high %v1994_v49, %v1994_v49  ;;  %v2003_v31 = vcombine.high %v2001_v51, %v2001_v51  ;;  %v2010_v56 = vrot.slane %v1994_v49, %v4895_v25  ;;  %v2017_v53 = vrot.slane %v2001_v51, %v4895_v25  ;;  %2162 = vmatpush1.bf16.msra.mxu0 %v4430_v46  ;;  %v7060_v49 = vld [vmem:[#allocation122_spill] sm:$0xff]  ;;  %v7061_v51 = vld [vmem:[#allocation123_spill] sm:$0xff] }
 0x4f3   :  { %2203 = vmatpush1.bf16.msra.mxu1 %v6789_v11  ;;  %2193 = vmatprep.mubr.bf16.mxu0 %v2078_v47 }
 0x4f4   :  { %v2024_v58 = vrot.slane %v2002_v41, %v4895_v25  ;;  %v2031_v17 = vrot.slane %v2003_v31, %v4895_v25  ;;  %v2032_v37 = vcombine.high %v2010_v56, %v2010_v56  ;;  %v2033_v13 = vcombine.high %v2017_v53, %v2017_v53  ;;  %3570 = vst.msk [vmem:[%s6369_s4 + $0x3] ss:$8 sm:$0x3] %vm4901_vm0, %v2010_v56  ;;  %v7062_v41 = vld [vmem:[#allocation124_spill] sm:$0xff]  ;;  %v7063_v31 = vld [vmem:[#allocation125_spill] sm:$0xff]  ;;  %v7064_v56 = vld [vmem:[#allocation126_spill] sm:$0xff] }
 0x4f5   :  { %3574 = vst.msk [vmem:[%s6369_s4 + $0x43] ss:$8 sm:$0x3] %vm4901_vm0, %v2017_v53  ;;  %2234 = vmatprep.mubr.bf16.mxu1 %v2078_v47  ;;  %2163 = vmatprep.subr.bf16.mxu0 %v6790_v55  ;;  %v7057_v47 = vld [vmem:[#allocation119_spill] sm:$0xff] }
 0x4f6   :  { %2204 = vmatprep.subr.bf16.mxu1 %v6791_v32  ;;  %v2034_v3 = vcombine.high %v2024_v58, %v2024_v58  ;;  %v2035_v24 = vcombine.high %v2031_v17, %v2031_v17  ;;  %3571 = vst.msk [vmem:[%s6369_s4 + $0x13] ss:$8 sm:$0x3] %vm4901_vm0, %v2024_v58  ;;  %3572 = vst.msk [vmem:[%s6369_s4 + $0x23] ss:$8 sm:$0x3] %vm4901_vm0, %v2032_v37  ;;  %2164 = vmatpush1.bf16.msra.mxu0 %v6792_v22 }
 0x4f7   :  { %3575 = vst.msk [vmem:[%s6369_s4 + $0x53] ss:$8 sm:$0x3] %vm4901_vm0, %v2031_v17  ;;  %3576 = vst.msk [vmem:[%s6369_s4 + $0x63] ss:$8 sm:$0x3] %vm4901_vm0, %v2033_v13  ;;  %2205 = vmatpush1.bf16.msra.mxu1 %v6793_v33  ;;  %2165 = vmatprep.subr.bf16.mxu0 %v6874_v30 }
 0x4f8   :  { %3573 = vst.msk [vmem:[%s6369_s4 + $0x33] ss:$8 sm:$0x3] %vm4901_vm0, %v2034_v3  ;;  %3577 = vst.msk [vmem:[%s6369_s4 + $0x73] ss:$8 sm:$0x3] %vm4901_vm0, %v2035_v24  ;;  %2206 = vmatprep.subr.bf16.mxu1 %v6875_v54 }
 0x4f9   :  { %v7065_v53 = vld [vmem:[#allocation127_spill] sm:$0xff]  ;;  %v7066_v58 = vld [vmem:[#allocation128_spill] sm:$0xff]  ;;  %v7067_v17 = vld [vmem:[#allocation129_spill] sm:$0xff] }
 0x4fa   :  { %2166 = vmatpush1.bf16.msra.mxu0 %v6876_v43  ;;  %v7068_v37 = vld [vmem:[#allocation130_spill] sm:$0xff]  ;;  %v7069_v13 = vld [vmem:[#allocation131_spill] sm:$0xff]  ;;  %v7070_v3 = vld [vmem:[#allocation132_spill] sm:$0xff] }
 0x4fb   :  { %2207 = vmatpush1.bf16.msra.mxu1 %v6877_v60  ;;  %2167 = vmatprep.subr.bf16.mxu0 %v6878_v50  ;;  %v7071_v24 = vld [vmem:[#allocation133_spill] sm:$0xff] }
 0x4fc   :  { %2208 = vmatprep.subr.bf16.mxu1 %v6879_v62 }
 0x4fe   :  { %2168 = vmatpush1.bf16.msra.mxu0 %v6880_v45 }
 0x4ff   :  { %2209 = vmatpush1.bf16.msra.mxu1 %v6881_v52  ;;  %2169 = vmatprep.subr.bf16.mxu0 %v6882_v61 }
 0x500   :  { %2210 = vmatprep.subr.bf16.mxu1 %v6963_v29 }
 0x502   :  { %2170 = vmatpush1.bf16.msra.mxu0 %v6964_v9 }
 0x503   :  { %2211 = vmatpush1.bf16.msra.mxu1 %v6965_v1  ;;  %2171 = vmatprep.subr.bf16.mxu0 %v6966_v10 }
 0x504   :  { %2212 = vmatprep.subr.bf16.mxu1 %v6967_v18 }
 0x506   :  { %2172 = vmatpush1.bf16.msra.mxu0 %v6968_v27 }
 0x507   :  { %2213 = vmatpush1.bf16.msra.mxu1 %v6969_v8  ;;  %2173 = vmatprep.subr.bf16.mxu0 %v6970_v20 }
 0x508   :  { %2214 = vmatprep.subr.bf16.mxu1 %v6971_v14 }
 0x50a   :  { %2174 = vmatpush1.bf16.msra.mxu0 %v6972_v16 }
 0x50b   :  { %2215 = vmatpush1.bf16.msra.mxu1 %v6973_v26  ;;  %2175 = vmatprep.subr.bf16.mxu0 %v6974_v5 }
 0x50c   :  { %2216 = vmatprep.subr.bf16.mxu1 %v6975_v19 }
 0x50e   :  { %2176 = vmatpush1.bf16.msra.mxu0 %v6976_v21 }
 0x50f   :  { %2217 = vmatpush1.bf16.msra.mxu1 %v6977_v48  ;;  %2177 = vmatprep.subr.bf16.mxu0 %v6898_v42 }
 0x510   :  { %2218 = vmatprep.subr.bf16.mxu1 %v6899_v35 }
 0x512   :  { %2178 = vmatpush2.bf16.msra.mxu0 %v6900_v34 }
 0x513   :  { %2219 = vmatpush2.bf16.msra.mxu1 %v6901_v63  ;;  %2179 = vmatprep.subr.bf16.mxu0 %v6902_v6 }
 0x514   :  { %2220 = vmatprep.subr.bf16.mxu1 %v6903_v7 }
 0x516   :  { %2180 = vmatpush2.bf16.msra.mxu0 %v6904_v44 }
 0x517   :  { %2221 = vmatpush2.bf16.msra.mxu1 %v6905_v28  ;;  %2181 = vmatprep.subr.bf16.mxu0 %v6906_v36 }
 0x518   :  { %2222 = vmatprep.subr.bf16.mxu1 %v7052_v15 }
 0x51a   :  { %2182 = vmatpush2.bf16.msra.mxu0 %v7053_v0 }
 0x51b   :  { %2223 = vmatpush2.bf16.msra.mxu1 %v7054_v38  ;;  %2183 = vmatprep.subr.bf16.mxu0 %v7055_v59 }
 0x51c   :  { %2224 = vmatprep.subr.bf16.mxu1 %v7056_v23 }
 0x51e   :  { %2184 = vmatpush2.bf16.msra.mxu0 %v7057_v47 }
 0x51f   :  { %2225 = vmatpush2.bf16.msra.mxu1 %v7058_v2  ;;  %2185 = vmatprep.subr.bf16.mxu0 %v7059_v39 }
 0x520   :  { %2226 = vmatprep.subr.bf16.mxu1 %v7060_v49 }
 0x522   :  { %2186 = vmatpush2.bf16.msra.mxu0 %v7061_v51  ;;  %v7072_v51 = vld [vmem:[#allocation134_spill] sm:$0xff] }
 0x523   :  { %2227 = vmatpush2.bf16.msra.mxu1 %v7062_v41  ;;  %2187 = vmatprep.subr.bf16.mxu0 %v7063_v31  ;;  %v7073_v41 = vld [vmem:[#allocation135_spill] sm:$0xff]  ;;  %v7074_v31 = vld [vmem:[#allocation136_spill] sm:$0xff] }
 0x524   :  { %2228 = vmatprep.subr.bf16.mxu1 %v7064_v56  ;;  %v7075_v56 = vld [vmem:[#allocation10_spill] sm:$0xff] }
 0x526   :  { %2188 = vmatpush2.bf16.msra.mxu0 %v7065_v53  ;;  %v7076_v53 = vld [vmem:[#allocation12_spill] sm:$0xff] }
 0x527   :  { %2229 = vmatpush2.bf16.msra.mxu1 %v7066_v58  ;;  %2189 = vmatprep.subr.bf16.mxu0 %v7067_v17  ;;  %v7086_v17 = vld [vmem:[#allocation21_spill] sm:$0xff] }
 0x528   :  { %2230 = vmatprep.subr.bf16.mxu1 %v7068_v37  ;;  %v7077_v37 = vld [vmem:[#allocation11_spill] sm:$0xff] }
 0x52a   :  { %2190 = vmatpush2.bf16.msra.mxu0 %v7069_v13  ;;  %v7078_v13 = vld [vmem:[#allocation13_spill] sm:$0xff] }
 0x52b   :  { %2231 = vmatpush2.bf16.msra.mxu1 %v7070_v3  ;;  %2191 = vmatprep.subr.bf16.mxu0 %v7071_v24  ;;  %v7079_v3 = vld [vmem:[#allocation14_spill] sm:$0xff]  ;;  %v7080_v24 = vld [vmem:[#allocation15_spill] sm:$0xff] }
 0x52c   :  { %2232 = vmatprep.subr.bf16.mxu1 %v7072_v51  ;;  %v7081_v51 = vld [vmem:[#allocation16_spill] sm:$0xff] }
 0x52e   :  { %2192 = vmatpush2.bf16.msra.mxu0 %v7073_v41  ;;  %v7082_v41 = vld [vmem:[#allocation17_spill] sm:$0xff] }
 0x52f   :  { %2233 = vmatpush2.bf16.msra.mxu1 %v7074_v31  ;;  %2394 = vmatprep.subr.bf16.mxu0 %v7075_v56  ;;  %v7083_v31 = vld [vmem:[#allocation18_spill] sm:$0xff]  ;;  %v7084_v56 = vld [vmem:[#allocation19_spill] sm:$0xff] }
 0x530   :  { %2435 = vmatprep.subr.bf16.mxu1 %v7076_v53  ;;  %v7085_v53 = vld [vmem:[#allocation20_spill] sm:$0xff] }
 0x531   :  { %2194 = vmatmul.mubr.bf16.vlgmr.msra.gmra.mxu0 %v5537_v4 }
 0x532   :  { %2235 = vmatmul.mubr.bf16.vlgmr.msra.gmra.mxu1 %v5537_v4  ;;  %2395 = vmatpush1.bf16.msra.mxu0 %v7077_v37  ;;  %v7087_v4 = vld [vmem:[#allocation22_spill] sm:$0xff]  ;;  %v7088_v37 = vld [vmem:[#allocation23_spill] sm:$0xff] }
 0x533   :  { %2436 = vmatpush1.bf16.msra.mxu1 %v7078_v13  ;;  %2396 = vmatprep.subr.bf16.mxu0 %v7079_v3  ;;  %v7089_v13 = vld [vmem:[#allocation24_spill] sm:$0xff]  ;;  %v7090_v3 = vld [vmem:[#allocation25_spill] sm:$0xff] }
 0x534   :  { %2437 = vmatprep.subr.bf16.mxu1 %v7080_v24  ;;  %v7091_v24 = vld [vmem:[#allocation26_spill] sm:$0xff] }
 0x536   :  { %2397 = vmatpush1.bf16.msra.mxu0 %v7081_v51  ;;  %v7092_v51 = vld [vmem:[#allocation27_spill] sm:$0xff] }
 0x537   :  { %2438 = vmatpush1.bf16.msra.mxu1 %v7082_v41  ;;  %2398 = vmatprep.subr.bf16.mxu0 %v7083_v31  ;;  %v7093_v41 = vld [vmem:[#allocation28_spill] sm:$0xff]  ;;  %v7094_v31 = vld [vmem:[#allocation29_spill] sm:$0xff] }
 0x538   :  { %2439 = vmatprep.subr.bf16.mxu1 %v7084_v56  ;;  %v7095_v56 = vld [vmem:[#allocation30_spill] sm:$0xff] }
 0x53a   :  { %2399 = vmatpush1.bf16.msra.mxu0 %v7085_v53  ;;  %v7096_v53 = vld [vmem:[#allocation31_spill] sm:$0xff] }
 0x53b   :  { %2440 = vmatpush1.bf16.msra.mxu1 %v7086_v17  ;;  %2400 = vmatprep.subr.bf16.mxu0 %v7087_v4  ;;  %v7097_v17 = vld [vmem:[#allocation32_spill] sm:$0xff]  ;;  %v7098_v4 = vld [vmem:[#allocation33_spill] sm:$0xff] }
 0x53c   :  { %2441 = vmatprep.subr.bf16.mxu1 %v7088_v37  ;;  %v7099_v37 = vld [vmem:[#allocation34_spill] sm:$0xff] }
 0x53e   :  { %2401 = vmatpush1.bf16.msra.mxu0 %v7089_v13  ;;  %v7100_v13 = vld [vmem:[#allocation35_spill] sm:$0xff] }
 0x53f   :  { %2442 = vmatpush1.bf16.msra.mxu1 %v7090_v3  ;;  %2402 = vmatprep.subr.bf16.mxu0 %v7091_v24  ;;  %v7101_v3 = vld [vmem:[#allocation36_spill] sm:$0xff]  ;;  %v7102_v24 = vld [vmem:[#allocation37_spill] sm:$0xff] }
 0x540   :  { %2443 = vmatprep.subr.bf16.mxu1 %v7092_v51  ;;  %v7103_v51 = vld [vmem:[#allocation38_spill] sm:$0xff] }
 0x542   :  { %2403 = vmatpush1.bf16.msra.mxu0 %v7093_v41  ;;  %v7104_v41 = vld [vmem:[#allocation39_spill] sm:$0xff] }
 0x543   :  { %2444 = vmatpush1.bf16.msra.mxu1 %v7094_v31  ;;  %2404 = vmatprep.subr.bf16.mxu0 %v7095_v56  ;;  %v7105_v31 = vld [vmem:[#allocation40_spill] sm:$0xff]  ;;  %v7106_v56 = vld [vmem:[#allocation41_spill] sm:$0xff] }
 0x544   :  { %2445 = vmatprep.subr.bf16.mxu1 %v7096_v53  ;;  %v7107_v53 = vld [vmem:[#allocation42_spill] sm:$0xff] }
 0x546   :  { %2405 = vmatpush1.bf16.msra.mxu0 %v7097_v17  ;;  %v7108_v17 = vld [vmem:[#allocation43_spill] sm:$0xff] }
 0x547   :  { %2446 = vmatpush1.bf16.msra.mxu1 %v7098_v4  ;;  %2406 = vmatprep.subr.bf16.mxu0 %v7099_v37  ;;  %v7109_v4 = vld [vmem:[#allocation44_spill] sm:$0xff]  ;;  %v7110_v37 = vld [vmem:[#allocation45_spill] sm:$0xff] }
 0x548   :  { %2447 = vmatprep.subr.bf16.mxu1 %v7100_v13  ;;  %v7111_v13 = vld [vmem:[#allocation46_spill] sm:$0xff] }
 0x54a   :  { %2407 = vmatpush1.bf16.msra.mxu0 %v7101_v3  ;;  %v7112_v3 = vld [vmem:[#allocation47_spill] sm:$0xff] }
 0x54b   :  { %2448 = vmatpush1.bf16.msra.mxu1 %v7102_v24  ;;  %2408 = vmatprep.subr.bf16.mxu0 %v7103_v51  ;;  %v7113_v24 = vld [vmem:[#allocation48_spill] sm:$0xff]  ;;  %v7114_v51 = vld [vmem:[#allocation49_spill] sm:$0xff] }
 0x54c   :  { %2449 = vmatprep.subr.bf16.mxu1 %v7104_v41  ;;  %v7115_v41 = vld [vmem:[#allocation50_spill] sm:$0xff] }
 0x54e   :  { %2409 = vmatpush1.bf16.msra.mxu0 %v7105_v31  ;;  %v7116_v31 = vld [vmem:[#allocation51_spill] sm:$0xff] }
 0x54f   :  { %2450 = vmatpush1.bf16.msra.mxu1 %v7106_v56  ;;  %2410 = vmatprep.subr.bf16.mxu0 %v7107_v53  ;;  %v7117_v56 = vld [vmem:[#allocation52_spill] sm:$0xff]  ;;  %v7118_v53 = vld [vmem:[#allocation53_spill] sm:$0xff] }
 0x550   :  { %2451 = vmatprep.subr.bf16.mxu1 %v7108_v17  ;;  %v7119_v17 = vld [vmem:[#allocation54_spill] sm:$0xff] }
 0x552   :  { %2411 = vmatpush2.bf16.msra.mxu0 %v7109_v4  ;;  %v7120_v4 = vld [vmem:[#allocation55_spill] sm:$0xff] }
 0x553   :  { %2452 = vmatpush2.bf16.msra.mxu1 %v7110_v37  ;;  %2412 = vmatprep.subr.bf16.mxu0 %v7111_v13  ;;  %v7121_v37 = vld [vmem:[#allocation56_spill] sm:$0xff]  ;;  %v7122_v13 = vld [vmem:[#allocation57_spill] sm:$0xff] }
 0x554   :  { %2453 = vmatprep.subr.bf16.mxu1 %v7112_v3  ;;  %v7123_v3 = vld [vmem:[#allocation58_spill] sm:$0xff] }
 0x556   :  { %2413 = vmatpush2.bf16.msra.mxu0 %v7113_v24  ;;  %v7124_v24 = vld [vmem:[#allocation59_spill] sm:$0xff] }
 0x557   :  { %2454 = vmatpush2.bf16.msra.mxu1 %v7114_v51  ;;  %2414 = vmatprep.subr.bf16.mxu0 %v7115_v41  ;;  %v7125_v51 = vld [vmem:[#allocation60_spill] sm:$0xff]  ;;  %v7126_v41 = vld [vmem:[#allocation61_spill] sm:$0xff] }
 0x558   :  { %2455 = vmatprep.subr.bf16.mxu1 %v7116_v31  ;;  %v7127_v31 = vld [vmem:[#allocation62_spill] sm:$0xff] }
 0x55a   :  { %2415 = vmatpush2.bf16.msra.mxu0 %v7117_v56  ;;  %v7128_v56 = vld [vmem:[#allocation63_spill] sm:$0xff] }
 0x55b   :  { %2456 = vmatpush2.bf16.msra.mxu1 %v7118_v53  ;;  %2416 = vmatprep.subr.bf16.mxu0 %v7119_v17  ;;  %v7129_v53 = vld [vmem:[#allocation64_spill] sm:$0xff]  ;;  %v7130_v17 = vld [vmem:[#allocation65_spill] sm:$0xff] }
 0x55c   :  { %2457 = vmatprep.subr.bf16.mxu1 %v7120_v4  ;;  %v7131_v4 = vld [vmem:[#allocation66_spill] sm:$0xff] }
 0x55e   :  { %2417 = vmatpush2.bf16.msra.mxu0 %v7121_v37  ;;  %v7132_v37 = vld [vmem:[#allocation67_spill] sm:$0xff] }
 0x55f   :  { %2458 = vmatpush2.bf16.msra.mxu1 %v7122_v13  ;;  %2418 = vmatprep.subr.bf16.mxu0 %v7123_v3  ;;  %v7133_v13 = vld [vmem:[#allocation68_spill] sm:$0xff]  ;;  %v7134_v3 = vld [vmem:[#allocation69_spill] sm:$0xff] }
 0x560   :  { %2459 = vmatprep.subr.bf16.mxu1 %v7124_v24  ;;  %v7135_v24 = vld [vmem:[#allocation70_spill] sm:$0xff] }
 0x562   :  { %2419 = vmatpush2.bf16.msra.mxu0 %v7125_v51  ;;  %v7136_v51 = vld [vmem:[#allocation71_spill] sm:$0xff] }
 0x563   :  { %2460 = vmatpush2.bf16.msra.mxu1 %v7126_v41  ;;  %2420 = vmatprep.subr.bf16.mxu0 %v7127_v31  ;;  %v7137_v41 = vld [vmem:[#allocation72_spill] sm:$0xff]  ;;  %v7138_v31 = vld [vmem:[#allocation73_spill] sm:$0xff] }
 0x564   :  { %2461 = vmatprep.subr.bf16.mxu1 %v7128_v56  ;;  %v7139_v56 = vld [vmem:[#allocation74_spill] sm:$0xff] }
 0x566   :  { %2421 = vmatpush2.bf16.msra.mxu0 %v7129_v53  ;;  %v7140_v53 = vld [vmem:[#allocation75_spill] sm:$0xff] }
 0x567   :  { %2462 = vmatpush2.bf16.msra.mxu1 %v7130_v17  ;;  %2422 = vmatprep.subr.bf16.mxu0 %v7131_v4 }
 0x568   :  { %2463 = vmatprep.subr.bf16.mxu1 %v7132_v37 }
 0x56a   :  { %2423 = vmatpush2.bf16.msra.mxu0 %v7133_v13 }
 0x56b   :  { %2464 = vmatpush2.bf16.msra.mxu1 %v7134_v3  ;;  %2424 = vmatprep.subr.bf16.mxu0 %v7135_v24 }
 0x56c   :  { %2465 = vmatprep.subr.bf16.mxu1 %v7136_v51  ;;  %v3578_v51 = vld [vmem:[%s6365_s0 + $0x100] sm:$0xff] }
 0x56e   :  { %2425 = vmatpush2.bf16.msra.mxu0 %v7137_v41 }
 0x56f   :  { %2466 = vmatpush2.bf16.msra.mxu1 %v7138_v31  ;;  %2476 = vmatprep.subr.bf16.mxu0 %v7139_v56  ;;  %v3580_v31 = vld [vmem:[%s6365_s0 + $0x110] sm:$0xff] }
 0x570   :  { %2517 = vmatprep.subr.bf16.mxu1 %v7140_v53  ;;  %v3579_v53 = vld [vmem:[%s6365_s0 + $0x108] sm:$0xff] }
 0x5b1   :  { %v2113_v17 = vpop.f32.mrf.mxu0  ;;  %v2154_v4 = vpop.f32.mrf.mxu1 }
 0x5b2   :  { %v2243_v56 = vadd.f32 %v3578_v51, %v2113_v17 }
 0x5b3   :  { %v2115_v58 = vpop.f32.mrf.mxu0  ;;  %v2156_v37 = vpop.f32.mrf.mxu1 }
 0x5b4   :  { %v3586_v41 = vmul.f32 -1.442695, %v2243_v56  ;;  %v3584_v56 = vld [vmem:[%s6365_s0 + $0x130] sm:$0xff] }
 0x5b5   :  { %v2117_v49 = vpop.f32.mrf.mxu0  ;;  %v2158_v13 = vpop.f32.mrf.mxu1 }
 0x5b6   :  { %v3581_v49 = vld [vmem:[%s6365_s0 + $0x118] sm:$0xff]  ;;  %v2245_v13 = vadd.f32 %v3580_v31, %v2154_v4  ;;  %3797 = vpow2.f32 %v3586_v41  ;;  %v3582_v31 = vld [vmem:[%s6365_s0 + $0x120] sm:$0xff] }
 0x5b7   :  { %v2118_v39 = vpop.f32.mrf.mxu0  ;;  %v2159_v3 = vpop.f32.mrf.mxu1 }
 0x5b8   :  { %v2244_v39 = vadd.f32 %v3579_v53, %v2115_v58  ;;  %v2246_v3 = vadd.f32 %v3581_v49, %v2156_v37  ;;  %v3588_v24 = vmul.f32 -1.442695, %v2245_v13 }
 0x5ba   :  { %v3587_v2 = vmul.f32 -1.442695, %v2244_v39  ;;  %v3589_v47 = vmul.f32 -1.442695, %v2246_v3  ;;  %3799 = vpow2.f32 %v3588_v24 }
 0x5bc   :  { %3801 = vpow2.f32 %v3587_v2 }
 0x5bd   :  { %3803 = vpow2.f32 %v3589_v47  ;;  %v3583_v47 = vld [vmem:[%s6365_s0 + $0x128] sm:$0xff] }
 0x5c3   :  { %v3798_v23 = vpop.eup %3797 }
 0x5c4   :  { %v2257_v51 = vadd.f32 1.0, %v3798_v23 }
 0x5c6   :  { %3805 = vrcp.f32 %v2257_v51 }
 0x5c7   :  { %v3800_v59 = vpop.eup %3799 }
 0x5c8   :  { %v2269_v17 = vadd.f32 1.0, %v3800_v59 }
 0x5c9   :  { %v3802_v38 = vpop.eup %3801 }
 0x5ca   :  { %v3804_v0 = vpop.eup %3803  ;;  %v2258_v15 = vadd.f32 1.0, %v3802_v38  ;;  %3807 = vrcp.f32 %v2269_v17  ;;  %v3585_v38 = vld [vmem:[%s6365_s0 + $0x138] sm:$0xff] }
 0x5cb   :  { %v2270_v53 = vadd.f32 1.0, %v3804_v0 }
 0x5cc   :  { %3809 = vrcp.f32 %v2258_v15 }
 0x5cd   :  { %3811 = vrcp.f32 %v2270_v53 }
 0x5d3   :  { %v3806_v17 = vpop.eup %3805 }
 0x5f1   :  { %v2195_v41 = vpop.f32.mrf.mxu0 }
 0x5f2   :  { %v2247_v2 = vadd.f32 %v3582_v31, %v2195_v41  ;;  %v2236_v23 = vpop.f32.mrf.mxu1  ;;  %v3808_v31 = vpop.eup %3807 }
 0x5f3   :  { %v2249_v59 = vadd.f32 %v3584_v56, %v2236_v23  ;;  %v2197_v0 = vpop.f32.mrf.mxu0  ;;  %v3810_v41 = vpop.eup %3809  ;;  %v2289_v53 = vmul.f32 %v3808_v31, %v5530_v12 }
 0x5f4   :  { %v3590_v58 = vmul.f32 -1.442695, %v2247_v2  ;;  %v2248_v37 = vadd.f32 %v3583_v47, %v2197_v0  ;;  %v2238_v24 = vpop.f32.mrf.mxu1  ;;  %v3812_v15 = vpop.eup %3811 }
 0x5f5   :  { %3813 = vtanh.f32 %v2249_v59  ;;  %v2250_v4 = vadd.f32 %v3585_v38, %v2238_v24  ;;  %v2199_v49 = vpop.f32.mrf.mxu0 }
 0x5f6   :  { %3815 = vpow2.f32 %v3590_v58  ;;  %v3591_v13 = vmul.f32 -1.442695, %v2248_v37  ;;  %v2240_v39 = vpop.f32.mrf.mxu1  ;;  %v2290_v58 = vmul.f32 %v3812_v15, %v5534_v57 }
 0x5f7   :  { %3817 = vtanh.f32 %v2250_v4  ;;  %v2200_v3 = vpop.f32.mrf.mxu0 }
 0x5f8   :  { %3819 = vpow2.f32 %v3591_v13  ;;  %v2241_v51 = vpop.f32.mrf.mxu1 }
 0x602   :  { %v3814_v56 = vpop.eup %3813 }
 0x603   :  { %v3816_v23 = vpop.eup %3815  ;;  %v2291_v47 = vmul.f32 %v3814_v56, %v3806_v17 }
 0x604   :  { %v3818_v2 = vpop.eup %3817  ;;  %v2281_v59 = vadd.f32 1.0, %v3816_v23 }
 0x605   :  { %v3820_v38 = vpop.eup %3819  ;;  %v5742_v0 = vadd.f32 %v2291_v47, %v2289_v53  ;;  %v2292_v37 = vmul.f32 %v3818_v2, %v3810_v41 }
 0x606   :  { %3821 = vrcp.f32 %v2281_v59  ;;  %v2282_v24 = vadd.f32 1.0, %v3820_v38 }
 0x607   :  { %3823 = vtanh.f32 %v5742_v0  ;;  %v5746_v4 = vadd.f32 %v2292_v37, %v2290_v58 }
 0x608   :  { %3825 = vrcp.f32 %v2282_v24 }
 0x609   :  { %3827 = vtanh.f32 %v5746_v4 }
 0x613   :  { %v3822_v49 = vpop.eup %3821 }
 0x614   :  { %v3824_v12 = vpop.eup %3823 }
 0x615   :  { %v3826_v13 = vpop.eup %3825  ;;  %v2297_v3 = vmul.f32 %v3824_v12, %v3822_v49  ;;  %v7141_v12 = vld [vmem:[#allocation114_spill] sm:$0xff] }
 0x616   :  { %v3828_v39 = vpop.eup %3827 }
 0x617   :  { %v2298_v51 = vmul.f32 %v3828_v39, %v3826_v13  ;;  %v5749_v57 = vpack.c.bf16 %v2297_v3, %v2297_v3  ;;  %v7142_v13 = vld [vmem:[#allocation115_spill] sm:$0xff]  ;;  %v7143_v39 = vld [vmem:[#allocation116_spill] sm:$0xff] }
 0x619   :  { %v2393_v17 = vpack.c.bf16 %v2298_v51, %v2298_v51  ;;  %v2301_v31 = vcombine.low %v2297_v3, %v2298_v51  ;;  %v2302_v56 = vcombine.high %v2297_v3, %v2298_v51  ;;  %v7144_v3 = vld [vmem:[#allocation117_spill] sm:$0xff]  ;;  %v7145_v51 = vld [vmem:[#allocation118_spill] sm:$0xff] }
 0x61b   :  { %2426 = vmatprep.mubr.bf16.mxu0 %v2393_v17  ;;  %2467 = vmatprep.mubr.bf16.mxu1 %v2393_v17  ;;  %v2309_v41 = vrot.slane %v2301_v31, %v4895_v25  ;;  %v2316_v15 = vrot.slane %v2302_v56, %v4895_v25  ;;  %v7147_v31 = vld [vmem:[#allocation120_spill] sm:$0xff]  ;;  %v7148_v56 = vld [vmem:[#allocation121_spill] sm:$0xff] }
 0x61c   :  { %2427 = vmatmul.mubr.bf16.vlgmr.msra.gmra.mxu0 %v5749_v57  ;;  %2468 = vmatmul.mubr.bf16.vlgmr.msra.gmra.mxu1 %v5749_v57 }
 0x61d   :  { %v2317_v23 = vcombine.high %v2309_v41, %v2309_v41  ;;  %v2318_v53 = vcombine.high %v2316_v15, %v2316_v15  ;;  %v2325_v47 = vrot.slane %v2309_v41, %v4895_v25  ;;  %v2332_v2 = vrot.slane %v2316_v15, %v4895_v25  ;;  %2477 = vmatpush1.bf16.msra.mxu0 %v4430_v46  ;;  %v7149_v41 = vld [vmem:[#allocation122_spill] sm:$0xff]  ;;  %v7150_v15 = vld [vmem:[#allocation123_spill] sm:$0xff] }
 0x61e   :  { %2518 = vmatpush1.bf16.msra.mxu1 %v6789_v11  ;;  %2508 = vmatprep.mubr.bf16.mxu0 %v2393_v17 }
 0x61f   :  { %v2339_v59 = vrot.slane %v2317_v23, %v4895_v25  ;;  %v2346_v38 = vrot.slane %v2318_v53, %v4895_v25  ;;  %v2347_v58 = vcombine.high %v2325_v47, %v2325_v47  ;;  %v2348_v37 = vcombine.high %v2332_v2, %v2332_v2  ;;  %3592 = vst.msk [vmem:[%s6369_s4 + $0x4] ss:$8 sm:$0x3] %vm4901_vm0, %v2325_v47  ;;  %v7151_v23 = vld [vmem:[#allocation124_spill] sm:$0xff]  ;;  %v7152_v53 = vld [vmem:[#allocation125_spill] sm:$0xff]  ;;  %v7153_v47 = vld [vmem:[#allocation126_spill] sm:$0xff] }
 0x620   :  { %3596 = vst.msk [vmem:[%s6369_s4 + $0x44] ss:$8 sm:$0x3] %vm4901_vm0, %v2332_v2  ;;  %2549 = vmatprep.mubr.bf16.mxu1 %v2393_v17  ;;  %2478 = vmatprep.subr.bf16.mxu0 %v6790_v55  ;;  %v7146_v17 = vld [vmem:[#allocation119_spill] sm:$0xff] }
 0x621   :  { %2519 = vmatprep.subr.bf16.mxu1 %v6791_v32  ;;  %v2349_v24 = vcombine.high %v2339_v59, %v2339_v59  ;;  %v2350_v49 = vcombine.high %v2346_v38, %v2346_v38  ;;  %3593 = vst.msk [vmem:[%s6369_s4 + $0x14] ss:$8 sm:$0x3] %vm4901_vm0, %v2339_v59  ;;  %3594 = vst.msk [vmem:[%s6369_s4 + $0x24] ss:$8 sm:$0x3] %vm4901_vm0, %v2347_v58  ;;  %2479 = vmatpush1.bf16.msra.mxu0 %v6792_v22 }
 0x622   :  { %3597 = vst.msk [vmem:[%s6369_s4 + $0x54] ss:$8 sm:$0x3] %vm4901_vm0, %v2346_v38  ;;  %3598 = vst.msk [vmem:[%s6369_s4 + $0x64] ss:$8 sm:$0x3] %vm4901_vm0, %v2348_v37  ;;  %2520 = vmatpush1.bf16.msra.mxu1 %v6793_v33  ;;  %2480 = vmatprep.subr.bf16.mxu0 %v6874_v30 }
 0x623   :  { %3595 = vst.msk [vmem:[%s6369_s4 + $0x34] ss:$8 sm:$0x3] %vm4901_vm0, %v2349_v24  ;;  %3599 = vst.msk [vmem:[%s6369_s4 + $0x74] ss:$8 sm:$0x3] %vm4901_vm0, %v2350_v49  ;;  %2521 = vmatprep.subr.bf16.mxu1 %v6875_v54 }
 0x624   :  { %v7154_v2 = vld [vmem:[#allocation127_spill] sm:$0xff]  ;;  %v7155_v59 = vld [vmem:[#allocation128_spill] sm:$0xff]  ;;  %v7156_v38 = vld [vmem:[#allocation129_spill] sm:$0xff] }
 0x625   :  { %2481 = vmatpush1.bf16.msra.mxu0 %v6876_v43  ;;  %v7157_v58 = vld [vmem:[#allocation130_spill] sm:$0xff]  ;;  %v7158_v37 = vld [vmem:[#allocation131_spill] sm:$0xff]  ;;  %v7159_v24 = vld [vmem:[#allocation132_spill] sm:$0xff] }
 0x626   :  { %2522 = vmatpush1.bf16.msra.mxu1 %v6877_v60  ;;  %2482 = vmatprep.subr.bf16.mxu0 %v6878_v50  ;;  %v7160_v49 = vld [vmem:[#allocation133_spill] sm:$0xff] }
 0x627   :  { %2523 = vmatprep.subr.bf16.mxu1 %v6879_v62 }
 0x629   :  { %2483 = vmatpush1.bf16.msra.mxu0 %v6880_v45 }
 0x62a   :  { %2524 = vmatpush1.bf16.msra.mxu1 %v6881_v52  ;;  %2484 = vmatprep.subr.bf16.mxu0 %v6882_v61 }
 0x62b   :  { %2525 = vmatprep.subr.bf16.mxu1 %v6963_v29 }
 0x62d   :  { %2485 = vmatpush1.bf16.msra.mxu0 %v6964_v9 }
 0x62e   :  { %2526 = vmatpush1.bf16.msra.mxu1 %v6965_v1  ;;  %2486 = vmatprep.subr.bf16.mxu0 %v6966_v10 }
 0x62f   :  { %2527 = vmatprep.subr.bf16.mxu1 %v6967_v18 }
 0x631   :  { %2487 = vmatpush1.bf16.msra.mxu0 %v6968_v27 }
 0x632   :  { %2528 = vmatpush1.bf16.msra.mxu1 %v6969_v8  ;;  %2488 = vmatprep.subr.bf16.mxu0 %v6970_v20 }
 0x633   :  { %2529 = vmatprep.subr.bf16.mxu1 %v6971_v14 }
 0x635   :  { %2489 = vmatpush1.bf16.msra.mxu0 %v6972_v16 }
 0x636   :  { %2530 = vmatpush1.bf16.msra.mxu1 %v6973_v26  ;;  %2490 = vmatprep.subr.bf16.mxu0 %v6974_v5 }
 0x637   :  { %2531 = vmatprep.subr.bf16.mxu1 %v6975_v19 }
 0x639   :  { %2491 = vmatpush1.bf16.msra.mxu0 %v6976_v21 }
 0x63a   :  { %2532 = vmatpush1.bf16.msra.mxu1 %v6977_v48  ;;  %2492 = vmatprep.subr.bf16.mxu0 %v6898_v42 }
 0x63b   :  { %2533 = vmatprep.subr.bf16.mxu1 %v6899_v35 }
 0x63d   :  { %2493 = vmatpush2.bf16.msra.mxu0 %v6900_v34 }
 0x63e   :  { %2534 = vmatpush2.bf16.msra.mxu1 %v6901_v63  ;;  %2494 = vmatprep.subr.bf16.mxu0 %v6902_v6 }
 0x63f   :  { %2535 = vmatprep.subr.bf16.mxu1 %v6903_v7 }
 0x641   :  { %2495 = vmatpush2.bf16.msra.mxu0 %v6904_v44 }
 0x642   :  { %2536 = vmatpush2.bf16.msra.mxu1 %v6905_v28  ;;  %2496 = vmatprep.subr.bf16.mxu0 %v6906_v36 }
 0x643   :  { %2537 = vmatprep.subr.bf16.mxu1 %v7141_v12 }
 0x645   :  { %2497 = vmatpush2.bf16.msra.mxu0 %v7142_v13 }
 0x646   :  { %2538 = vmatpush2.bf16.msra.mxu1 %v7143_v39  ;;  %2498 = vmatprep.subr.bf16.mxu0 %v7144_v3 }
 0x647   :  { %2539 = vmatprep.subr.bf16.mxu1 %v7145_v51 }
 0x649   :  { %2499 = vmatpush2.bf16.msra.mxu0 %v7146_v17 }
 0x64a   :  { %2540 = vmatpush2.bf16.msra.mxu1 %v7147_v31  ;;  %2500 = vmatprep.subr.bf16.mxu0 %v7148_v56 }
 0x64b   :  { %2541 = vmatprep.subr.bf16.mxu1 %v7149_v41 }
 0x64d   :  { %2501 = vmatpush2.bf16.msra.mxu0 %v7150_v15  ;;  %v7161_v15 = vld [vmem:[#allocation134_spill] sm:$0xff] }
 0x64e   :  { %2542 = vmatpush2.bf16.msra.mxu1 %v7151_v23  ;;  %2502 = vmatprep.subr.bf16.mxu0 %v7152_v53  ;;  %v7162_v23 = vld [vmem:[#allocation135_spill] sm:$0xff]  ;;  %v7163_v53 = vld [vmem:[#allocation136_spill] sm:$0xff] }
 0x64f   :  { %2543 = vmatprep.subr.bf16.mxu1 %v7153_v47  ;;  %v7164_v47 = vld [vmem:[#allocation10_spill] sm:$0xff] }
 0x651   :  { %2503 = vmatpush2.bf16.msra.mxu0 %v7154_v2  ;;  %v7165_v2 = vld [vmem:[#allocation12_spill] sm:$0xff] }
 0x652   :  { %2544 = vmatpush2.bf16.msra.mxu1 %v7155_v59  ;;  %2504 = vmatprep.subr.bf16.mxu0 %v7156_v38  ;;  %v7175_v38 = vld [vmem:[#allocation21_spill] sm:$0xff] }
 0x653   :  { %2545 = vmatprep.subr.bf16.mxu1 %v7157_v58  ;;  %v7166_v58 = vld [vmem:[#allocation11_spill] sm:$0xff] }
 0x655   :  { %2505 = vmatpush2.bf16.msra.mxu0 %v7158_v37  ;;  %v7167_v37 = vld [vmem:[#allocation13_spill] sm:$0xff] }
 0x656   :  { %2546 = vmatpush2.bf16.msra.mxu1 %v7159_v24  ;;  %2506 = vmatprep.subr.bf16.mxu0 %v7160_v49  ;;  %v7168_v24 = vld [vmem:[#allocation14_spill] sm:$0xff]  ;;  %v7169_v49 = vld [vmem:[#allocation15_spill] sm:$0xff] }
 0x657   :  { %2547 = vmatprep.subr.bf16.mxu1 %v7161_v15  ;;  %v7170_v15 = vld [vmem:[#allocation16_spill] sm:$0xff] }
 0x659   :  { %2507 = vmatpush2.bf16.msra.mxu0 %v7162_v23  ;;  %v7171_v23 = vld [vmem:[#allocation17_spill] sm:$0xff] }
 0x65a   :  { %2548 = vmatpush2.bf16.msra.mxu1 %v7163_v53  ;;  %2709 = vmatprep.subr.bf16.mxu0 %v7164_v47  ;;  %v7172_v53 = vld [vmem:[#allocation18_spill] sm:$0xff]  ;;  %v7173_v47 = vld [vmem:[#allocation19_spill] sm:$0xff] }
 0x65b   :  { %2750 = vmatprep.subr.bf16.mxu1 %v7165_v2  ;;  %v7174_v2 = vld [vmem:[#allocation20_spill] sm:$0xff] }
 0x65c   :  { %2509 = vmatmul.mubr.bf16.vlgmr.msra.gmra.mxu0 %v5749_v57 }
 0x65d   :  { %2550 = vmatmul.mubr.bf16.vlgmr.msra.gmra.mxu1 %v5749_v57  ;;  %2710 = vmatpush1.bf16.msra.mxu0 %v7166_v58  ;;  %v7176_v57 = vld [vmem:[#allocation22_spill] sm:$0xff]  ;;  %v7177_v58 = vld [vmem:[#allocation23_spill] sm:$0xff] }
 0x65e   :  { %2751 = vmatpush1.bf16.msra.mxu1 %v7167_v37  ;;  %2711 = vmatprep.subr.bf16.mxu0 %v7168_v24  ;;  %v7178_v37 = vld [vmem:[#allocation24_spill] sm:$0xff]  ;;  %v7179_v24 = vld [vmem:[#allocation25_spill] sm:$0xff] }
 0x65f   :  { %2752 = vmatprep.subr.bf16.mxu1 %v7169_v49  ;;  %v7180_v49 = vld [vmem:[#allocation26_spill] sm:$0xff] }
 0x661   :  { %2712 = vmatpush1.bf16.msra.mxu0 %v7170_v15  ;;  %v7181_v15 = vld [vmem:[#allocation27_spill] sm:$0xff] }
 0x662   :  { %2753 = vmatpush1.bf16.msra.mxu1 %v7171_v23  ;;  %2713 = vmatprep.subr.bf16.mxu0 %v7172_v53  ;;  %v7182_v23 = vld [vmem:[#allocation28_spill] sm:$0xff]  ;;  %v7183_v53 = vld [vmem:[#allocation29_spill] sm:$0xff] }
 0x663   :  { %2754 = vmatprep.subr.bf16.mxu1 %v7173_v47  ;;  %v7184_v47 = vld [vmem:[#allocation30_spill] sm:$0xff] }
 0x665   :  { %2714 = vmatpush1.bf16.msra.mxu0 %v7174_v2  ;;  %v7185_v2 = vld [vmem:[#allocation31_spill] sm:$0xff] }
 0x666   :  { %2755 = vmatpush1.bf16.msra.mxu1 %v7175_v38  ;;  %2715 = vmatprep.subr.bf16.mxu0 %v7176_v57  ;;  %v7186_v38 = vld [vmem:[#allocation32_spill] sm:$0xff]  ;;  %v7187_v57 = vld [vmem:[#allocation33_spill] sm:$0xff] }
 0x667   :  { %2756 = vmatprep.subr.bf16.mxu1 %v7177_v58  ;;  %v7188_v58 = vld [vmem:[#allocation34_spill] sm:$0xff] }
 0x669   :  { %2716 = vmatpush1.bf16.msra.mxu0 %v7178_v37  ;;  %v7189_v37 = vld [vmem:[#allocation35_spill] sm:$0xff] }
 0x66a   :  { %2757 = vmatpush1.bf16.msra.mxu1 %v7179_v24  ;;  %2717 = vmatprep.subr.bf16.mxu0 %v7180_v49  ;;  %v7190_v24 = vld [vmem:[#allocation36_spill] sm:$0xff]  ;;  %v7191_v49 = vld [vmem:[#allocation37_spill] sm:$0xff] }
 0x66b   :  { %2758 = vmatprep.subr.bf16.mxu1 %v7181_v15  ;;  %v7192_v15 = vld [vmem:[#allocation38_spill] sm:$0xff] }
 0x66d   :  { %2718 = vmatpush1.bf16.msra.mxu0 %v7182_v23  ;;  %v7193_v23 = vld [vmem:[#allocation39_spill] sm:$0xff] }
 0x66e   :  { %2759 = vmatpush1.bf16.msra.mxu1 %v7183_v53  ;;  %2719 = vmatprep.subr.bf16.mxu0 %v7184_v47  ;;  %v7194_v53 = vld [vmem:[#allocation40_spill] sm:$0xff]  ;;  %v7195_v47 = vld [vmem:[#allocation41_spill] sm:$0xff] }
 0x66f   :  { %2760 = vmatprep.subr.bf16.mxu1 %v7185_v2  ;;  %v7196_v2 = vld [vmem:[#allocation42_spill] sm:$0xff] }
 0x671   :  { %2720 = vmatpush1.bf16.msra.mxu0 %v7186_v38  ;;  %v7197_v38 = vld [vmem:[#allocation43_spill] sm:$0xff] }
 0x672   :  { %2761 = vmatpush1.bf16.msra.mxu1 %v7187_v57  ;;  %2721 = vmatprep.subr.bf16.mxu0 %v7188_v58  ;;  %v7198_v57 = vld [vmem:[#allocation44_spill] sm:$0xff]  ;;  %v7199_v58 = vld [vmem:[#allocation45_spill] sm:$0xff] }
 0x673   :  { %2762 = vmatprep.subr.bf16.mxu1 %v7189_v37  ;;  %v7200_v37 = vld [vmem:[#allocation46_spill] sm:$0xff] }
 0x675   :  { %2722 = vmatpush1.bf16.msra.mxu0 %v7190_v24  ;;  %v7201_v24 = vld [vmem:[#allocation47_spill] sm:$0xff] }
 0x676   :  { %2763 = vmatpush1.bf16.msra.mxu1 %v7191_v49  ;;  %2723 = vmatprep.subr.bf16.mxu0 %v7192_v15  ;;  %v7202_v49 = vld [vmem:[#allocation48_spill] sm:$0xff]  ;;  %v7203_v15 = vld [vmem:[#allocation49_spill] sm:$0xff] }
 0x677   :  { %2764 = vmatprep.subr.bf16.mxu1 %v7193_v23  ;;  %v7204_v23 = vld [vmem:[#allocation50_spill] sm:$0xff] }
 0x679   :  { %2724 = vmatpush1.bf16.msra.mxu0 %v7194_v53  ;;  %v7205_v53 = vld [vmem:[#allocation51_spill] sm:$0xff] }
 0x67a   :  { %2765 = vmatpush1.bf16.msra.mxu1 %v7195_v47  ;;  %2725 = vmatprep.subr.bf16.mxu0 %v7196_v2  ;;  %v7206_v47 = vld [vmem:[#allocation52_spill] sm:$0xff]  ;;  %v7207_v2 = vld [vmem:[#allocation53_spill] sm:$0xff] }
 0x67b   :  { %2766 = vmatprep.subr.bf16.mxu1 %v7197_v38  ;;  %v7208_v38 = vld [vmem:[#allocation54_spill] sm:$0xff] }
 0x67d   :  { %2726 = vmatpush2.bf16.msra.mxu0 %v7198_v57  ;;  %v7209_v57 = vld [vmem:[#allocation55_spill] sm:$0xff] }
 0x67e   :  { %2767 = vmatpush2.bf16.msra.mxu1 %v7199_v58  ;;  %2727 = vmatprep.subr.bf16.mxu0 %v7200_v37  ;;  %v7210_v58 = vld [vmem:[#allocation56_spill] sm:$0xff]  ;;  %v7211_v37 = vld [vmem:[#allocation57_spill] sm:$0xff] }
 0x67f   :  { %2768 = vmatprep.subr.bf16.mxu1 %v7201_v24  ;;  %v7212_v24 = vld [vmem:[#allocation58_spill] sm:$0xff] }
 0x681   :  { %2728 = vmatpush2.bf16.msra.mxu0 %v7202_v49  ;;  %v7213_v49 = vld [vmem:[#allocation59_spill] sm:$0xff] }
 0x682   :  { %2769 = vmatpush2.bf16.msra.mxu1 %v7203_v15  ;;  %2729 = vmatprep.subr.bf16.mxu0 %v7204_v23  ;;  %v7214_v15 = vld [vmem:[#allocation60_spill] sm:$0xff]  ;;  %v7215_v23 = vld [vmem:[#allocation61_spill] sm:$0xff] }
 0x683   :  { %2770 = vmatprep.subr.bf16.mxu1 %v7205_v53  ;;  %v7216_v53 = vld [vmem:[#allocation62_spill] sm:$0xff] }
 0x685   :  { %2730 = vmatpush2.bf16.msra.mxu0 %v7206_v47  ;;  %v7217_v47 = vld [vmem:[#allocation63_spill] sm:$0xff] }
 0x686   :  { %2771 = vmatpush2.bf16.msra.mxu1 %v7207_v2  ;;  %2731 = vmatprep.subr.bf16.mxu0 %v7208_v38  ;;  %v7218_v2 = vld [vmem:[#allocation64_spill] sm:$0xff]  ;;  %v7219_v38 = vld [vmem:[#allocation65_spill] sm:$0xff] }
 0x687   :  { %2772 = vmatprep.subr.bf16.mxu1 %v7209_v57  ;;  %v7220_v57 = vld [vmem:[#allocation66_spill] sm:$0xff] }
 0x689   :  { %2732 = vmatpush2.bf16.msra.mxu0 %v7210_v58  ;;  %v7221_v58 = vld [vmem:[#allocation67_spill] sm:$0xff] }
 0x68a   :  { %2773 = vmatpush2.bf16.msra.mxu1 %v7211_v37  ;;  %2733 = vmatprep.subr.bf16.mxu0 %v7212_v24  ;;  %v7222_v37 = vld [vmem:[#allocation68_spill] sm:$0xff]  ;;  %v7223_v24 = vld [vmem:[#allocation69_spill] sm:$0xff] }
 0x68b   :  { %2774 = vmatprep.subr.bf16.mxu1 %v7213_v49  ;;  %v7224_v49 = vld [vmem:[#allocation70_spill] sm:$0xff] }
 0x68d   :  { %2734 = vmatpush2.bf16.msra.mxu0 %v7214_v15  ;;  %v7225_v15 = vld [vmem:[#allocation71_spill] sm:$0xff] }
 0x68e   :  { %2775 = vmatpush2.bf16.msra.mxu1 %v7215_v23  ;;  %2735 = vmatprep.subr.bf16.mxu0 %v7216_v53  ;;  %v7226_v23 = vld [vmem:[#allocation72_spill] sm:$0xff]  ;;  %v7227_v53 = vld [vmem:[#allocation73_spill] sm:$0xff] }
 0x68f   :  { %2776 = vmatprep.subr.bf16.mxu1 %v7217_v47  ;;  %v7228_v47 = vld [vmem:[#allocation74_spill] sm:$0xff] }
 0x691   :  { %2736 = vmatpush2.bf16.msra.mxu0 %v7218_v2  ;;  %v7229_v2 = vld [vmem:[#allocation75_spill] sm:$0xff] }
 0x692   :  { %2777 = vmatpush2.bf16.msra.mxu1 %v7219_v38  ;;  %2737 = vmatprep.subr.bf16.mxu0 %v7220_v57 }
 0x693   :  { %2778 = vmatprep.subr.bf16.mxu1 %v7221_v58 }
 0x695   :  { %2738 = vmatpush2.bf16.msra.mxu0 %v7222_v37 }
 0x696   :  { %2779 = vmatpush2.bf16.msra.mxu1 %v7223_v24  ;;  %2739 = vmatprep.subr.bf16.mxu0 %v7224_v49 }
 0x697   :  { %2780 = vmatprep.subr.bf16.mxu1 %v7225_v15  ;;  %v3600_v15 = vld [vmem:[%s6365_s0 + $0x140] sm:$0xff] }
 0x699   :  { %2740 = vmatpush2.bf16.msra.mxu0 %v7226_v23 }
 0x69a   :  { %2781 = vmatpush2.bf16.msra.mxu1 %v7227_v53  ;;  %2791 = vmatprep.subr.bf16.mxu0 %v7228_v47  ;;  %v3602_v53 = vld [vmem:[%s6365_s0 + $0x150] sm:$0xff] }
 0x69b   :  { %2832 = vmatprep.subr.bf16.mxu1 %v7229_v2  ;;  %v3601_v2 = vld [vmem:[%s6365_s0 + $0x148] sm:$0xff] }
 0x6dc   :  { %v2428_v38 = vpop.f32.mrf.mxu0  ;;  %v2469_v57 = vpop.f32.mrf.mxu1 }
 0x6dd   :  { %v2558_v47 = vadd.f32 %v3600_v15, %v2428_v38 }
 0x6de   :  { %v2430_v59 = vpop.f32.mrf.mxu0  ;;  %v2471_v58 = vpop.f32.mrf.mxu1 }
 0x6df   :  { %v3608_v23 = vmul.f32 -1.442695, %v2558_v47  ;;  %v3606_v47 = vld [vmem:[%s6365_s0 + $0x170] sm:$0xff] }
 0x6e0   :  { %v2432_v41 = vpop.f32.mrf.mxu0  ;;  %v2473_v37 = vpop.f32.mrf.mxu1 }
 0x6e1   :  { %v3603_v41 = vld [vmem:[%s6365_s0 + $0x158] sm:$0xff]  ;;  %v2560_v37 = vadd.f32 %v3602_v53, %v2469_v57  ;;  %3829 = vpow2.f32 %v3608_v23  ;;  %v3604_v53 = vld [vmem:[%s6365_s0 + $0x160] sm:$0xff] }
 0x6e2   :  { %v2433_v56 = vpop.f32.mrf.mxu0  ;;  %v2474_v24 = vpop.f32.mrf.mxu1 }
 0x6e3   :  { %v2559_v56 = vadd.f32 %v3601_v2, %v2430_v59  ;;  %v2561_v24 = vadd.f32 %v3603_v41, %v2471_v58  ;;  %v3610_v49 = vmul.f32 -1.442695, %v2560_v37 }
 0x6e5   :  { %v3609_v31 = vmul.f32 -1.442695, %v2559_v56  ;;  %v3611_v17 = vmul.f32 -1.442695, %v2561_v24  ;;  %3831 = vpow2.f32 %v3610_v49 }
 0x6e7   :  { %3833 = vpow2.f32 %v3609_v31 }
 0x6e8   :  { %3835 = vpow2.f32 %v3611_v17  ;;  %v3605_v17 = vld [vmem:[%s6365_s0 + $0x168] sm:$0xff] }
 0x6ee   :  { %v3830_v51 = vpop.eup %3829 }
 0x6ef   :  { %v2572_v15 = vadd.f32 1.0, %v3830_v51 }
 0x6f1   :  { %3837 = vrcp.f32 %v2572_v15 }
 0x6f2   :  { %v3832_v3 = vpop.eup %3831 }
 0x6f3   :  { %v2584_v38 = vadd.f32 1.0, %v3832_v3 }
 0x6f4   :  { %v3834_v39 = vpop.eup %3833 }
 0x6f5   :  { %v3836_v13 = vpop.eup %3835  ;;  %v2573_v12 = vadd.f32 1.0, %v3834_v39  ;;  %3839 = vrcp.f32 %v2584_v38  ;;  %v3607_v39 = vld [vmem:[%s6365_s0 + $0x178] sm:$0xff] }
 0x6f6   :  { %v2585_v2 = vadd.f32 1.0, %v3836_v13 }
 0x6f7   :  { %3841 = vrcp.f32 %v2573_v12 }
 0x6f8   :  { %3843 = vrcp.f32 %v2585_v2 }
 0x6fe   :  { %v3838_v38 = vpop.eup %3837 }
 0x71c   :  { %v2510_v23 = vpop.f32.mrf.mxu0 }
 0x71d   :  { %v2562_v31 = vadd.f32 %v3604_v53, %v2510_v23  ;;  %v2551_v51 = vpop.f32.mrf.mxu1  ;;  %v3840_v53 = vpop.eup %3839 }
 0x71e   :  { %v2564_v3 = vadd.f32 %v3606_v47, %v2551_v51  ;;  %v2512_v13 = vpop.f32.mrf.mxu0  ;;  %v3842_v23 = vpop.eup %3841  ;;  %v2604_v2 = vmul.f32 %v3840_v53, %v5742_v0 }
 0x71f   :  { %v3612_v59 = vmul.f32 -1.442695, %v2562_v31  ;;  %v2563_v58 = vadd.f32 %v3605_v17, %v2512_v13  ;;  %v2553_v49 = vpop.f32.mrf.mxu1  ;;  %v3844_v12 = vpop.eup %3843 }
 0x720   :  { %3845 = vtanh.f32 %v2564_v3  ;;  %v2565_v57 = vadd.f32 %v3607_v39, %v2553_v49  ;;  %v2514_v41 = vpop.f32.mrf.mxu0 }
 0x721   :  { %3847 = vpow2.f32 %v3612_v59  ;;  %v3613_v37 = vmul.f32 -1.442695, %v2563_v58  ;;  %v2555_v56 = vpop.f32.mrf.mxu1  ;;  %v2605_v59 = vmul.f32 %v3844_v12, %v5746_v4 }
 0x722   :  { %3849 = vtanh.f32 %v2565_v57  ;;  %v2515_v24 = vpop.f32.mrf.mxu0 }
 0x723   :  { %3851 = vpow2.f32 %v3613_v37  ;;  %v2556_v15 = vpop.f32.mrf.mxu1 }
 0x72d   :  { %v3846_v47 = vpop.eup %3845 }
 0x72e   :  { %v3848_v51 = vpop.eup %3847  ;;  %v2606_v17 = vmul.f32 %v3846_v47, %v3838_v38 }
 0x72f   :  { %v3850_v31 = vpop.eup %3849  ;;  %v2596_v3 = vadd.f32 1.0, %v3848_v51 }
 0x730   :  { %v3852_v39 = vpop.eup %3851  ;;  %v5954_v13 = vadd.f32 %v2606_v17, %v2604_v2  ;;  %v2607_v58 = vmul.f32 %v3850_v31, %v3842_v23 }
 0x731   :  { %3853 = vrcp.f32 %v2596_v3  ;;  %v2597_v49 = vadd.f32 1.0, %v3852_v39 }
 0x732   :  { %3855 = vtanh.f32 %v5954_v13  ;;  %v5958_v57 = vadd.f32 %v2607_v58, %v2605_v59 }
 0x733   :  { %3857 = vrcp.f32 %v2597_v49 }
 0x734   :  { %3859 = vtanh.f32 %v5958_v57 }
 0x73e   :  { %v3854_v41 = vpop.eup %3853 }
 0x73f   :  { %v3856_v0 = vpop.eup %3855 }
 0x740   :  { %v3858_v37 = vpop.eup %3857  ;;  %v2612_v24 = vmul.f32 %v3856_v0, %v3854_v41  ;;  %v7230_v0 = vld [vmem:[#allocation114_spill] sm:$0xff] }
 0x741   :  { %v3860_v56 = vpop.eup %3859 }
 0x742   :  { %v2613_v15 = vmul.f32 %v3860_v56, %v3858_v37  ;;  %v5961_v4 = vpack.c.bf16 %v2612_v24, %v2612_v24  ;;  %v7231_v37 = vld [vmem:[#allocation115_spill] sm:$0xff]  ;;  %v7232_v56 = vld [vmem:[#allocation116_spill] sm:$0xff] }
 0x744   :  { %v2708_v38 = vpack.c.bf16 %v2613_v15, %v2613_v15  ;;  %v2616_v53 = vcombine.low %v2612_v24, %v2613_v15  ;;  %v2617_v47 = vcombine.high %v2612_v24, %v2613_v15  ;;  %v7233_v24 = vld [vmem:[#allocation117_spill] sm:$0xff]  ;;  %v7234_v15 = vld [vmem:[#allocation118_spill] sm:$0xff] }
 0x746   :  { %2741 = vmatprep.mubr.bf16.mxu0 %v2708_v38  ;;  %2782 = vmatprep.mubr.bf16.mxu1 %v2708_v38  ;;  %v2624_v23 = vrot.slane %v2616_v53, %v4895_v25  ;;  %v2631_v12 = vrot.slane %v2617_v47, %v4895_v25  ;;  %v7236_v53 = vld [vmem:[#allocation120_spill] sm:$0xff]  ;;  %v7237_v47 = vld [vmem:[#allocation121_spill] sm:$0xff] }
 0x747   :  { %2742 = vmatmul.mubr.bf16.vlgmr.msra.gmra.mxu0 %v5961_v4  ;;  %2783 = vmatmul.mubr.bf16.vlgmr.msra.gmra.mxu1 %v5961_v4 }
 0x748   :  { %v2632_v51 = vcombine.high %v2624_v23, %v2624_v23  ;;  %v2633_v2 = vcombine.high %v2631_v12, %v2631_v12  ;;  %v2640_v17 = vrot.slane %v2624_v23, %v4895_v25  ;;  %v2647_v31 = vrot.slane %v2631_v12, %v4895_v25  ;;  %2792 = vmatpush1.bf16.msra.mxu0 %v4430_v46  ;;  %v7238_v23 = vld [vmem:[#allocation122_spill] sm:$0xff]  ;;  %v7239_v12 = vld [vmem:[#allocation123_spill] sm:$0xff] }
 0x749   :  { %2833 = vmatpush1.bf16.msra.mxu1 %v6789_v11  ;;  %2823 = vmatprep.mubr.bf16.mxu0 %v2708_v38 }
 0x74a   :  { %v2654_v3 = vrot.slane %v2632_v51, %v4895_v25  ;;  %v2661_v39 = vrot.slane %v2633_v2, %v4895_v25  ;;  %v2662_v59 = vcombine.high %v2640_v17, %v2640_v17  ;;  %v2663_v58 = vcombine.high %v2647_v31, %v2647_v31  ;;  %3614 = vst.msk [vmem:[%s6369_s4 + $0x5] ss:$8 sm:$0x3] %vm4901_vm0, %v2640_v17  ;;  %v7240_v51 = vld [vmem:[#allocation124_spill] sm:$0xff]  ;;  %v7241_v2 = vld [vmem:[#allocation125_spill] sm:$0xff]  ;;  %v7242_v17 = vld [vmem:[#allocation126_spill] sm:$0xff] }
 0x74b   :  { %3618 = vst.msk [vmem:[%s6369_s4 + $0x45] ss:$8 sm:$0x3] %vm4901_vm0, %v2647_v31  ;;  %2864 = vmatprep.mubr.bf16.mxu1 %v2708_v38  ;;  %2793 = vmatprep.subr.bf16.mxu0 %v6790_v55  ;;  %v7235_v38 = vld [vmem:[#allocation119_spill] sm:$0xff] }
 0x74c   :  { %2834 = vmatprep.subr.bf16.mxu1 %v6791_v32  ;;  %v2664_v49 = vcombine.high %v2654_v3, %v2654_v3  ;;  %v2665_v41 = vcombine.high %v2661_v39, %v2661_v39  ;;  %3615 = vst.msk [vmem:[%s6369_s4 + $0x15] ss:$8 sm:$0x3] %vm4901_vm0, %v2654_v3  ;;  %3616 = vst.msk [vmem:[%s6369_s4 + $0x25] ss:$8 sm:$0x3] %vm4901_vm0, %v2662_v59  ;;  %2794 = vmatpush1.bf16.msra.mxu0 %v6792_v22 }
 0x74d   :  { %3619 = vst.msk [vmem:[%s6369_s4 + $0x55] ss:$8 sm:$0x3] %vm4901_vm0, %v2661_v39  ;;  %3620 = vst.msk [vmem:[%s6369_s4 + $0x65] ss:$8 sm:$0x3] %vm4901_vm0, %v2663_v58  ;;  %2835 = vmatpush1.bf16.msra.mxu1 %v6793_v33  ;;  %2795 = vmatprep.subr.bf16.mxu0 %v6874_v30 }
 0x74e   :  { %3617 = vst.msk [vmem:[%s6369_s4 + $0x35] ss:$8 sm:$0x3] %vm4901_vm0, %v2664_v49  ;;  %3621 = vst.msk [vmem:[%s6369_s4 + $0x75] ss:$8 sm:$0x3] %vm4901_vm0, %v2665_v41  ;;  %2836 = vmatprep.subr.bf16.mxu1 %v6875_v54 }
 0x74f   :  { %v7243_v31 = vld [vmem:[#allocation127_spill] sm:$0xff]  ;;  %v7244_v3 = vld [vmem:[#allocation128_spill] sm:$0xff]  ;;  %v7245_v39 = vld [vmem:[#allocation129_spill] sm:$0xff] }
 0x750   :  { %2796 = vmatpush1.bf16.msra.mxu0 %v6876_v43  ;;  %v7246_v59 = vld [vmem:[#allocation130_spill] sm:$0xff]  ;;  %v7247_v58 = vld [vmem:[#allocation131_spill] sm:$0xff]  ;;  %v7248_v49 = vld [vmem:[#allocation132_spill] sm:$0xff] }
 0x751   :  { %2837 = vmatpush1.bf16.msra.mxu1 %v6877_v60  ;;  %2797 = vmatprep.subr.bf16.mxu0 %v6878_v50  ;;  %v7249_v41 = vld [vmem:[#allocation133_spill] sm:$0xff] }
 0x752   :  { %2838 = vmatprep.subr.bf16.mxu1 %v6879_v62 }
 0x754   :  { %2798 = vmatpush1.bf16.msra.mxu0 %v6880_v45 }
 0x755   :  { %2839 = vmatpush1.bf16.msra.mxu1 %v6881_v52  ;;  %2799 = vmatprep.subr.bf16.mxu0 %v6882_v61 }
 0x756   :  { %2840 = vmatprep.subr.bf16.mxu1 %v6963_v29 }
 0x758   :  { %2800 = vmatpush1.bf16.msra.mxu0 %v6964_v9 }
 0x759   :  { %2841 = vmatpush1.bf16.msra.mxu1 %v6965_v1  ;;  %2801 = vmatprep.subr.bf16.mxu0 %v6966_v10 }
 0x75a   :  { %2842 = vmatprep.subr.bf16.mxu1 %v6967_v18 }
 0x75c   :  { %2802 = vmatpush1.bf16.msra.mxu0 %v6968_v27 }
 0x75d   :  { %2843 = vmatpush1.bf16.msra.mxu1 %v6969_v8  ;;  %2803 = vmatprep.subr.bf16.mxu0 %v6970_v20 }
 0x75e   :  { %2844 = vmatprep.subr.bf16.mxu1 %v6971_v14 }
 0x760   :  { %2804 = vmatpush1.bf16.msra.mxu0 %v6972_v16 }
 0x761   :  { %2845 = vmatpush1.bf16.msra.mxu1 %v6973_v26  ;;  %2805 = vmatprep.subr.bf16.mxu0 %v6974_v5 }
 0x762   :  { %2846 = vmatprep.subr.bf16.mxu1 %v6975_v19 }
 0x764   :  { %2806 = vmatpush1.bf16.msra.mxu0 %v6976_v21 }
 0x765   :  { %2847 = vmatpush1.bf16.msra.mxu1 %v6977_v48  ;;  %2807 = vmatprep.subr.bf16.mxu0 %v6898_v42 }
 0x766   :  { %2848 = vmatprep.subr.bf16.mxu1 %v6899_v35 }
 0x768   :  { %2808 = vmatpush2.bf16.msra.mxu0 %v6900_v34 }
 0x769   :  { %2849 = vmatpush2.bf16.msra.mxu1 %v6901_v63  ;;  %2809 = vmatprep.subr.bf16.mxu0 %v6902_v6 }
 0x76a   :  { %2850 = vmatprep.subr.bf16.mxu1 %v6903_v7 }
 0x76c   :  { %2810 = vmatpush2.bf16.msra.mxu0 %v6904_v44 }
 0x76d   :  { %2851 = vmatpush2.bf16.msra.mxu1 %v6905_v28  ;;  %2811 = vmatprep.subr.bf16.mxu0 %v6906_v36 }
 0x76e   :  { %2852 = vmatprep.subr.bf16.mxu1 %v7230_v0 }
 0x770   :  { %2812 = vmatpush2.bf16.msra.mxu0 %v7231_v37 }
 0x771   :  { %2853 = vmatpush2.bf16.msra.mxu1 %v7232_v56  ;;  %2813 = vmatprep.subr.bf16.mxu0 %v7233_v24 }
 0x772   :  { %2854 = vmatprep.subr.bf16.mxu1 %v7234_v15 }
 0x774   :  { %2814 = vmatpush2.bf16.msra.mxu0 %v7235_v38 }
 0x775   :  { %2855 = vmatpush2.bf16.msra.mxu1 %v7236_v53  ;;  %2815 = vmatprep.subr.bf16.mxu0 %v7237_v47 }
 0x776   :  { %2856 = vmatprep.subr.bf16.mxu1 %v7238_v23 }
 0x778   :  { %2816 = vmatpush2.bf16.msra.mxu0 %v7239_v12  ;;  %v7250_v12 = vld [vmem:[#allocation134_spill] sm:$0xff] }
 0x779   :  { %2857 = vmatpush2.bf16.msra.mxu1 %v7240_v51  ;;  %2817 = vmatprep.subr.bf16.mxu0 %v7241_v2  ;;  %v7251_v51 = vld [vmem:[#allocation135_spill] sm:$0xff]  ;;  %v7252_v2 = vld [vmem:[#allocation136_spill] sm:$0xff] }
 0x77a   :  { %2858 = vmatprep.subr.bf16.mxu1 %v7242_v17  ;;  %v7253_v17 = vld [vmem:[#allocation10_spill] sm:$0xff] }
 0x77c   :  { %2818 = vmatpush2.bf16.msra.mxu0 %v7243_v31  ;;  %v7254_v31 = vld [vmem:[#allocation12_spill] sm:$0xff] }
 0x77d   :  { %2859 = vmatpush2.bf16.msra.mxu1 %v7244_v3  ;;  %2819 = vmatprep.subr.bf16.mxu0 %v7245_v39  ;;  %v7264_v39 = vld [vmem:[#allocation21_spill] sm:$0xff] }
 0x77e   :  { %2860 = vmatprep.subr.bf16.mxu1 %v7246_v59  ;;  %v7255_v59 = vld [vmem:[#allocation11_spill] sm:$0xff] }
 0x780   :  { %2820 = vmatpush2.bf16.msra.mxu0 %v7247_v58  ;;  %v7256_v58 = vld [vmem:[#allocation13_spill] sm:$0xff] }
 0x781   :  { %2861 = vmatpush2.bf16.msra.mxu1 %v7248_v49  ;;  %2821 = vmatprep.subr.bf16.mxu0 %v7249_v41  ;;  %v7257_v49 = vld [vmem:[#allocation14_spill] sm:$0xff]  ;;  %v7258_v41 = vld [vmem:[#allocation15_spill] sm:$0xff] }
 0x782   :  { %2862 = vmatprep.subr.bf16.mxu1 %v7250_v12  ;;  %v7259_v12 = vld [vmem:[#allocation16_spill] sm:$0xff] }
 0x784   :  { %2822 = vmatpush2.bf16.msra.mxu0 %v7251_v51  ;;  %v7260_v51 = vld [vmem:[#allocation17_spill] sm:$0xff] }
 0x785   :  { %2863 = vmatpush2.bf16.msra.mxu1 %v7252_v2  ;;  %3024 = vmatprep.subr.bf16.mxu0 %v7253_v17  ;;  %v7261_v2 = vld [vmem:[#allocation18_spill] sm:$0xff]  ;;  %v7262_v17 = vld [vmem:[#allocation19_spill] sm:$0xff] }
 0x786   :  { %3065 = vmatprep.subr.bf16.mxu1 %v7254_v31  ;;  %v7263_v31 = vld [vmem:[#allocation20_spill] sm:$0xff] }
 0x787   :  { %2824 = vmatmul.mubr.bf16.vlgmr.msra.gmra.mxu0 %v5961_v4 }
 0x788   :  { %2865 = vmatmul.mubr.bf16.vlgmr.msra.gmra.mxu1 %v5961_v4  ;;  %3025 = vmatpush1.bf16.msra.mxu0 %v7255_v59  ;;  %v7265_v4 = vld [vmem:[#allocation22_spill] sm:$0xff]  ;;  %v7266_v59 = vld [vmem:[#allocation23_spill] sm:$0xff] }
 0x789   :  { %3066 = vmatpush1.bf16.msra.mxu1 %v7256_v58  ;;  %3026 = vmatprep.subr.bf16.mxu0 %v7257_v49  ;;  %v7267_v58 = vld [vmem:[#allocation24_spill] sm:$0xff]  ;;  %v7268_v49 = vld [vmem:[#allocation25_spill] sm:$0xff] }
 0x78a   :  { %3067 = vmatprep.subr.bf16.mxu1 %v7258_v41  ;;  %v7269_v41 = vld [vmem:[#allocation26_spill] sm:$0xff] }
 0x78c   :  { %3027 = vmatpush1.bf16.msra.mxu0 %v7259_v12  ;;  %v7270_v12 = vld [vmem:[#allocation27_spill] sm:$0xff] }
 0x78d   :  { %3068 = vmatpush1.bf16.msra.mxu1 %v7260_v51  ;;  %3028 = vmatprep.subr.bf16.mxu0 %v7261_v2  ;;  %v7271_v51 = vld [vmem:[#allocation28_spill] sm:$0xff]  ;;  %v7272_v2 = vld [vmem:[#allocation29_spill] sm:$0xff] }
 0x78e   :  { %3069 = vmatprep.subr.bf16.mxu1 %v7262_v17  ;;  %v7273_v17 = vld [vmem:[#allocation30_spill] sm:$0xff] }
 0x790   :  { %3029 = vmatpush1.bf16.msra.mxu0 %v7263_v31  ;;  %v7274_v31 = vld [vmem:[#allocation31_spill] sm:$0xff] }
 0x791   :  { %3070 = vmatpush1.bf16.msra.mxu1 %v7264_v39  ;;  %3030 = vmatprep.subr.bf16.mxu0 %v7265_v4  ;;  %v7275_v39 = vld [vmem:[#allocation32_spill] sm:$0xff]  ;;  %v7276_v4 = vld [vmem:[#allocation33_spill] sm:$0xff] }
 0x792   :  { %3071 = vmatprep.subr.bf16.mxu1 %v7266_v59  ;;  %v7277_v59 = vld [vmem:[#allocation34_spill] sm:$0xff] }
 0x794   :  { %3031 = vmatpush1.bf16.msra.mxu0 %v7267_v58  ;;  %v7278_v58 = vld [vmem:[#allocation35_spill] sm:$0xff] }
 0x795   :  { %3072 = vmatpush1.bf16.msra.mxu1 %v7268_v49  ;;  %3032 = vmatprep.subr.bf16.mxu0 %v7269_v41  ;;  %v7279_v49 = vld [vmem:[#allocation36_spill] sm:$0xff]  ;;  %v7280_v41 = vld [vmem:[#allocation37_spill] sm:$0xff] }
 0x796   :  { %3073 = vmatprep.subr.bf16.mxu1 %v7270_v12  ;;  %v7281_v12 = vld [vmem:[#allocation38_spill] sm:$0xff] }
 0x798   :  { %3033 = vmatpush1.bf16.msra.mxu0 %v7271_v51  ;;  %v7282_v51 = vld [vmem:[#allocation39_spill] sm:$0xff] }
 0x799   :  { %3074 = vmatpush1.bf16.msra.mxu1 %v7272_v2  ;;  %3034 = vmatprep.subr.bf16.mxu0 %v7273_v17  ;;  %v7283_v2 = vld [vmem:[#allocation40_spill] sm:$0xff]  ;;  %v7284_v17 = vld [vmem:[#allocation41_spill] sm:$0xff] }
 0x79a   :  { %3075 = vmatprep.subr.bf16.mxu1 %v7274_v31  ;;  %v7285_v31 = vld [vmem:[#allocation42_spill] sm:$0xff] }
 0x79c   :  { %3035 = vmatpush1.bf16.msra.mxu0 %v7275_v39  ;;  %v7286_v39 = vld [vmem:[#allocation43_spill] sm:$0xff] }
 0x79d   :  { %3076 = vmatpush1.bf16.msra.mxu1 %v7276_v4  ;;  %3036 = vmatprep.subr.bf16.mxu0 %v7277_v59  ;;  %v7287_v4 = vld [vmem:[#allocation44_spill] sm:$0xff]  ;;  %v7288_v59 = vld [vmem:[#allocation45_spill] sm:$0xff] }
 0x79e   :  { %3077 = vmatprep.subr.bf16.mxu1 %v7278_v58  ;;  %v7289_v58 = vld [vmem:[#allocation46_spill] sm:$0xff] }
 0x7a0   :  { %3037 = vmatpush1.bf16.msra.mxu0 %v7279_v49  ;;  %v7290_v49 = vld [vmem:[#allocation47_spill] sm:$0xff] }
 0x7a1   :  { %3078 = vmatpush1.bf16.msra.mxu1 %v7280_v41  ;;  %3038 = vmatprep.subr.bf16.mxu0 %v7281_v12  ;;  %v7291_v41 = vld [vmem:[#allocation48_spill] sm:$0xff]  ;;  %v7292_v12 = vld [vmem:[#allocation49_spill] sm:$0xff] }
 0x7a2   :  { %3079 = vmatprep.subr.bf16.mxu1 %v7282_v51  ;;  %v7293_v51 = vld [vmem:[#allocation50_spill] sm:$0xff] }
 0x7a4   :  { %3039 = vmatpush1.bf16.msra.mxu0 %v7283_v2  ;;  %v7294_v2 = vld [vmem:[#allocation51_spill] sm:$0xff] }
 0x7a5   :  { %3080 = vmatpush1.bf16.msra.mxu1 %v7284_v17  ;;  %3040 = vmatprep.subr.bf16.mxu0 %v7285_v31  ;;  %v7295_v17 = vld [vmem:[#allocation52_spill] sm:$0xff]  ;;  %v7296_v31 = vld [vmem:[#allocation53_spill] sm:$0xff] }
 0x7a6   :  { %3081 = vmatprep.subr.bf16.mxu1 %v7286_v39  ;;  %v7297_v39 = vld [vmem:[#allocation54_spill] sm:$0xff] }
 0x7a8   :  { %3041 = vmatpush2.bf16.msra.mxu0 %v7287_v4  ;;  %v7298_v4 = vld [vmem:[#allocation55_spill] sm:$0xff] }
 0x7a9   :  { %3082 = vmatpush2.bf16.msra.mxu1 %v7288_v59  ;;  %3042 = vmatprep.subr.bf16.mxu0 %v7289_v58  ;;  %v7299_v59 = vld [vmem:[#allocation56_spill] sm:$0xff]  ;;  %v7300_v58 = vld [vmem:[#allocation57_spill] sm:$0xff] }
 0x7aa   :  { %3083 = vmatprep.subr.bf16.mxu1 %v7290_v49  ;;  %v7301_v49 = vld [vmem:[#allocation58_spill] sm:$0xff] }
 0x7ac   :  { %3043 = vmatpush2.bf16.msra.mxu0 %v7291_v41  ;;  %v7302_v41 = vld [vmem:[#allocation59_spill] sm:$0xff] }
 0x7ad   :  { %3084 = vmatpush2.bf16.msra.mxu1 %v7292_v12  ;;  %3044 = vmatprep.subr.bf16.mxu0 %v7293_v51  ;;  %v7303_v12 = vld [vmem:[#allocation60_spill] sm:$0xff]  ;;  %v7304_v51 = vld [vmem:[#allocation61_spill] sm:$0xff] }
 0x7ae   :  { %3085 = vmatprep.subr.bf16.mxu1 %v7294_v2  ;;  %v7305_v2 = vld [vmem:[#allocation62_spill] sm:$0xff] }
 0x7b0   :  { %3045 = vmatpush2.bf16.msra.mxu0 %v7295_v17  ;;  %v7306_v17 = vld [vmem:[#allocation63_spill] sm:$0xff] }
 0x7b1   :  { %3086 = vmatpush2.bf16.msra.mxu1 %v7296_v31  ;;  %3046 = vmatprep.subr.bf16.mxu0 %v7297_v39  ;;  %v7307_v31 = vld [vmem:[#allocation64_spill] sm:$0xff]  ;;  %v7308_v39 = vld [vmem:[#allocation65_spill] sm:$0xff] }
 0x7b2   :  { %3087 = vmatprep.subr.bf16.mxu1 %v7298_v4  ;;  %v7309_v4 = vld [vmem:[#allocation66_spill] sm:$0xff] }
 0x7b4   :  { %3047 = vmatpush2.bf16.msra.mxu0 %v7299_v59  ;;  %v7310_v59 = vld [vmem:[#allocation67_spill] sm:$0xff] }
 0x7b5   :  { %3088 = vmatpush2.bf16.msra.mxu1 %v7300_v58  ;;  %3048 = vmatprep.subr.bf16.mxu0 %v7301_v49  ;;  %v7311_v58 = vld [vmem:[#allocation68_spill] sm:$0xff]  ;;  %v7312_v49 = vld [vmem:[#allocation69_spill] sm:$0xff] }
 0x7b6   :  { %3089 = vmatprep.subr.bf16.mxu1 %v7302_v41  ;;  %v7313_v41 = vld [vmem:[#allocation70_spill] sm:$0xff] }
 0x7b8   :  { %3049 = vmatpush2.bf16.msra.mxu0 %v7303_v12  ;;  %v7314_v12 = vld [vmem:[#allocation71_spill] sm:$0xff] }
 0x7b9   :  { %3090 = vmatpush2.bf16.msra.mxu1 %v7304_v51  ;;  %3050 = vmatprep.subr.bf16.mxu0 %v7305_v2  ;;  %v7315_v51 = vld [vmem:[#allocation72_spill] sm:$0xff]  ;;  %v7316_v2 = vld [vmem:[#allocation73_spill] sm:$0xff] }
 0x7ba   :  { %3091 = vmatprep.subr.bf16.mxu1 %v7306_v17  ;;  %v7317_v17 = vld [vmem:[#allocation74_spill] sm:$0xff] }
 0x7bc   :  { %3051 = vmatpush2.bf16.msra.mxu0 %v7307_v31  ;;  %v7318_v31 = vld [vmem:[#allocation75_spill] sm:$0xff] }
 0x7bd   :  { %3092 = vmatpush2.bf16.msra.mxu1 %v7308_v39  ;;  %3052 = vmatprep.subr.bf16.mxu0 %v7309_v4 }
 0x7be   :  { %3093 = vmatprep.subr.bf16.mxu1 %v7310_v59 }
 0x7c0   :  { %3053 = vmatpush2.bf16.msra.mxu0 %v7311_v58 }
 0x7c1   :  { %3094 = vmatpush2.bf16.msra.mxu1 %v7312_v49  ;;  %3054 = vmatprep.subr.bf16.mxu0 %v7313_v41  ;;  %v3622_v41 = vld [vmem:[%s6365_s0 + $0x180] sm:$0xff] }
 0x7c2   :  { %3095 = vmatprep.subr.bf16.mxu1 %v7314_v12  ;;  %v3624_v12 = vld [vmem:[%s6365_s0 + $0x190] sm:$0xff] }
 0x7c4   :  { %3055 = vmatpush2.bf16.msra.mxu0 %v7315_v51  ;;  %v3623_v51 = vld [vmem:[%s6365_s0 + $0x188] sm:$0xff] }
 0x7c5   :  { %3096 = vmatpush2.bf16.msra.mxu1 %v7316_v2  ;;  %3106 = vmatprep.subr.bf16.mxu0 %v7317_v17 }
 0x7c6   :  { %3147 = vmatprep.subr.bf16.mxu1 %v7318_v31 }
 0x807   :  { %v2743_v39 = vpop.f32.mrf.mxu0  ;;  %v2784_v4 = vpop.f32.mrf.mxu1 }
 0x808   :  { %v2873_v2 = vadd.f32 %v3622_v41, %v2743_v39  ;;  %v2875_v17 = vadd.f32 %v3624_v12, %v2784_v4 }
 0x809   :  { %v2745_v3 = vpop.f32.mrf.mxu0  ;;  %v2786_v59 = vpop.f32.mrf.mxu1 }
 0x80b   :  { %v2747_v23 = vpop.f32.mrf.mxu0  ;;  %v2788_v58 = vpop.f32.mrf.mxu1 }
 0x80c   :  { %v3625_v23 = vld [vmem:[%s6365_s0 + $0x198] sm:$0xff]  ;;  %v3630_v58 = vmul.f32 -1.442695, %v2873_v2 }
 0x80d   :  { %v2748_v47 = vpop.f32.mrf.mxu0  ;;  %v2789_v49 = vpop.f32.mrf.mxu1  ;;  %v2876_v31 = vadd.f32 %v3625_v23, %v2786_v59  ;;  %v3628_v59 = vld [vmem:[%s6365_s0 + $0x1b0] sm:$0xff] }
 0x80e   :  { %v2874_v47 = vadd.f32 %v3623_v51, %v2745_v3  ;;  %v3632_v49 = vmul.f32 -1.442695, %v2875_v17  ;;  %3861 = vpow2.f32 %v3630_v58  ;;  %v3626_v3 = vld [vmem:[%s6365_s0 + $0x1a0] sm:$0xff] }
 0x80f   :  { %v3633_v38 = vmul.f32 -1.442695, %v2876_v31 }
 0x810   :  { %v3631_v53 = vmul.f32 -1.442695, %v2874_v47  ;;  %3863 = vpow2.f32 %v3632_v49 }
 0x812   :  { %3865 = vpow2.f32 %v3631_v53 }
 0x813   :  { %3867 = vpow2.f32 %v3633_v38  ;;  %v3627_v38 = vld [vmem:[%s6365_s0 + $0x1a8] sm:$0xff] }
 0x81b   :  { %v3862_v15 = vpop.eup %3861 }
 0x81c   :  { %v2887_v39 = vadd.f32 1.0, %v3862_v15 }
 0x81d   :  { %v3864_v24 = vpop.eup %3863 }
 0x81e   :  { %v2899_v41 = vadd.f32 1.0, %v3864_v24  ;;  %3869 = vrcp.f32 %v2887_v39 }
 0x81f   :  { %v3866_v56 = vpop.eup %3865 }
 0x820   :  { %v3868_v37 = vpop.eup %3867  ;;  %v2888_v0 = vadd.f32 1.0, %v3866_v56  ;;  %3871 = vrcp.f32 %v2899_v41  ;;  %v3629_v56 = vld [vmem:[%s6365_s0 + $0x1b8] sm:$0xff] }
 0x821   :  { %v2900_v4 = vadd.f32 1.0, %v3868_v37 }
 0x822   :  { %3873 = vrcp.f32 %v2888_v0 }
 0x823   :  { %3875 = vrcp.f32 %v2900_v4 }
 0x82b   :  { %v3870_v41 = vpop.eup %3869 }
 0x847   :  { %v2825_v12 = vpop.f32.mrf.mxu0 }
 0x848   :  { %v2877_v53 = vadd.f32 %v3626_v3, %v2825_v12  ;;  %v2866_v15 = vpop.f32.mrf.mxu1  ;;  %v3872_v3 = vpop.eup %3871 }
 0x849   :  { %v2879_v24 = vadd.f32 %v3628_v59, %v2866_v15  ;;  %v2827_v37 = vpop.f32.mrf.mxu0  ;;  %v3874_v12 = vpop.eup %3873  ;;  %v2919_v4 = vmul.f32 %v3872_v3, %v5954_v13 }
 0x84a   :  { %v3634_v51 = vmul.f32 -1.442695, %v2877_v53  ;;  %v2878_v2 = vadd.f32 %v3627_v38, %v2827_v37  ;;  %v2868_v23 = vpop.f32.mrf.mxu1  ;;  %v3876_v0 = vpop.eup %3875 }
 0x84b   :  { %3877 = vtanh.f32 %v2879_v24  ;;  %v2880_v17 = vadd.f32 %v3629_v56, %v2868_v23  ;;  %v2829_v47 = vpop.f32.mrf.mxu0 }
 0x84c   :  { %3879 = vpow2.f32 %v3634_v51  ;;  %v3635_v31 = vmul.f32 -1.442695, %v2878_v2  ;;  %v2870_v58 = vpop.f32.mrf.mxu1  ;;  %v2920_v51 = vmul.f32 %v3876_v0, %v5958_v57 }
 0x84d   :  { %3881 = vtanh.f32 %v2880_v17  ;;  %v2830_v49 = vpop.f32.mrf.mxu0 }
 0x84e   :  { %3883 = vpow2.f32 %v3635_v31  ;;  %v2871_v39 = vpop.f32.mrf.mxu1 }
 0x858   :  { %v3878_v59 = vpop.eup %3877 }
 0x859   :  { %v3880_v15 = vpop.eup %3879  ;;  %v2921_v38 = vmul.f32 %v3878_v59, %v3870_v41 }
 0x85a   :  { %v3882_v53 = vpop.eup %3881  ;;  %v2911_v24 = vadd.f32 1.0, %v3880_v15 }
 0x85b   :  { %v3884_v56 = vpop.eup %3883  ;;  %v6166_v37 = vadd.f32 %v2921_v38, %v2919_v4  ;;  %v2922_v2 = vmul.f32 %v3882_v53, %v3874_v12 }
 0x85c   :  { %3885 = vrcp.f32 %v2911_v24  ;;  %v2912_v23 = vadd.f32 1.0, %v3884_v56 }
 0x85d   :  { %3887 = vtanh.f32 %v6166_v37  ;;  %v6170_v17 = vadd.f32 %v2922_v2, %v2920_v51 }
 0x85e   :  { %3889 = vrcp.f32 %v2912_v23 }
 0x85f   :  { %3891 = vtanh.f32 %v6170_v17 }
 0x869   :  { %v3886_v47 = vpop.eup %3885 }
 0x86a   :  { %v3888_v13 = vpop.eup %3887 }
 0x86b   :  { %v3890_v31 = vpop.eup %3889  ;;  %v2927_v49 = vmul.f32 %v3888_v13, %v3886_v47 }
 0x86c   :  { %v3892_v58 = vpop.eup %3891 }
 0x86d   :  { %v2928_v39 = vmul.f32 %v3892_v58, %v3890_v31  ;;  %v6173_v57 = vpack.c.bf16 %v2927_v49, %v2927_v49 }
 0x86f   :  { %v3023_v41 = vpack.c.bf16 %v2928_v39, %v2928_v39  ;;  %v2931_v3 = vcombine.low %v2927_v49, %v2928_v39  ;;  %v2932_v59 = vcombine.high %v2927_v49, %v2928_v39 }
 0x871   :  { %3056 = vmatprep.mubr.bf16.mxu0 %v3023_v41  ;;  %3097 = vmatprep.mubr.bf16.mxu1 %v3023_v41  ;;  %v2939_v12 = vrot.slane %v2931_v3, %v4895_v25  ;;  %v2946_v0 = vrot.slane %v2932_v59, %v4895_v25 }
 0x872   :  { %3057 = vmatmul.mubr.bf16.vlgmr.msra.gmra.mxu0 %v6173_v57  ;;  %3098 = vmatmul.mubr.bf16.vlgmr.msra.gmra.mxu1 %v6173_v57 }
 0x873   :  { %v2947_v15 = vcombine.high %v2939_v12, %v2939_v12  ;;  %v2948_v4 = vcombine.high %v2946_v0, %v2946_v0  ;;  %v2955_v38 = vrot.slane %v2939_v12, %v4895_v25  ;;  %v2962_v53 = vrot.slane %v2946_v0, %v4895_v25  ;;  %3107 = vmatpush1.bf16.msra.mxu0 %v4430_v46 }
 0x874   :  { %3148 = vmatpush1.bf16.msra.mxu1 %v6789_v11  ;;  %3138 = vmatprep.mubr.bf16.mxu0 %v3023_v41 }
 0x875   :  { %v2969_v24 = vrot.slane %v2947_v15, %v4895_v25  ;;  %v2976_v56 = vrot.slane %v2948_v4, %v4895_v25  ;;  %v2977_v51 = vcombine.high %v2955_v38, %v2955_v38  ;;  %v2978_v2 = vcombine.high %v2962_v53, %v2962_v53  ;;  %3636 = vst.msk [vmem:[%s6369_s4 + $0x6] ss:$8 sm:$0x3] %vm4901_vm0, %v2955_v38  ;;  %v3648_v15 = vld [vmem:[%s6365_s0 + $0x1e0] sm:$0xff]  ;;  %v3650_v38 = vld [vmem:[%s6365_s0 + $0x1f0] sm:$0xff] }
 0x876   :  { %3640 = vst.msk [vmem:[%s6369_s4 + $0x46] ss:$8 sm:$0x3] %vm4901_vm0, %v2962_v53  ;;  %3179 = vmatprep.mubr.bf16.mxu1 %v3023_v41  ;;  %3108 = vmatprep.subr.bf16.mxu0 %v6790_v55  ;;  %v7319_v55 = vld [vmem:[#allocation114_spill] sm:$0xff] }
 0x877   :  { %3149 = vmatprep.subr.bf16.mxu1 %v6791_v32  ;;  %v2979_v46 = vcombine.high %v2969_v24, %v2969_v24  ;;  %v2980_v11 = vcombine.high %v2976_v56, %v2976_v56  ;;  %3637 = vst.msk [vmem:[%s6369_s4 + $0x16] ss:$8 sm:$0x3] %vm4901_vm0, %v2969_v24  ;;  %3638 = vst.msk [vmem:[%s6369_s4 + $0x26] ss:$8 sm:$0x3] %vm4901_vm0, %v2977_v51  ;;  %3109 = vmatpush1.bf16.msra.mxu0 %v6792_v22 }
 0x878   :  { %3641 = vst.msk [vmem:[%s6369_s4 + $0x56] ss:$8 sm:$0x3] %vm4901_vm0, %v2976_v56  ;;  %3642 = vst.msk [vmem:[%s6369_s4 + $0x66] ss:$8 sm:$0x3] %vm4901_vm0, %v2978_v2  ;;  %3150 = vmatpush1.bf16.msra.mxu1 %v6793_v33  ;;  %3110 = vmatprep.subr.bf16.mxu0 %v6874_v30 }
 0x879   :  { %3639 = vst.msk [vmem:[%s6369_s4 + $0x36] ss:$8 sm:$0x3] %vm4901_vm0, %v2979_v46  ;;  %3643 = vst.msk [vmem:[%s6369_s4 + $0x76] ss:$8 sm:$0x3] %vm4901_vm0, %v2980_v11  ;;  %3151 = vmatprep.subr.bf16.mxu1 %v6875_v54 }
 0x87a   :  { %v7320_v32 = vld [vmem:[#allocation115_spill] sm:$0xff]  ;;  %v7321_v22 = vld [vmem:[#allocation116_spill] sm:$0xff]  ;;  %v7322_v33 = vld [vmem:[#allocation117_spill] sm:$0xff] }
 0x87b   :  { %3111 = vmatpush1.bf16.msra.mxu0 %v6876_v43  ;;  %v7323_v30 = vld [vmem:[#allocation118_spill] sm:$0xff]  ;;  %v7324_v54 = vld [vmem:[#allocation119_spill] sm:$0xff]  ;;  %v7325_v43 = vld [vmem:[#allocation120_spill] sm:$0xff] }
 0x87c   :  { %3152 = vmatpush1.bf16.msra.mxu1 %v6877_v60  ;;  %3112 = vmatprep.subr.bf16.mxu0 %v6878_v50  ;;  %v7326_v60 = vld [vmem:[#allocation121_spill] sm:$0xff]  ;;  %v7327_v50 = vld [vmem:[#allocation122_spill] sm:$0xff]  ;;  %v3649_v24 = vld [vmem:[%s6365_s0 + $0x1e8] sm:$0xff] }
 0x87d   :  { %3153 = vmatprep.subr.bf16.mxu1 %v6879_v62  ;;  %v7328_v62 = vld [vmem:[#allocation123_spill] sm:$0xff]  ;;  %v3651_v2 = vld [vmem:[%s6365_s0 + $0x1f8] sm:$0xff] }
 0x87f   :  { %3113 = vmatpush1.bf16.msra.mxu0 %v6880_v45  ;;  %v7329_v45 = vld [vmem:[#allocation124_spill] sm:$0xff] }
 0x880   :  { %3154 = vmatpush1.bf16.msra.mxu1 %v6881_v52  ;;  %3114 = vmatprep.subr.bf16.mxu0 %v6882_v61  ;;  %v7330_v52 = vld [vmem:[#allocation125_spill] sm:$0xff]  ;;  %v7331_v61 = vld [vmem:[#allocation126_spill] sm:$0xff] }
 0x881   :  { %3155 = vmatprep.subr.bf16.mxu1 %v6963_v29  ;;  %v7341_v29 = vld [vmem:[#allocation136_spill] sm:$0xff] }
 0x883   :  { %3115 = vmatpush1.bf16.msra.mxu0 %v6964_v9 }
 0x884   :  { %3156 = vmatpush1.bf16.msra.mxu1 %v6965_v1  ;;  %3116 = vmatprep.subr.bf16.mxu0 %v6966_v10 }
 0x885   :  { %3157 = vmatprep.subr.bf16.mxu1 %v6967_v18 }
 0x887   :  { %3117 = vmatpush1.bf16.msra.mxu0 %v6968_v27 }
 0x888   :  { %3158 = vmatpush1.bf16.msra.mxu1 %v6969_v8  ;;  %3118 = vmatprep.subr.bf16.mxu0 %v6970_v20 }
 0x889   :  { %3159 = vmatprep.subr.bf16.mxu1 %v6971_v14 }
 0x88b   :  { %3119 = vmatpush1.bf16.msra.mxu0 %v6972_v16  ;;  %v3644_v16 = vld [vmem:[%s6365_s0 + $0x1c0] sm:$0xff] }
 0x88c   :  { %3160 = vmatpush1.bf16.msra.mxu1 %v6973_v26  ;;  %3120 = vmatprep.subr.bf16.mxu0 %v6974_v5  ;;  %v3646_v26 = vld [vmem:[%s6365_s0 + $0x1d0] sm:$0xff]  ;;  %v3645_v5 = vld [vmem:[%s6365_s0 + $0x1c8] sm:$0xff] }
 0x88d   :  { %3161 = vmatprep.subr.bf16.mxu1 %v6975_v19 }
 0x88f   :  { %3121 = vmatpush1.bf16.msra.mxu0 %v6976_v21  ;;  %v3647_v21 = vld [vmem:[%s6365_s0 + $0x1d8] sm:$0xff]  ;;  %s3970_s0 = smov [#allocation6]  }
 0x890   :  { %3162 = vmatpush1.bf16.msra.mxu1 %v6977_v48  ;;  %3122 = vmatprep.subr.bf16.mxu0 %v6898_v42  ;;  %v7334_v42 = vld [vmem:[#allocation129_spill] sm:$0xff]  ;;  %s3357_s12 = sshll.u32 %s3970_s0, 4  ;;  %s3358_s12 = int_to_ptr.vmem [resolvable:$true] %s3357_s12 }
 0x891   :  { %3163 = vmatprep.subr.bf16.mxu1 %v6899_v35  ;;  %v7335_v35 = vld [vmem:[#allocation130_spill] sm:$0xff]  ;;  %s3925_s13 = scalar_lea.vmem %s3358_s12, 256  ;;  %p3930_p1 = scmp.lt.s32.totalorder %s3358_s12, %s3358_s12 }
 0x892   :  { %p3926_p0 = scmp.ne.s32.totalorder %s3358_s12, %s3925_s13  ;;  %p3931_p2 = scmp.lt.s32.totalorder %s3925_s13, %s3925_s13 }
 0x893   :  { %3123 = vmatpush2.bf16.msra.mxu0 %v6900_v34  ;;  %v7336_v34 = vld [vmem:[#allocation131_spill] sm:$0xff] }
 0x894   :  { %3164 = vmatpush2.bf16.msra.mxu1 %v6901_v63  ;;  %3124 = vmatprep.subr.bf16.mxu0 %v6902_v6  ;;  %v7337_v63 = vld [vmem:[#allocation132_spill] sm:$0xff]  ;;  %v7338_v6 = vld [vmem:[#allocation133_spill] sm:$0xff]  ;;  %p3932_p3 = por %p3931_p2, %p3930_p1 }
 0x895   :  { %3165 = vmatprep.subr.bf16.mxu1 %v6903_v7  ;;  %v7339_v7 = vld [vmem:[#allocation134_spill] sm:$0xff] }
 0x896   :  { %p3933_p4 = pnand %p3932_p3, %p3926_p0 }
 0x897   :  { %3125 = vmatpush2.bf16.msra.mxu0 %v6904_v44  ;;  %v7340_v44 = vld [vmem:[#allocation135_spill] sm:$0xff] }
 0x898   :  { %3166 = vmatpush2.bf16.msra.mxu1 %v6905_v28  ;;  %3126 = vmatprep.subr.bf16.mxu0 %v6906_v36  ;;  %v7332_v28 = vld [vmem:[#allocation127_spill] sm:$0xff]  ;;  %v7333_v36 = vld [vmem:[#allocation128_spill] sm:$0xff] }
 0x899   :  { %3167 = vmatprep.subr.bf16.mxu1 %v7319_v55 }
 0x89b   :  { %3127 = vmatpush2.bf16.msra.mxu0 %v7320_v32 }
 0x89c   :  { %3168 = vmatpush2.bf16.msra.mxu1 %v7321_v22  ;;  %3128 = vmatprep.subr.bf16.mxu0 %v7322_v33 }
 0x89d   :  { %3169 = vmatprep.subr.bf16.mxu1 %v7323_v30 }
 0x89f   :  { %3129 = vmatpush2.bf16.msra.mxu0 %v7324_v54 }
 0x8a0   :  { %3170 = vmatpush2.bf16.msra.mxu1 %v7325_v43  ;;  %3130 = vmatprep.subr.bf16.mxu0 %v7326_v60 }
 0x8a1   :  { %3171 = vmatprep.subr.bf16.mxu1 %v7327_v50 }
 0x8a3   :  { %3131 = vmatpush2.bf16.msra.mxu0 %v7328_v62 }
 0x8a4   :  { %3172 = vmatpush2.bf16.msra.mxu1 %v7329_v45  ;;  %3132 = vmatprep.subr.bf16.mxu0 %v7330_v52 }
 0x8a5   :  { %3173 = vmatprep.subr.bf16.mxu1 %v7331_v61 }
 0x8a7   :  { %3133 = vmatpush2.bf16.msra.mxu0 %v7332_v28 }
 0x8a8   :  { %3174 = vmatpush2.bf16.msra.mxu1 %v7333_v36  ;;  %3134 = vmatprep.subr.bf16.mxu0 %v7334_v42 }
 0x8a9   :  { %3175 = vmatprep.subr.bf16.mxu1 %v7335_v35 }
 0x8ab   :  { %3135 = vmatpush2.bf16.msra.mxu0 %v7336_v34 }
 0x8ac   :  { %3176 = vmatpush2.bf16.msra.mxu1 %v7337_v63  ;;  %3136 = vmatprep.subr.bf16.mxu0 %v7338_v6 }
 0x8ad   :  { %3177 = vmatprep.subr.bf16.mxu1 %v7339_v7 }
 0x8af   :  { %3137 = vmatpush2.bf16.msra.mxu0 %v7340_v44 }
 0x8b0   :  { %3178 = vmatpush2.bf16.msra.mxu1 %v7341_v29 }
 0x8b2   :  { %3139 = vmatmul.mubr.bf16.vlgmr.msra.gmra.mxu0 %v6173_v57 }
 0x8b3   :  { %3180 = vmatmul.mubr.bf16.vlgmr.msra.gmra.mxu1 %v6173_v57 }
 0x932   :  { %v3058_v9 = vpop.f32.mrf.mxu0  ;;  %v3099_v1 = vpop.f32.mrf.mxu1 }
 0x933   :  { %v3188_v19 = vadd.f32 %v3644_v16, %v3058_v9  ;;  %v3190_v48 = vadd.f32 %v3646_v26, %v3099_v1 }
 0x934   :  { %v3060_v10 = vpop.f32.mrf.mxu0  ;;  %v3101_v18 = vpop.f32.mrf.mxu1 }
 0x935   :  { %v3189_v23 = vadd.f32 %v3645_v5, %v3060_v10  ;;  %v3191_v47 = vadd.f32 %v3647_v21, %v3101_v18  ;;  %v3652_v13 = vmul.f32 -1.442695, %v3188_v19  ;;  %v3654_v31 = vmul.f32 -1.442695, %v3190_v48 }
 0x936   :  { %v3062_v27 = vpop.f32.mrf.mxu0  ;;  %v3103_v8 = vpop.f32.mrf.mxu1 }
 0x937   :  { %v3653_v58 = vmul.f32 -1.442695, %v3189_v23  ;;  %v3655_v49 = vmul.f32 -1.442695, %v3191_v47  ;;  %3893 = vpow2.f32 %v3652_v13 }
 0x938   :  { %v3063_v20 = vpop.f32.mrf.mxu0  ;;  %v3104_v14 = vpop.f32.mrf.mxu1  ;;  %3895 = vpow2.f32 %v3654_v31 }
 0x939   :  { %3897 = vpow2.f32 %v3653_v58 }
 0x93a   :  { %3899 = vpow2.f32 %v3655_v49 }
 0x944   :  { %v3894_v39 = vpop.eup %3893 }
 0x945   :  { %v3896_v41 = vpop.eup %3895  ;;  %v3202_v57 = vadd.f32 1.0, %v3894_v39 }
 0x946   :  { %v3898_v3 = vpop.eup %3897  ;;  %v3214_v12 = vadd.f32 1.0, %v3896_v41 }
 0x947   :  { %v3900_v59 = vpop.eup %3899  ;;  %v3203_v0 = vadd.f32 1.0, %v3898_v3  ;;  %3901 = vrcp.f32 %v3202_v57 }
 0x948   :  { %v3215_v4 = vadd.f32 1.0, %v3900_v59  ;;  %3903 = vrcp.f32 %v3214_v12 }
 0x949   :  { %3905 = vrcp.f32 %v3203_v0 }
 0x94a   :  { %3907 = vrcp.f32 %v3215_v4 }
 0x954   :  { %v3902_v62 = vpop.eup %3901 }
 0x955   :  { %v3904_v45 = vpop.eup %3903 }
 0x956   :  { %v3906_v52 = vpop.eup %3905  ;;  %v3234_v42 = vmul.f32 %v3904_v45, %v6166_v37 }
 0x957   :  { %v3908_v61 = vpop.eup %3907 }
 0x958   :  { %v3235_v44 = vmul.f32 %v3908_v61, %v6170_v17 }
 0x972   :  { %v3140_v53 = vpop.f32.mrf.mxu0 }
 0x973   :  { %v3192_v56 = vadd.f32 %v3648_v15, %v3140_v53  ;;  %v3181_v51 = vpop.f32.mrf.mxu1 }
 0x974   :  { %v3194_v46 = vadd.f32 %v3650_v38, %v3181_v51  ;;  %v3142_v11 = vpop.f32.mrf.mxu0 }
 0x975   :  { %v3656_v55 = vmul.f32 -1.442695, %v3192_v56  ;;  %v3193_v32 = vadd.f32 %v3649_v24, %v3142_v11  ;;  %v3183_v22 = vpop.f32.mrf.mxu1 }
 0x976   :  { %3909 = vtanh.f32 %v3194_v46  ;;  %v3195_v33 = vadd.f32 %v3651_v2, %v3183_v22  ;;  %v3144_v30 = vpop.f32.mrf.mxu0 }
 0x977   :  { %3911 = vpow2.f32 %v3656_v55  ;;  %v3657_v54 = vmul.f32 -1.442695, %v3193_v32  ;;  %v3185_v43 = vpop.f32.mrf.mxu1 }
 0x978   :  { %3913 = vtanh.f32 %v3195_v33  ;;  %v3145_v60 = vpop.f32.mrf.mxu0 }
 0x979   :  { %3915 = vpow2.f32 %v3657_v54  ;;  %v3186_v50 = vpop.f32.mrf.mxu1 }
 0x983   :  { %v3910_v28 = vpop.eup %3909 }
 0x984   :  { %v3912_v36 = vpop.eup %3911  ;;  %v3236_v35 = vmul.f32 %v3910_v28, %v3902_v62 }
 0x985   :  { %v3914_v34 = vpop.eup %3913  ;;  %v3226_v63 = vadd.f32 1.0, %v3912_v36 }
 0x986   :  { %v3916_v6 = vpop.eup %3915  ;;  %v3238_v7 = vadd.f32 %v3236_v35, %v3234_v42  ;;  %v3237_v29 = vmul.f32 %v3914_v34, %v3906_v52 }
 0x987   :  { %3917 = vrcp.f32 %v3226_v63  ;;  %v3227_v9 = vadd.f32 1.0, %v3916_v6 }
 0x988   :  { %3919 = vtanh.f32 %v3238_v7  ;;  %3337 = vst [vmem:[#allocation6] sm:$0xff] %v3238_v7  ;;  %v3239_v1 = vadd.f32 %v3237_v29, %v3235_v44 }
 0x989   :  { %3921 = vrcp.f32 %v3227_v9 }
 0x98a   :  { %3923 = vtanh.f32 %v3239_v1  ;;  %3338 = vst [vmem:[#allocation6 + $0x8] sm:$0xff] %v3239_v1 }
 0x98b   :  { %3936 = shalt.err (!%p3933_p4)
}
 0x98c   :  { %3360 = dma.vmem_to_hbm [thread:$0]  %s3358_s12, 256, %s6371_s6, [#allocation7]  }
 0x98d   :  { %s3971_s16 = smov [#allocation4]  }
 0x98e   :  { %s3347_s17 = sshll.u32 %s3971_s16, 4  ;;  %s3348_s17 = int_to_ptr.vmem [resolvable:$true] %s3347_s17 }
 0x98f   :  { %s3945_s18 = scalar_lea.vmem %s3348_s17, 256  ;;  %p3950_p6 = scmp.lt.s32.totalorder %s3348_s17, %s3348_s17 }
 0x990   :  { %p3946_p5 = scmp.ne.s32.totalorder %s3348_s17, %s3945_s18  ;;  %p3951_p7 = scmp.lt.s32.totalorder %s3945_s18, %s3945_s18 }
 0x992   :  { %p3952_p8 = por %p3951_p7, %p3950_p6 }
 0x994   :  { %v3918_v37 = vpop.eup %3917  ;;  %p3953_p9 = pnand %p3952_p8, %p3946_p5 }
 0x995   :  { %v3920_v17 = vpop.eup %3919 }
 0x996   :  { %v3922_v10 = vpop.eup %3921  ;;  %v3242_v18 = vmul.f32 %v3920_v17, %v3918_v37 }
 0x997   :  { %v3924_v27 = vpop.eup %3923 }
 0x998   :  { %v3243_v8 = vmul.f32 %v3924_v27, %v3922_v10  ;;  %3335 = vst [vmem:[#allocation4] sm:$0xff] %v3242_v18 }
 0x99a   :  { %v3246_v20 = vcombine.low %v3242_v18, %v3243_v8  ;;  %v3247_v14 = vcombine.high %v3242_v18, %v3243_v8  ;;  %3336 = vst [vmem:[#allocation4 + $0x8] sm:$0xff] %v3243_v8 }
 0x99b   :  { %3956 = shalt.err (!%p3953_p9)
}
 0x99c   :  { %3350 = dma.vmem_to_hbm [thread:$0]  %s3348_s17, 256, %s6370_s5, [#allocation5]   ;;  %v3254_v16 = vrot.slane %v3246_v20, %v4895_v25  ;;  %v3261_v26 = vrot.slane %v3247_v14, %v4895_v25 }
 0x99e   :  { %v3262_v5 = vcombine.high %v3254_v16, %v3254_v16  ;;  %v3263_v19 = vcombine.high %v3261_v26, %v3261_v26  ;;  %v3270_v21 = vrot.slane %v3254_v16, %v4895_v25  ;;  %v3277_v48 = vrot.slane %v3261_v26, %v4895_v25 }
 0x9a0   :  { %v3284_v23 = vrot.slane %v3262_v5, %v4895_v25  ;;  %v3291_v47 = vrot.slane %v3263_v19, %v4895_v25  ;;  %v3292_v13 = vcombine.high %v3270_v21, %v3270_v21  ;;  %v3293_v31 = vcombine.high %v3277_v48, %v3277_v48  ;;  %3658 = vst.msk [vmem:[%s6369_s4 + $0x7] ss:$8 sm:$0x3] %vm4901_vm0, %v3270_v21 }
 0x9a1   :  { %3662 = vst.msk [vmem:[%s6369_s4 + $0x47] ss:$8 sm:$0x3] %vm4901_vm0, %v3277_v48 }
 0x9a2   :  { %v3294_v58 = vcombine.high %v3284_v23, %v3284_v23  ;;  %v3295_v49 = vcombine.high %v3291_v47, %v3291_v47  ;;  %3659 = vst.msk [vmem:[%s6369_s4 + $0x17] ss:$8 sm:$0x3] %vm4901_vm0, %v3284_v23  ;;  %3660 = vst.msk [vmem:[%s6369_s4 + $0x27] ss:$8 sm:$0x3] %vm4901_vm0, %v3292_v13 }
 0x9a3   :  { %3663 = vst.msk [vmem:[%s6369_s4 + $0x57] ss:$8 sm:$0x3] %vm4901_vm0, %v3291_v47  ;;  %3664 = vst.msk [vmem:[%s6369_s4 + $0x67] ss:$8 sm:$0x3] %vm4901_vm0, %v3293_v31 }
 0x9a4   :  { %3661 = vst.msk [vmem:[%s6369_s4 + $0x37] ss:$8 sm:$0x3] %vm4901_vm0, %v3294_v58  ;;  %3665 = vst.msk [vmem:[%s6369_s4 + $0x77] ss:$8 sm:$0x3] %vm4901_vm0, %v3295_v49 }
 0x9a5   :  { %3965 = dma.done.wait [#allocation5], 256  }
 0x9a6   :  { %3966 = vsyncadd [#allocation5], 4294967040 }
 0x9a7   :  { %3967 = dma.done.wait [#allocation7], 256  }
 0x9a8   :  { %3968 = vsyncadd [#allocation7], 4294967040 }
 0x9a9   :  { %3369 = vsyncpa [#allocation5], 1 }
 0x9aa   :  { %3370 = vsyncpa [#allocation7], 1 }

</bundles_post_ra>
